<compile_context>
chip_gen: v7x
topology: tpu7x:2x2x1
jax: 0.10.0
libtpu: 0.0.40
codegen_flags: <defaults>
</compile_context>

<pallas_src>
import functools

import jax
import jax.numpy as jnp
from jax import lax
from jax.experimental import pallas as pl
from jax.experimental.pallas import tpu as pltpu

_BN_EPS = 1e-5


# ----------------------------------------------------------------------------
# Fused EncoderBlock kernel: direct 4x4 stride-2 conv (4 tap matmuls over a
# space-to-depth slab) + bias + BatchNorm (batch stats) + LeakyReLU.
# ----------------------------------------------------------------------------
def _encoder_block_kernel(xs_ref, w_ref, b_ref, g_ref, be_ref, o_ref, *,
                          n, ho, wo, k, cout, slope):
    m = n * ho * wo
    acc = jnp.zeros((m, cout), jnp.float32)
    for t in range(4):                                   # 2x2 taps over the s2d slab
        qy, qx = t // 2, t % 2
        xt = xs_ref[:, qy:qy + ho, qx:qx + wo, :]        # (n, ho, wo, 4*cin) f32
        xt = xt.reshape(m, k).astype(jnp.bfloat16)
        acc = acc + jnp.dot(xt, w_ref[t], preferred_element_type=jnp.float32)
    acc = acc + b_ref[...]
    mean = jnp.mean(acc, axis=0, keepdims=True)
    var = jnp.mean((acc - mean) * (acc - mean), axis=0, keepdims=True)
    y = (acc - mean) * lax.rsqrt(var + _BN_EPS) * g_ref[...] + be_ref[...]
    o_ref[...] = jnp.where(y >= 0, y, slope * y)         # LeakyReLU(1) == identity


def encoder_block_forward(x4, p, slope=1.0):
    """x4: (N, H, W, Cin) f32 -> (N, H/2, W/2, Cout) f32."""
    n, h, w, cin = x4.shape
    ho, wo = h // 2, w // 2
    k = 4 * cin
    cout = p["w"].shape[-1]
    # pad + space-to-depth: a 4x4/stride-2/pad-1 conv over x == a 2x2/stride-1 conv over xs.
    xp = jnp.pad(x4, ((0, 0), (1, 1), (1, 1), (0, 0)))
    xs = xp.reshape(n, ho + 1, 2, wo + 1, 2, cin)
    xs = xs.transpose(0, 1, 3, 2, 4, 5).reshape(n, ho + 1, wo + 1, k)
    m = n * ho * wo
    y = pl.pallas_call(
        functools.partial(_encoder_block_kernel, n=n, ho=ho, wo=wo, k=k,
                          cout=cout, slope=float(slope)),
        out_shape=jax.ShapeDtypeStruct((m, cout), jnp.float32),
        in_specs=[
            pl.BlockSpec((n, ho + 1, wo + 1, k), lambda: (0, 0, 0, 0)),
            pl.BlockSpec((4, k, cout), lambda: (0, 0, 0)),
            pl.BlockSpec((1, cout), lambda: (0, 0)),
            pl.BlockSpec((1, cout), lambda: (0, 0)),
            pl.BlockSpec((1, cout), lambda: (0, 0)),
        ],
        out_specs=pl.BlockSpec((m, cout), lambda: (0, 0)),
    )(xs, p["w"], p["b"], p["gamma"], p["beta"])
    return y.reshape(n, ho, wo, cout)                    # free metadata reshape (NHWC-flat rows)


# ----------------------------------------------------------------------------
# Fused ResnetBlock kernel: conv3x3 -> BN -> ReLU -> conv3x3 -> BN -> +skip,
# with in-kernel zero padding kept in a VMEM scratch.
# ----------------------------------------------------------------------------
def _resnet_block_kernel(x_ref, w1_ref, b1_ref, g1_ref, be1_ref,
                         w2_ref, b2_ref, g2_ref, be2_ref, o_ref, xpad_ref, *,
                         n, h, w, c):
    m = n * h * w
    x = x_ref[...]                                       # (n, h, w, c) f32

    def conv3x3(w_taps_ref, bias_ref):
        acc = jnp.zeros((m, c), jnp.float32)
        for t in range(9):                               # 3x3 taps, stride 1
            dy, dx = t // 3, t % 3
            xt = xpad_ref[:, dy:dy + h, dx:dx + w, :]    # (n, h, w, c) f32
            xt = xt.reshape(m, c).astype(jnp.bfloat16)
            acc = acc + jnp.dot(xt, w_taps_ref[t], preferred_element_type=jnp.float32)
        return acc + bias_ref[...]

    def batchnorm(a, g_ref, be_ref):
        mean = jnp.mean(a, axis=0, keepdims=True)
        var = jnp.mean((a - mean) * (a - mean), axis=0, keepdims=True)
        return (a - mean) * lax.rsqrt(var + _BN_EPS) * g_ref[...] + be_ref[...]

    # zero-padded conv input lives in VMEM scratch; the border stays zero throughout.
    xpad_ref[...] = jnp.zeros_like(xpad_ref)
    xpad_ref[:, 1:h + 1, 1:w + 1, :] = x
    h1 = batchnorm(conv3x3(w1_ref, b1_ref), g1_ref, be1_ref)
    h1 = jnp.maximum(h1, 0.0)                            # ReLU
    xpad_ref[:, 1:h + 1, 1:w + 1, :] = h1.reshape(n, h, w, c)
    h2 = batchnorm(conv3x3(w2_ref, b2_ref), g2_ref, be2_ref)   # no activation
    o_ref[...] = x.reshape(m, c) + h2                    # identity skip


def resnet_block_forward(x4, p):
    n, h, w, c = x4.shape
    m = n * h * w
    y = pl.pallas_call(
        functools.partial(_resnet_block_kernel, n=n, h=h, w=w, c=c),
        out_shape=jax.ShapeDtypeStruct((m, c), jnp.float32),
        in_specs=[
            pl.BlockSpec((n, h, w, c), lambda: (0, 0, 0, 0)),
            pl.BlockSpec((9, c, c), lambda: (0, 0, 0)),
            pl.BlockSpec((1, c), lambda: (0, 0)),
            pl.BlockSpec((1, c), lambda: (0, 0)),
            pl.BlockSpec((1, c), lambda: (0, 0)),
            pl.BlockSpec((9, c, c), lambda: (0, 0, 0)),
            pl.BlockSpec((1, c), lambda: (0, 0)),
            pl.BlockSpec((1, c), lambda: (0, 0)),
            pl.BlockSpec((1, c), lambda: (0, 0)),
        ],
        out_specs=pl.BlockSpec((m, c), lambda: (0, 0)),
        scratch_shapes=[pltpu.VMEM((n, h + 2, w + 2, c), jnp.float32)],
    )(x4, p["w1"], p["b1"], p["g1"], p["be1"],
      p["w2"], p["b2"], p["g2"], p["be2"])
    return y.reshape(n, h, w, c)


# ----------------------------------------------------------------------------
# FC head (weights pre-permuted at init to consume the NHWC flatten).
# ----------------------------------------------------------------------------
def _fc_kernel(x_ref, w_ref, b_ref, o_ref):
    acc = jnp.dot(x_ref[...].astype(jnp.bfloat16), w_ref[...],
                  preferred_element_type=jnp.float32)
    o_ref[...] = acc + b_ref[...]


def fc_forward(x2, w, b):
    m, k = x2.shape
    nout = w.shape[-1]
    return pl.pallas_call(
        _fc_kernel,
        out_shape=jax.ShapeDtypeStruct((m, nout), jnp.float32),
        in_specs=[
            pl.BlockSpec((m, k), lambda: (0, 0)),
            pl.BlockSpec((k, nout), lambda: (0, 0)),
            pl.BlockSpec((1, nout), lambda: (0, 0)),
        ],
        out_specs=pl.BlockSpec((m, nout), lambda: (0, 0)),
    )(x2, w, b)


# ----------------------------------------------------------------------------
# Parameter init (PyTorch-style fan-in uniform) + weight pre-packing.
# ----------------------------------------------------------------------------
def _init_conv(key, out_c, in_c, ksize):
    k1, k2 = jax.random.split(key)
    fan_in = in_c * ksize * ksize
    bound = 1.0 / (fan_in ** 0.5)
    w = jax.random.uniform(k1, (out_c, in_c, ksize, ksize), jnp.float32, -bound, bound)
    b = jax.random.uniform(k2, (out_c,), jnp.float32, -bound, bound)
    return w, b


def _pack_conv4x4_s2(w):
    """(Cout, Cin, 4, 4) OIHW -> (4 taps, 4*Cin, Cout) bf16 matching the s2d channel layout."""
    cout, cin = w.shape[0], w.shape[1]
    w6 = w.reshape(cout, cin, 2, 2, 2, 2)                # (o, c, qy, py, qx, px)
    w6 = w6.transpose(2, 4, 3, 5, 1, 0)                  # (qy, qx, py, px, c, o)
    return w6.reshape(4, 4 * cin, cout).astype(jnp.bfloat16)


def _pack_conv3x3(w):
    """(Cout, Cin, 3, 3) OIHW -> (9 taps, Cin, Cout) bf16."""
    cout, cin = w.shape[0], w.shape[1]
    return w.transpose(2, 3, 1, 0).reshape(9, cin, cout).astype(jnp.bfloat16)


def init_encoder_params(key, image_size, in_channels, latent_dim, base_channels, num_layers):
    total_layers = num_layers + 1
    assert image_size % 2 ** total_layers == 0 and image_size > 0
    keys = jax.random.split(key, 64)
    ki = iter(range(64))
    layers = []

    def enc_block(in_c, out_c):
        w, b = _init_conv(keys[next(ki)], out_c, in_c, 4)
        return {"type": "enc", "w": _pack_conv4x4_s2(w), "b": b.reshape(1, out_c),
                "gamma": jnp.ones((1, out_c), jnp.float32),
                "beta": jnp.zeros((1, out_c), jnp.float32)}

    def res_block(c):
        w1, b1 = _init_conv(keys[next(ki)], c, c, 3)
        w2, b2 = _init_conv(keys[next(ki)], c, c, 3)
        ones, zeros = jnp.ones((1, c), jnp.float32), jnp.zeros((1, c), jnp.float32)
        return {"type": "res",
                "w1": _pack_conv3x3(w1), "b1": b1.reshape(1, c), "g1": ones, "be1": zeros,
                "w2": _pack_conv3x3(w2), "b2": b2.reshape(1, c), "g2": ones, "be2": zeros}

    layers.append(enc_block(in_channels, base_channels))
    for i in range(num_layers):
        c = base_channels * 2 ** i
        layers.append(res_block(c))
        layers.append(enc_block(c, c * 2))
    conv_out_channels = base_channels * 2 ** num_layers
    layers.append(res_block(conv_out_channels))

    hf = image_size // 2 ** total_layers
    fc_in = hf * hf * conv_out_channels
    bound = 1.0 / (fc_in ** 0.5)
    kw, kb = jax.random.split(keys[next(ki)])
    fc_w = jax.random.uniform(kw, (latent_dim, fc_in), jnp.float32, -bound, bound)
    fc_b = jax.random.uniform(kb, (latent_dim,), jnp.float32, -bound, bound)
    # pre-permute FC rows from PyTorch's NCHW flatten to our NHWC flatten and
    # pre-transpose to (fc_in, latent_dim) so the forward pass never transposes.
    fc_w = fc_w.reshape(latent_dim, conv_out_channels, hf, hf)
    fc_w = fc_w.transpose(2, 3, 1, 0).reshape(fc_in, latent_dim).astype(jnp.bfloat16)
    return {"layers": layers, "fc_w": fc_w, "fc_b": fc_b.reshape(1, latent_dim)}


# ----------------------------------------------------------------------------
# Forward pass (NHWC end-to-end; one transpose at the input).
# ----------------------------------------------------------------------------
def encoder_network_forward(params, x_nchw):
    x = x_nchw.transpose(0, 2, 3, 1)                     # single NCHW -> NHWC transpose
    for p in params["layers"]:
        if p["type"] == "enc":
            x = encoder_block_forward(x, p, slope=1.0)   # LeakyReLU(1)
        else:
            x = resnet_block_forward(x, p)
    n = x.shape[0]
    x_flat = x.reshape(n, -1)                            # NHWC flatten (fc_w pre-permuted to match)
    return fc_forward(x_flat, params["fc_w"], params["fc_b"])


# ----------------------------------------------------------------------------
if __name__ == "__main__":
    image_size = 16
    in_channels = 4
    base_channels = 4
    num_layers = 3
    latent_dim = 32
    batch = 2

    key = jax.random.PRNGKey(0)
    kp, kx = jax.random.split(key)
    params = init_encoder_params(kp, image_size, in_channels, latent_dim,
                                 base_channels, num_layers)
    x = jax.random.normal(kx, (batch, in_channels, image_size, image_size), jnp.float32)

    fwd = jax.jit(lambda inp: encoder_network_forward(params, inp))
    out = jax.block_until_ready(fwd(x))
    assert out.shape == (batch, latent_dim), out.shape
    assert bool(jnp.all(jnp.isfinite(out)))
    print("KERNEL_OK")
</pallas_src>

<mosaic_0001>
module attributes {stable_mosaic.version = 11 : i64} {
  func.func @_encoder_block_kernel(%arg0: memref<2x9x9x16xf32, #tpu.memory_space<vmem>>, %arg1: memref<4x16x4xbf16, #tpu.memory_space<vmem>>, %arg2: memref<1x4xf32, #tpu.memory_space<vmem>>, %arg3: memref<1x4xf32, #tpu.memory_space<vmem>>, %arg4: memref<1x4xf32, #tpu.memory_space<vmem>>, %arg5: memref<128x4xf32, #tpu.memory_space<vmem>>) attributes {dimension_semantics = [], scalar_prefetch = 0 : i64, scratch_operands = 0 : i64, tpu.core_type = #tpu.core_type<tc>} {
    %cst = arith.constant 0.000000e+00 : f32
    %0 = vector.broadcast %cst : f32 to vector<128x4xf32>
    %c0 = arith.constant 0 : index
    %c0_0 = arith.constant 0 : index
    %c0_1 = arith.constant 0 : index
    %c0_2 = arith.constant 0 : index
    %1 = vector.load %arg0[%c0, %c0_0, %c0_1, %c0_2] : memref<2x9x9x16xf32, #tpu.memory_space<vmem>>, vector<2x8x8x16xf32>
    %2 = vector.shape_cast %1 : vector<2x8x8x16xf32> to vector<128x16xf32>
    %3 = arith.truncf %2 : vector<128x16xf32> to vector<128x16xbf16>
    %c0_3 = arith.constant 0 : index
    %c0_4 = arith.constant 0 : index
    %c0_5 = arith.constant 0 : index
    %4 = vector.load %arg1[%c0_3, %c0_4, %c0_5] : memref<4x16x4xbf16, #tpu.memory_space<vmem>>, vector<1x16x4xbf16>
    %5 = vector.shape_cast %4 : vector<1x16x4xbf16> to vector<16x4xbf16>
    %cst_6 = arith.constant dense<0.000000e+00> : vector<128x4xf32>
    %6 = tpu.matmul %3, %5, %cst_6 {dimension_numbers = #tpu.dot_dimension_numbers<[1], [0], [0], [1], [0, 0, 1, 1], [], []>} : vector<128x16xbf16>, vector<16x4xbf16>, vector<128x4xf32> -> vector<128x4xf32>
    %7 = arith.addf %0, %6 : vector<128x4xf32>
    %c0_7 = arith.constant 0 : index
    %c0_8 = arith.constant 0 : index
    %c1 = arith.constant 1 : index
    %c0_9 = arith.constant 0 : index
    %8 = vector.load %arg0[%c0_7, %c0_8, %c1, %c0_9] : memref<2x9x9x16xf32, #tpu.memory_space<vmem>>, vector<2x8x8x16xf32>
    %9 = vector.shape_cast %8 : vector<2x8x8x16xf32> to vector<128x16xf32>
    %10 = arith.truncf %9 : vector<128x16xf32> to vector<128x16xbf16>
    %c1_10 = arith.constant 1 : index
    %c0_11 = arith.constant 0 : index
    %c0_12 = arith.constant 0 : index
    %11 = vector.load %arg1[%c1_10, %c0_11, %c0_12] : memref<4x16x4xbf16, #tpu.memory_space<vmem>>, vector<1x16x4xbf16>
    %12 = vector.shape_cast %11 : vector<1x16x4xbf16> to vector<16x4xbf16>
    %cst_13 = arith.constant dense<0.000000e+00> : vector<128x4xf32>
    %13 = tpu.matmul %10, %12, %cst_13 {dimension_numbers = #tpu.dot_dimension_numbers<[1], [0], [0], [1], [0, 0, 1, 1], [], []>} : vector<128x16xbf16>, vector<16x4xbf16>, vector<128x4xf32> -> vector<128x4xf32>
    %14 = arith.addf %7, %13 : vector<128x4xf32>
    %c0_14 = arith.constant 0 : index
    %c1_15 = arith.constant 1 : index
    %c0_16 = arith.constant 0 : index
    %c0_17 = arith.constant 0 : index
    %15 = vector.load %arg0[%c0_14, %c1_15, %c0_16, %c0_17] : memref<2x9x9x16xf32, #tpu.memory_space<vmem>>, vector<2x8x8x16xf32>
    %16 = vector.shape_cast %15 : vector<2x8x8x16xf32> to vector<128x16xf32>
    %17 = arith.truncf %16 : vector<128x16xf32> to vector<128x16xbf16>
    %c2 = arith.constant 2 : index
    %c0_18 = arith.constant 0 : index
    %c0_19 = arith.constant 0 : index
    %18 = vector.load %arg1[%c2, %c0_18, %c0_19] : memref<4x16x4xbf16, #tpu.memory_space<vmem>>, vector<1x16x4xbf16>
    %19 = vector.shape_cast %18 : vector<1x16x4xbf16> to vector<16x4xbf16>
    %cst_20 = arith.constant dense<0.000000e+00> : vector<128x4xf32>
    %20 = tpu.matmul %17, %19, %cst_20 {dimension_numbers = #tpu.dot_dimension_numbers<[1], [0], [0], [1], [0, 0, 1, 1], [], []>} : vector<128x16xbf16>, vector<16x4xbf16>, vector<128x4xf32> -> vector<128x4xf32>
    %21 = arith.addf %14, %20 : vector<128x4xf32>
    %c0_21 = arith.constant 0 : index
    %c1_22 = arith.constant 1 : index
    %c1_23 = arith.constant 1 : index
    %c0_24 = arith.constant 0 : index
    %22 = vector.load %arg0[%c0_21, %c1_22, %c1_23, %c0_24] : memref<2x9x9x16xf32, #tpu.memory_space<vmem>>, vector<2x8x8x16xf32>
    %23 = vector.shape_cast %22 : vector<2x8x8x16xf32> to vector<128x16xf32>
    %24 = arith.truncf %23 : vector<128x16xf32> to vector<128x16xbf16>
    %c3 = arith.constant 3 : index
    %c0_25 = arith.constant 0 : index
    %c0_26 = arith.constant 0 : index
    %25 = vector.load %arg1[%c3, %c0_25, %c0_26] : memref<4x16x4xbf16, #tpu.memory_space<vmem>>, vector<1x16x4xbf16>
    %26 = vector.shape_cast %25 : vector<1x16x4xbf16> to vector<16x4xbf16>
    %cst_27 = arith.constant dense<0.000000e+00> : vector<128x4xf32>
    %27 = tpu.matmul %24, %26, %cst_27 {dimension_numbers = #tpu.dot_dimension_numbers<[1], [0], [0], [1], [0, 0, 1, 1], [], []>} : vector<128x16xbf16>, vector<16x4xbf16>, vector<128x4xf32> -> vector<128x4xf32>
    %28 = arith.addf %21, %27 : vector<128x4xf32>
    %c0_28 = arith.constant 0 : index
    %c0_29 = arith.constant 0 : index
    %29 = vector.load %arg2[%c0_28, %c0_29] : memref<1x4xf32, #tpu.memory_space<vmem>>, vector<1x4xf32>
    %30 = vector.broadcast %29 : vector<1x4xf32> to vector<128x4xf32>
    %31 = arith.addf %28, %30 : vector<128x4xf32>
    %cst_30 = arith.constant dense<0.000000e+00> : vector<4xf32>
    %32 = vector.multi_reduction <add>, %31, %cst_30 [0] : vector<128x4xf32> to vector<4xf32>
    %33 = vector.shape_cast %32 : vector<4xf32> to vector<1x4xf32>
    %cst_31 = arith.constant 1.280000e+02 : f32
    %34 = vector.broadcast %cst_31 : f32 to vector<1x4xf32>
    %35 = arith.divf %33, %34 : vector<1x4xf32>
    %36 = vector.broadcast %35 : vector<1x4xf32> to vector<128x4xf32>
    %37 = arith.subf %31, %36 : vector<128x4xf32>
    %38 = vector.broadcast %35 : vector<1x4xf32> to vector<128x4xf32>
    %39 = arith.subf %31, %38 : vector<128x4xf32>
    %40 = arith.mulf %37, %39 : vector<128x4xf32>
    %cst_32 = arith.constant dense<0.000000e+00> : vector<4xf32>
    %41 = vector.multi_reduction <add>, %40, %cst_32 [0] : vector<128x4xf32> to vector<4xf32>
    %42 = vector.shape_cast %41 : vector<4xf32> to vector<1x4xf32>
    %cst_33 = arith.constant 1.280000e+02 : f32
    %43 = vector.broadcast %cst_33 : f32 to vector<1x4xf32>
    %44 = arith.divf %42, %43 : vector<1x4xf32>
    %45 = vector.broadcast %35 : vector<1x4xf32> to vector<128x4xf32>
    %46 = arith.subf %31, %45 : vector<128x4xf32>
    %cst_34 = arith.constant 9.99999974E-6 : f32
    %47 = vector.broadcast %cst_34 : f32 to vector<1x4xf32>
    %48 = arith.addf %44, %47 : vector<1x4xf32>
    %49 = math.rsqrt %48 : vector<1x4xf32>
    %50 = vector.broadcast %49 : vector<1x4xf32> to vector<128x4xf32>
    %51 = arith.mulf %46, %50 : vector<128x4xf32>
    %c0_35 = arith.constant 0 : index
    %c0_36 = arith.constant 0 : index
    %52 = vector.load %arg3[%c0_35, %c0_36] : memref<1x4xf32, #tpu.memory_space<vmem>>, vector<1x4xf32>
    %53 = vector.broadcast %52 : vector<1x4xf32> to vector<128x4xf32>
    %54 = arith.mulf %51, %53 : vector<128x4xf32>
    %c0_37 = arith.constant 0 : index
    %c0_38 = arith.constant 0 : index
    %55 = vector.load %arg4[%c0_37, %c0_38] : memref<1x4xf32, #tpu.memory_space<vmem>>, vector<1x4xf32>
    %56 = vector.broadcast %55 : vector<1x4xf32> to vector<128x4xf32>
    %57 = arith.addf %54, %56 : vector<128x4xf32>
    %cst_39 = arith.constant 0.000000e+00 : f32
    %58 = vector.broadcast %cst_39 : f32 to vector<128x4xf32>
    %59 = arith.cmpf oge, %57, %58 : vector<128x4xf32>
    %cst_40 = arith.constant 1.000000e+00 : f32
    %60 = vector.broadcast %cst_40 : f32 to vector<128x4xf32>
    %61 = arith.mulf %60, %57 : vector<128x4xf32>
    %62 = arith.select %59, %57, %61 : vector<128x4xi1>, vector<128x4xf32>
    %c0_41 = arith.constant 0 : index
    %c0_42 = arith.constant 0 : index
    %63 = vector.load %arg5[%c0_41, %c0_42] : memref<128x4xf32, #tpu.memory_space<vmem>>, vector<128x4xf32>
    tpu.vector_store %arg5[%c0_41, %c0_42], %62 {strides = array<i32>} : memref<128x4xf32, #tpu.memory_space<vmem>>, vector<128x4xf32>,
    return
  }
}

module attributes {stable_mosaic.version = 11 : i64} {
  func.func @_resnet_block_kernel(%arg0: memref<2x8x8x4xf32, #tpu.memory_space<vmem>>, %arg1: memref<9x4x4xbf16, #tpu.memory_space<vmem>>, %arg2: memref<1x4xf32, #tpu.memory_space<vmem>>, %arg3: memref<1x4xf32, #tpu.memory_space<vmem>>, %arg4: memref<1x4xf32, #tpu.memory_space<vmem>>, %arg5: memref<9x4x4xbf16, #tpu.memory_space<vmem>>, %arg6: memref<1x4xf32, #tpu.memory_space<vmem>>, %arg7: memref<1x4xf32, #tpu.memory_space<vmem>>, %arg8: memref<1x4xf32, #tpu.memory_space<vmem>>, %arg9: memref<128x4xf32, #tpu.memory_space<vmem>>, %arg10: memref<2x10x10x4xf32, #tpu.memory_space<vmem>>) attributes {dimension_semantics = [], scalar_prefetch = 0 : i64, scratch_operands = 1 : i64, tpu.core_type = #tpu.core_type<tc>} {
    %c0 = arith.constant 0 : index
    %c0_0 = arith.constant 0 : index
    %c0_1 = arith.constant 0 : index
    %c0_2 = arith.constant 0 : index
    %0 = vector.load %arg0[%c0, %c0_0, %c0_1, %c0_2] : memref<2x8x8x4xf32, #tpu.memory_space<vmem>>, vector<2x8x8x4xf32>
    %cst = arith.constant 0.000000e+00 : f32
    %1 = vector.broadcast %cst : f32 to vector<2x10x10x4xf32>
    %c0_3 = arith.constant 0 : index
    %c0_4 = arith.constant 0 : index
    %c0_5 = arith.constant 0 : index
    %c0_6 = arith.constant 0 : index
    %2 = vector.load %arg10[%c0_3, %c0_4, %c0_5, %c0_6] : memref<2x10x10x4xf32, #tpu.memory_space<vmem>>, vector<2x10x10x4xf32>
    tpu.vector_store %arg10[%c0_3, %c0_4, %c0_5, %c0_6], %1 {strides = array<i32>} : memref<2x10x10x4xf32, #tpu.memory_space<vmem>>, vector<2x10x10x4xf32>,
    %c0_7 = arith.constant 0 : index
    %c1 = arith.constant 1 : index
    %c1_8 = arith.constant 1 : index
    %c0_9 = arith.constant 0 : index
    %3 = vector.load %arg10[%c0_7, %c1, %c1_8, %c0_9] : memref<2x10x10x4xf32, #tpu.memory_space<vmem>>, vector<2x8x8x4xf32>
    tpu.vector_store %arg10[%c0_7, %c1, %c1_8, %c0_9], %0 {strides = array<i32>} : memref<2x10x10x4xf32, #tpu.memory_space<vmem>>, vector<2x8x8x4xf32>,
    %cst_10 = arith.constant 0.000000e+00 : f32
    %4 = vector.broadcast %cst_10 : f32 to vector<128x4xf32>
    %c0_11 = arith.constant 0 : index
    %c0_12 = arith.constant 0 : index
    %c0_13 = arith.constant 0 : index
    %c0_14 = arith.constant 0 : index
    %5 = vector.load %arg10[%c0_11, %c0_12, %c0_13, %c0_14] : memref<2x10x10x4xf32, #tpu.memory_space<vmem>>, vector<2x8x8x4xf32>
    %6 = vector.shape_cast %5 : vector<2x8x8x4xf32> to vector<128x4xf32>
    %7 = arith.truncf %6 : vector<128x4xf32> to vector<128x4xbf16>
    %c0_15 = arith.constant 0 : index
    %c0_16 = arith.constant 0 : index
    %c0_17 = arith.constant 0 : index
    %8 = vector.load %arg1[%c0_15, %c0_16, %c0_17] : memref<9x4x4xbf16, #tpu.memory_space<vmem>>, vector<1x4x4xbf16>
    %9 = vector.shape_cast %8 : vector<1x4x4xbf16> to vector<4x4xbf16>
    %cst_18 = arith.constant dense<0.000000e+00> : vector<128x4xf32>
    %10 = tpu.matmul %7, %9, %cst_18 {dimension_numbers = #tpu.dot_dimension_numbers<[1], [0], [0], [1], [0, 0, 1, 1], [], []>} : vector<128x4xbf16>, vector<4x4xbf16>, vector<128x4xf32> -> vector<128x4xf32>
    %11 = arith.addf %4, %10 : vector<128x4xf32>
    %c0_19 = arith.constant 0 : index
    %c0_20 = arith.constant 0 : index
    %c1_21 = arith.constant 1 : index
    %c0_22 = arith.constant 0 : index
    %12 = vector.load %arg10[%c0_19, %c0_20, %c1_21, %c0_22] : memref<2x10x10x4xf32, #tpu.memory_space<vmem>>, vector<2x8x8x4xf32>
    %13 = vector.shape_cast %12 : vector<2x8x8x4xf32> to vector<128x4xf32>
    %14 = arith.truncf %13 : vector<128x4xf32> to vector<128x4xbf16>
    %c1_23 = arith.constant 1 : index
    %c0_24 = arith.constant 0 : index
    %c0_25 = arith.constant 0 : index
    %15 = vector.load %arg1[%c1_23, %c0_24, %c0_25] : memref<9x4x4xbf16, #tpu.memory_space<vmem>>, vector<1x4x4xbf16>
    %16 = vector.shape_cast %15 : vector<1x4x4xbf16> to vector<4x4xbf16>
    %cst_26 = arith.constant dense<0.000000e+00> : vector<128x4xf32>
    %17 = tpu.matmul %14, %16, %cst_26 {dimension_numbers = #tpu.dot_dimension_numbers<[1], [0], [0], [1], [0, 0, 1, 1], [], []>} : vector<128x4xbf16>, vector<4x4xbf16>, vector<128x4xf32> -> vector<128x4xf32>
    %18 = arith.addf %11, %17 : vector<128x4xf32>
    %c0_27 = arith.constant 0 : index
    %c0_28 = arith.constant 0 : index
    %c2 = arith.constant 2 : index
    %c0_29 = arith.constant 0 : index
    %19 = vector.load %arg10[%c0_27, %c0_28, %c2, %c0_29] : memref<2x10x10x4xf32, #tpu.memory_space<vmem>>, vector<2x8x8x4xf32>
    %20 = vector.shape_cast %19 : vector<2x8x8x4xf32> to vector<128x4xf32>
    %21 = arith.truncf %20 : vector<128x4xf32> to vector<128x4xbf16>
    %c2_30 = arith.constant 2 : index
    %c0_31 = arith.constant 0 : index
    %c0_32 = arith.constant 0 : index
    %22 = vector.load %arg1[%c2_30, %c0_31, %c0_32] : memref<9x4x4xbf16, #tpu.memory_space<vmem>>, vector<1x4x4xbf16>
    %23 = vector.shape_cast %22 : vector<1x4x4xbf16> to vector<4x4xbf16>
    %cst_33 = arith.constant dense<0.000000e+00> : vector<128x4xf32>
    %24 = tpu.matmul %21, %23, %cst_33 {dimension_numbers = #tpu.dot_dimension_numbers<[1], [0], [0], [1], [0, 0, 1, 1], [], []>} : vector<128x4xbf16>, vector<4x4xbf16>, vector<128x4xf32> -> vector<128x4xf32>
    %25 = arith.addf %18, %24 : vector<128x4xf32>
    %c0_34 = arith.constant 0 : index
    %c1_35 = arith.constant 1 : index
    %c0_36 = arith.constant 0 : index
    %c0_37 = arith.constant 0 : index
    %26 = vector.load %arg10[%c0_34, %c1_35, %c0_36, %c0_37] : memref<2x10x10x4xf32, #tpu.memory_space<vmem>>, vector<2x8x8x4xf32>
    %27 = vector.shape_cast %26 : vector<2x8x8x4xf32> to vector<128x4xf32>
    %28 = arith.truncf %27 : vector<128x4xf32> to vector<128x4xbf16>
    %c3 = arith.constant 3 : index
    %c0_38 = arith.constant 0 : index
    %c0_39 = arith.constant 0 : index
    %29 = vector.load %arg1[%c3, %c0_38, %c0_39] : memref<9x4x4xbf16, #tpu.memory_space<vmem>>, vector<1x4x4xbf16>
    %30 = vector.shape_cast %29 : vector<1x4x4xbf16> to vector<4x4xbf16>
    %cst_40 = arith.constant dense<0.000000e+00> : vector<128x4xf32>
    %31 = tpu.matmul %28, %30, %cst_40 {dimension_numbers = #tpu.dot_dimension_numbers<[1], [0], [0], [1], [0, 0, 1, 1], [], []>} : vector<128x4xbf16>, vector<4x4xbf16>, vector<128x4xf32> -> vector<128x4xf32>
    %32 = arith.addf %25, %31 : vector<128x4xf32>
    %c0_41 = arith.constant 0 : index
    %c1_42 = arith.constant 1 : index
    %c1_43 = arith.constant 1 : index
    %c0_44 = arith.constant 0 : index
    %33 = vector.load %arg10[%c0_41, %c1_42, %c1_43, %c0_44] : memref<2x10x10x4xf32, #tpu.memory_space<vmem>>, vector<2x8x8x4xf32>
    %34 = vector.shape_cast %33 : vector<2x8x8x4xf32> to vector<128x4xf32>
    %35 = arith.truncf %34 : vector<128x4xf32> to vector<128x4xbf16>
    %c4 = arith.constant 4 : index
    %c0_45 = arith.constant 0 : index
    %c0_46 = arith.constant 0 : index
    %36 = vector.load %arg1[%c4, %c0_45, %c0_46] : memref<9x4x4xbf16, #tpu.memory_space<vmem>>, vector<1x4x4xbf16>
    %37 = vector.shape_cast %36 : vector<1x4x4xbf16> to vector<4x4xbf16>
    %cst_47 = arith.constant dense<0.000000e+00> : vector<128x4xf32>
    %38 = tpu.matmul %35, %37, %cst_47 {dimension_numbers = #tpu.dot_dimension_numbers<[1], [0], [0], [1], [0, 0, 1, 1], [], []>} : vector<128x4xbf16>, vector<4x4xbf16>, vector<128x4xf32> -> vector<128x4xf32>
    %39 = arith.addf %32, %38 : vector<128x4xf32>
    %c0_48 = arith.constant 0 : index
    %c1_49 = arith.constant 1 : index
    %c2_50 = arith.constant 2 : index
    %c0_51 = arith.constant 0 : index
    %40 = vector.load %arg10[%c0_48, %c1_49, %c2_50, %c0_51] : memref<2x10x10x4xf32, #tpu.memory_space<vmem>>, vector<2x8x8x4xf32>
    %41 = vector.shape_cast %40 : vector<2x8x8x4xf32> to vector<128x4xf32>
    %42 = arith.truncf %41 : vector<128x4xf32> to vector<128x4xbf16>
    %c5 = arith.constant 5 : index
    %c0_52 = arith.constant 0 : index
    %c0_53 = arith.constant 0 : index
    %43 = vector.load %arg1[%c5, %c0_52, %c0_53] : memref<9x4x4xbf16, #tpu.memory_space<vmem>>, vector<1x4x4xbf16>
    %44 = vector.shape_cast %43 : vector<1x4x4xbf16> to vector<4x4xbf16>
    %cst_54 = arith.constant dense<0.000000e+00> : vector<128x4xf32>
    %45 = tpu.matmul %42, %44, %cst_54 {dimension_numbers = #tpu.dot_dimension_numbers<[1], [0], [0], [1], [0, 0, 1, 1], [], []>} : vector<128x4xbf16>, vector<4x4xbf16>, vector<128x4xf32> -> vector<128x4xf32>
    %46 = arith.addf %39, %45 : vector<128x4xf32>
    %c0_55 = arith.constant 0 : index
    %c2_56 = arith.constant 2 : index
    %c0_57 = arith.constant 0 : index
    %c0_58 = arith.constant 0 : index
    %47 = vector.load %arg10[%c0_55, %c2_56, %c0_57, %c0_58] : memref<2x10x10x4xf32, #tpu.memory_space<vmem>>, vector<2x8x8x4xf32>
    %48 = vector.shape_cast %47 : vector<2x8x8x4xf32> to vector<128x4xf32>
    %49 = arith.truncf %48 : vector<128x4xf32> to vector<128x4xbf16>
    %c6 = arith.constant 6 : index
    %c0_59 = arith.constant 0 : index
    %c0_60 = arith.constant 0 : index
    %50 = vector.load %arg1[%c6, %c0_59, %c0_60] : memref<9x4x4xbf16, #tpu.memory_space<vmem>>, vector<1x4x4xbf16>
    %51 = vector.shape_cast %50 : vector<1x4x4xbf16> to vector<4x4xbf16>
    %cst_61 = arith.constant dense<0.000000e+00> : vector<128x4xf32>
    %52 = tpu.matmul %49, %51, %cst_61 {dimension_numbers = #tpu.dot_dimension_numbers<[1], [0], [0], [1], [0, 0, 1, 1], [], []>} : vector<128x4xbf16>, vector<4x4xbf16>, vector<128x4xf32> -> vector<128x4xf32>
    %53 = arith.addf %46, %52 : vector<128x4xf32>
    %c0_62 = arith.constant 0 : index
    %c2_63 = arith.constant 2 : index
    %c1_64 = arith.constant 1 : index
    %c0_65 = arith.constant 0 : index
    %54 = vector.load %arg10[%c0_62, %c2_63, %c1_64, %c0_65] : memref<2x10x10x4xf32, #tpu.memory_space<vmem>>, vector<2x8x8x4xf32>
    %55 = vector.shape_cast %54 : vector<2x8x8x4xf32> to vector<128x4xf32>
    %56 = arith.truncf %55 : vector<128x4xf32> to vector<128x4xbf16>
    %c7 = arith.constant 7 : index
    %c0_66 = arith.constant 0 : index
    %c0_67 = arith.constant 0 : index
    %57 = vector.load %arg1[%c7, %c0_66, %c0_67] : memref<9x4x4xbf16, #tpu.memory_space<vmem>>, vector<1x4x4xbf16>
    %58 = vector.shape_cast %57 : vector<1x4x4xbf16> to vector<4x4xbf16>
    %cst_68 = arith.constant dense<0.000000e+00> : vector<128x4xf32>
    %59 = tpu.matmul %56, %58, %cst_68 {dimension_numbers = #tpu.dot_dimension_numbers<[1], [0], [0], [1], [0, 0, 1, 1], [], []>} : vector<128x4xbf16>, vector<4x4xbf16>, vector<128x4xf32> -> vector<128x4xf32>
    %60 = arith.addf %53, %59 : vector<128x4xf32>
    %c0_69 = arith.constant 0 : index
    %c2_70 = arith.constant 2 : index
    %c2_71 = arith.constant 2 : index
    %c0_72 = arith.constant 0 : index
    %61 = vector.load %arg10[%c0_69, %c2_70, %c2_71, %c0_72] : memref<2x10x10x4xf32, #tpu.memory_space<vmem>>, vector<2x8x8x4xf32>
    %62 = vector.shape_cast %61 : vector<2x8x8x4xf32> to vector<128x4xf32>
    %63 = arith.truncf %62 : vector<128x4xf32> to vector<128x4xbf16>
    %c8 = arith.constant 8 : index
    %c0_73 = arith.constant 0 : index
    %c0_74 = arith.constant 0 : index
    %64 = vector.load %arg1[%c8, %c0_73, %c0_74] : memref<9x4x4xbf16, #tpu.memory_space<vmem>>, vector<1x4x4xbf16>
    %65 = vector.shape_cast %64 : vector<1x4x4xbf16> to vector<4x4xbf16>
    %cst_75 = arith.constant dense<0.000000e+00> : vector<128x4xf32>
    %66 = tpu.matmul %63, %65, %cst_75 {dimension_numbers = #tpu.dot_dimension_numbers<[1], [0], [0], [1], [0, 0, 1, 1], [], []>} : vector<128x4xbf16>, vector<4x4xbf16>, vector<128x4xf32> -> vector<128x4xf32>
    %67 = arith.addf %60, %66 : vector<128x4xf32>
    %c0_76 = arith.constant 0 : index
    %c0_77 = arith.constant 0 : index
    %68 = vector.load %arg2[%c0_76, %c0_77] : memref<1x4xf32, #tpu.memory_space<vmem>>, vector<1x4xf32>
    %69 = vector.broadcast %68 : vector<1x4xf32> to vector<128x4xf32>
    %70 = arith.addf %67, %69 : vector<128x4xf32>
    %cst_78 = arith.constant dense<0.000000e+00> : vector<4xf32>
    %71 = vector.multi_reduction <add>, %70, %cst_78 [0] : vector<128x4xf32> to vector<4xf32>
    %72 = vector.shape_cast %71 : vector<4xf32> to vector<1x4xf32>
    %cst_79 = arith.constant 1.280000e+02 : f32
    %73 = vector.broadcast %cst_79 : f32 to vector<1x4xf32>
    %74 = arith.divf %72, %73 : vector<1x4xf32>
    %75 = vector.broadcast %74 : vector<1x4xf32> to vector<128x4xf32>
    %76 = arith.subf %70, %75 : vector<128x4xf32>
    %77 = vector.broadcast %74 : vector<1x4xf32> to vector<128x4xf32>
    %78 = arith.subf %70, %77 : vector<128x4xf32>
    %79 = arith.mulf %76, %78 : vector<128x4xf32>
    %cst_80 = arith.constant dense<0.000000e+00> : vector<4xf32>
    %80 = vector.multi_reduction <add>, %79, %cst_80 [0] : vector<128x4xf32> to vector<4xf32>
    %81 = vector.shape_cast %80 : vector<4xf32> to vector<1x4xf32>
    %cst_81 = arith.constant 1.280000e+02 : f32
    %82 = vector.broadcast %cst_81 : f32 to vector<1x4xf32>
    %83 = arith.divf %81, %82 : vector<1x4xf32>
    %84 = vector.broadcast %74 : vector<1x4xf32> to vector<128x4xf32>
    %85 = arith.subf %70, %84 : vector<128x4xf32>
    %cst_82 = arith.constant 9.99999974E-6 : f32
    %86 = vector.broadcast %cst_82 : f32 to vector<1x4xf32>
    %87 = arith.addf %83, %86 : vector<1x4xf32>
    %88 = math.rsqrt %87 : vector<1x4xf32>
    %89 = vector.broadcast %88 : vector<1x4xf32> to vector<128x4xf32>
    %90 = arith.mulf %85, %89 : vector<128x4xf32>
    %c0_83 = arith.constant 0 : index
    %c0_84 = arith.constant 0 : index
    %91 = vector.load %arg3[%c0_83, %c0_84] : memref<1x4xf32, #tpu.memory_space<vmem>>, vector<1x4xf32>
    %92 = vector.broadcast %91 : vector<1x4xf32> to vector<128x4xf32>
    %93 = arith.mulf %90, %92 : vector<128x4xf32>
    %c0_85 = arith.constant 0 : index
    %c0_86 = arith.constant 0 : index
    %94 = vector.load %arg4[%c0_85, %c0_86] : memref<1x4xf32, #tpu.memory_space<vmem>>, vector<1x4xf32>
    %95 = vector.broadcast %94 : vector<1x4xf32> to vector<128x4xf32>
    %96 = arith.addf %93, %95 : vector<128x4xf32>
    %cst_87 = arith.constant 0.000000e+00 : f32
    %97 = vector.broadcast %cst_87 : f32 to vector<128x4xf32>
    %98 = arith.maximumf %96, %97 : vector<128x4xf32>
    %99 = vector.shape_cast %98 : vector<128x4xf32> to vector<2x8x8x4xf32>
    %c0_88 = arith.constant 0 : index
    %c1_89 = arith.constant 1 : index
    %c1_90 = arith.constant 1 : index
    %c0_91 = arith.constant 0 : index
    %100 = vector.load %arg10[%c0_88, %c1_89, %c1_90, %c0_91] : memref<2x10x10x4xf32, #tpu.memory_space<vmem>>, vector<2x8x8x4xf32>
    tpu.vector_store %arg10[%c0_88, %c1_89, %c1_90, %c0_91], %99 {strides = array<i32>} : memref<2x10x10x4xf32, #tpu.memory_space<vmem>>, vector<2x8x8x4xf32>,
    %cst_92 = arith.constant 0.000000e+00 : f32
    %101 = vector.broadcast %cst_92 : f32 to vector<128x4xf32>
    %c0_93 = arith.constant 0 : index
    %c0_94 = arith.constant 0 : index
    %c0_95 = arith.constant 0 : index
    %c0_96 = arith.constant 0 : index
    %102 = vector.load %arg10[%c0_93, %c0_94, %c0_95, %c0_96] : memref<2x10x10x4xf32, #tpu.memory_space<vmem>>, vector<2x8x8x4xf32>
    %103 = vector.shape_cast %102 : vector<2x8x8x4xf32> to vector<128x4xf32>
    %104 = arith.truncf %103 : vector<128x4xf32> to vector<128x4xbf16>
    %c0_97 = arith.constant 0 : index
    %c0_98 = arith.constant 0 : index
    %c0_99 = arith.constant 0 : index
    %105 = vector.load %arg5[%c0_97, %c0_98, %c0_99] : memref<9x4x4xbf16, #tpu.memory_space<vmem>>, vector<1x4x4xbf16>
    %106 = vector.shape_cast %105 : vector<1x4x4xbf16> to vector<4x4xbf16>
    %cst_100 = arith.constant dense<0.000000e+00> : vector<128x4xf32>
    %107 = tpu.matmul %104, %106, %cst_100 {dimension_numbers = #tpu.dot_dimension_numbers<[1], [0], [0], [1], [0, 0, 1, 1], [], []>} : vector<128x4xbf16>, vector<4x4xbf16>, vector<128x4xf32> -> vector<128x4xf32>
    %108 = arith.addf %101, %107 : vector<128x4xf32>
    %c0_101 = arith.constant 0 : index
    %c0_102 = arith.constant 0 : index
    %c1_103 = arith.constant 1 : index
    %c0_104 = arith.constant 0 : index
    %109 = vector.load %arg10[%c0_101, %c0_102, %c1_103, %c0_104] : memref<2x10x10x4xf32, #tpu.memory_space<vmem>>, vector<2x8x8x4xf32>
    %110 = vector.shape_cast %109 : vector<2x8x8x4xf32> to vector<128x4xf32>
    %111 = arith.truncf %110 : vector<128x4xf32> to vector<128x4xbf16>
    %c1_105 = arith.constant 1 : index
    %c0_106 = arith.constant 0 : index
    %c0_107 = arith.constant 0 : index
    %112 = vector.load %arg5[%c1_105, %c0_106, %c0_107] : memref<9x4x4xbf16, #tpu.memory_space<vmem>>, vector<1x4x4xbf16>
    %113 = vector.shape_cast %112 : vector<1x4x4xbf16> to vector<4x4xbf16>
    %cst_108 = arith.constant dense<0.000000e+00> : vector<128x4xf32>
    %114 = tpu.matmul %111, %113, %cst_108 {dimension_numbers = #tpu.dot_dimension_numbers<[1], [0], [0], [1], [0, 0, 1, 1], [], []>} : vector<128x4xbf16>, vector<4x4xbf16>, vector<128x4xf32> -> vector<128x4xf32>
    %115 = arith.addf %108, %114 : vector<128x4xf32>
    %c0_109 = arith.constant 0 : index
    %c0_110 = arith.constant 0 : index
    %c2_111 = arith.constant 2 : index
    %c0_112 = arith.constant 0 : index
    %116 = vector.load %arg10[%c0_109, %c0_110, %c2_111, %c0_112] : memref<2x10x10x4xf32, #tpu.memory_space<vmem>>, vector<2x8x8x4xf32>
    %117 = vector.shape_cast %116 : vector<2x8x8x4xf32> to vector<128x4xf32>
    %118 = arith.truncf %117 : vector<128x4xf32> to vector<128x4xbf16>
    %c2_113 = arith.constant 2 : index
    %c0_114 = arith.constant 0 : index
    %c0_115 = arith.constant 0 : index
    %119 = vector.load %arg5[%c2_113, %c0_114, %c0_115] : memref<9x4x4xbf16, #tpu.memory_space<vmem>>, vector<1x4x4xbf16>
    %120 = vector.shape_cast %119 : vector<1x4x4xbf16> to vector<4x4xbf16>
    %cst_116 = arith.constant dense<0.000000e+00> : vector<128x4xf32>
    %121 = tpu.matmul %118, %120, %cst_116 {dimension_numbers = #tpu.dot_dimension_numbers<[1], [0], [0], [1], [0, 0, 1, 1], [], []>} : vector<128x4xbf16>, vector<4x4xbf16>, vector<128x4xf32> -> vector<128x4xf32>
    %122 = arith.addf %115, %121 : vector<128x4xf32>
    %c0_117 = arith.constant 0 : index
    %c1_118 = arith.constant 1 : index
    %c0_119 = arith.constant 0 : index
    %c0_120 = arith.constant 0 : index
    %123 = vector.load %arg10[%c0_117, %c1_118, %c0_119, %c0_120] : memref<2x10x10x4xf32, #tpu.memory_space<vmem>>, vector<2x8x8x4xf32>
    %124 = vector.shape_cast %123 : vector<2x8x8x4xf32> to vector<128x4xf32>
    %125 = arith.truncf %124 : vector<128x4xf32> to vector<128x4xbf16>
    %c3_121 = arith.constant 3 : index
    %c0_122 = arith.constant 0 : index
    %c0_123 = arith.constant 0 : index
    %126 = vector.load %arg5[%c3_121, %c0_122, %c0_123] : memref<9x4x4xbf16, #tpu.memory_space<vmem>>, vector<1x4x4xbf16>
    %127 = vector.shape_cast %126 : vector<1x4x4xbf16> to vector<4x4xbf16>
    %cst_124 = arith.constant dense<0.000000e+00> : vector<128x4xf32>
    %128 = tpu.matmul %125, %127, %cst_124 {dimension_numbers = #tpu.dot_dimension_numbers<[1], [0], [0], [1], [0, 0, 1, 1], [], []>} : vector<128x4xbf16>, vector<4x4xbf16>, vector<128x4xf32> -> vector<128x4xf32>
    %129 = arith.addf %122, %128 : vector<128x4xf32>
    %c0_125 = arith.constant 0 : index
    %c1_126 = arith.constant 1 : index
    %c1_127 = arith.constant 1 : index
    %c0_128 = arith.constant 0 : index
    %130 = vector.load %arg10[%c0_125, %c1_126, %c1_127, %c0_128] : memref<2x10x10x4xf32, #tpu.memory_space<vmem>>, vector<2x8x8x4xf32>
    %131 = vector.shape_cast %130 : vector<2x8x8x4xf32> to vector<128x4xf32>
    %132 = arith.truncf %131 : vector<128x4xf32> to vector<128x4xbf16>
    %c4_129 = arith.constant 4 : index
    %c0_130 = arith.constant 0 : index
    %c0_131 = arith.constant 0 : index
    %133 = vector.load %arg5[%c4_129, %c0_130, %c0_131] : memref<9x4x4xbf16, #tpu.memory_space<vmem>>, vector<1x4x4xbf16>
    %134 = vector.shape_cast %133 : vector<1x4x4xbf16> to vector<4x4xbf16>
    %cst_132 = arith.constant dense<0.000000e+00> : vector<128x4xf32>
    %135 = tpu.matmul %132, %134, %cst_132 {dimension_numbers = #tpu.dot_dimension_numbers<[1], [0], [0], [1], [0, 0, 1, 1], [], []>} : vector<128x4xbf16>, vector<4x4xbf16>, vector<128x4xf32> -> vector<128x4xf32>
    %136 = arith.addf %129, %135 : vector<128x4xf32>
    %c0_133 = arith.constant 0 : index
    %c1_134 = arith.constant 1 : index
    %c2_135 = arith.constant 2 : index
    %c0_136 = arith.constant 0 : index
    %137 = vector.load %arg10[%c0_133, %c1_134, %c2_135, %c0_136] : memref<2x10x10x4xf32, #tpu.memory_space<vmem>>, vector<2x8x8x4xf32>
    %138 = vector.shape_cast %137 : vector<2x8x8x4xf32> to vector<128x4xf32>
    %139 = arith.truncf %138 : vector<128x4xf32> to vector<128x4xbf16>
    %c5_137 = arith.constant 5 : index
    %c0_138 = arith.constant 0 : index
    %c0_139 = arith.constant 0 : index
    %140 = vector.load %arg5[%c5_137, %c0_138, %c0_139] : memref<9x4x4xbf16, #tpu.memory_space<vmem>>, vector<1x4x4xbf16>
    %141 = vector.shape_cast %140 : vector<1x4x4xbf16> to vector<4x4xbf16>
    %cst_140 = arith.constant dense<0.000000e+00> : vector<128x4xf32>
    %142 = tpu.matmul %139, %141, %cst_140 {dimension_numbers = #tpu.dot_dimension_numbers<[1], [0], [0], [1], [0, 0, 1, 1], [], []>} : vector<128x4xbf16>, vector<4x4xbf16>, vector<128x4xf32> -> vector<128x4xf32>
    %143 = arith.addf %136, %142 : vector<128x4xf32>
    %c0_141 = arith.constant 0 : index
    %c2_142 = arith.constant 2 : index
    %c0_143 = arith.constant 0 : index
    %c0_144 = arith.constant 0 : index
    %144 = vector.load %arg10[%c0_141, %c2_142, %c0_143, %c0_144] : memref<2x10x10x4xf32, #tpu.memory_space<vmem>>, vector<2x8x8x4xf32>
    %145 = vector.shape_cast %144 : vector<2x8x8x4xf32> to vector<128x4xf32>
    %146 = arith.truncf %145 : vector<128x4xf32> to vector<128x4xbf16>
    %c6_145 = arith.constant 6 : index
    %c0_146 = arith.constant 0 : index
    %c0_147 = arith.constant 0 : index
    %147 = vector.load %arg5[%c6_145, %c0_146, %c0_147] : memref<9x4x4xbf16, #tpu.memory_space<vmem>>, vector<1x4x4xbf16>
    %148 = vector.shape_cast %147 : vector<1x4x4xbf16> to vector<4x4xbf16>
    %cst_148 = arith.constant dense<0.000000e+00> : vector<128x4xf32>
    %149 = tpu.matmul %146, %148, %cst_148 {dimension_numbers = #tpu.dot_dimension_numbers<[1], [0], [0], [1], [0, 0, 1, 1], [], []>} : vector<128x4xbf16>, vector<4x4xbf16>, vector<128x4xf32> -> vector<128x4xf32>
    %150 = arith.addf %143, %149 : vector<128x4xf32>
    %c0_149 = arith.constant 0 : index
    %c2_150 = arith.constant 2 : index
    %c1_151 = arith.constant 1 : index
    %c0_152 = arith.constant 0 : index
    %151 = vector.load %arg10[%c0_149, %c2_150, %c1_151, %c0_152] : memref<2x10x10x4xf32, #tpu.memory_space<vmem>>, vector<2x8x8x4xf32>
    %152 = vector.shape_cast %151 : vector<2x8x8x4xf32> to vector<128x4xf32>
    %153 = arith.truncf %152 : vector<128x4xf32> to vector<128x4xbf16>
    %c7_153 = arith.constant 7 : index
    %c0_154 = arith.constant 0 : index
    %c0_155 = arith.constant 0 : index
    %154 = vector.load %arg5[%c7_153, %c0_154, %c0_155] : memref<9x4x4xbf16, #tpu.memory_space<vmem>>, vector<1x4x4xbf16>
    %155 = vector.shape_cast %154 : vector<1x4x4xbf16> to vector<4x4xbf16>
    %cst_156 = arith.constant dense<0.000000e+00> : vector<128x4xf32>
    %156 = tpu.matmul %153, %155, %cst_156 {dimension_numbers = #tpu.dot_dimension_numbers<[1], [0], [0], [1], [0, 0, 1, 1], [], []>} : vector<128x4xbf16>, vector<4x4xbf16>, vector<128x4xf32> -> vector<128x4xf32>
    %157 = arith.addf %150, %156 : vector<128x4xf32>
    %c0_157 = arith.constant 0 : index
    %c2_158 = arith.constant 2 : index
    %c2_159 = arith.constant 2 : index
    %c0_160 = arith.constant 0 : index
    %158 = vector.load %arg10[%c0_157, %c2_158, %c2_159, %c0_160] : memref<2x10x10x4xf32, #tpu.memory_space<vmem>>, vector<2x8x8x4xf32>
    %159 = vector.shape_cast %158 : vector<2x8x8x4xf32> to vector<128x4xf32>
    %160 = arith.truncf %159 : vector<128x4xf32> to vector<128x4xbf16>
    %c8_161 = arith.constant 8 : index
    %c0_162 = arith.constant 0 : index
    %c0_163 = arith.constant 0 : index
    %161 = vector.load %arg5[%c8_161, %c0_162, %c0_163] : memref<9x4x4xbf16, #tpu.memory_space<vmem>>, vector<1x4x4xbf16>
    %162 = vector.shape_cast %161 : vector<1x4x4xbf16> to vector<4x4xbf16>
    %cst_164 = arith.constant dense<0.000000e+00> : vector<128x4xf32>
    %163 = tpu.matmul %160, %162, %cst_164 {dimension_numbers = #tpu.dot_dimension_numbers<[1], [0], [0], [1], [0, 0, 1, 1], [], []>} : vector<128x4xbf16>, vector<4x4xbf16>, vector<128x4xf32> -> vector<128x4xf32>
    %164 = arith.addf %157, %163 : vector<128x4xf32>
    %c0_165 = arith.constant 0 : index
    %c0_166 = arith.constant 0 : index
    %165 = vector.load %arg6[%c0_165, %c0_166] : memref<1x4xf32, #tpu.memory_space<vmem>>, vector<1x4xf32>
    %166 = vector.broadcast %165 : vector<1x4xf32> to vector<128x4xf32>
    %167 = arith.addf %164, %166 : vector<128x4xf32>
    %cst_167 = arith.constant dense<0.000000e+00> : vector<4xf32>
    %168 = vector.multi_reduction <add>, %167, %cst_167 [0] : vector<128x4xf32> to vector<4xf32>
    %169 = vector.shape_cast %168 : vector<4xf32> to vector<1x4xf32>
    %cst_168 = arith.constant 1.280000e+02 : f32
    %170 = vector.broadcast %cst_168 : f32 to vector<1x4xf32>
    %171 = arith.divf %169, %170 : vector<1x4xf32>
    %172 = vector.broadcast %171 : vector<1x4xf32> to vector<128x4xf32>
    %173 = arith.subf %167, %172 : vector<128x4xf32>
    %174 = vector.broadcast %171 : vector<1x4xf32> to vector<128x4xf32>
    %175 = arith.subf %167, %174 : vector<128x4xf32>
    %176 = arith.mulf %173, %175 : vector<128x4xf32>
    %cst_169 = arith.constant dense<0.000000e+00> : vector<4xf32>
    %177 = vector.multi_reduction <add>, %176, %cst_169 [0] : vector<128x4xf32> to vector<4xf32>
    %178 = vector.shape_cast %177 : vector<4xf32> to vector<1x4xf32>
    %cst_170 = arith.constant 1.280000e+02 : f32
    %179 = vector.broadcast %cst_170 : f32 to vector<1x4xf32>
    %180 = arith.divf %178, %179 : vector<1x4xf32>
    %181 = vector.broadcast %171 : vector<1x4xf32> to vector<128x4xf32>
    %182 = arith.subf %167, %181 : vector<128x4xf32>
    %cst_171 = arith.constant 9.99999974E-6 : f32
    %183 = vector.broadcast %cst_171 : f32 to vector<1x4xf32>
    %184 = arith.addf %180, %183 : vector<1x4xf32>
    %185 = math.rsqrt %184 : vector<1x4xf32>
    %186 = vector.broadcast %185 : vector<1x4xf32> to vector<128x4xf32>
    %187 = arith.mulf %182, %186 : vector<128x4xf32>
    %c0_172 = arith.constant 0 : index
    %c0_173 = arith.constant 0 : index
    %188 = vector.load %arg7[%c0_172, %c0_173] : memref<1x4xf32, #tpu.memory_space<vmem>>, vector<1x4xf32>
    %189 = vector.broadcast %188 : vector<1x4xf32> to vector<128x4xf32>
    %190 = arith.mulf %187, %189 : vector<128x4xf32>
    %c0_174 = arith.constant 0 : index
    %c0_175 = arith.constant 0 : index
    %191 = vector.load %arg8[%c0_174, %c0_175] : memref<1x4xf32, #tpu.memory_space<vmem>>, vector<1x4xf32>
    %192 = vector.broadcast %191 : vector<1x4xf32> to vector<128x4xf32>
    %193 = arith.addf %190, %192 : vector<128x4xf32>
    %194 = vector.shape_cast %0 : vector<2x8x8x4xf32> to vector<128x4xf32>
    %195 = arith.addf %194, %193 : vector<128x4xf32>
    %c0_176 = arith.constant 0 : index
    %c0_177 = arith.constant 0 : index
    %196 = vector.load %arg9[%c0_176, %c0_177] : memref<128x4xf32, #tpu.memory_space<vmem>>, vector<128x4xf32>
    tpu.vector_store %arg9[%c0_176, %c0_177], %195 {strides = array<i32>} : memref<128x4xf32, #tpu.memory_space<vmem>>, vector<128x4xf32>,
    return
  }
}

module attributes {stable_mosaic.version = 11 : i64} {
  func.func @_encoder_block_kernel(%arg0: memref<2x5x5x16xf32, #tpu.memory_space<vmem>>, %arg1: memref<4x16x8xbf16, #tpu.memory_space<vmem>>, %arg2: memref<1x8xf32, #tpu.memory_space<vmem>>, %arg3: memref<1x8xf32, #tpu.memory_space<vmem>>, %arg4: memref<1x8xf32, #tpu.memory_space<vmem>>, %arg5: memref<32x8xf32, #tpu.memory_space<vmem>>) attributes {dimension_semantics = [], scalar_prefetch = 0 : i64, scratch_operands = 0 : i64, tpu.core_type = #tpu.core_type<tc>} {
    %cst = arith.constant 0.000000e+00 : f32
    %0 = vector.broadcast %cst : f32 to vector<32x8xf32>
    %c0 = arith.constant 0 : index
    %c0_0 = arith.constant 0 : index
    %c0_1 = arith.constant 0 : index
    %c0_2 = arith.constant 0 : index
    %1 = vector.load %arg0[%c0, %c0_0, %c0_1, %c0_2] : memref<2x5x5x16xf32, #tpu.memory_space<vmem>>, vector<2x4x4x16xf32>
    %2 = vector.shape_cast %1 : vector<2x4x4x16xf32> to vector<32x16xf32>
    %3 = arith.truncf %2 : vector<32x16xf32> to vector<32x16xbf16>
    %c0_3 = arith.constant 0 : index
    %c0_4 = arith.constant 0 : index
    %c0_5 = arith.constant 0 : index
    %4 = vector.load %arg1[%c0_3, %c0_4, %c0_5] : memref<4x16x8xbf16, #tpu.memory_space<vmem>>, vector<1x16x8xbf16>
    %5 = vector.shape_cast %4 : vector<1x16x8xbf16> to vector<16x8xbf16>
    %cst_6 = arith.constant dense<0.000000e+00> : vector<32x8xf32>
    %6 = tpu.matmul %3, %5, %cst_6 {dimension_numbers = #tpu.dot_dimension_numbers<[1], [0], [0], [1], [0, 0, 1, 1], [], []>} : vector<32x16xbf16>, vector<16x8xbf16>, vector<32x8xf32> -> vector<32x8xf32>
    %7 = arith.addf %0, %6 : vector<32x8xf32>
    %c0_7 = arith.constant 0 : index
    %c0_8 = arith.constant 0 : index
    %c1 = arith.constant 1 : index
    %c0_9 = arith.constant 0 : index
    %8 = vector.load %arg0[%c0_7, %c0_8, %c1, %c0_9] : memref<2x5x5x16xf32, #tpu.memory_space<vmem>>, vector<2x4x4x16xf32>
    %9 = vector.shape_cast %8 : vector<2x4x4x16xf32> to vector<32x16xf32>
    %10 = arith.truncf %9 : vector<32x16xf32> to vector<32x16xbf16>
    %c1_10 = arith.constant 1 : index
    %c0_11 = arith.constant 0 : index
    %c0_12 = arith.constant 0 : index
    %11 = vector.load %arg1[%c1_10, %c0_11, %c0_12] : memref<4x16x8xbf16, #tpu.memory_space<vmem>>, vector<1x16x8xbf16>
    %12 = vector.shape_cast %11 : vector<1x16x8xbf16> to vector<16x8xbf16>
    %cst_13 = arith.constant dense<0.000000e+00> : vector<32x8xf32>
    %13 = tpu.matmul %10, %12, %cst_13 {dimension_numbers = #tpu.dot_dimension_numbers<[1], [0], [0], [1], [0, 0, 1, 1], [], []>} : vector<32x16xbf16>, vector<16x8xbf16>, vector<32x8xf32> -> vector<32x8xf32>
    %14 = arith.addf %7, %13 : vector<32x8xf32>
    %c0_14 = arith.constant 0 : index
    %c1_15 = arith.constant 1 : index
    %c0_16 = arith.constant 0 : index
    %c0_17 = arith.constant 0 : index
    %15 = vector.load %arg0[%c0_14, %c1_15, %c0_16, %c0_17] : memref<2x5x5x16xf32, #tpu.memory_space<vmem>>, vector<2x4x4x16xf32>
    %16 = vector.shape_cast %15 : vector<2x4x4x16xf32> to vector<32x16xf32>
    %17 = arith.truncf %16 : vector<32x16xf32> to vector<32x16xbf16>
    %c2 = arith.constant 2 : index
    %c0_18 = arith.constant 0 : index
    %c0_19 = arith.constant 0 : index
    %18 = vector.load %arg1[%c2, %c0_18, %c0_19] : memref<4x16x8xbf16, #tpu.memory_space<vmem>>, vector<1x16x8xbf16>
    %19 = vector.shape_cast %18 : vector<1x16x8xbf16> to vector<16x8xbf16>
    %cst_20 = arith.constant dense<0.000000e+00> : vector<32x8xf32>
    %20 = tpu.matmul %17, %19, %cst_20 {dimension_numbers = #tpu.dot_dimension_numbers<[1], [0], [0], [1], [0, 0, 1, 1], [], []>} : vector<32x16xbf16>, vector<16x8xbf16>, vector<32x8xf32> -> vector<32x8xf32>
    %21 = arith.addf %14, %20 : vector<32x8xf32>
    %c0_21 = arith.constant 0 : index
    %c1_22 = arith.constant 1 : index
    %c1_23 = arith.constant 1 : index
    %c0_24 = arith.constant 0 : index
    %22 = vector.load %arg0[%c0_21, %c1_22, %c1_23, %c0_24] : memref<2x5x5x16xf32, #tpu.memory_space<vmem>>, vector<2x4x4x16xf32>
    %23 = vector.shape_cast %22 : vector<2x4x4x16xf32> to vector<32x16xf32>
    %24 = arith.truncf %23 : vector<32x16xf32> to vector<32x16xbf16>
    %c3 = arith.constant 3 : index
    %c0_25 = arith.constant 0 : index
    %c0_26 = arith.constant 0 : index
    %25 = vector.load %arg1[%c3, %c0_25, %c0_26] : memref<4x16x8xbf16, #tpu.memory_space<vmem>>, vector<1x16x8xbf16>
    %26 = vector.shape_cast %25 : vector<1x16x8xbf16> to vector<16x8xbf16>
    %cst_27 = arith.constant dense<0.000000e+00> : vector<32x8xf32>
    %27 = tpu.matmul %24, %26, %cst_27 {dimension_numbers = #tpu.dot_dimension_numbers<[1], [0], [0], [1], [0, 0, 1, 1], [], []>} : vector<32x16xbf16>, vector<16x8xbf16>, vector<32x8xf32> -> vector<32x8xf32>
    %28 = arith.addf %21, %27 : vector<32x8xf32>
    %c0_28 = arith.constant 0 : index
    %c0_29 = arith.constant 0 : index
    %29 = vector.load %arg2[%c0_28, %c0_29] : memref<1x8xf32, #tpu.memory_space<vmem>>, vector<1x8xf32>
    %30 = vector.broadcast %29 : vector<1x8xf32> to vector<32x8xf32>
    %31 = arith.addf %28, %30 : vector<32x8xf32>
    %cst_30 = arith.constant dense<0.000000e+00> : vector<8xf32>
    %32 = vector.multi_reduction <add>, %31, %cst_30 [0] : vector<32x8xf32> to vector<8xf32>
    %33 = vector.shape_cast %32 : vector<8xf32> to vector<1x8xf32>
    %cst_31 = arith.constant 3.200000e+01 : f32
    %34 = vector.broadcast %cst_31 : f32 to vector<1x8xf32>
    %35 = arith.divf %33, %34 : vector<1x8xf32>
    %36 = vector.broadcast %35 : vector<1x8xf32> to vector<32x8xf32>
    %37 = arith.subf %31, %36 : vector<32x8xf32>
    %38 = vector.broadcast %35 : vector<1x8xf32> to vector<32x8xf32>
    %39 = arith.subf %31, %38 : vector<32x8xf32>
    %40 = arith.mulf %37, %39 : vector<32x8xf32>
    %cst_32 = arith.constant dense<0.000000e+00> : vector<8xf32>
    %41 = vector.multi_reduction <add>, %40, %cst_32 [0] : vector<32x8xf32> to vector<8xf32>
    %42 = vector.shape_cast %41 : vector<8xf32> to vector<1x8xf32>
    %cst_33 = arith.constant 3.200000e+01 : f32
    %43 = vector.broadcast %cst_33 : f32 to vector<1x8xf32>
    %44 = arith.divf %42, %43 : vector<1x8xf32>
    %45 = vector.broadcast %35 : vector<1x8xf32> to vector<32x8xf32>
    %46 = arith.subf %31, %45 : vector<32x8xf32>
    %cst_34 = arith.constant 9.99999974E-6 : f32
    %47 = vector.broadcast %cst_34 : f32 to vector<1x8xf32>
    %48 = arith.addf %44, %47 : vector<1x8xf32>
    %49 = math.rsqrt %48 : vector<1x8xf32>
    %50 = vector.broadcast %49 : vector<1x8xf32> to vector<32x8xf32>
    %51 = arith.mulf %46, %50 : vector<32x8xf32>
    %c0_35 = arith.constant 0 : index
    %c0_36 = arith.constant 0 : index
    %52 = vector.load %arg3[%c0_35, %c0_36] : memref<1x8xf32, #tpu.memory_space<vmem>>, vector<1x8xf32>
    %53 = vector.broadcast %52 : vector<1x8xf32> to vector<32x8xf32>
    %54 = arith.mulf %51, %53 : vector<32x8xf32>
    %c0_37 = arith.constant 0 : index
    %c0_38 = arith.constant 0 : index
    %55 = vector.load %arg4[%c0_37, %c0_38] : memref<1x8xf32, #tpu.memory_space<vmem>>, vector<1x8xf32>
    %56 = vector.broadcast %55 : vector<1x8xf32> to vector<32x8xf32>
    %57 = arith.addf %54, %56 : vector<32x8xf32>
    %cst_39 = arith.constant 0.000000e+00 : f32
    %58 = vector.broadcast %cst_39 : f32 to vector<32x8xf32>
    %59 = arith.cmpf oge, %57, %58 : vector<32x8xf32>
    %cst_40 = arith.constant 1.000000e+00 : f32
    %60 = vector.broadcast %cst_40 : f32 to vector<32x8xf32>
    %61 = arith.mulf %60, %57 : vector<32x8xf32>
    %62 = arith.select %59, %57, %61 : vector<32x8xi1>, vector<32x8xf32>
    %c0_41 = arith.constant 0 : index
    %c0_42 = arith.constant 0 : index
    %63 = vector.load %arg5[%c0_41, %c0_42] : memref<32x8xf32, #tpu.memory_space<vmem>>, vector<32x8xf32>
    tpu.vector_store %arg5[%c0_41, %c0_42], %62 {strides = array<i32>} : memref<32x8xf32, #tpu.memory_space<vmem>>, vector<32x8xf32>,
    return
  }
}

module attributes {stable_mosaic.version = 11 : i64} {
  func.func @_resnet_block_kernel(%arg0: memref<2x4x4x8xf32, #tpu.memory_space<vmem>>, %arg1: memref<9x8x8xbf16, #tpu.memory_space<vmem>>, %arg2: memref<1x8xf32, #tpu.memory_space<vmem>>, %arg3: memref<1x8xf32, #tpu.memory_space<vmem>>, %arg4: memref<1x8xf32, #tpu.memory_space<vmem>>, %arg5: memref<9x8x8xbf16, #tpu.memory_space<vmem>>, %arg6: memref<1x8xf32, #tpu.memory_space<vmem>>, %arg7: memref<1x8xf32, #tpu.memory_space<vmem>>, %arg8: memref<1x8xf32, #tpu.memory_space<vmem>>, %arg9: memref<32x8xf32, #tpu.memory_space<vmem>>, %arg10: memref<2x6x6x8xf32, #tpu.memory_space<vmem>>) attributes {dimension_semantics = [], scalar_prefetch = 0 : i64, scratch_operands = 1 : i64, tpu.core_type = #tpu.core_type<tc>} {
    %c0 = arith.constant 0 : index
    %c0_0 = arith.constant 0 : index
    %c0_1 = arith.constant 0 : index
    %c0_2 = arith.constant 0 : index
    %0 = vector.load %arg0[%c0, %c0_0, %c0_1, %c0_2] : memref<2x4x4x8xf32, #tpu.memory_space<vmem>>, vector<2x4x4x8xf32>
    %cst = arith.constant 0.000000e+00 : f32
    %1 = vector.broadcast %cst : f32 to vector<2x6x6x8xf32>
    %c0_3 = arith.constant 0 : index
    %c0_4 = arith.constant 0 : index
    %c0_5 = arith.constant 0 : index
    %c0_6 = arith.constant 0 : index
    %2 = vector.load %arg10[%c0_3, %c0_4, %c0_5, %c0_6] : memref<2x6x6x8xf32, #tpu.memory_space<vmem>>, vector<2x6x6x8xf32>
    tpu.vector_store %arg10[%c0_3, %c0_4, %c0_5, %c0_6], %1 {strides = array<i32>} : memref<2x6x6x8xf32, #tpu.memory_space<vmem>>, vector<2x6x6x8xf32>,
    %c0_7 = arith.constant 0 : index
    %c1 = arith.constant 1 : index
    %c1_8 = arith.constant 1 : index
    %c0_9 = arith.constant 0 : index
    %3 = vector.load %arg10[%c0_7, %c1, %c1_8, %c0_9] : memref<2x6x6x8xf32, #tpu.memory_space<vmem>>, vector<2x4x4x8xf32>
    tpu.vector_store %arg10[%c0_7, %c1, %c1_8, %c0_9], %0 {strides = array<i32>} : memref<2x6x6x8xf32, #tpu.memory_space<vmem>>, vector<2x4x4x8xf32>,
    %cst_10 = arith.constant 0.000000e+00 : f32
    %4 = vector.broadcast %cst_10 : f32 to vector<32x8xf32>
    %c0_11 = arith.constant 0 : index
    %c0_12 = arith.constant 0 : index
    %c0_13 = arith.constant 0 : index
    %c0_14 = arith.constant 0 : index
    %5 = vector.load %arg10[%c0_11, %c0_12, %c0_13, %c0_14] : memref<2x6x6x8xf32, #tpu.memory_space<vmem>>, vector<2x4x4x8xf32>
    %6 = vector.shape_cast %5 : vector<2x4x4x8xf32> to vector<32x8xf32>
    %7 = arith.truncf %6 : vector<32x8xf32> to vector<32x8xbf16>
    %c0_15 = arith.constant 0 : index
    %c0_16 = arith.constant 0 : index
    %c0_17 = arith.constant 0 : index
    %8 = vector.load %arg1[%c0_15, %c0_16, %c0_17] : memref<9x8x8xbf16, #tpu.memory_space<vmem>>, vector<1x8x8xbf16>
    %9 = vector.shape_cast %8 : vector<1x8x8xbf16> to vector<8x8xbf16>
    %cst_18 = arith.constant dense<0.000000e+00> : vector<32x8xf32>
    %10 = tpu.matmul %7, %9, %cst_18 {dimension_numbers = #tpu.dot_dimension_numbers<[1], [0], [0], [1], [0, 0, 1, 1], [], []>} : vector<32x8xbf16>, vector<8x8xbf16>, vector<32x8xf32> -> vector<32x8xf32>
    %11 = arith.addf %4, %10 : vector<32x8xf32>
    %c0_19 = arith.constant 0 : index
    %c0_20 = arith.constant 0 : index
    %c1_21 = arith.constant 1 : index
    %c0_22 = arith.constant 0 : index
    %12 = vector.load %arg10[%c0_19, %c0_20, %c1_21, %c0_22] : memref<2x6x6x8xf32, #tpu.memory_space<vmem>>, vector<2x4x4x8xf32>
    %13 = vector.shape_cast %12 : vector<2x4x4x8xf32> to vector<32x8xf32>
    %14 = arith.truncf %13 : vector<32x8xf32> to vector<32x8xbf16>
    %c1_23 = arith.constant 1 : index
    %c0_24 = arith.constant 0 : index
    %c0_25 = arith.constant 0 : index
    %15 = vector.load %arg1[%c1_23, %c0_24, %c0_25] : memref<9x8x8xbf16, #tpu.memory_space<vmem>>, vector<1x8x8xbf16>
    %16 = vector.shape_cast %15 : vector<1x8x8xbf16> to vector<8x8xbf16>
    %cst_26 = arith.constant dense<0.000000e+00> : vector<32x8xf32>
    %17 = tpu.matmul %14, %16, %cst_26 {dimension_numbers = #tpu.dot_dimension_numbers<[1], [0], [0], [1], [0, 0, 1, 1], [], []>} : vector<32x8xbf16>, vector<8x8xbf16>, vector<32x8xf32> -> vector<32x8xf32>
    %18 = arith.addf %11, %17 : vector<32x8xf32>
    %c0_27 = arith.constant 0 : index
    %c0_28 = arith.constant 0 : index
    %c2 = arith.constant 2 : index
    %c0_29 = arith.constant 0 : index
    %19 = vector.load %arg10[%c0_27, %c0_28, %c2, %c0_29] : memref<2x6x6x8xf32, #tpu.memory_space<vmem>>, vector<2x4x4x8xf32>
    %20 = vector.shape_cast %19 : vector<2x4x4x8xf32> to vector<32x8xf32>
    %21 = arith.truncf %20 : vector<32x8xf32> to vector<32x8xbf16>
    %c2_30 = arith.constant 2 : index
    %c0_31 = arith.constant 0 : index
    %c0_32 = arith.constant 0 : index
    %22 = vector.load %arg1[%c2_30, %c0_31, %c0_32] : memref<9x8x8xbf16, #tpu.memory_space<vmem>>, vector<1x8x8xbf16>
    %23 = vector.shape_cast %22 : vector<1x8x8xbf16> to vector<8x8xbf16>
    %cst_33 = arith.constant dense<0.000000e+00> : vector<32x8xf32>
    %24 = tpu.matmul %21, %23, %cst_33 {dimension_numbers = #tpu.dot_dimension_numbers<[1], [0], [0], [1], [0, 0, 1, 1], [], []>} : vector<32x8xbf16>, vector<8x8xbf16>, vector<32x8xf32> -> vector<32x8xf32>
    %25 = arith.addf %18, %24 : vector<32x8xf32>
    %c0_34 = arith.constant 0 : index
    %c1_35 = arith.constant 1 : index
    %c0_36 = arith.constant 0 : index
    %c0_37 = arith.constant 0 : index
    %26 = vector.load %arg10[%c0_34, %c1_35, %c0_36, %c0_37] : memref<2x6x6x8xf32, #tpu.memory_space<vmem>>, vector<2x4x4x8xf32>
    %27 = vector.shape_cast %26 : vector<2x4x4x8xf32> to vector<32x8xf32>
    %28 = arith.truncf %27 : vector<32x8xf32> to vector<32x8xbf16>
    %c3 = arith.constant 3 : index
    %c0_38 = arith.constant 0 : index
    %c0_39 = arith.constant 0 : index
    %29 = vector.load %arg1[%c3, %c0_38, %c0_39] : memref<9x8x8xbf16, #tpu.memory_space<vmem>>, vector<1x8x8xbf16>
    %30 = vector.shape_cast %29 : vector<1x8x8xbf16> to vector<8x8xbf16>
    %cst_40 = arith.constant dense<0.000000e+00> : vector<32x8xf32>
    %31 = tpu.matmul %28, %30, %cst_40 {dimension_numbers = #tpu.dot_dimension_numbers<[1], [0], [0], [1], [0, 0, 1, 1], [], []>} : vector<32x8xbf16>, vector<8x8xbf16>, vector<32x8xf32> -> vector<32x8xf32>
    %32 = arith.addf %25, %31 : vector<32x8xf32>
    %c0_41 = arith.constant 0 : index
    %c1_42 = arith.constant 1 : index
    %c1_43 = arith.constant 1 : index
    %c0_44 = arith.constant 0 : index
    %33 = vector.load %arg10[%c0_41, %c1_42, %c1_43, %c0_44] : memref<2x6x6x8xf32, #tpu.memory_space<vmem>>, vector<2x4x4x8xf32>
    %34 = vector.shape_cast %33 : vector<2x4x4x8xf32> to vector<32x8xf32>
    %35 = arith.truncf %34 : vector<32x8xf32> to vector<32x8xbf16>
    %c4 = arith.constant 4 : index
    %c0_45 = arith.constant 0 : index
    %c0_46 = arith.constant 0 : index
    %36 = vector.load %arg1[%c4, %c0_45, %c0_46] : memref<9x8x8xbf16, #tpu.memory_space<vmem>>, vector<1x8x8xbf16>
    %37 = vector.shape_cast %36 : vector<1x8x8xbf16> to vector<8x8xbf16>
    %cst_47 = arith.constant dense<0.000000e+00> : vector<32x8xf32>
    %38 = tpu.matmul %35, %37, %cst_47 {dimension_numbers = #tpu.dot_dimension_numbers<[1], [0], [0], [1], [0, 0, 1, 1], [], []>} : vector<32x8xbf16>, vector<8x8xbf16>, vector<32x8xf32> -> vector<32x8xf32>
    %39 = arith.addf %32, %38 : vector<32x8xf32>
    %c0_48 = arith.constant 0 : index
    %c1_49 = arith.constant 1 : index
    %c2_50 = arith.constant 2 : index
    %c0_51 = arith.constant 0 : index
    %40 = vector.load %arg10[%c0_48, %c1_49, %c2_50, %c0_51] : memref<2x6x6x8xf32, #tpu.memory_space<vmem>>, vector<2x4x4x8xf32>
    %41 = vector.shape_cast %40 : vector<2x4x4x8xf32> to vector<32x8xf32>
    %42 = arith.truncf %41 : vector<32x8xf32> to vector<32x8xbf16>
    %c5 = arith.constant 5 : index
    %c0_52 = arith.constant 0 : index
    %c0_53 = arith.constant 0 : index
    %43 = vector.load %arg1[%c5, %c0_52, %c0_53] : memref<9x8x8xbf16, #tpu.memory_space<vmem>>, vector<1x8x8xbf16>
    %44 = vector.shape_cast %43 : vector<1x8x8xbf16> to vector<8x8xbf16>
    %cst_54 = arith.constant dense<0.000000e+00> : vector<32x8xf32>
    %45 = tpu.matmul %42, %44, %cst_54 {dimension_numbers = #tpu.dot_dimension_numbers<[1], [0], [0], [1], [0, 0, 1, 1], [], []>} : vector<32x8xbf16>, vector<8x8xbf16>, vector<32x8xf32> -> vector<32x8xf32>
    %46 = arith.addf %39, %45 : vector<32x8xf32>
    %c0_55 = arith.constant 0 : index
    %c2_56 = arith.constant 2 : index
    %c0_57 = arith.constant 0 : index
    %c0_58 = arith.constant 0 : index
    %47 = vector.load %arg10[%c0_55, %c2_56, %c0_57, %c0_58] : memref<2x6x6x8xf32, #tpu.memory_space<vmem>>, vector<2x4x4x8xf32>
    %48 = vector.shape_cast %47 : vector<2x4x4x8xf32> to vector<32x8xf32>
    %49 = arith.truncf %48 : vector<32x8xf32> to vector<32x8xbf16>
    %c6 = arith.constant 6 : index
    %c0_59 = arith.constant 0 : index
    %c0_60 = arith.constant 0 : index
    %50 = vector.load %arg1[%c6, %c0_59, %c0_60] : memref<9x8x8xbf16, #tpu.memory_space<vmem>>, vector<1x8x8xbf16>
    %51 = vector.shape_cast %50 : vector<1x8x8xbf16> to vector<8x8xbf16>
    %cst_61 = arith.constant dense<0.000000e+00> : vector<32x8xf32>
    %52 = tpu.matmul %49, %51, %cst_61 {dimension_numbers = #tpu.dot_dimension_numbers<[1], [0], [0], [1], [0, 0, 1, 1], [], []>} : vector<32x8xbf16>, vector<8x8xbf16>, vector<32x8xf32> -> vector<32x8xf32>
    %53 = arith.addf %46, %52 : vector<32x8xf32>
    %c0_62 = arith.constant 0 : index
    %c2_63 = arith.constant 2 : index
    %c1_64 = arith.constant 1 : index
    %c0_65 = arith.constant 0 : index
    %54 = vector.load %arg10[%c0_62, %c2_63, %c1_64, %c0_65] : memref<2x6x6x8xf32, #tpu.memory_space<vmem>>, vector<2x4x4x8xf32>
    %55 = vector.shape_cast %54 : vector<2x4x4x8xf32> to vector<32x8xf32>
    %56 = arith.truncf %55 : vector<32x8xf32> to vector<32x8xbf16>
    %c7 = arith.constant 7 : index
    %c0_66 = arith.constant 0 : index
    %c0_67 = arith.constant 0 : index
    %57 = vector.load %arg1[%c7, %c0_66, %c0_67] : memref<9x8x8xbf16, #tpu.memory_space<vmem>>, vector<1x8x8xbf16>
    %58 = vector.shape_cast %57 : vector<1x8x8xbf16> to vector<8x8xbf16>
    %cst_68 = arith.constant dense<0.000000e+00> : vector<32x8xf32>
    %59 = tpu.matmul %56, %58, %cst_68 {dimension_numbers = #tpu.dot_dimension_numbers<[1], [0], [0], [1], [0, 0, 1, 1], [], []>} : vector<32x8xbf16>, vector<8x8xbf16>, vector<32x8xf32> -> vector<32x8xf32>
    %60 = arith.addf %53, %59 : vector<32x8xf32>
    %c0_69 = arith.constant 0 : index
    %c2_70 = arith.constant 2 : index
    %c2_71 = arith.constant 2 : index
    %c0_72 = arith.constant 0 : index
    %61 = vector.load %arg10[%c0_69, %c2_70, %c2_71, %c0_72] : memref<2x6x6x8xf32, #tpu.memory_space<vmem>>, vector<2x4x4x8xf32>
    %62 = vector.shape_cast %61 : vector<2x4x4x8xf32> to vector<32x8xf32>
    %63 = arith.truncf %62 : vector<32x8xf32> to vector<32x8xbf16>
    %c8 = arith.constant 8 : index
    %c0_73 = arith.constant 0 : index
    %c0_74 = arith.constant 0 : index
    %64 = vector.load %arg1[%c8, %c0_73, %c0_74] : memref<9x8x8xbf16, #tpu.memory_space<vmem>>, vector<1x8x8xbf16>
    %65 = vector.shape_cast %64 : vector<1x8x8xbf16> to vector<8x8xbf16>
    %cst_75 = arith.constant dense<0.000000e+00> : vector<32x8xf32>
    %66 = tpu.matmul %63, %65, %cst_75 {dimension_numbers = #tpu.dot_dimension_numbers<[1], [0], [0], [1], [0, 0, 1, 1], [], []>} : vector<32x8xbf16>, vector<8x8xbf16>, vector<32x8xf32> -> vector<32x8xf32>
    %67 = arith.addf %60, %66 : vector<32x8xf32>
    %c0_76 = arith.constant 0 : index
    %c0_77 = arith.constant 0 : index
    %68 = vector.load %arg2[%c0_76, %c0_77] : memref<1x8xf32, #tpu.memory_space<vmem>>, vector<1x8xf32>
    %69 = vector.broadcast %68 : vector<1x8xf32> to vector<32x8xf32>
    %70 = arith.addf %67, %69 : vector<32x8xf32>
    %cst_78 = arith.constant dense<0.000000e+00> : vector<8xf32>
    %71 = vector.multi_reduction <add>, %70, %cst_78 [0] : vector<32x8xf32> to vector<8xf32>
    %72 = vector.shape_cast %71 : vector<8xf32> to vector<1x8xf32>
    %cst_79 = arith.constant 3.200000e+01 : f32
    %73 = vector.broadcast %cst_79 : f32 to vector<1x8xf32>
    %74 = arith.divf %72, %73 : vector<1x8xf32>
    %75 = vector.broadcast %74 : vector<1x8xf32> to vector<32x8xf32>
    %76 = arith.subf %70, %75 : vector<32x8xf32>
    %77 = vector.broadcast %74 : vector<1x8xf32> to vector<32x8xf32>
    %78 = arith.subf %70, %77 : vector<32x8xf32>
    %79 = arith.mulf %76, %78 : vector<32x8xf32>
    %cst_80 = arith.constant dense<0.000000e+00> : vector<8xf32>
    %80 = vector.multi_reduction <add>, %79, %cst_80 [0] : vector<32x8xf32> to vector<8xf32>
    %81 = vector.shape_cast %80 : vector<8xf32> to vector<1x8xf32>
    %cst_81 = arith.constant 3.200000e+01 : f32
    %82 = vector.broadcast %cst_81 : f32 to vector<1x8xf32>
    %83 = arith.divf %81, %82 : vector<1x8xf32>
    %84 = vector.broadcast %74 : vector<1x8xf32> to vector<32x8xf32>
    %85 = arith.subf %70, %84 : vector<32x8xf32>
    %cst_82 = arith.constant 9.99999974E-6 : f32
    %86 = vector.broadcast %cst_82 : f32 to vector<1x8xf32>
    %87 = arith.addf %83, %86 : vector<1x8xf32>
    %88 = math.rsqrt %87 : vector<1x8xf32>
    %89 = vector.broadcast %88 : vector<1x8xf32> to vector<32x8xf32>
    %90 = arith.mulf %85, %89 : vector<32x8xf32>
    %c0_83 = arith.constant 0 : index
    %c0_84 = arith.constant 0 : index
    %91 = vector.load %arg3[%c0_83, %c0_84] : memref<1x8xf32, #tpu.memory_space<vmem>>, vector<1x8xf32>
    %92 = vector.broadcast %91 : vector<1x8xf32> to vector<32x8xf32>
    %93 = arith.mulf %90, %92 : vector<32x8xf32>
    %c0_85 = arith.constant 0 : index
    %c0_86 = arith.constant 0 : index
    %94 = vector.load %arg4[%c0_85, %c0_86] : memref<1x8xf32, #tpu.memory_space<vmem>>, vector<1x8xf32>
    %95 = vector.broadcast %94 : vector<1x8xf32> to vector<32x8xf32>
    %96 = arith.addf %93, %95 : vector<32x8xf32>
    %cst_87 = arith.constant 0.000000e+00 : f32
    %97 = vector.broadcast %cst_87 : f32 to vector<32x8xf32>
    %98 = arith.maximumf %96, %97 : vector<32x8xf32>
    %99 = vector.shape_cast %98 : vector<32x8xf32> to vector<2x4x4x8xf32>
    %c0_88 = arith.constant 0 : index
    %c1_89 = arith.constant 1 : index
    %c1_90 = arith.constant 1 : index
    %c0_91 = arith.constant 0 : index
    %100 = vector.load %arg10[%c0_88, %c1_89, %c1_90, %c0_91] : memref<2x6x6x8xf32, #tpu.memory_space<vmem>>, vector<2x4x4x8xf32>
    tpu.vector_store %arg10[%c0_88, %c1_89, %c1_90, %c0_91], %99 {strides = array<i32>} : memref<2x6x6x8xf32, #tpu.memory_space<vmem>>, vector<2x4x4x8xf32>,
    %cst_92 = arith.constant 0.000000e+00 : f32
    %101 = vector.broadcast %cst_92 : f32 to vector<32x8xf32>
    %c0_93 = arith.constant 0 : index
    %c0_94 = arith.constant 0 : index
    %c0_95 = arith.constant 0 : index
    %c0_96 = arith.constant 0 : index
    %102 = vector.load %arg10[%c0_93, %c0_94, %c0_95, %c0_96] : memref<2x6x6x8xf32, #tpu.memory_space<vmem>>, vector<2x4x4x8xf32>
    %103 = vector.shape_cast %102 : vector<2x4x4x8xf32> to vector<32x8xf32>
    %104 = arith.truncf %103 : vector<32x8xf32> to vector<32x8xbf16>
    %c0_97 = arith.constant 0 : index
    %c0_98 = arith.constant 0 : index
    %c0_99 = arith.constant 0 : index
    %105 = vector.load %arg5[%c0_97, %c0_98, %c0_99] : memref<9x8x8xbf16, #tpu.memory_space<vmem>>, vector<1x8x8xbf16>
    %106 = vector.shape_cast %105 : vector<1x8x8xbf16> to vector<8x8xbf16>
    %cst_100 = arith.constant dense<0.000000e+00> : vector<32x8xf32>
    %107 = tpu.matmul %104, %106, %cst_100 {dimension_numbers = #tpu.dot_dimension_numbers<[1], [0], [0], [1], [0, 0, 1, 1], [], []>} : vector<32x8xbf16>, vector<8x8xbf16>, vector<32x8xf32> -> vector<32x8xf32>
    %108 = arith.addf %101, %107 : vector<32x8xf32>
    %c0_101 = arith.constant 0 : index
    %c0_102 = arith.constant 0 : index
    %c1_103 = arith.constant 1 : index
    %c0_104 = arith.constant 0 : index
    %109 = vector.load %arg10[%c0_101, %c0_102, %c1_103, %c0_104] : memref<2x6x6x8xf32, #tpu.memory_space<vmem>>, vector<2x4x4x8xf32>
    %110 = vector.shape_cast %109 : vector<2x4x4x8xf32> to vector<32x8xf32>
    %111 = arith.truncf %110 : vector<32x8xf32> to vector<32x8xbf16>
    %c1_105 = arith.constant 1 : index
    %c0_106 = arith.constant 0 : index
    %c0_107 = arith.constant 0 : index
    %112 = vector.load %arg5[%c1_105, %c0_106, %c0_107] : memref<9x8x8xbf16, #tpu.memory_space<vmem>>, vector<1x8x8xbf16>
    %113 = vector.shape_cast %112 : vector<1x8x8xbf16> to vector<8x8xbf16>
    %cst_108 = arith.constant dense<0.000000e+00> : vector<32x8xf32>
    %114 = tpu.matmul %111, %113, %cst_108 {dimension_numbers = #tpu.dot_dimension_numbers<[1], [0], [0], [1], [0, 0, 1, 1], [], []>} : vector<32x8xbf16>, vector<8x8xbf16>, vector<32x8xf32> -> vector<32x8xf32>
    %115 = arith.addf %108, %114 : vector<32x8xf32>
    %c0_109 = arith.constant 0 : index
    %c0_110 = arith.constant 0 : index
    %c2_111 = arith.constant 2 : index
    %c0_112 = arith.constant 0 : index
    %116 = vector.load %arg10[%c0_109, %c0_110, %c2_111, %c0_112] : memref<2x6x6x8xf32, #tpu.memory_space<vmem>>, vector<2x4x4x8xf32>
    %117 = vector.shape_cast %116 : vector<2x4x4x8xf32> to vector<32x8xf32>
    %118 = arith.truncf %117 : vector<32x8xf32> to vector<32x8xbf16>
    %c2_113 = arith.constant 2 : index
    %c0_114 = arith.constant 0 : index
    %c0_115 = arith.constant 0 : index
    %119 = vector.load %arg5[%c2_113, %c0_114, %c0_115] : memref<9x8x8xbf16, #tpu.memory_space<vmem>>, vector<1x8x8xbf16>
    %120 = vector.shape_cast %119 : vector<1x8x8xbf16> to vector<8x8xbf16>
    %cst_116 = arith.constant dense<0.000000e+00> : vector<32x8xf32>
    %121 = tpu.matmul %118, %120, %cst_116 {dimension_numbers = #tpu.dot_dimension_numbers<[1], [0], [0], [1], [0, 0, 1, 1], [], []>} : vector<32x8xbf16>, vector<8x8xbf16>, vector<32x8xf32> -> vector<32x8xf32>
    %122 = arith.addf %115, %121 : vector<32x8xf32>
    %c0_117 = arith.constant 0 : index
    %c1_118 = arith.constant 1 : index
    %c0_119 = arith.constant 0 : index
    %c0_120 = arith.constant 0 : index
    %123 = vector.load %arg10[%c0_117, %c1_118, %c0_119, %c0_120] : memref<2x6x6x8xf32, #tpu.memory_space<vmem>>, vector<2x4x4x8xf32>
    %124 = vector.shape_cast %123 : vector<2x4x4x8xf32> to vector<32x8xf32>
    %125 = arith.truncf %124 : vector<32x8xf32> to vector<32x8xbf16>
    %c3_121 = arith.constant 3 : index
    %c0_122 = arith.constant 0 : index
    %c0_123 = arith.constant 0 : index
    %126 = vector.load %arg5[%c3_121, %c0_122, %c0_123] : memref<9x8x8xbf16, #tpu.memory_space<vmem>>, vector<1x8x8xbf16>
    %127 = vector.shape_cast %126 : vector<1x8x8xbf16> to vector<8x8xbf16>
    %cst_124 = arith.constant dense<0.000000e+00> : vector<32x8xf32>
    %128 = tpu.matmul %125, %127, %cst_124 {dimension_numbers = #tpu.dot_dimension_numbers<[1], [0], [0], [1], [0, 0, 1, 1], [], []>} : vector<32x8xbf16>, vector<8x8xbf16>, vector<32x8xf32> -> vector<32x8xf32>
    %129 = arith.addf %122, %128 : vector<32x8xf32>
    %c0_125 = arith.constant 0 : index
    %c1_126 = arith.constant 1 : index
    %c1_127 = arith.constant 1 : index
    %c0_128 = arith.constant 0 : index
    %130 = vector.load %arg10[%c0_125, %c1_126, %c1_127, %c0_128] : memref<2x6x6x8xf32, #tpu.memory_space<vmem>>, vector<2x4x4x8xf32>
    %131 = vector.shape_cast %130 : vector<2x4x4x8xf32> to vector<32x8xf32>
    %132 = arith.truncf %131 : vector<32x8xf32> to vector<32x8xbf16>
    %c4_129 = arith.constant 4 : index
    %c0_130 = arith.constant 0 : index
    %c0_131 = arith.constant 0 : index
    %133 = vector.load %arg5[%c4_129, %c0_130, %c0_131] : memref<9x8x8xbf16, #tpu.memory_space<vmem>>, vector<1x8x8xbf16>
    %134 = vector.shape_cast %133 : vector<1x8x8xbf16> to vector<8x8xbf16>
    %cst_132 = arith.constant dense<0.000000e+00> : vector<32x8xf32>
    %135 = tpu.matmul %132, %134, %cst_132 {dimension_numbers = #tpu.dot_dimension_numbers<[1], [0], [0], [1], [0, 0, 1, 1], [], []>} : vector<32x8xbf16>, vector<8x8xbf16>, vector<32x8xf32> -> vector<32x8xf32>
    %136 = arith.addf %129, %135 : vector<32x8xf32>
    %c0_133 = arith.constant 0 : index
    %c1_134 = arith.constant 1 : index
    %c2_135 = arith.constant 2 : index
    %c0_136 = arith.constant 0 : index
    %137 = vector.load %arg10[%c0_133, %c1_134, %c2_135, %c0_136] : memref<2x6x6x8xf32, #tpu.memory_space<vmem>>, vector<2x4x4x8xf32>
    %138 = vector.shape_cast %137 : vector<2x4x4x8xf32> to vector<32x8xf32>
    %139 = arith.truncf %138 : vector<32x8xf32> to vector<32x8xbf16>
    %c5_137 = arith.constant 5 : index
    %c0_138 = arith.constant 0 : index
    %c0_139 = arith.constant 0 : index
    %140 = vector.load %arg5[%c5_137, %c0_138, %c0_139] : memref<9x8x8xbf16, #tpu.memory_space<vmem>>, vector<1x8x8xbf16>
    %141 = vector.shape_cast %140 : vector<1x8x8xbf16> to vector<8x8xbf16>
    %cst_140 = arith.constant dense<0.000000e+00> : vector<32x8xf32>
    %142 = tpu.matmul %139, %141, %cst_140 {dimension_numbers = #tpu.dot_dimension_numbers<[1], [0], [0], [1], [0, 0, 1, 1], [], []>} : vector<32x8xbf16>, vector<8x8xbf16>, vector<32x8xf32> -> vector<32x8xf32>
    %143 = arith.addf %136, %142 : vector<32x8xf32>
    %c0_141 = arith.constant 0 : index
    %c2_142 = arith.constant 2 : index
    %c0_143 = arith.constant 0 : index
    %c0_144 = arith.constant 0 : index
    %144 = vector.load %arg10[%c0_141, %c2_142, %c0_143, %c0_144] : memref<2x6x6x8xf32, #tpu.memory_space<vmem>>, vector<2x4x4x8xf32>
    %145 = vector.shape_cast %144 : vector<2x4x4x8xf32> to vector<32x8xf32>
    %146 = arith.truncf %145 : vector<32x8xf32> to vector<32x8xbf16>
    %c6_145 = arith.constant 6 : index
    %c0_146 = arith.constant 0 : index
    %c0_147 = arith.constant 0 : index
    %147 = vector.load %arg5[%c6_145, %c0_146, %c0_147] : memref<9x8x8xbf16, #tpu.memory_space<vmem>>, vector<1x8x8xbf16>
    %148 = vector.shape_cast %147 : vector<1x8x8xbf16> to vector<8x8xbf16>
    %cst_148 = arith.constant dense<0.000000e+00> : vector<32x8xf32>
    %149 = tpu.matmul %146, %148, %cst_148 {dimension_numbers = #tpu.dot_dimension_numbers<[1], [0], [0], [1], [0, 0, 1, 1], [], []>} : vector<32x8xbf16>, vector<8x8xbf16>, vector<32x8xf32> -> vector<32x8xf32>
    %150 = arith.addf %143, %149 : vector<32x8xf32>
    %c0_149 = arith.constant 0 : index
    %c2_150 = arith.constant 2 : index
    %c1_151 = arith.constant 1 : index
    %c0_152 = arith.constant 0 : index
    %151 = vector.load %arg10[%c0_149, %c2_150, %c1_151, %c0_152] : memref<2x6x6x8xf32, #tpu.memory_space<vmem>>, vector<2x4x4x8xf32>
    %152 = vector.shape_cast %151 : vector<2x4x4x8xf32> to vector<32x8xf32>
    %153 = arith.truncf %152 : vector<32x8xf32> to vector<32x8xbf16>
    %c7_153 = arith.constant 7 : index
    %c0_154 = arith.constant 0 : index
    %c0_155 = arith.constant 0 : index
    %154 = vector.load %arg5[%c7_153, %c0_154, %c0_155] : memref<9x8x8xbf16, #tpu.memory_space<vmem>>, vector<1x8x8xbf16>
    %155 = vector.shape_cast %154 : vector<1x8x8xbf16> to vector<8x8xbf16>
    %cst_156 = arith.constant dense<0.000000e+00> : vector<32x8xf32>
    %156 = tpu.matmul %153, %155, %cst_156 {dimension_numbers = #tpu.dot_dimension_numbers<[1], [0], [0], [1], [0, 0, 1, 1], [], []>} : vector<32x8xbf16>, vector<8x8xbf16>, vector<32x8xf32> -> vector<32x8xf32>
    %157 = arith.addf %150, %156 : vector<32x8xf32>
    %c0_157 = arith.constant 0 : index
    %c2_158 = arith.constant 2 : index
    %c2_159 = arith.constant 2 : index
    %c0_160 = arith.constant 0 : index
    %158 = vector.load %arg10[%c0_157, %c2_158, %c2_159, %c0_160] : memref<2x6x6x8xf32, #tpu.memory_space<vmem>>, vector<2x4x4x8xf32>
    %159 = vector.shape_cast %158 : vector<2x4x4x8xf32> to vector<32x8xf32>
    %160 = arith.truncf %159 : vector<32x8xf32> to vector<32x8xbf16>
    %c8_161 = arith.constant 8 : index
    %c0_162 = arith.constant 0 : index
    %c0_163 = arith.constant 0 : index
    %161 = vector.load %arg5[%c8_161, %c0_162, %c0_163] : memref<9x8x8xbf16, #tpu.memory_space<vmem>>, vector<1x8x8xbf16>
    %162 = vector.shape_cast %161 : vector<1x8x8xbf16> to vector<8x8xbf16>
    %cst_164 = arith.constant dense<0.000000e+00> : vector<32x8xf32>
    %163 = tpu.matmul %160, %162, %cst_164 {dimension_numbers = #tpu.dot_dimension_numbers<[1], [0], [0], [1], [0, 0, 1, 1], [], []>} : vector<32x8xbf16>, vector<8x8xbf16>, vector<32x8xf32> -> vector<32x8xf32>
    %164 = arith.addf %157, %163 : vector<32x8xf32>
    %c0_165 = arith.constant 0 : index
    %c0_166 = arith.constant 0 : index
    %165 = vector.load %arg6[%c0_165, %c0_166] : memref<1x8xf32, #tpu.memory_space<vmem>>, vector<1x8xf32>
    %166 = vector.broadcast %165 : vector<1x8xf32> to vector<32x8xf32>
    %167 = arith.addf %164, %166 : vector<32x8xf32>
    %cst_167 = arith.constant dense<0.000000e+00> : vector<8xf32>
    %168 = vector.multi_reduction <add>, %167, %cst_167 [0] : vector<32x8xf32> to vector<8xf32>
    %169 = vector.shape_cast %168 : vector<8xf32> to vector<1x8xf32>
    %cst_168 = arith.constant 3.200000e+01 : f32
    %170 = vector.broadcast %cst_168 : f32 to vector<1x8xf32>
    %171 = arith.divf %169, %170 : vector<1x8xf32>
    %172 = vector.broadcast %171 : vector<1x8xf32> to vector<32x8xf32>
    %173 = arith.subf %167, %172 : vector<32x8xf32>
    %174 = vector.broadcast %171 : vector<1x8xf32> to vector<32x8xf32>
    %175 = arith.subf %167, %174 : vector<32x8xf32>
    %176 = arith.mulf %173, %175 : vector<32x8xf32>
    %cst_169 = arith.constant dense<0.000000e+00> : vector<8xf32>
    %177 = vector.multi_reduction <add>, %176, %cst_169 [0] : vector<32x8xf32> to vector<8xf32>
    %178 = vector.shape_cast %177 : vector<8xf32> to vector<1x8xf32>
    %cst_170 = arith.constant 3.200000e+01 : f32
    %179 = vector.broadcast %cst_170 : f32 to vector<1x8xf32>
    %180 = arith.divf %178, %179 : vector<1x8xf32>
    %181 = vector.broadcast %171 : vector<1x8xf32> to vector<32x8xf32>
    %182 = arith.subf %167, %181 : vector<32x8xf32>
    %cst_171 = arith.constant 9.99999974E-6 : f32
    %183 = vector.broadcast %cst_171 : f32 to vector<1x8xf32>
    %184 = arith.addf %180, %183 : vector<1x8xf32>
    %185 = math.rsqrt %184 : vector<1x8xf32>
    %186 = vector.broadcast %185 : vector<1x8xf32> to vector<32x8xf32>
    %187 = arith.mulf %182, %186 : vector<32x8xf32>
    %c0_172 = arith.constant 0 : index
    %c0_173 = arith.constant 0 : index
    %188 = vector.load %arg7[%c0_172, %c0_173] : memref<1x8xf32, #tpu.memory_space<vmem>>, vector<1x8xf32>
    %189 = vector.broadcast %188 : vector<1x8xf32> to vector<32x8xf32>
    %190 = arith.mulf %187, %189 : vector<32x8xf32>
    %c0_174 = arith.constant 0 : index
    %c0_175 = arith.constant 0 : index
    %191 = vector.load %arg8[%c0_174, %c0_175] : memref<1x8xf32, #tpu.memory_space<vmem>>, vector<1x8xf32>
    %192 = vector.broadcast %191 : vector<1x8xf32> to vector<32x8xf32>
    %193 = arith.addf %190, %192 : vector<32x8xf32>
    %194 = vector.shape_cast %0 : vector<2x4x4x8xf32> to vector<32x8xf32>
    %195 = arith.addf %194, %193 : vector<32x8xf32>
    %c0_176 = arith.constant 0 : index
    %c0_177 = arith.constant 0 : index
    %196 = vector.load %arg9[%c0_176, %c0_177] : memref<32x8xf32, #tpu.memory_space<vmem>>, vector<32x8xf32>
    tpu.vector_store %arg9[%c0_176, %c0_177], %195 {strides = array<i32>} : memref<32x8xf32, #tpu.memory_space<vmem>>, vector<32x8xf32>,
    return
  }
}

module attributes {stable_mosaic.version = 11 : i64} {
  func.func @_encoder_block_kernel(%arg0: memref<2x3x3x32xf32, #tpu.memory_space<vmem>>, %arg1: memref<4x32x16xbf16, #tpu.memory_space<vmem>>, %arg2: memref<1x16xf32, #tpu.memory_space<vmem>>, %arg3: memref<1x16xf32, #tpu.memory_space<vmem>>, %arg4: memref<1x16xf32, #tpu.memory_space<vmem>>, %arg5: memref<8x16xf32, #tpu.memory_space<vmem>>) attributes {dimension_semantics = [], scalar_prefetch = 0 : i64, scratch_operands = 0 : i64, tpu.core_type = #tpu.core_type<tc>} {
    %cst = arith.constant 0.000000e+00 : f32
    %0 = vector.broadcast %cst : f32 to vector<8x16xf32>
    %c0 = arith.constant 0 : index
    %c0_0 = arith.constant 0 : index
    %c0_1 = arith.constant 0 : index
    %c0_2 = arith.constant 0 : index
    %1 = vector.load %arg0[%c0, %c0_0, %c0_1, %c0_2] : memref<2x3x3x32xf32, #tpu.memory_space<vmem>>, vector<2x2x2x32xf32>
    %2 = vector.shape_cast %1 : vector<2x2x2x32xf32> to vector<8x32xf32>
    %3 = arith.truncf %2 : vector<8x32xf32> to vector<8x32xbf16>
    %c0_3 = arith.constant 0 : index
    %c0_4 = arith.constant 0 : index
    %c0_5 = arith.constant 0 : index
    %4 = vector.load %arg1[%c0_3, %c0_4, %c0_5] : memref<4x32x16xbf16, #tpu.memory_space<vmem>>, vector<1x32x16xbf16>
    %5 = vector.shape_cast %4 : vector<1x32x16xbf16> to vector<32x16xbf16>
    %cst_6 = arith.constant dense<0.000000e+00> : vector<8x16xf32>
    %6 = tpu.matmul %3, %5, %cst_6 {dimension_numbers = #tpu.dot_dimension_numbers<[1], [0], [0], [1], [0, 0, 1, 1], [], []>} : vector<8x32xbf16>, vector<32x16xbf16>, vector<8x16xf32> -> vector<8x16xf32>
    %7 = arith.addf %0, %6 : vector<8x16xf32>
    %c0_7 = arith.constant 0 : index
    %c0_8 = arith.constant 0 : index
    %c1 = arith.constant 1 : index
    %c0_9 = arith.constant 0 : index
    %8 = vector.load %arg0[%c0_7, %c0_8, %c1, %c0_9] : memref<2x3x3x32xf32, #tpu.memory_space<vmem>>, vector<2x2x2x32xf32>
    %9 = vector.shape_cast %8 : vector<2x2x2x32xf32> to vector<8x32xf32>
    %10 = arith.truncf %9 : vector<8x32xf32> to vector<8x32xbf16>
    %c1_10 = arith.constant 1 : index
    %c0_11 = arith.constant 0 : index
    %c0_12 = arith.constant 0 : index
    %11 = vector.load %arg1[%c1_10, %c0_11, %c0_12] : memref<4x32x16xbf16, #tpu.memory_space<vmem>>, vector<1x32x16xbf16>
    %12 = vector.shape_cast %11 : vector<1x32x16xbf16> to vector<32x16xbf16>
    %cst_13 = arith.constant dense<0.000000e+00> : vector<8x16xf32>
    %13 = tpu.matmul %10, %12, %cst_13 {dimension_numbers = #tpu.dot_dimension_numbers<[1], [0], [0], [1], [0, 0, 1, 1], [], []>} : vector<8x32xbf16>, vector<32x16xbf16>, vector<8x16xf32> -> vector<8x16xf32>
    %14 = arith.addf %7, %13 : vector<8x16xf32>
    %c0_14 = arith.constant 0 : index
    %c1_15 = arith.constant 1 : index
    %c0_16 = arith.constant 0 : index
    %c0_17 = arith.constant 0 : index
    %15 = vector.load %arg0[%c0_14, %c1_15, %c0_16, %c0_17] : memref<2x3x3x32xf32, #tpu.memory_space<vmem>>, vector<2x2x2x32xf32>
    %16 = vector.shape_cast %15 : vector<2x2x2x32xf32> to vector<8x32xf32>
    %17 = arith.truncf %16 : vector<8x32xf32> to vector<8x32xbf16>
    %c2 = arith.constant 2 : index
    %c0_18 = arith.constant 0 : index
    %c0_19 = arith.constant 0 : index
    %18 = vector.load %arg1[%c2, %c0_18, %c0_19] : memref<4x32x16xbf16, #tpu.memory_space<vmem>>, vector<1x32x16xbf16>
    %19 = vector.shape_cast %18 : vector<1x32x16xbf16> to vector<32x16xbf16>
    %cst_20 = arith.constant dense<0.000000e+00> : vector<8x16xf32>
    %20 = tpu.matmul %17, %19, %cst_20 {dimension_numbers = #tpu.dot_dimension_numbers<[1], [0], [0], [1], [0, 0, 1, 1], [], []>} : vector<8x32xbf16>, vector<32x16xbf16>, vector<8x16xf32> -> vector<8x16xf32>
    %21 = arith.addf %14, %20 : vector<8x16xf32>
    %c0_21 = arith.constant 0 : index
    %c1_22 = arith.constant 1 : index
    %c1_23 = arith.constant 1 : index
    %c0_24 = arith.constant 0 : index
    %22 = vector.load %arg0[%c0_21, %c1_22, %c1_23, %c0_24] : memref<2x3x3x32xf32, #tpu.memory_space<vmem>>, vector<2x2x2x32xf32>
    %23 = vector.shape_cast %22 : vector<2x2x2x32xf32> to vector<8x32xf32>
    %24 = arith.truncf %23 : vector<8x32xf32> to vector<8x32xbf16>
    %c3 = arith.constant 3 : index
    %c0_25 = arith.constant 0 : index
    %c0_26 = arith.constant 0 : index
    %25 = vector.load %arg1[%c3, %c0_25, %c0_26] : memref<4x32x16xbf16, #tpu.memory_space<vmem>>, vector<1x32x16xbf16>
    %26 = vector.shape_cast %25 : vector<1x32x16xbf16> to vector<32x16xbf16>
    %cst_27 = arith.constant dense<0.000000e+00> : vector<8x16xf32>
    %27 = tpu.matmul %24, %26, %cst_27 {dimension_numbers = #tpu.dot_dimension_numbers<[1], [0], [0], [1], [0, 0, 1, 1], [], []>} : vector<8x32xbf16>, vector<32x16xbf16>, vector<8x16xf32> -> vector<8x16xf32>
    %28 = arith.addf %21, %27 : vector<8x16xf32>
    %c0_28 = arith.constant 0 : index
    %c0_29 = arith.constant 0 : index
    %29 = vector.load %arg2[%c0_28, %c0_29] : memref<1x16xf32, #tpu.memory_space<vmem>>, vector<1x16xf32>
    %30 = vector.broadcast %29 : vector<1x16xf32> to vector<8x16xf32>
    %31 = arith.addf %28, %30 : vector<8x16xf32>
    %cst_30 = arith.constant dense<0.000000e+00> : vector<16xf32>
    %32 = vector.multi_reduction <add>, %31, %cst_30 [0] : vector<8x16xf32> to vector<16xf32>
    %33 = vector.shape_cast %32 : vector<16xf32> to vector<1x16xf32>
    %cst_31 = arith.constant 8.000000e+00 : f32
    %34 = vector.broadcast %cst_31 : f32 to vector<1x16xf32>
    %35 = arith.divf %33, %34 : vector<1x16xf32>
    %36 = vector.broadcast %35 : vector<1x16xf32> to vector<8x16xf32>
    %37 = arith.subf %31, %36 : vector<8x16xf32>
    %38 = vector.broadcast %35 : vector<1x16xf32> to vector<8x16xf32>
    %39 = arith.subf %31, %38 : vector<8x16xf32>
    %40 = arith.mulf %37, %39 : vector<8x16xf32>
    %cst_32 = arith.constant dense<0.000000e+00> : vector<16xf32>
    %41 = vector.multi_reduction <add>, %40, %cst_32 [0] : vector<8x16xf32> to vector<16xf32>
    %42 = vector.shape_cast %41 : vector<16xf32> to vector<1x16xf32>
    %cst_33 = arith.constant 8.000000e+00 : f32
    %43 = vector.broadcast %cst_33 : f32 to vector<1x16xf32>
    %44 = arith.divf %42, %43 : vector<1x16xf32>
    %45 = vector.broadcast %35 : vector<1x16xf32> to vector<8x16xf32>
    %46 = arith.subf %31, %45 : vector<8x16xf32>
    %cst_34 = arith.constant 9.99999974E-6 : f32
    %47 = vector.broadcast %cst_34 : f32 to vector<1x16xf32>
    %48 = arith.addf %44, %47 : vector<1x16xf32>
    %49 = math.rsqrt %48 : vector<1x16xf32>
    %50 = vector.broadcast %49 : vector<1x16xf32> to vector<8x16xf32>
    %51 = arith.mulf %46, %50 : vector<8x16xf32>
    %c0_35 = arith.constant 0 : index
    %c0_36 = arith.constant 0 : index
    %52 = vector.load %arg3[%c0_35, %c0_36] : memref<1x16xf32, #tpu.memory_space<vmem>>, vector<1x16xf32>
    %53 = vector.broadcast %52 : vector<1x16xf32> to vector<8x16xf32>
    %54 = arith.mulf %51, %53 : vector<8x16xf32>
    %c0_37 = arith.constant 0 : index
    %c0_38 = arith.constant 0 : index
    %55 = vector.load %arg4[%c0_37, %c0_38] : memref<1x16xf32, #tpu.memory_space<vmem>>, vector<1x16xf32>
    %56 = vector.broadcast %55 : vector<1x16xf32> to vector<8x16xf32>
    %57 = arith.addf %54, %56 : vector<8x16xf32>
    %cst_39 = arith.constant 0.000000e+00 : f32
    %58 = vector.broadcast %cst_39 : f32 to vector<8x16xf32>
    %59 = arith.cmpf oge, %57, %58 : vector<8x16xf32>
    %cst_40 = arith.constant 1.000000e+00 : f32
    %60 = vector.broadcast %cst_40 : f32 to vector<8x16xf32>
    %61 = arith.mulf %60, %57 : vector<8x16xf32>
    %62 = arith.select %59, %57, %61 : vector<8x16xi1>, vector<8x16xf32>
    %c0_41 = arith.constant 0 : index
    %c0_42 = arith.constant 0 : index
    %63 = vector.load %arg5[%c0_41, %c0_42] : memref<8x16xf32, #tpu.memory_space<vmem>>, vector<8x16xf32>
    tpu.vector_store %arg5[%c0_41, %c0_42], %62 {strides = array<i32>} : memref<8x16xf32, #tpu.memory_space<vmem>>, vector<8x16xf32>,
    return
  }
}

module attributes {stable_mosaic.version = 11 : i64} {
  func.func @_resnet_block_kernel(%arg0: memref<2x2x2x16xf32, #tpu.memory_space<vmem>>, %arg1: memref<9x16x16xbf16, #tpu.memory_space<vmem>>, %arg2: memref<1x16xf32, #tpu.memory_space<vmem>>, %arg3: memref<1x16xf32, #tpu.memory_space<vmem>>, %arg4: memref<1x16xf32, #tpu.memory_space<vmem>>, %arg5: memref<9x16x16xbf16, #tpu.memory_space<vmem>>, %arg6: memref<1x16xf32, #tpu.memory_space<vmem>>, %arg7: memref<1x16xf32, #tpu.memory_space<vmem>>, %arg8: memref<1x16xf32, #tpu.memory_space<vmem>>, %arg9: memref<8x16xf32, #tpu.memory_space<vmem>>, %arg10: memref<2x4x4x16xf32, #tpu.memory_space<vmem>>) attributes {dimension_semantics = [], scalar_prefetch = 0 : i64, scratch_operands = 1 : i64, tpu.core_type = #tpu.core_type<tc>} {
    %c0 = arith.constant 0 : index
    %c0_0 = arith.constant 0 : index
    %c0_1 = arith.constant 0 : index
    %c0_2 = arith.constant 0 : index
    %0 = vector.load %arg0[%c0, %c0_0, %c0_1, %c0_2] : memref<2x2x2x16xf32, #tpu.memory_space<vmem>>, vector<2x2x2x16xf32>
    %cst = arith.constant 0.000000e+00 : f32
    %1 = vector.broadcast %cst : f32 to vector<2x4x4x16xf32>
    %c0_3 = arith.constant 0 : index
    %c0_4 = arith.constant 0 : index
    %c0_5 = arith.constant 0 : index
    %c0_6 = arith.constant 0 : index
    %2 = vector.load %arg10[%c0_3, %c0_4, %c0_5, %c0_6] : memref<2x4x4x16xf32, #tpu.memory_space<vmem>>, vector<2x4x4x16xf32>
    tpu.vector_store %arg10[%c0_3, %c0_4, %c0_5, %c0_6], %1 {strides = array<i32>} : memref<2x4x4x16xf32, #tpu.memory_space<vmem>>, vector<2x4x4x16xf32>,
    %c0_7 = arith.constant 0 : index
    %c1 = arith.constant 1 : index
    %c1_8 = arith.constant 1 : index
    %c0_9 = arith.constant 0 : index
    %3 = vector.load %arg10[%c0_7, %c1, %c1_8, %c0_9] : memref<2x4x4x16xf32, #tpu.memory_space<vmem>>, vector<2x2x2x16xf32>
    tpu.vector_store %arg10[%c0_7, %c1, %c1_8, %c0_9], %0 {strides = array<i32>} : memref<2x4x4x16xf32, #tpu.memory_space<vmem>>, vector<2x2x2x16xf32>,
    %cst_10 = arith.constant 0.000000e+00 : f32
    %4 = vector.broadcast %cst_10 : f32 to vector<8x16xf32>
    %c0_11 = arith.constant 0 : index
    %c0_12 = arith.constant 0 : index
    %c0_13 = arith.constant 0 : index
    %c0_14 = arith.constant 0 : index
    %5 = vector.load %arg10[%c0_11, %c0_12, %c0_13, %c0_14] : memref<2x4x4x16xf32, #tpu.memory_space<vmem>>, vector<2x2x2x16xf32>
    %6 = vector.shape_cast %5 : vector<2x2x2x16xf32> to vector<8x16xf32>
    %7 = arith.truncf %6 : vector<8x16xf32> to vector<8x16xbf16>
    %c0_15 = arith.constant 0 : index
    %c0_16 = arith.constant 0 : index
    %c0_17 = arith.constant 0 : index
    %8 = vector.load %arg1[%c0_15, %c0_16, %c0_17] : memref<9x16x16xbf16, #tpu.memory_space<vmem>>, vector<1x16x16xbf16>
    %9 = vector.shape_cast %8 : vector<1x16x16xbf16> to vector<16x16xbf16>
    %cst_18 = arith.constant dense<0.000000e+00> : vector<8x16xf32>
    %10 = tpu.matmul %7, %9, %cst_18 {dimension_numbers = #tpu.dot_dimension_numbers<[1], [0], [0], [1], [0, 0, 1, 1], [], []>} : vector<8x16xbf16>, vector<16x16xbf16>, vector<8x16xf32> -> vector<8x16xf32>
    %11 = arith.addf %4, %10 : vector<8x16xf32>
    %c0_19 = arith.constant 0 : index
    %c0_20 = arith.constant 0 : index
    %c1_21 = arith.constant 1 : index
    %c0_22 = arith.constant 0 : index
    %12 = vector.load %arg10[%c0_19, %c0_20, %c1_21, %c0_22] : memref<2x4x4x16xf32, #tpu.memory_space<vmem>>, vector<2x2x2x16xf32>
    %13 = vector.shape_cast %12 : vector<2x2x2x16xf32> to vector<8x16xf32>
    %14 = arith.truncf %13 : vector<8x16xf32> to vector<8x16xbf16>
    %c1_23 = arith.constant 1 : index
    %c0_24 = arith.constant 0 : index
    %c0_25 = arith.constant 0 : index
    %15 = vector.load %arg1[%c1_23, %c0_24, %c0_25] : memref<9x16x16xbf16, #tpu.memory_space<vmem>>, vector<1x16x16xbf16>
    %16 = vector.shape_cast %15 : vector<1x16x16xbf16> to vector<16x16xbf16>
    %cst_26 = arith.constant dense<0.000000e+00> : vector<8x16xf32>
    %17 = tpu.matmul %14, %16, %cst_26 {dimension_numbers = #tpu.dot_dimension_numbers<[1], [0], [0], [1], [0, 0, 1, 1], [], []>} : vector<8x16xbf16>, vector<16x16xbf16>, vector<8x16xf32> -> vector<8x16xf32>
    %18 = arith.addf %11, %17 : vector<8x16xf32>
    %c0_27 = arith.constant 0 : index
    %c0_28 = arith.constant 0 : index
    %c2 = arith.constant 2 : index
    %c0_29 = arith.constant 0 : index
    %19 = vector.load %arg10[%c0_27, %c0_28, %c2, %c0_29] : memref<2x4x4x16xf32, #tpu.memory_space<vmem>>, vector<2x2x2x16xf32>
    %20 = vector.shape_cast %19 : vector<2x2x2x16xf32> to vector<8x16xf32>
    %21 = arith.truncf %20 : vector<8x16xf32> to vector<8x16xbf16>
    %c2_30 = arith.constant 2 : index
    %c0_31 = arith.constant 0 : index
    %c0_32 = arith.constant 0 : index
    %22 = vector.load %arg1[%c2_30, %c0_31, %c0_32] : memref<9x16x16xbf16, #tpu.memory_space<vmem>>, vector<1x16x16xbf16>
    %23 = vector.shape_cast %22 : vector<1x16x16xbf16> to vector<16x16xbf16>
    %cst_33 = arith.constant dense<0.000000e+00> : vector<8x16xf32>
    %24 = tpu.matmul %21, %23, %cst_33 {dimension_numbers = #tpu.dot_dimension_numbers<[1], [0], [0], [1], [0, 0, 1, 1], [], []>} : vector<8x16xbf16>, vector<16x16xbf16>, vector<8x16xf32> -> vector<8x16xf32>
    %25 = arith.addf %18, %24 : vector<8x16xf32>
    %c0_34 = arith.constant 0 : index
    %c1_35 = arith.constant 1 : index
    %c0_36 = arith.constant 0 : index
    %c0_37 = arith.constant 0 : index
    %26 = vector.load %arg10[%c0_34, %c1_35, %c0_36, %c0_37] : memref<2x4x4x16xf32, #tpu.memory_space<vmem>>, vector<2x2x2x16xf32>
    %27 = vector.shape_cast %26 : vector<2x2x2x16xf32> to vector<8x16xf32>
    %28 = arith.truncf %27 : vector<8x16xf32> to vector<8x16xbf16>
    %c3 = arith.constant 3 : index
    %c0_38 = arith.constant 0 : index
    %c0_39 = arith.constant 0 : index
    %29 = vector.load %arg1[%c3, %c0_38, %c0_39] : memref<9x16x16xbf16, #tpu.memory_space<vmem>>, vector<1x16x16xbf16>
    %30 = vector.shape_cast %29 : vector<1x16x16xbf16> to vector<16x16xbf16>
    %cst_40 = arith.constant dense<0.000000e+00> : vector<8x16xf32>
    %31 = tpu.matmul %28, %30, %cst_40 {dimension_numbers = #tpu.dot_dimension_numbers<[1], [0], [0], [1], [0, 0, 1, 1], [], []>} : vector<8x16xbf16>, vector<16x16xbf16>, vector<8x16xf32> -> vector<8x16xf32>
    %32 = arith.addf %25, %31 : vector<8x16xf32>
    %c0_41 = arith.constant 0 : index
    %c1_42 = arith.constant 1 : index
    %c1_43 = arith.constant 1 : index
    %c0_44 = arith.constant 0 : index
    %33 = vector.load %arg10[%c0_41, %c1_42, %c1_43, %c0_44] : memref<2x4x4x16xf32, #tpu.memory_space<vmem>>, vector<2x2x2x16xf32>
    %34 = vector.shape_cast %33 : vector<2x2x2x16xf32> to vector<8x16xf32>
    %35 = arith.truncf %34 : vector<8x16xf32> to vector<8x16xbf16>
    %c4 = arith.constant 4 : index
    %c0_45 = arith.constant 0 : index
    %c0_46 = arith.constant 0 : index
    %36 = vector.load %arg1[%c4, %c0_45, %c0_46] : memref<9x16x16xbf16, #tpu.memory_space<vmem>>, vector<1x16x16xbf16>
    %37 = vector.shape_cast %36 : vector<1x16x16xbf16> to vector<16x16xbf16>
    %cst_47 = arith.constant dense<0.000000e+00> : vector<8x16xf32>
    %38 = tpu.matmul %35, %37, %cst_47 {dimension_numbers = #tpu.dot_dimension_numbers<[1], [0], [0], [1], [0, 0, 1, 1], [], []>} : vector<8x16xbf16>, vector<16x16xbf16>, vector<8x16xf32> -> vector<8x16xf32>
    %39 = arith.addf %32, %38 : vector<8x16xf32>
    %c0_48 = arith.constant 0 : index
    %c1_49 = arith.constant 1 : index
    %c2_50 = arith.constant 2 : index
    %c0_51 = arith.constant 0 : index
    %40 = vector.load %arg10[%c0_48, %c1_49, %c2_50, %c0_51] : memref<2x4x4x16xf32, #tpu.memory_space<vmem>>, vector<2x2x2x16xf32>
    %41 = vector.shape_cast %40 : vector<2x2x2x16xf32> to vector<8x16xf32>
    %42 = arith.truncf %41 : vector<8x16xf32> to vector<8x16xbf16>
    %c5 = arith.constant 5 : index
    %c0_52 = arith.constant 0 : index
    %c0_53 = arith.constant 0 : index
    %43 = vector.load %arg1[%c5, %c0_52, %c0_53] : memref<9x16x16xbf16, #tpu.memory_space<vmem>>, vector<1x16x16xbf16>
    %44 = vector.shape_cast %43 : vector<1x16x16xbf16> to vector<16x16xbf16>
    %cst_54 = arith.constant dense<0.000000e+00> : vector<8x16xf32>
    %45 = tpu.matmul %42, %44, %cst_54 {dimension_numbers = #tpu.dot_dimension_numbers<[1], [0], [0], [1], [0, 0, 1, 1], [], []>} : vector<8x16xbf16>, vector<16x16xbf16>, vector<8x16xf32> -> vector<8x16xf32>
    %46 = arith.addf %39, %45 : vector<8x16xf32>
    %c0_55 = arith.constant 0 : index
    %c2_56 = arith.constant 2 : index
    %c0_57 = arith.constant 0 : index
    %c0_58 = arith.constant 0 : index
    %47 = vector.load %arg10[%c0_55, %c2_56, %c0_57, %c0_58] : memref<2x4x4x16xf32, #tpu.memory_space<vmem>>, vector<2x2x2x16xf32>
    %48 = vector.shape_cast %47 : vector<2x2x2x16xf32> to vector<8x16xf32>
    %49 = arith.truncf %48 : vector<8x16xf32> to vector<8x16xbf16>
    %c6 = arith.constant 6 : index
    %c0_59 = arith.constant 0 : index
    %c0_60 = arith.constant 0 : index
    %50 = vector.load %arg1[%c6, %c0_59, %c0_60] : memref<9x16x16xbf16, #tpu.memory_space<vmem>>, vector<1x16x16xbf16>
    %51 = vector.shape_cast %50 : vector<1x16x16xbf16> to vector<16x16xbf16>
    %cst_61 = arith.constant dense<0.000000e+00> : vector<8x16xf32>
    %52 = tpu.matmul %49, %51, %cst_61 {dimension_numbers = #tpu.dot_dimension_numbers<[1], [0], [0], [1], [0, 0, 1, 1], [], []>} : vector<8x16xbf16>, vector<16x16xbf16>, vector<8x16xf32> -> vector<8x16xf32>
    %53 = arith.addf %46, %52 : vector<8x16xf32>
    %c0_62 = arith.constant 0 : index
    %c2_63 = arith.constant 2 : index
    %c1_64 = arith.constant 1 : index
    %c0_65 = arith.constant 0 : index
    %54 = vector.load %arg10[%c0_62, %c2_63, %c1_64, %c0_65] : memref<2x4x4x16xf32, #tpu.memory_space<vmem>>, vector<2x2x2x16xf32>
    %55 = vector.shape_cast %54 : vector<2x2x2x16xf32> to vector<8x16xf32>
    %56 = arith.truncf %55 : vector<8x16xf32> to vector<8x16xbf16>
    %c7 = arith.constant 7 : index
    %c0_66 = arith.constant 0 : index
    %c0_67 = arith.constant 0 : index
    %57 = vector.load %arg1[%c7, %c0_66, %c0_67] : memref<9x16x16xbf16, #tpu.memory_space<vmem>>, vector<1x16x16xbf16>
    %58 = vector.shape_cast %57 : vector<1x16x16xbf16> to vector<16x16xbf16>
    %cst_68 = arith.constant dense<0.000000e+00> : vector<8x16xf32>
    %59 = tpu.matmul %56, %58, %cst_68 {dimension_numbers = #tpu.dot_dimension_numbers<[1], [0], [0], [1], [0, 0, 1, 1], [], []>} : vector<8x16xbf16>, vector<16x16xbf16>, vector<8x16xf32> -> vector<8x16xf32>
    %60 = arith.addf %53, %59 : vector<8x16xf32>
    %c0_69 = arith.constant 0 : index
    %c2_70 = arith.constant 2 : index
    %c2_71 = arith.constant 2 : index
    %c0_72 = arith.constant 0 : index
    %61 = vector.load %arg10[%c0_69, %c2_70, %c2_71, %c0_72] : memref<2x4x4x16xf32, #tpu.memory_space<vmem>>, vector<2x2x2x16xf32>
    %62 = vector.shape_cast %61 : vector<2x2x2x16xf32> to vector<8x16xf32>
    %63 = arith.truncf %62 : vector<8x16xf32> to vector<8x16xbf16>
    %c8 = arith.constant 8 : index
    %c0_73 = arith.constant 0 : index
    %c0_74 = arith.constant 0 : index
    %64 = vector.load %arg1[%c8, %c0_73, %c0_74] : memref<9x16x16xbf16, #tpu.memory_space<vmem>>, vector<1x16x16xbf16>
    %65 = vector.shape_cast %64 : vector<1x16x16xbf16> to vector<16x16xbf16>
    %cst_75 = arith.constant dense<0.000000e+00> : vector<8x16xf32>
    %66 = tpu.matmul %63, %65, %cst_75 {dimension_numbers = #tpu.dot_dimension_numbers<[1], [0], [0], [1], [0, 0, 1, 1], [], []>} : vector<8x16xbf16>, vector<16x16xbf16>, vector<8x16xf32> -> vector<8x16xf32>
    %67 = arith.addf %60, %66 : vector<8x16xf32>
    %c0_76 = arith.constant 0 : index
    %c0_77 = arith.constant 0 : index
    %68 = vector.load %arg2[%c0_76, %c0_77] : memref<1x16xf32, #tpu.memory_space<vmem>>, vector<1x16xf32>
    %69 = vector.broadcast %68 : vector<1x16xf32> to vector<8x16xf32>
    %70 = arith.addf %67, %69 : vector<8x16xf32>
    %cst_78 = arith.constant dense<0.000000e+00> : vector<16xf32>
    %71 = vector.multi_reduction <add>, %70, %cst_78 [0] : vector<8x16xf32> to vector<16xf32>
    %72 = vector.shape_cast %71 : vector<16xf32> to vector<1x16xf32>
    %cst_79 = arith.constant 8.000000e+00 : f32
    %73 = vector.broadcast %cst_79 : f32 to vector<1x16xf32>
    %74 = arith.divf %72, %73 : vector<1x16xf32>
    %75 = vector.broadcast %74 : vector<1x16xf32> to vector<8x16xf32>
    %76 = arith.subf %70, %75 : vector<8x16xf32>
    %77 = vector.broadcast %74 : vector<1x16xf32> to vector<8x16xf32>
    %78 = arith.subf %70, %77 : vector<8x16xf32>
    %79 = arith.mulf %76, %78 : vector<8x16xf32>
    %cst_80 = arith.constant dense<0.000000e+00> : vector<16xf32>
    %80 = vector.multi_reduction <add>, %79, %cst_80 [0] : vector<8x16xf32> to vector<16xf32>
    %81 = vector.shape_cast %80 : vector<16xf32> to vector<1x16xf32>
    %cst_81 = arith.constant 8.000000e+00 : f32
    %82 = vector.broadcast %cst_81 : f32 to vector<1x16xf32>
    %83 = arith.divf %81, %82 : vector<1x16xf32>
    %84 = vector.broadcast %74 : vector<1x16xf32> to vector<8x16xf32>
    %85 = arith.subf %70, %84 : vector<8x16xf32>
    %cst_82 = arith.constant 9.99999974E-6 : f32
    %86 = vector.broadcast %cst_82 : f32 to vector<1x16xf32>
    %87 = arith.addf %83, %86 : vector<1x16xf32>
    %88 = math.rsqrt %87 : vector<1x16xf32>
    %89 = vector.broadcast %88 : vector<1x16xf32> to vector<8x16xf32>
    %90 = arith.mulf %85, %89 : vector<8x16xf32>
    %c0_83 = arith.constant 0 : index
    %c0_84 = arith.constant 0 : index
    %91 = vector.load %arg3[%c0_83, %c0_84] : memref<1x16xf32, #tpu.memory_space<vmem>>, vector<1x16xf32>
    %92 = vector.broadcast %91 : vector<1x16xf32> to vector<8x16xf32>
    %93 = arith.mulf %90, %92 : vector<8x16xf32>
    %c0_85 = arith.constant 0 : index
    %c0_86 = arith.constant 0 : index
    %94 = vector.load %arg4[%c0_85, %c0_86] : memref<1x16xf32, #tpu.memory_space<vmem>>, vector<1x16xf32>
    %95 = vector.broadcast %94 : vector<1x16xf32> to vector<8x16xf32>
    %96 = arith.addf %93, %95 : vector<8x16xf32>
    %cst_87 = arith.constant 0.000000e+00 : f32
    %97 = vector.broadcast %cst_87 : f32 to vector<8x16xf32>
    %98 = arith.maximumf %96, %97 : vector<8x16xf32>
    %99 = vector.shape_cast %98 : vector<8x16xf32> to vector<2x2x2x16xf32>
    %c0_88 = arith.constant 0 : index
    %c1_89 = arith.constant 1 : index
    %c1_90 = arith.constant 1 : index
    %c0_91 = arith.constant 0 : index
    %100 = vector.load %arg10[%c0_88, %c1_89, %c1_90, %c0_91] : memref<2x4x4x16xf32, #tpu.memory_space<vmem>>, vector<2x2x2x16xf32>
    tpu.vector_store %arg10[%c0_88, %c1_89, %c1_90, %c0_91], %99 {strides = array<i32>} : memref<2x4x4x16xf32, #tpu.memory_space<vmem>>, vector<2x2x2x16xf32>,
    %cst_92 = arith.constant 0.000000e+00 : f32
    %101 = vector.broadcast %cst_92 : f32 to vector<8x16xf32>
    %c0_93 = arith.constant 0 : index
    %c0_94 = arith.constant 0 : index
    %c0_95 = arith.constant 0 : index
    %c0_96 = arith.constant 0 : index
    %102 = vector.load %arg10[%c0_93, %c0_94, %c0_95, %c0_96] : memref<2x4x4x16xf32, #tpu.memory_space<vmem>>, vector<2x2x2x16xf32>
    %103 = vector.shape_cast %102 : vector<2x2x2x16xf32> to vector<8x16xf32>
    %104 = arith.truncf %103 : vector<8x16xf32> to vector<8x16xbf16>
    %c0_97 = arith.constant 0 : index
    %c0_98 = arith.constant 0 : index
    %c0_99 = arith.constant 0 : index
    %105 = vector.load %arg5[%c0_97, %c0_98, %c0_99] : memref<9x16x16xbf16, #tpu.memory_space<vmem>>, vector<1x16x16xbf16>
    %106 = vector.shape_cast %105 : vector<1x16x16xbf16> to vector<16x16xbf16>
    %cst_100 = arith.constant dense<0.000000e+00> : vector<8x16xf32>
    %107 = tpu.matmul %104, %106, %cst_100 {dimension_numbers = #tpu.dot_dimension_numbers<[1], [0], [0], [1], [0, 0, 1, 1], [], []>} : vector<8x16xbf16>, vector<16x16xbf16>, vector<8x16xf32> -> vector<8x16xf32>
    %108 = arith.addf %101, %107 : vector<8x16xf32>
    %c0_101 = arith.constant 0 : index
    %c0_102 = arith.constant 0 : index
    %c1_103 = arith.constant 1 : index
    %c0_104 = arith.constant 0 : index
    %109 = vector.load %arg10[%c0_101, %c0_102, %c1_103, %c0_104] : memref<2x4x4x16xf32, #tpu.memory_space<vmem>>, vector<2x2x2x16xf32>
    %110 = vector.shape_cast %109 : vector<2x2x2x16xf32> to vector<8x16xf32>
    %111 = arith.truncf %110 : vector<8x16xf32> to vector<8x16xbf16>
    %c1_105 = arith.constant 1 : index
    %c0_106 = arith.constant 0 : index
    %c0_107 = arith.constant 0 : index
    %112 = vector.load %arg5[%c1_105, %c0_106, %c0_107] : memref<9x16x16xbf16, #tpu.memory_space<vmem>>, vector<1x16x16xbf16>
    %113 = vector.shape_cast %112 : vector<1x16x16xbf16> to vector<16x16xbf16>
    %cst_108 = arith.constant dense<0.000000e+00> : vector<8x16xf32>
    %114 = tpu.matmul %111, %113, %cst_108 {dimension_numbers = #tpu.dot_dimension_numbers<[1], [0], [0], [1], [0, 0, 1, 1], [], []>} : vector<8x16xbf16>, vector<16x16xbf16>, vector<8x16xf32> -> vector<8x16xf32>
    %115 = arith.addf %108, %114 : vector<8x16xf32>
    %c0_109 = arith.constant 0 : index
    %c0_110 = arith.constant 0 : index
    %c2_111 = arith.constant 2 : index
    %c0_112 = arith.constant 0 : index
    %116 = vector.load %arg10[%c0_109, %c0_110, %c2_111, %c0_112] : memref<2x4x4x16xf32, #tpu.memory_space<vmem>>, vector<2x2x2x16xf32>
    %117 = vector.shape_cast %116 : vector<2x2x2x16xf32> to vector<8x16xf32>
    %118 = arith.truncf %117 : vector<8x16xf32> to vector<8x16xbf16>
    %c2_113 = arith.constant 2 : index
    %c0_114 = arith.constant 0 : index
    %c0_115 = arith.constant 0 : index
    %119 = vector.load %arg5[%c2_113, %c0_114, %c0_115] : memref<9x16x16xbf16, #tpu.memory_space<vmem>>, vector<1x16x16xbf16>
    %120 = vector.shape_cast %119 : vector<1x16x16xbf16> to vector<16x16xbf16>
    %cst_116 = arith.constant dense<0.000000e+00> : vector<8x16xf32>
    %121 = tpu.matmul %118, %120, %cst_116 {dimension_numbers = #tpu.dot_dimension_numbers<[1], [0], [0], [1], [0, 0, 1, 1], [], []>} : vector<8x16xbf16>, vector<16x16xbf16>, vector<8x16xf32> -> vector<8x16xf32>
    %122 = arith.addf %115, %121 : vector<8x16xf32>
    %c0_117 = arith.constant 0 : index
    %c1_118 = arith.constant 1 : index
    %c0_119 = arith.constant 0 : index
    %c0_120 = arith.constant 0 : index
    %123 = vector.load %arg10[%c0_117, %c1_118, %c0_119, %c0_120] : memref<2x4x4x16xf32, #tpu.memory_space<vmem>>, vector<2x2x2x16xf32>
    %124 = vector.shape_cast %123 : vector<2x2x2x16xf32> to vector<8x16xf32>
    %125 = arith.truncf %124 : vector<8x16xf32> to vector<8x16xbf16>
    %c3_121 = arith.constant 3 : index
    %c0_122 = arith.constant 0 : index
    %c0_123 = arith.constant 0 : index
    %126 = vector.load %arg5[%c3_121, %c0_122, %c0_123] : memref<9x16x16xbf16, #tpu.memory_space<vmem>>, vector<1x16x16xbf16>
    %127 = vector.shape_cast %126 : vector<1x16x16xbf16> to vector<16x16xbf16>
    %cst_124 = arith.constant dense<0.000000e+00> : vector<8x16xf32>
    %128 = tpu.matmul %125, %127, %cst_124 {dimension_numbers = #tpu.dot_dimension_numbers<[1], [0], [0], [1], [0, 0, 1, 1], [], []>} : vector<8x16xbf16>, vector<16x16xbf16>, vector<8x16xf32> -> vector<8x16xf32>
    %129 = arith.addf %122, %128 : vector<8x16xf32>
    %c0_125 = arith.constant 0 : index
    %c1_126 = arith.constant 1 : index
    %c1_127 = arith.constant 1 : index
    %c0_128 = arith.constant 0 : index
    %130 = vector.load %arg10[%c0_125, %c1_126, %c1_127, %c0_128] : memref<2x4x4x16xf32, #tpu.memory_space<vmem>>, vector<2x2x2x16xf32>
    %131 = vector.shape_cast %130 : vector<2x2x2x16xf32> to vector<8x16xf32>
    %132 = arith.truncf %131 : vector<8x16xf32> to vector<8x16xbf16>
    %c4_129 = arith.constant 4 : index
    %c0_130 = arith.constant 0 : index
    %c0_131 = arith.constant 0 : index
    %133 = vector.load %arg5[%c4_129, %c0_130, %c0_131] : memref<9x16x16xbf16, #tpu.memory_space<vmem>>, vector<1x16x16xbf16>
    %134 = vector.shape_cast %133 : vector<1x16x16xbf16> to vector<16x16xbf16>
    %cst_132 = arith.constant dense<0.000000e+00> : vector<8x16xf32>
    %135 = tpu.matmul %132, %134, %cst_132 {dimension_numbers = #tpu.dot_dimension_numbers<[1], [0], [0], [1], [0, 0, 1, 1], [], []>} : vector<8x16xbf16>, vector<16x16xbf16>, vector<8x16xf32> -> vector<8x16xf32>
    %136 = arith.addf %129, %135 : vector<8x16xf32>
    %c0_133 = arith.constant 0 : index
    %c1_134 = arith.constant 1 : index
    %c2_135 = arith.constant 2 : index
    %c0_136 = arith.constant 0 : index
    %137 = vector.load %arg10[%c0_133, %c1_134, %c2_135, %c0_136] : memref<2x4x4x16xf32, #tpu.memory_space<vmem>>, vector<2x2x2x16xf32>
    %138 = vector.shape_cast %137 : vector<2x2x2x16xf32> to vector<8x16xf32>
    %139 = arith.truncf %138 : vector<8x16xf32> to vector<8x16xbf16>
    %c5_137 = arith.constant 5 : index
    %c0_138 = arith.constant 0 : index
    %c0_139 = arith.constant 0 : index
    %140 = vector.load %arg5[%c5_137, %c0_138, %c0_139] : memref<9x16x16xbf16, #tpu.memory_space<vmem>>, vector<1x16x16xbf16>
    %141 = vector.shape_cast %140 : vector<1x16x16xbf16> to vector<16x16xbf16>
    %cst_140 = arith.constant dense<0.000000e+00> : vector<8x16xf32>
    %142 = tpu.matmul %139, %141, %cst_140 {dimension_numbers = #tpu.dot_dimension_numbers<[1], [0], [0], [1], [0, 0, 1, 1], [], []>} : vector<8x16xbf16>, vector<16x16xbf16>, vector<8x16xf32> -> vector<8x16xf32>
    %143 = arith.addf %136, %142 : vector<8x16xf32>
    %c0_141 = arith.constant 0 : index
    %c2_142 = arith.constant 2 : index
    %c0_143 = arith.constant 0 : index
    %c0_144 = arith.constant 0 : index
    %144 = vector.load %arg10[%c0_141, %c2_142, %c0_143, %c0_144] : memref<2x4x4x16xf32, #tpu.memory_space<vmem>>, vector<2x2x2x16xf32>
    %145 = vector.shape_cast %144 : vector<2x2x2x16xf32> to vector<8x16xf32>
    %146 = arith.truncf %145 : vector<8x16xf32> to vector<8x16xbf16>
    %c6_145 = arith.constant 6 : index
    %c0_146 = arith.constant 0 : index
    %c0_147 = arith.constant 0 : index
    %147 = vector.load %arg5[%c6_145, %c0_146, %c0_147] : memref<9x16x16xbf16, #tpu.memory_space<vmem>>, vector<1x16x16xbf16>
    %148 = vector.shape_cast %147 : vector<1x16x16xbf16> to vector<16x16xbf16>
    %cst_148 = arith.constant dense<0.000000e+00> : vector<8x16xf32>
    %149 = tpu.matmul %146, %148, %cst_148 {dimension_numbers = #tpu.dot_dimension_numbers<[1], [0], [0], [1], [0, 0, 1, 1], [], []>} : vector<8x16xbf16>, vector<16x16xbf16>, vector<8x16xf32> -> vector<8x16xf32>
    %150 = arith.addf %143, %149 : vector<8x16xf32>
    %c0_149 = arith.constant 0 : index
    %c2_150 = arith.constant 2 : index
    %c1_151 = arith.constant 1 : index
    %c0_152 = arith.constant 0 : index
    %151 = vector.load %arg10[%c0_149, %c2_150, %c1_151, %c0_152] : memref<2x4x4x16xf32, #tpu.memory_space<vmem>>, vector<2x2x2x16xf32>
    %152 = vector.shape_cast %151 : vector<2x2x2x16xf32> to vector<8x16xf32>
    %153 = arith.truncf %152 : vector<8x16xf32> to vector<8x16xbf16>
    %c7_153 = arith.constant 7 : index
    %c0_154 = arith.constant 0 : index
    %c0_155 = arith.constant 0 : index
    %154 = vector.load %arg5[%c7_153, %c0_154, %c0_155] : memref<9x16x16xbf16, #tpu.memory_space<vmem>>, vector<1x16x16xbf16>
    %155 = vector.shape_cast %154 : vector<1x16x16xbf16> to vector<16x16xbf16>
    %cst_156 = arith.constant dense<0.000000e+00> : vector<8x16xf32>
    %156 = tpu.matmul %153, %155, %cst_156 {dimension_numbers = #tpu.dot_dimension_numbers<[1], [0], [0], [1], [0, 0, 1, 1], [], []>} : vector<8x16xbf16>, vector<16x16xbf16>, vector<8x16xf32> -> vector<8x16xf32>
    %157 = arith.addf %150, %156 : vector<8x16xf32>
    %c0_157 = arith.constant 0 : index
    %c2_158 = arith.constant 2 : index
    %c2_159 = arith.constant 2 : index
    %c0_160 = arith.constant 0 : index
    %158 = vector.load %arg10[%c0_157, %c2_158, %c2_159, %c0_160] : memref<2x4x4x16xf32, #tpu.memory_space<vmem>>, vector<2x2x2x16xf32>
    %159 = vector.shape_cast %158 : vector<2x2x2x16xf32> to vector<8x16xf32>
    %160 = arith.truncf %159 : vector<8x16xf32> to vector<8x16xbf16>
    %c8_161 = arith.constant 8 : index
    %c0_162 = arith.constant 0 : index
    %c0_163 = arith.constant 0 : index
    %161 = vector.load %arg5[%c8_161, %c0_162, %c0_163] : memref<9x16x16xbf16, #tpu.memory_space<vmem>>, vector<1x16x16xbf16>
    %162 = vector.shape_cast %161 : vector<1x16x16xbf16> to vector<16x16xbf16>
    %cst_164 = arith.constant dense<0.000000e+00> : vector<8x16xf32>
    %163 = tpu.matmul %160, %162, %cst_164 {dimension_numbers = #tpu.dot_dimension_numbers<[1], [0], [0], [1], [0, 0, 1, 1], [], []>} : vector<8x16xbf16>, vector<16x16xbf16>, vector<8x16xf32> -> vector<8x16xf32>
    %164 = arith.addf %157, %163 : vector<8x16xf32>
    %c0_165 = arith.constant 0 : index
    %c0_166 = arith.constant 0 : index
    %165 = vector.load %arg6[%c0_165, %c0_166] : memref<1x16xf32, #tpu.memory_space<vmem>>, vector<1x16xf32>
    %166 = vector.broadcast %165 : vector<1x16xf32> to vector<8x16xf32>
    %167 = arith.addf %164, %166 : vector<8x16xf32>
    %cst_167 = arith.constant dense<0.000000e+00> : vector<16xf32>
    %168 = vector.multi_reduction <add>, %167, %cst_167 [0] : vector<8x16xf32> to vector<16xf32>
    %169 = vector.shape_cast %168 : vector<16xf32> to vector<1x16xf32>
    %cst_168 = arith.constant 8.000000e+00 : f32
    %170 = vector.broadcast %cst_168 : f32 to vector<1x16xf32>
    %171 = arith.divf %169, %170 : vector<1x16xf32>
    %172 = vector.broadcast %171 : vector<1x16xf32> to vector<8x16xf32>
    %173 = arith.subf %167, %172 : vector<8x16xf32>
    %174 = vector.broadcast %171 : vector<1x16xf32> to vector<8x16xf32>
    %175 = arith.subf %167, %174 : vector<8x16xf32>
    %176 = arith.mulf %173, %175 : vector<8x16xf32>
    %cst_169 = arith.constant dense<0.000000e+00> : vector<16xf32>
    %177 = vector.multi_reduction <add>, %176, %cst_169 [0] : vector<8x16xf32> to vector<16xf32>
    %178 = vector.shape_cast %177 : vector<16xf32> to vector<1x16xf32>
    %cst_170 = arith.constant 8.000000e+00 : f32
    %179 = vector.broadcast %cst_170 : f32 to vector<1x16xf32>
    %180 = arith.divf %178, %179 : vector<1x16xf32>
    %181 = vector.broadcast %171 : vector<1x16xf32> to vector<8x16xf32>
    %182 = arith.subf %167, %181 : vector<8x16xf32>
    %cst_171 = arith.constant 9.99999974E-6 : f32
    %183 = vector.broadcast %cst_171 : f32 to vector<1x16xf32>
    %184 = arith.addf %180, %183 : vector<1x16xf32>
    %185 = math.rsqrt %184 : vector<1x16xf32>
    %186 = vector.broadcast %185 : vector<1x16xf32> to vector<8x16xf32>
    %187 = arith.mulf %182, %186 : vector<8x16xf32>
    %c0_172 = arith.constant 0 : index
    %c0_173 = arith.constant 0 : index
    %188 = vector.load %arg7[%c0_172, %c0_173] : memref<1x16xf32, #tpu.memory_space<vmem>>, vector<1x16xf32>
    %189 = vector.broadcast %188 : vector<1x16xf32> to vector<8x16xf32>
    %190 = arith.mulf %187, %189 : vector<8x16xf32>
    %c0_174 = arith.constant 0 : index
    %c0_175 = arith.constant 0 : index
    %191 = vector.load %arg8[%c0_174, %c0_175] : memref<1x16xf32, #tpu.memory_space<vmem>>, vector<1x16xf32>
    %192 = vector.broadcast %191 : vector<1x16xf32> to vector<8x16xf32>
    %193 = arith.addf %190, %192 : vector<8x16xf32>
    %194 = vector.shape_cast %0 : vector<2x2x2x16xf32> to vector<8x16xf32>
    %195 = arith.addf %194, %193 : vector<8x16xf32>
    %c0_176 = arith.constant 0 : index
    %c0_177 = arith.constant 0 : index
    %196 = vector.load %arg9[%c0_176, %c0_177] : memref<8x16xf32, #tpu.memory_space<vmem>>, vector<8x16xf32>
    tpu.vector_store %arg9[%c0_176, %c0_177], %195 {strides = array<i32>} : memref<8x16xf32, #tpu.memory_space<vmem>>, vector<8x16xf32>,
    return
  }
}

module attributes {stable_mosaic.version = 11 : i64} {
  func.func @_resnet_block_kernel(%arg0: memref<2x1x1x32xf32, #tpu.memory_space<vmem>>, %arg1: memref<9x32x32xbf16, #tpu.memory_space<vmem>>, %arg2: memref<1x32xf32, #tpu.memory_space<vmem>>, %arg3: memref<1x32xf32, #tpu.memory_space<vmem>>, %arg4: memref<1x32xf32, #tpu.memory_space<vmem>>, %arg5: memref<9x32x32xbf16, #tpu.memory_space<vmem>>, %arg6: memref<1x32xf32, #tpu.memory_space<vmem>>, %arg7: memref<1x32xf32, #tpu.memory_space<vmem>>, %arg8: memref<1x32xf32, #tpu.memory_space<vmem>>, %arg9: memref<2x32xf32, #tpu.memory_space<vmem>>, %arg10: memref<2x3x3x32xf32, #tpu.memory_space<vmem>>) attributes {dimension_semantics = [], scalar_prefetch = 0 : i64, scratch_operands = 1 : i64, tpu.core_type = #tpu.core_type<tc>} {
    %c0 = arith.constant 0 : index
    %c0_0 = arith.constant 0 : index
    %c0_1 = arith.constant 0 : index
    %c0_2 = arith.constant 0 : index
    %0 = vector.load %arg0[%c0, %c0_0, %c0_1, %c0_2] : memref<2x1x1x32xf32, #tpu.memory_space<vmem>>, vector<2x1x1x32xf32>
    %cst = arith.constant 0.000000e+00 : f32
    %1 = vector.broadcast %cst : f32 to vector<2x3x3x32xf32>
    %c0_3 = arith.constant 0 : index
    %c0_4 = arith.constant 0 : index
    %c0_5 = arith.constant 0 : index
    %c0_6 = arith.constant 0 : index
    %2 = vector.load %arg10[%c0_3, %c0_4, %c0_5, %c0_6] : memref<2x3x3x32xf32, #tpu.memory_space<vmem>>, vector<2x3x3x32xf32>
    tpu.vector_store %arg10[%c0_3, %c0_4, %c0_5, %c0_6], %1 {strides = array<i32>} : memref<2x3x3x32xf32, #tpu.memory_space<vmem>>, vector<2x3x3x32xf32>,
    %c0_7 = arith.constant 0 : index
    %c1 = arith.constant 1 : index
    %c1_8 = arith.constant 1 : index
    %c0_9 = arith.constant 0 : index
    %3 = vector.load %arg10[%c0_7, %c1, %c1_8, %c0_9] : memref<2x3x3x32xf32, #tpu.memory_space<vmem>>, vector<2x1x1x32xf32>
    tpu.vector_store %arg10[%c0_7, %c1, %c1_8, %c0_9], %0 {strides = array<i32>} : memref<2x3x3x32xf32, #tpu.memory_space<vmem>>, vector<2x1x1x32xf32>,
    %cst_10 = arith.constant 0.000000e+00 : f32
    %4 = vector.broadcast %cst_10 : f32 to vector<2x32xf32>
    %c0_11 = arith.constant 0 : index
    %c0_12 = arith.constant 0 : index
    %c0_13 = arith.constant 0 : index
    %c0_14 = arith.constant 0 : index
    %5 = vector.load %arg10[%c0_11, %c0_12, %c0_13, %c0_14] : memref<2x3x3x32xf32, #tpu.memory_space<vmem>>, vector<2x1x1x32xf32>
    %6 = vector.shape_cast %5 : vector<2x1x1x32xf32> to vector<2x32xf32>
    %7 = arith.truncf %6 : vector<2x32xf32> to vector<2x32xbf16>
    %c0_15 = arith.constant 0 : index
    %c0_16 = arith.constant 0 : index
    %c0_17 = arith.constant 0 : index
    %8 = vector.load %arg1[%c0_15, %c0_16, %c0_17] : memref<9x32x32xbf16, #tpu.memory_space<vmem>>, vector<1x32x32xbf16>
    %9 = vector.shape_cast %8 : vector<1x32x32xbf16> to vector<32x32xbf16>
    %cst_18 = arith.constant dense<0.000000e+00> : vector<2x32xf32>
    %10 = tpu.matmul %7, %9, %cst_18 {dimension_numbers = #tpu.dot_dimension_numbers<[1], [0], [0], [1], [0, 0, 1, 1], [], []>} : vector<2x32xbf16>, vector<32x32xbf16>, vector<2x32xf32> -> vector<2x32xf32>
    %11 = arith.addf %4, %10 : vector<2x32xf32>
    %c0_19 = arith.constant 0 : index
    %c0_20 = arith.constant 0 : index
    %c1_21 = arith.constant 1 : index
    %c0_22 = arith.constant 0 : index
    %12 = vector.load %arg10[%c0_19, %c0_20, %c1_21, %c0_22] : memref<2x3x3x32xf32, #tpu.memory_space<vmem>>, vector<2x1x1x32xf32>
    %13 = vector.shape_cast %12 : vector<2x1x1x32xf32> to vector<2x32xf32>
    %14 = arith.truncf %13 : vector<2x32xf32> to vector<2x32xbf16>
    %c1_23 = arith.constant 1 : index
    %c0_24 = arith.constant 0 : index
    %c0_25 = arith.constant 0 : index
    %15 = vector.load %arg1[%c1_23, %c0_24, %c0_25] : memref<9x32x32xbf16, #tpu.memory_space<vmem>>, vector<1x32x32xbf16>
    %16 = vector.shape_cast %15 : vector<1x32x32xbf16> to vector<32x32xbf16>
    %cst_26 = arith.constant dense<0.000000e+00> : vector<2x32xf32>
    %17 = tpu.matmul %14, %16, %cst_26 {dimension_numbers = #tpu.dot_dimension_numbers<[1], [0], [0], [1], [0, 0, 1, 1], [], []>} : vector<2x32xbf16>, vector<32x32xbf16>, vector<2x32xf32> -> vector<2x32xf32>
    %18 = arith.addf %11, %17 : vector<2x32xf32>
    %c0_27 = arith.constant 0 : index
    %c0_28 = arith.constant 0 : index
    %c2 = arith.constant 2 : index
    %c0_29 = arith.constant 0 : index
    %19 = vector.load %arg10[%c0_27, %c0_28, %c2, %c0_29] : memref<2x3x3x32xf32, #tpu.memory_space<vmem>>, vector<2x1x1x32xf32>
    %20 = vector.shape_cast %19 : vector<2x1x1x32xf32> to vector<2x32xf32>
    %21 = arith.truncf %20 : vector<2x32xf32> to vector<2x32xbf16>
    %c2_30 = arith.constant 2 : index
    %c0_31 = arith.constant 0 : index
    %c0_32 = arith.constant 0 : index
    %22 = vector.load %arg1[%c2_30, %c0_31, %c0_32] : memref<9x32x32xbf16, #tpu.memory_space<vmem>>, vector<1x32x32xbf16>
    %23 = vector.shape_cast %22 : vector<1x32x32xbf16> to vector<32x32xbf16>
    %cst_33 = arith.constant dense<0.000000e+00> : vector<2x32xf32>
    %24 = tpu.matmul %21, %23, %cst_33 {dimension_numbers = #tpu.dot_dimension_numbers<[1], [0], [0], [1], [0, 0, 1, 1], [], []>} : vector<2x32xbf16>, vector<32x32xbf16>, vector<2x32xf32> -> vector<2x32xf32>
    %25 = arith.addf %18, %24 : vector<2x32xf32>
    %c0_34 = arith.constant 0 : index
    %c1_35 = arith.constant 1 : index
    %c0_36 = arith.constant 0 : index
    %c0_37 = arith.constant 0 : index
    %26 = vector.load %arg10[%c0_34, %c1_35, %c0_36, %c0_37] : memref<2x3x3x32xf32, #tpu.memory_space<vmem>>, vector<2x1x1x32xf32>
    %27 = vector.shape_cast %26 : vector<2x1x1x32xf32> to vector<2x32xf32>
    %28 = arith.truncf %27 : vector<2x32xf32> to vector<2x32xbf16>
    %c3 = arith.constant 3 : index
    %c0_38 = arith.constant 0 : index
    %c0_39 = arith.constant 0 : index
    %29 = vector.load %arg1[%c3, %c0_38, %c0_39] : memref<9x32x32xbf16, #tpu.memory_space<vmem>>, vector<1x32x32xbf16>
    %30 = vector.shape_cast %29 : vector<1x32x32xbf16> to vector<32x32xbf16>
    %cst_40 = arith.constant dense<0.000000e+00> : vector<2x32xf32>
    %31 = tpu.matmul %28, %30, %cst_40 {dimension_numbers = #tpu.dot_dimension_numbers<[1], [0], [0], [1], [0, 0, 1, 1], [], []>} : vector<2x32xbf16>, vector<32x32xbf16>, vector<2x32xf32> -> vector<2x32xf32>
    %32 = arith.addf %25, %31 : vector<2x32xf32>
    %c0_41 = arith.constant 0 : index
    %c1_42 = arith.constant 1 : index
    %c1_43 = arith.constant 1 : index
    %c0_44 = arith.constant 0 : index
    %33 = vector.load %arg10[%c0_41, %c1_42, %c1_43, %c0_44] : memref<2x3x3x32xf32, #tpu.memory_space<vmem>>, vector<2x1x1x32xf32>
    %34 = vector.shape_cast %33 : vector<2x1x1x32xf32> to vector<2x32xf32>
    %35 = arith.truncf %34 : vector<2x32xf32> to vector<2x32xbf16>
    %c4 = arith.constant 4 : index
    %c0_45 = arith.constant 0 : index
    %c0_46 = arith.constant 0 : index
    %36 = vector.load %arg1[%c4, %c0_45, %c0_46] : memref<9x32x32xbf16, #tpu.memory_space<vmem>>, vector<1x32x32xbf16>
    %37 = vector.shape_cast %36 : vector<1x32x32xbf16> to vector<32x32xbf16>
    %cst_47 = arith.constant dense<0.000000e+00> : vector<2x32xf32>
    %38 = tpu.matmul %35, %37, %cst_47 {dimension_numbers = #tpu.dot_dimension_numbers<[1], [0], [0], [1], [0, 0, 1, 1], [], []>} : vector<2x32xbf16>, vector<32x32xbf16>, vector<2x32xf32> -> vector<2x32xf32>
    %39 = arith.addf %32, %38 : vector<2x32xf32>
    %c0_48 = arith.constant 0 : index
    %c1_49 = arith.constant 1 : index
    %c2_50 = arith.constant 2 : index
    %c0_51 = arith.constant 0 : index
    %40 = vector.load %arg10[%c0_48, %c1_49, %c2_50, %c0_51] : memref<2x3x3x32xf32, #tpu.memory_space<vmem>>, vector<2x1x1x32xf32>
    %41 = vector.shape_cast %40 : vector<2x1x1x32xf32> to vector<2x32xf32>
    %42 = arith.truncf %41 : vector<2x32xf32> to vector<2x32xbf16>
    %c5 = arith.constant 5 : index
    %c0_52 = arith.constant 0 : index
    %c0_53 = arith.constant 0 : index
    %43 = vector.load %arg1[%c5, %c0_52, %c0_53] : memref<9x32x32xbf16, #tpu.memory_space<vmem>>, vector<1x32x32xbf16>
    %44 = vector.shape_cast %43 : vector<1x32x32xbf16> to vector<32x32xbf16>
    %cst_54 = arith.constant dense<0.000000e+00> : vector<2x32xf32>
    %45 = tpu.matmul %42, %44, %cst_54 {dimension_numbers = #tpu.dot_dimension_numbers<[1], [0], [0], [1], [0, 0, 1, 1], [], []>} : vector<2x32xbf16>, vector<32x32xbf16>, vector<2x32xf32> -> vector<2x32xf32>
    %46 = arith.addf %39, %45 : vector<2x32xf32>
    %c0_55 = arith.constant 0 : index
    %c2_56 = arith.constant 2 : index
    %c0_57 = arith.constant 0 : index
    %c0_58 = arith.constant 0 : index
    %47 = vector.load %arg10[%c0_55, %c2_56, %c0_57, %c0_58] : memref<2x3x3x32xf32, #tpu.memory_space<vmem>>, vector<2x1x1x32xf32>
    %48 = vector.shape_cast %47 : vector<2x1x1x32xf32> to vector<2x32xf32>
    %49 = arith.truncf %48 : vector<2x32xf32> to vector<2x32xbf16>
    %c6 = arith.constant 6 : index
    %c0_59 = arith.constant 0 : index
    %c0_60 = arith.constant 0 : index
    %50 = vector.load %arg1[%c6, %c0_59, %c0_60] : memref<9x32x32xbf16, #tpu.memory_space<vmem>>, vector<1x32x32xbf16>
    %51 = vector.shape_cast %50 : vector<1x32x32xbf16> to vector<32x32xbf16>
    %cst_61 = arith.constant dense<0.000000e+00> : vector<2x32xf32>
    %52 = tpu.matmul %49, %51, %cst_61 {dimension_numbers = #tpu.dot_dimension_numbers<[1], [0], [0], [1], [0, 0, 1, 1], [], []>} : vector<2x32xbf16>, vector<32x32xbf16>, vector<2x32xf32> -> vector<2x32xf32>
    %53 = arith.addf %46, %52 : vector<2x32xf32>
    %c0_62 = arith.constant 0 : index
    %c2_63 = arith.constant 2 : index
    %c1_64 = arith.constant 1 : index
    %c0_65 = arith.constant 0 : index
    %54 = vector.load %arg10[%c0_62, %c2_63, %c1_64, %c0_65] : memref<2x3x3x32xf32, #tpu.memory_space<vmem>>, vector<2x1x1x32xf32>
    %55 = vector.shape_cast %54 : vector<2x1x1x32xf32> to vector<2x32xf32>
    %56 = arith.truncf %55 : vector<2x32xf32> to vector<2x32xbf16>
    %c7 = arith.constant 7 : index
    %c0_66 = arith.constant 0 : index
    %c0_67 = arith.constant 0 : index
    %57 = vector.load %arg1[%c7, %c0_66, %c0_67] : memref<9x32x32xbf16, #tpu.memory_space<vmem>>, vector<1x32x32xbf16>
    %58 = vector.shape_cast %57 : vector<1x32x32xbf16> to vector<32x32xbf16>
    %cst_68 = arith.constant dense<0.000000e+00> : vector<2x32xf32>
    %59 = tpu.matmul %56, %58, %cst_68 {dimension_numbers = #tpu.dot_dimension_numbers<[1], [0], [0], [1], [0, 0, 1, 1], [], []>} : vector<2x32xbf16>, vector<32x32xbf16>, vector<2x32xf32> -> vector<2x32xf32>
    %60 = arith.addf %53, %59 : vector<2x32xf32>
    %c0_69 = arith.constant 0 : index
    %c2_70 = arith.constant 2 : index
    %c2_71 = arith.constant 2 : index
    %c0_72 = arith.constant 0 : index
    %61 = vector.load %arg10[%c0_69, %c2_70, %c2_71, %c0_72] : memref<2x3x3x32xf32, #tpu.memory_space<vmem>>, vector<2x1x1x32xf32>
    %62 = vector.shape_cast %61 : vector<2x1x1x32xf32> to vector<2x32xf32>
    %63 = arith.truncf %62 : vector<2x32xf32> to vector<2x32xbf16>
    %c8 = arith.constant 8 : index
    %c0_73 = arith.constant 0 : index
    %c0_74 = arith.constant 0 : index
    %64 = vector.load %arg1[%c8, %c0_73, %c0_74] : memref<9x32x32xbf16, #tpu.memory_space<vmem>>, vector<1x32x32xbf16>
    %65 = vector.shape_cast %64 : vector<1x32x32xbf16> to vector<32x32xbf16>
    %cst_75 = arith.constant dense<0.000000e+00> : vector<2x32xf32>
    %66 = tpu.matmul %63, %65, %cst_75 {dimension_numbers = #tpu.dot_dimension_numbers<[1], [0], [0], [1], [0, 0, 1, 1], [], []>} : vector<2x32xbf16>, vector<32x32xbf16>, vector<2x32xf32> -> vector<2x32xf32>
    %67 = arith.addf %60, %66 : vector<2x32xf32>
    %c0_76 = arith.constant 0 : index
    %c0_77 = arith.constant 0 : index
    %68 = vector.load %arg2[%c0_76, %c0_77] : memref<1x32xf32, #tpu.memory_space<vmem>>, vector<1x32xf32>
    %69 = vector.broadcast %68 : vector<1x32xf32> to vector<2x32xf32>
    %70 = arith.addf %67, %69 : vector<2x32xf32>
    %cst_78 = arith.constant dense<0.000000e+00> : vector<32xf32>
    %71 = vector.multi_reduction <add>, %70, %cst_78 [0] : vector<2x32xf32> to vector<32xf32>
    %72 = vector.shape_cast %71 : vector<32xf32> to vector<1x32xf32>
    %cst_79 = arith.constant 2.000000e+00 : f32
    %73 = vector.broadcast %cst_79 : f32 to vector<1x32xf32>
    %74 = arith.divf %72, %73 : vector<1x32xf32>
    %75 = vector.broadcast %74 : vector<1x32xf32> to vector<2x32xf32>
    %76 = arith.subf %70, %75 : vector<2x32xf32>
    %77 = vector.broadcast %74 : vector<1x32xf32> to vector<2x32xf32>
    %78 = arith.subf %70, %77 : vector<2x32xf32>
    %79 = arith.mulf %76, %78 : vector<2x32xf32>
    %cst_80 = arith.constant dense<0.000000e+00> : vector<32xf32>
    %80 = vector.multi_reduction <add>, %79, %cst_80 [0] : vector<2x32xf32> to vector<32xf32>
    %81 = vector.shape_cast %80 : vector<32xf32> to vector<1x32xf32>
    %cst_81 = arith.constant 2.000000e+00 : f32
    %82 = vector.broadcast %cst_81 : f32 to vector<1x32xf32>
    %83 = arith.divf %81, %82 : vector<1x32xf32>
    %84 = vector.broadcast %74 : vector<1x32xf32> to vector<2x32xf32>
    %85 = arith.subf %70, %84 : vector<2x32xf32>
    %cst_82 = arith.constant 9.99999974E-6 : f32
    %86 = vector.broadcast %cst_82 : f32 to vector<1x32xf32>
    %87 = arith.addf %83, %86 : vector<1x32xf32>
    %88 = math.rsqrt %87 : vector<1x32xf32>
    %89 = vector.broadcast %88 : vector<1x32xf32> to vector<2x32xf32>
    %90 = arith.mulf %85, %89 : vector<2x32xf32>
    %c0_83 = arith.constant 0 : index
    %c0_84 = arith.constant 0 : index
    %91 = vector.load %arg3[%c0_83, %c0_84] : memref<1x32xf32, #tpu.memory_space<vmem>>, vector<1x32xf32>
    %92 = vector.broadcast %91 : vector<1x32xf32> to vector<2x32xf32>
    %93 = arith.mulf %90, %92 : vector<2x32xf32>
    %c0_85 = arith.constant 0 : index
    %c0_86 = arith.constant 0 : index
    %94 = vector.load %arg4[%c0_85, %c0_86] : memref<1x32xf32, #tpu.memory_space<vmem>>, vector<1x32xf32>
    %95 = vector.broadcast %94 : vector<1x32xf32> to vector<2x32xf32>
    %96 = arith.addf %93, %95 : vector<2x32xf32>
    %cst_87 = arith.constant 0.000000e+00 : f32
    %97 = vector.broadcast %cst_87 : f32 to vector<2x32xf32>
    %98 = arith.maximumf %96, %97 : vector<2x32xf32>
    %99 = vector.shape_cast %98 : vector<2x32xf32> to vector<2x1x1x32xf32>
    %c0_88 = arith.constant 0 : index
    %c1_89 = arith.constant 1 : index
    %c1_90 = arith.constant 1 : index
    %c0_91 = arith.constant 0 : index
    %100 = vector.load %arg10[%c0_88, %c1_89, %c1_90, %c0_91] : memref<2x3x3x32xf32, #tpu.memory_space<vmem>>, vector<2x1x1x32xf32>
    tpu.vector_store %arg10[%c0_88, %c1_89, %c1_90, %c0_91], %99 {strides = array<i32>} : memref<2x3x3x32xf32, #tpu.memory_space<vmem>>, vector<2x1x1x32xf32>,
    %cst_92 = arith.constant 0.000000e+00 : f32
    %101 = vector.broadcast %cst_92 : f32 to vector<2x32xf32>
    %c0_93 = arith.constant 0 : index
    %c0_94 = arith.constant 0 : index
    %c0_95 = arith.constant 0 : index
    %c0_96 = arith.constant 0 : index
    %102 = vector.load %arg10[%c0_93, %c0_94, %c0_95, %c0_96] : memref<2x3x3x32xf32, #tpu.memory_space<vmem>>, vector<2x1x1x32xf32>
    %103 = vector.shape_cast %102 : vector<2x1x1x32xf32> to vector<2x32xf32>
    %104 = arith.truncf %103 : vector<2x32xf32> to vector<2x32xbf16>
    %c0_97 = arith.constant 0 : index
    %c0_98 = arith.constant 0 : index
    %c0_99 = arith.constant 0 : index
    %105 = vector.load %arg5[%c0_97, %c0_98, %c0_99] : memref<9x32x32xbf16, #tpu.memory_space<vmem>>, vector<1x32x32xbf16>
    %106 = vector.shape_cast %105 : vector<1x32x32xbf16> to vector<32x32xbf16>
    %cst_100 = arith.constant dense<0.000000e+00> : vector<2x32xf32>
    %107 = tpu.matmul %104, %106, %cst_100 {dimension_numbers = #tpu.dot_dimension_numbers<[1], [0], [0], [1], [0, 0, 1, 1], [], []>} : vector<2x32xbf16>, vector<32x32xbf16>, vector<2x32xf32> -> vector<2x32xf32>
    %108 = arith.addf %101, %107 : vector<2x32xf32>
    %c0_101 = arith.constant 0 : index
    %c0_102 = arith.constant 0 : index
    %c1_103 = arith.constant 1 : index
    %c0_104 = arith.constant 0 : index
    %109 = vector.load %arg10[%c0_101, %c0_102, %c1_103, %c0_104] : memref<2x3x3x32xf32, #tpu.memory_space<vmem>>, vector<2x1x1x32xf32>
    %110 = vector.shape_cast %109 : vector<2x1x1x32xf32> to vector<2x32xf32>
    %111 = arith.truncf %110 : vector<2x32xf32> to vector<2x32xbf16>
    %c1_105 = arith.constant 1 : index
    %c0_106 = arith.constant 0 : index
    %c0_107 = arith.constant 0 : index
    %112 = vector.load %arg5[%c1_105, %c0_106, %c0_107] : memref<9x32x32xbf16, #tpu.memory_space<vmem>>, vector<1x32x32xbf16>
    %113 = vector.shape_cast %112 : vector<1x32x32xbf16> to vector<32x32xbf16>
    %cst_108 = arith.constant dense<0.000000e+00> : vector<2x32xf32>
    %114 = tpu.matmul %111, %113, %cst_108 {dimension_numbers = #tpu.dot_dimension_numbers<[1], [0], [0], [1], [0, 0, 1, 1], [], []>} : vector<2x32xbf16>, vector<32x32xbf16>, vector<2x32xf32> -> vector<2x32xf32>
    %115 = arith.addf %108, %114 : vector<2x32xf32>
    %c0_109 = arith.constant 0 : index
    %c0_110 = arith.constant 0 : index
    %c2_111 = arith.constant 2 : index
    %c0_112 = arith.constant 0 : index
    %116 = vector.load %arg10[%c0_109, %c0_110, %c2_111, %c0_112] : memref<2x3x3x32xf32, #tpu.memory_space<vmem>>, vector<2x1x1x32xf32>
    %117 = vector.shape_cast %116 : vector<2x1x1x32xf32> to vector<2x32xf32>
    %118 = arith.truncf %117 : vector<2x32xf32> to vector<2x32xbf16>
    %c2_113 = arith.constant 2 : index
    %c0_114 = arith.constant 0 : index
    %c0_115 = arith.constant 0 : index
    %119 = vector.load %arg5[%c2_113, %c0_114, %c0_115] : memref<9x32x32xbf16, #tpu.memory_space<vmem>>, vector<1x32x32xbf16>
    %120 = vector.shape_cast %119 : vector<1x32x32xbf16> to vector<32x32xbf16>
    %cst_116 = arith.constant dense<0.000000e+00> : vector<2x32xf32>
    %121 = tpu.matmul %118, %120, %cst_116 {dimension_numbers = #tpu.dot_dimension_numbers<[1], [0], [0], [1], [0, 0, 1, 1], [], []>} : vector<2x32xbf16>, vector<32x32xbf16>, vector<2x32xf32> -> vector<2x32xf32>
    %122 = arith.addf %115, %121 : vector<2x32xf32>
    %c0_117 = arith.constant 0 : index
    %c1_118 = arith.constant 1 : index
    %c0_119 = arith.constant 0 : index
    %c0_120 = arith.constant 0 : index
    %123 = vector.load %arg10[%c0_117, %c1_118, %c0_119, %c0_120] : memref<2x3x3x32xf32, #tpu.memory_space<vmem>>, vector<2x1x1x32xf32>
    %124 = vector.shape_cast %123 : vector<2x1x1x32xf32> to vector<2x32xf32>
    %125 = arith.truncf %124 : vector<2x32xf32> to vector<2x32xbf16>
    %c3_121 = arith.constant 3 : index
    %c0_122 = arith.constant 0 : index
    %c0_123 = arith.constant 0 : index
    %126 = vector.load %arg5[%c3_121, %c0_122, %c0_123] : memref<9x32x32xbf16, #tpu.memory_space<vmem>>, vector<1x32x32xbf16>
    %127 = vector.shape_cast %126 : vector<1x32x32xbf16> to vector<32x32xbf16>
    %cst_124 = arith.constant dense<0.000000e+00> : vector<2x32xf32>
    %128 = tpu.matmul %125, %127, %cst_124 {dimension_numbers = #tpu.dot_dimension_numbers<[1], [0], [0], [1], [0, 0, 1, 1], [], []>} : vector<2x32xbf16>, vector<32x32xbf16>, vector<2x32xf32> -> vector<2x32xf32>
    %129 = arith.addf %122, %128 : vector<2x32xf32>
    %c0_125 = arith.constant 0 : index
    %c1_126 = arith.constant 1 : index
    %c1_127 = arith.constant 1 : index
    %c0_128 = arith.constant 0 : index
    %130 = vector.load %arg10[%c0_125, %c1_126, %c1_127, %c0_128] : memref<2x3x3x32xf32, #tpu.memory_space<vmem>>, vector<2x1x1x32xf32>
    %131 = vector.shape_cast %130 : vector<2x1x1x32xf32> to vector<2x32xf32>
    %132 = arith.truncf %131 : vector<2x32xf32> to vector<2x32xbf16>
    %c4_129 = arith.constant 4 : index
    %c0_130 = arith.constant 0 : index
    %c0_131 = arith.constant 0 : index
    %133 = vector.load %arg5[%c4_129, %c0_130, %c0_131] : memref<9x32x32xbf16, #tpu.memory_space<vmem>>, vector<1x32x32xbf16>
    %134 = vector.shape_cast %133 : vector<1x32x32xbf16> to vector<32x32xbf16>
    %cst_132 = arith.constant dense<0.000000e+00> : vector<2x32xf32>
    %135 = tpu.matmul %132, %134, %cst_132 {dimension_numbers = #tpu.dot_dimension_numbers<[1], [0], [0], [1], [0, 0, 1, 1], [], []>} : vector<2x32xbf16>, vector<32x32xbf16>, vector<2x32xf32> -> vector<2x32xf32>
    %136 = arith.addf %129, %135 : vector<2x32xf32>
    %c0_133 = arith.constant 0 : index
    %c1_134 = arith.constant 1 : index
    %c2_135 = arith.constant 2 : index
    %c0_136 = arith.constant 0 : index
    %137 = vector.load %arg10[%c0_133, %c1_134, %c2_135, %c0_136] : memref<2x3x3x32xf32, #tpu.memory_space<vmem>>, vector<2x1x1x32xf32>
    %138 = vector.shape_cast %137 : vector<2x1x1x32xf32> to vector<2x32xf32>
    %139 = arith.truncf %138 : vector<2x32xf32> to vector<2x32xbf16>
    %c5_137 = arith.constant 5 : index
    %c0_138 = arith.constant 0 : index
    %c0_139 = arith.constant 0 : index
    %140 = vector.load %arg5[%c5_137, %c0_138, %c0_139] : memref<9x32x32xbf16, #tpu.memory_space<vmem>>, vector<1x32x32xbf16>
    %141 = vector.shape_cast %140 : vector<1x32x32xbf16> to vector<32x32xbf16>
    %cst_140 = arith.constant dense<0.000000e+00> : vector<2x32xf32>
    %142 = tpu.matmul %139, %141, %cst_140 {dimension_numbers = #tpu.dot_dimension_numbers<[1], [0], [0], [1], [0, 0, 1, 1], [], []>} : vector<2x32xbf16>, vector<32x32xbf16>, vector<2x32xf32> -> vector<2x32xf32>
    %143 = arith.addf %136, %142 : vector<2x32xf32>
    %c0_141 = arith.constant 0 : index
    %c2_142 = arith.constant 2 : index
    %c0_143 = arith.constant 0 : index
    %c0_144 = arith.constant 0 : index
    %144 = vector.load %arg10[%c0_141, %c2_142, %c0_143, %c0_144] : memref<2x3x3x32xf32, #tpu.memory_space<vmem>>, vector<2x1x1x32xf32>
    %145 = vector.shape_cast %144 : vector<2x1x1x32xf32> to vector<2x32xf32>
    %146 = arith.truncf %145 : vector<2x32xf32> to vector<2x32xbf16>
    %c6_145 = arith.constant 6 : index
    %c0_146 = arith.constant 0 : index
    %c0_147 = arith.constant 0 : index
    %147 = vector.load %arg5[%c6_145, %c0_146, %c0_147] : memref<9x32x32xbf16, #tpu.memory_space<vmem>>, vector<1x32x32xbf16>
    %148 = vector.shape_cast %147 : vector<1x32x32xbf16> to vector<32x32xbf16>
    %cst_148 = arith.constant dense<0.000000e+00> : vector<2x32xf32>
    %149 = tpu.matmul %146, %148, %cst_148 {dimension_numbers = #tpu.dot_dimension_numbers<[1], [0], [0], [1], [0, 0, 1, 1], [], []>} : vector<2x32xbf16>, vector<32x32xbf16>, vector<2x32xf32> -> vector<2x32xf32>
    %150 = arith.addf %143, %149 : vector<2x32xf32>
    %c0_149 = arith.constant 0 : index
    %c2_150 = arith.constant 2 : index
    %c1_151 = arith.constant 1 : index
    %c0_152 = arith.constant 0 : index
    %151 = vector.load %arg10[%c0_149, %c2_150, %c1_151, %c0_152] : memref<2x3x3x32xf32, #tpu.memory_space<vmem>>, vector<2x1x1x32xf32>
    %152 = vector.shape_cast %151 : vector<2x1x1x32xf32> to vector<2x32xf32>
    %153 = arith.truncf %152 : vector<2x32xf32> to vector<2x32xbf16>
    %c7_153 = arith.constant 7 : index
    %c0_154 = arith.constant 0 : index
    %c0_155 = arith.constant 0 : index
    %154 = vector.load %arg5[%c7_153, %c0_154, %c0_155] : memref<9x32x32xbf16, #tpu.memory_space<vmem>>, vector<1x32x32xbf16>
    %155 = vector.shape_cast %154 : vector<1x32x32xbf16> to vector<32x32xbf16>
    %cst_156 = arith.constant dense<0.000000e+00> : vector<2x32xf32>
    %156 = tpu.matmul %153, %155, %cst_156 {dimension_numbers = #tpu.dot_dimension_numbers<[1], [0], [0], [1], [0, 0, 1, 1], [], []>} : vector<2x32xbf16>, vector<32x32xbf16>, vector<2x32xf32> -> vector<2x32xf32>
    %157 = arith.addf %150, %156 : vector<2x32xf32>
    %c0_157 = arith.constant 0 : index
    %c2_158 = arith.constant 2 : index
    %c2_159 = arith.constant 2 : index
    %c0_160 = arith.constant 0 : index
    %158 = vector.load %arg10[%c0_157, %c2_158, %c2_159, %c0_160] : memref<2x3x3x32xf32, #tpu.memory_space<vmem>>, vector<2x1x1x32xf32>
    %159 = vector.shape_cast %158 : vector<2x1x1x32xf32> to vector<2x32xf32>
    %160 = arith.truncf %159 : vector<2x32xf32> to vector<2x32xbf16>
    %c8_161 = arith.constant 8 : index
    %c0_162 = arith.constant 0 : index
    %c0_163 = arith.constant 0 : index
    %161 = vector.load %arg5[%c8_161, %c0_162, %c0_163] : memref<9x32x32xbf16, #tpu.memory_space<vmem>>, vector<1x32x32xbf16>
    %162 = vector.shape_cast %161 : vector<1x32x32xbf16> to vector<32x32xbf16>
    %cst_164 = arith.constant dense<0.000000e+00> : vector<2x32xf32>
    %163 = tpu.matmul %160, %162, %cst_164 {dimension_numbers = #tpu.dot_dimension_numbers<[1], [0], [0], [1], [0, 0, 1, 1], [], []>} : vector<2x32xbf16>, vector<32x32xbf16>, vector<2x32xf32> -> vector<2x32xf32>
    %164 = arith.addf %157, %163 : vector<2x32xf32>
    %c0_165 = arith.constant 0 : index
    %c0_166 = arith.constant 0 : index
    %165 = vector.load %arg6[%c0_165, %c0_166] : memref<1x32xf32, #tpu.memory_space<vmem>>, vector<1x32xf32>
    %166 = vector.broadcast %165 : vector<1x32xf32> to vector<2x32xf32>
    %167 = arith.addf %164, %166 : vector<2x32xf32>
    %cst_167 = arith.constant dense<0.000000e+00> : vector<32xf32>
    %168 = vector.multi_reduction <add>, %167, %cst_167 [0] : vector<2x32xf32> to vector<32xf32>
    %169 = vector.shape_cast %168 : vector<32xf32> to vector<1x32xf32>
    %cst_168 = arith.constant 2.000000e+00 : f32
    %170 = vector.broadcast %cst_168 : f32 to vector<1x32xf32>
    %171 = arith.divf %169, %170 : vector<1x32xf32>
    %172 = vector.broadcast %171 : vector<1x32xf32> to vector<2x32xf32>
    %173 = arith.subf %167, %172 : vector<2x32xf32>
    %174 = vector.broadcast %171 : vector<1x32xf32> to vector<2x32xf32>
    %175 = arith.subf %167, %174 : vector<2x32xf32>
    %176 = arith.mulf %173, %175 : vector<2x32xf32>
    %cst_169 = arith.constant dense<0.000000e+00> : vector<32xf32>
    %177 = vector.multi_reduction <add>, %176, %cst_169 [0] : vector<2x32xf32> to vector<32xf32>
    %178 = vector.shape_cast %177 : vector<32xf32> to vector<1x32xf32>
    %cst_170 = arith.constant 2.000000e+00 : f32
    %179 = vector.broadcast %cst_170 : f32 to vector<1x32xf32>
    %180 = arith.divf %178, %179 : vector<1x32xf32>
    %181 = vector.broadcast %171 : vector<1x32xf32> to vector<2x32xf32>
    %182 = arith.subf %167, %181 : vector<2x32xf32>
    %cst_171 = arith.constant 9.99999974E-6 : f32
    %183 = vector.broadcast %cst_171 : f32 to vector<1x32xf32>
    %184 = arith.addf %180, %183 : vector<1x32xf32>
    %185 = math.rsqrt %184 : vector<1x32xf32>
    %186 = vector.broadcast %185 : vector<1x32xf32> to vector<2x32xf32>
    %187 = arith.mulf %182, %186 : vector<2x32xf32>
    %c0_172 = arith.constant 0 : index
    %c0_173 = arith.constant 0 : index
    %188 = vector.load %arg7[%c0_172, %c0_173] : memref<1x32xf32, #tpu.memory_space<vmem>>, vector<1x32xf32>
    %189 = vector.broadcast %188 : vector<1x32xf32> to vector<2x32xf32>
    %190 = arith.mulf %187, %189 : vector<2x32xf32>
    %c0_174 = arith.constant 0 : index
    %c0_175 = arith.constant 0 : index
    %191 = vector.load %arg8[%c0_174, %c0_175] : memref<1x32xf32, #tpu.memory_space<vmem>>, vector<1x32xf32>
    %192 = vector.broadcast %191 : vector<1x32xf32> to vector<2x32xf32>
    %193 = arith.addf %190, %192 : vector<2x32xf32>
    %194 = vector.shape_cast %0 : vector<2x1x1x32xf32> to vector<2x32xf32>
    %195 = arith.addf %194, %193 : vector<2x32xf32>
    %c0_176 = arith.constant 0 : index
    %c0_177 = arith.constant 0 : index
    %196 = vector.load %arg9[%c0_176, %c0_177] : memref<2x32xf32, #tpu.memory_space<vmem>>, vector<2x32xf32>
    tpu.vector_store %arg9[%c0_176, %c0_177], %195 {strides = array<i32>} : memref<2x32xf32, #tpu.memory_space<vmem>>, vector<2x32xf32>,
    return
  }
}

module attributes {stable_mosaic.version = 11 : i64} {
  func.func @_encoder_block_kernel(%arg0: memref<2x2x2x64xf32, #tpu.memory_space<vmem>>, %arg1: memref<4x64x32xbf16, #tpu.memory_space<vmem>>, %arg2: memref<1x32xf32, #tpu.memory_space<vmem>>, %arg3: memref<1x32xf32, #tpu.memory_space<vmem>>, %arg4: memref<1x32xf32, #tpu.memory_space<vmem>>, %arg5: memref<2x32xf32, #tpu.memory_space<vmem>>) attributes {dimension_semantics = [], scalar_prefetch = 0 : i64, scratch_operands = 0 : i64, tpu.core_type = #tpu.core_type<tc>} {
    %cst = arith.constant 0.000000e+00 : f32
    %0 = vector.broadcast %cst : f32 to vector<2x32xf32>
    %c0 = arith.constant 0 : index
    %c0_0 = arith.constant 0 : index
    %c0_1 = arith.constant 0 : index
    %c0_2 = arith.constant 0 : index
    %1 = vector.load %arg0[%c0, %c0_0, %c0_1, %c0_2] : memref<2x2x2x64xf32, #tpu.memory_space<vmem>>, vector<2x1x1x64xf32>
    %2 = vector.shape_cast %1 : vector<2x1x1x64xf32> to vector<2x64xf32>
    %3 = arith.truncf %2 : vector<2x64xf32> to vector<2x64xbf16>
    %c0_3 = arith.constant 0 : index
    %c0_4 = arith.constant 0 : index
    %c0_5 = arith.constant 0 : index
    %4 = vector.load %arg1[%c0_3, %c0_4, %c0_5] : memref<4x64x32xbf16, #tpu.memory_space<vmem>>, vector<1x64x32xbf16>
    %5 = vector.shape_cast %4 : vector<1x64x32xbf16> to vector<64x32xbf16>
    %cst_6 = arith.constant dense<0.000000e+00> : vector<2x32xf32>
    %6 = tpu.matmul %3, %5, %cst_6 {dimension_numbers = #tpu.dot_dimension_numbers<[1], [0], [0], [1], [0, 0, 1, 1], [], []>} : vector<2x64xbf16>, vector<64x32xbf16>, vector<2x32xf32> -> vector<2x32xf32>
    %7 = arith.addf %0, %6 : vector<2x32xf32>
    %c0_7 = arith.constant 0 : index
    %c0_8 = arith.constant 0 : index
    %c1 = arith.constant 1 : index
    %c0_9 = arith.constant 0 : index
    %8 = vector.load %arg0[%c0_7, %c0_8, %c1, %c0_9] : memref<2x2x2x64xf32, #tpu.memory_space<vmem>>, vector<2x1x1x64xf32>
    %9 = vector.shape_cast %8 : vector<2x1x1x64xf32> to vector<2x64xf32>
    %10 = arith.truncf %9 : vector<2x64xf32> to vector<2x64xbf16>
    %c1_10 = arith.constant 1 : index
    %c0_11 = arith.constant 0 : index
    %c0_12 = arith.constant 0 : index
    %11 = vector.load %arg1[%c1_10, %c0_11, %c0_12] : memref<4x64x32xbf16, #tpu.memory_space<vmem>>, vector<1x64x32xbf16>
    %12 = vector.shape_cast %11 : vector<1x64x32xbf16> to vector<64x32xbf16>
    %cst_13 = arith.constant dense<0.000000e+00> : vector<2x32xf32>
    %13 = tpu.matmul %10, %12, %cst_13 {dimension_numbers = #tpu.dot_dimension_numbers<[1], [0], [0], [1], [0, 0, 1, 1], [], []>} : vector<2x64xbf16>, vector<64x32xbf16>, vector<2x32xf32> -> vector<2x32xf32>
    %14 = arith.addf %7, %13 : vector<2x32xf32>
    %c0_14 = arith.constant 0 : index
    %c1_15 = arith.constant 1 : index
    %c0_16 = arith.constant 0 : index
    %c0_17 = arith.constant 0 : index
    %15 = vector.load %arg0[%c0_14, %c1_15, %c0_16, %c0_17] : memref<2x2x2x64xf32, #tpu.memory_space<vmem>>, vector<2x1x1x64xf32>
    %16 = vector.shape_cast %15 : vector<2x1x1x64xf32> to vector<2x64xf32>
    %17 = arith.truncf %16 : vector<2x64xf32> to vector<2x64xbf16>
    %c2 = arith.constant 2 : index
    %c0_18 = arith.constant 0 : index
    %c0_19 = arith.constant 0 : index
    %18 = vector.load %arg1[%c2, %c0_18, %c0_19] : memref<4x64x32xbf16, #tpu.memory_space<vmem>>, vector<1x64x32xbf16>
    %19 = vector.shape_cast %18 : vector<1x64x32xbf16> to vector<64x32xbf16>
    %cst_20 = arith.constant dense<0.000000e+00> : vector<2x32xf32>
    %20 = tpu.matmul %17, %19, %cst_20 {dimension_numbers = #tpu.dot_dimension_numbers<[1], [0], [0], [1], [0, 0, 1, 1], [], []>} : vector<2x64xbf16>, vector<64x32xbf16>, vector<2x32xf32> -> vector<2x32xf32>
    %21 = arith.addf %14, %20 : vector<2x32xf32>
    %c0_21 = arith.constant 0 : index
    %c1_22 = arith.constant 1 : index
    %c1_23 = arith.constant 1 : index
    %c0_24 = arith.constant 0 : index
    %22 = vector.load %arg0[%c0_21, %c1_22, %c1_23, %c0_24] : memref<2x2x2x64xf32, #tpu.memory_space<vmem>>, vector<2x1x1x64xf32>
    %23 = vector.shape_cast %22 : vector<2x1x1x64xf32> to vector<2x64xf32>
    %24 = arith.truncf %23 : vector<2x64xf32> to vector<2x64xbf16>
    %c3 = arith.constant 3 : index
    %c0_25 = arith.constant 0 : index
    %c0_26 = arith.constant 0 : index
    %25 = vector.load %arg1[%c3, %c0_25, %c0_26] : memref<4x64x32xbf16, #tpu.memory_space<vmem>>, vector<1x64x32xbf16>
    %26 = vector.shape_cast %25 : vector<1x64x32xbf16> to vector<64x32xbf16>
    %cst_27 = arith.constant dense<0.000000e+00> : vector<2x32xf32>
    %27 = tpu.matmul %24, %26, %cst_27 {dimension_numbers = #tpu.dot_dimension_numbers<[1], [0], [0], [1], [0, 0, 1, 1], [], []>} : vector<2x64xbf16>, vector<64x32xbf16>, vector<2x32xf32> -> vector<2x32xf32>
    %28 = arith.addf %21, %27 : vector<2x32xf32>
    %c0_28 = arith.constant 0 : index
    %c0_29 = arith.constant 0 : index
    %29 = vector.load %arg2[%c0_28, %c0_29] : memref<1x32xf32, #tpu.memory_space<vmem>>, vector<1x32xf32>
    %30 = vector.broadcast %29 : vector<1x32xf32> to vector<2x32xf32>
    %31 = arith.addf %28, %30 : vector<2x32xf32>
    %cst_30 = arith.constant dense<0.000000e+00> : vector<32xf32>
    %32 = vector.multi_reduction <add>, %31, %cst_30 [0] : vector<2x32xf32> to vector<32xf32>
    %33 = vector.shape_cast %32 : vector<32xf32> to vector<1x32xf32>
    %cst_31 = arith.constant 2.000000e+00 : f32
    %34 = vector.broadcast %cst_31 : f32 to vector<1x32xf32>
    %35 = arith.divf %33, %34 : vector<1x32xf32>
    %36 = vector.broadcast %35 : vector<1x32xf32> to vector<2x32xf32>
    %37 = arith.subf %31, %36 : vector<2x32xf32>
    %38 = vector.broadcast %35 : vector<1x32xf32> to vector<2x32xf32>
    %39 = arith.subf %31, %38 : vector<2x32xf32>
    %40 = arith.mulf %37, %39 : vector<2x32xf32>
    %cst_32 = arith.constant dense<0.000000e+00> : vector<32xf32>
    %41 = vector.multi_reduction <add>, %40, %cst_32 [0] : vector<2x32xf32> to vector<32xf32>
    %42 = vector.shape_cast %41 : vector<32xf32> to vector<1x32xf32>
    %cst_33 = arith.constant 2.000000e+00 : f32
    %43 = vector.broadcast %cst_33 : f32 to vector<1x32xf32>
    %44 = arith.divf %42, %43 : vector<1x32xf32>
    %45 = vector.broadcast %35 : vector<1x32xf32> to vector<2x32xf32>
    %46 = arith.subf %31, %45 : vector<2x32xf32>
    %cst_34 = arith.constant 9.99999974E-6 : f32
    %47 = vector.broadcast %cst_34 : f32 to vector<1x32xf32>
    %48 = arith.addf %44, %47 : vector<1x32xf32>
    %49 = math.rsqrt %48 : vector<1x32xf32>
    %50 = vector.broadcast %49 : vector<1x32xf32> to vector<2x32xf32>
    %51 = arith.mulf %46, %50 : vector<2x32xf32>
    %c0_35 = arith.constant 0 : index
    %c0_36 = arith.constant 0 : index
    %52 = vector.load %arg3[%c0_35, %c0_36] : memref<1x32xf32, #tpu.memory_space<vmem>>, vector<1x32xf32>
    %53 = vector.broadcast %52 : vector<1x32xf32> to vector<2x32xf32>
    %54 = arith.mulf %51, %53 : vector<2x32xf32>
    %c0_37 = arith.constant 0 : index
    %c0_38 = arith.constant 0 : index
    %55 = vector.load %arg4[%c0_37, %c0_38] : memref<1x32xf32, #tpu.memory_space<vmem>>, vector<1x32xf32>
    %56 = vector.broadcast %55 : vector<1x32xf32> to vector<2x32xf32>
    %57 = arith.addf %54, %56 : vector<2x32xf32>
    %cst_39 = arith.constant 0.000000e+00 : f32
    %58 = vector.broadcast %cst_39 : f32 to vector<2x32xf32>
    %59 = arith.cmpf oge, %57, %58 : vector<2x32xf32>
    %cst_40 = arith.constant 1.000000e+00 : f32
    %60 = vector.broadcast %cst_40 : f32 to vector<2x32xf32>
    %61 = arith.mulf %60, %57 : vector<2x32xf32>
    %62 = arith.select %59, %57, %61 : vector<2x32xi1>, vector<2x32xf32>
    %c0_41 = arith.constant 0 : index
    %c0_42 = arith.constant 0 : index
    %63 = vector.load %arg5[%c0_41, %c0_42] : memref<2x32xf32, #tpu.memory_space<vmem>>, vector<2x32xf32>
    tpu.vector_store %arg5[%c0_41, %c0_42], %62 {strides = array<i32>} : memref<2x32xf32, #tpu.memory_space<vmem>>, vector<2x32xf32>,
    return
  }
}

module attributes {stable_mosaic.version = 11 : i64} {
  func.func @_fc_kernel(%arg0: memref<2x32xf32, #tpu.memory_space<vmem>>, %arg1: memref<32x32xbf16, #tpu.memory_space<vmem>>, %arg2: memref<1x32xf32, #tpu.memory_space<vmem>>, %arg3: memref<2x32xf32, #tpu.memory_space<vmem>>) attributes {dimension_semantics = [], scalar_prefetch = 0 : i64, scratch_operands = 0 : i64, tpu.core_type = #tpu.core_type<tc>} {
    %c0 = arith.constant 0 : index
    %c0_0 = arith.constant 0 : index
    %0 = vector.load %arg0[%c0, %c0_0] : memref<2x32xf32, #tpu.memory_space<vmem>>, vector<2x32xf32>
    %1 = arith.truncf %0 : vector<2x32xf32> to vector<2x32xbf16>
    %c0_1 = arith.constant 0 : index
    %c0_2 = arith.constant 0 : index
    %2 = vector.load %arg1[%c0_1, %c0_2] : memref<32x32xbf16, #tpu.memory_space<vmem>>, vector<32x32xbf16>
    %cst = arith.constant dense<0.000000e+00> : vector<2x32xf32>
    %3 = tpu.matmul %1, %2, %cst {dimension_numbers = #tpu.dot_dimension_numbers<[1], [0], [0], [1], [0, 0, 1, 1], [], []>} : vector<2x32xbf16>, vector<32x32xbf16>, vector<2x32xf32> -> vector<2x32xf32>
    %c0_3 = arith.constant 0 : index
    %c0_4 = arith.constant 0 : index
    %4 = vector.load %arg2[%c0_3, %c0_4] : memref<1x32xf32, #tpu.memory_space<vmem>>, vector<1x32xf32>
    %5 = vector.broadcast %4 : vector<1x32xf32> to vector<2x32xf32>
    %6 = arith.addf %3, %5 : vector<2x32xf32>
    %c0_5 = arith.constant 0 : index
    %c0_6 = arith.constant 0 : index
    %7 = vector.load %arg3[%c0_5, %c0_6] : memref<2x32xf32, #tpu.memory_space<vmem>>, vector<2x32xf32>
    tpu.vector_store %arg3[%c0_5, %c0_6], %6 {strides = array<i32>} : memref<2x32xf32, #tpu.memory_space<vmem>>, vector<2x32xf32>,
    return
  }
}

</mosaic_0001>

<bundles_post_ra>
// kernel: _lambda_.11
= control target key start
LH: loop header
LB: loop body
LE: loop exit
PB: predicated region body
PF: predicated region fallthrough
CT: control target
= control target key end

     0   :  { %vm84_vm0 = vcmask 130048   ;;  %vm401_vm1 = vcmask 64512   ;;  %s713_s1 = inlined_call_operand.vmem [shape: bf16[4,16,8], index: 1, kind: input, shape index: {}]   ;;  %s714_s0 = inlined_call_operand.vmem [shape: f32[2,5,5,16], index: 0, kind: input, shape index: {}]   ;;  %s715_s2 = inlined_call_operand.vmem [shape: f32[1,8], index: 2, kind: input, shape index: {}]   ;;  %s716_s3 = inlined_call_operand.vmem [shape: f32[1,8], index: 3, kind: input, shape index: {}]   ;;  %s717_s4 = inlined_call_operand.vmem [shape: f32[1,8], index: 4, kind: input, shape index: {}]   ;;  %s718_s5 = inlined_call_operand.vmem [shape: f32[32,8], index: 5, kind: output, shape index: {}]  }
   0x1   :  { %v560_v0 = vld [vmem:[%s713_s1 + $0x8] sm:$0xff]   ;;  %v561_v1 = vld [vmem:[%s713_s1 + $0x10] sm:$0xff]   ;;  %v565_v6 = vld [vmem:[%s714_s0 + $0x18] ss:$8 sps:$4 sm:$0xff]  }
   0x2   :  { %524 = vmatprep.subr.bf16.mxu1 %v560_v0  ;;  %536 = vmatprep.subr.bf16.mxu0 %v561_v1  ;;  %v562_v2 = vld [vmem:[%s714_s0 + $0x1] ss:$8 sps:$4 sm:$0xff]   ;;  %v563_v3 = vld [vmem:[%s714_s0 + $0x11] ss:$8 sps:$4 sm:$0xff]   ;;  %v509_v34 = vld [vmem:[%s715_s2] ss:$0 sm:$0xff] }
   0x3   :  { %525 = vmatpush3.bf16.msra.mxu1 %v560_v0  ;;  %537 = vmatpush3.bf16.msra.mxu0 %v561_v1  ;;  %v73_v4 = vpack.c.bf16 %v563_v3, %v562_v2  ;;  %v564_v5 = vld [vmem:[%s714_s0 + $0x8] ss:$8 sps:$4 sm:$0xff]   ;;  %v567_v9 = vld [vmem:[%s714_s0 + $0x39] ss:$8 sps:$4 sm:$0xff]  }
   0x4   :  { %v226_v7 = vpack.c.bf16 %v565_v6, %v564_v5  ;;  %v566_v8 = vld [vmem:[%s714_s0 + $0x29] ss:$8 sps:$4 sm:$0xff]   ;;  %v568_v10 = vld [vmem:[%s713_s1] sm:$0xff]   ;;  %v571_v14 = vld [vmem:[%s713_s1 + $0x18] sm:$0xff]  }
   0x5   :  { %526 = vmatprep.mubr.msk.bf16.mxu1 %vm84_vm0, %v73_v4  ;;  %v74_v11 = vpack.c.bf16 %v567_v9, %v566_v8  ;;  %530 = vmatprep.subr.bf16.mxu1 %v568_v10  ;;  %v569_v12 = vld [vmem:[%s714_s0 + $0x30] ss:$8 sps:$4 sm:$0xff]   ;;  %v570_v13 = vld [vmem:[%s714_s0 + $0x40] ss:$8 sps:$4 sm:$0xff]  }
   0x6   :  { %538 = vmatprep.mubr.msk.bf16.mxu0 %vm84_vm0, %v226_v7  ;;  %v227_v15 = vpack.c.bf16 %v570_v13, %v569_v12  ;;  %542 = vmatprep.subr.bf16.mxu0 %v571_v14  ;;  %v572_v16 = vld [vmem:[%s714_s0] ss:$8 sps:$4 sm:$0xff]   ;;  %v573_v17 = vld [vmem:[%s714_s0 + $0x10] ss:$8 sps:$4 sm:$0xff]  }
   0x7   :  { %527 = vmatmul.mubr.msk.bf16.vlgmr.msra.gmra.mrb[0].mxu1 %vm84_vm0, %v74_v11  ;;  %v45_v18 = vpack.c.bf16 %v573_v17, %v572_v16  ;;  %v574_v19 = vld [vmem:[%s714_s0 + $0x9] ss:$8 sps:$4 sm:$0xff]   ;;  %v575_v20 = vld [vmem:[%s714_s0 + $0x19] ss:$8 sps:$4 sm:$0xff]  }
   0x8   :  { %531 = vmatpush3.bf16.msra.mxu1 %v568_v10  ;;  %539 = vmatmul.mubr.msk.bf16.vlgmr.msra.gmra.mrb[0].mxu0 %vm84_vm0, %v227_v15  ;;  %v320_v21 = vpack.c.bf16 %v575_v20, %v574_v19  ;;  %v576_v22 = vld [vmem:[%s714_s0 + $0x28] ss:$8 sps:$4 sm:$0xff]   ;;  %v577_v23 = vld [vmem:[%s714_s0 + $0x38] ss:$8 sps:$4 sm:$0xff]  }
   0x9   :  { %543 = vmatpush3.bf16.msra.mxu0 %v571_v14  ;;  %532 = vmatprep.mubr.msk.bf16.mxu1 %vm84_vm0, %v45_v18  ;;  %v46_v24 = vpack.c.bf16 %v577_v23, %v576_v22  ;;  %v578_v25 = vld [vmem:[%s714_s0 + $0x31] ss:$8 sps:$4 sm:$0xff]   ;;  %v579_v26 = vld [vmem:[%s714_s0 + $0x41] ss:$8 sps:$4 sm:$0xff]   ;;  %v510_v19 = vld [vmem:[%s716_s3] ss:$0 sm:$0xff] }
   0xa   :  { %544 = vmatprep.mubr.msk.bf16.mxu0 %vm84_vm0, %v320_v21  ;;  %v321_v27 = vpack.c.bf16 %v579_v26, %v578_v25 }
  0x13   :  { %533 = vmatmul.mubr.msk.bf16.vlgmr.msra.gmra.mrb[0].mxu1 %vm84_vm0, %v46_v24  ;;  %v511_v24 = vld [vmem:[%s717_s4] ss:$0 sm:$0xff] }
  0x14   :  { %545 = vmatmul.mubr.msk.bf16.vlgmr.msra.gmra.mrb[0].mxu0 %vm84_vm0, %v321_v27 }
  0xe6   :  { %v534_v28 = vpop.f32.mrb[0].mxu1 }
  0xe7   :  { %v186_v29 = vpop.f32.mrb[1].mxu1  ;;  %v546_v31 = vpop.f32.mrb[0].mxu0 }
  0xe8   :  { %v535_v30 = vpop.f32.mrb[2].mxu1  ;;  %v548_v33 = vadd.f32 %v546_v31, %v534_v28  ;;  %v371_v35 = vpop.f32.mrb[1].mxu0 }
  0xe9   :  { %v189_v32 = vpop.f32.mrb[3].mxu1  ;;  %v549_v36 = vadd.f32 %v371_v35, %v186_v29  ;;  %v547_v37 = vpop.f32.mrb[2].mxu0 }
  0xea   :  { %v550_v38 = vadd.f32 %v547_v37, %v535_v30  ;;  %v374_v39 = vpop.f32.mrb[3].mxu0  ;;  %v399_v42 = vadd.f32 %v548_v33, %v509_v34 }
  0xeb   :  { %v397_v40 = vadd.f32 %v549_v36, %v509_v34  ;;  %v551_v41 = vadd.f32 %v374_v39, %v189_v32 }
  0xec   :  { %v400_v45 = vadd.f32 %v550_v38, %v509_v34  ;;  %v405_v48 = vsel %vm401_vm1, %v399_v42, 0.0 }
  0xed   :  { %v398_v43 = vadd.f32 %v551_v41, %v509_v34  ;;  %v402_v44 = vsel %vm401_vm1, %v397_v40, 0.0 }
  0xee   :  { %v407_v50 = vsel %vm401_vm1, %v400_v45, 0.0 }
  0xef   :  { %v403_v46 = vsel %vm401_vm1, %v398_v43, 0.0 }
  0xf0   :  { %v404_v47 = vadd.f32 %v403_v46, %v402_v44 }
  0xf2   :  { %v406_v49 = vadd.f32 %v405_v48, %v404_v47 }
  0xf4   :  { %v408_v51 = vadd.f32 %v407_v50, %v406_v49 }
  0xf6   :  { %v409_v52 = vrot.slane %v408_v51, 4 }
  0xf8   :  { %v410_v53 = vadd.f32 %v409_v52, %v408_v51 }
  0xfa   :  { %v411_v54 = vrot.slane %v410_v53, 2 }
  0xfc   :  { %v412_v55 = vadd.f32 %v411_v54, %v410_v53 }
  0xfe   :  { %v413_v56 = vrot.slane %v412_v55, 1 }
 0x100   :  { %v414_v57 = vadd.f32 %v413_v56, %v412_v55 }
 0x102   :  { %v416_v58 = vmul.f32 0.03125, %v414_v57 }
 0x104   :  { %v417_v59 = vsub.f32 %v397_v40, %v416_v58  ;;  %v418_v60 = vsub.f32 %v398_v43, %v416_v58  ;;  %v419_v61 = vsub.f32 %v399_v42, %v416_v58  ;;  %v420_v62 = vsub.f32 %v400_v45, %v416_v58 }
 0x106   :  { %v421_v63 = vmul.f32 %v417_v59, %v417_v59  ;;  %v422_v0 = vmul.f32 %v418_v60, %v418_v60  ;;  %v423_v1 = vmul.f32 %v419_v61, %v419_v61  ;;  %v424_v2 = vmul.f32 %v420_v62, %v420_v62 }
 0x108   :  { %v425_v3 = vsel %vm401_vm1, %v421_v63, 0.0  ;;  %v426_v4 = vsel %vm401_vm1, %v422_v0, 0.0  ;;  %v428_v6 = vsel %vm401_vm1, %v423_v1, 0.0  ;;  %v430_v8 = vsel %vm401_vm1, %v424_v2, 0.0 }
 0x109   :  { %v427_v5 = vadd.f32 %v426_v4, %v425_v3 }
 0x10b   :  { %v429_v7 = vadd.f32 %v428_v6, %v427_v5 }
 0x10d   :  { %v431_v9 = vadd.f32 %v430_v8, %v429_v7 }
 0x10f   :  { %v432_v10 = vrot.slane %v431_v9, 4 }
 0x111   :  { %v433_v11 = vadd.f32 %v432_v10, %v431_v9 }
 0x113   :  { %v434_v12 = vrot.slane %v433_v11, 2 }
 0x115   :  { %v435_v13 = vadd.f32 %v434_v12, %v433_v11 }
 0x117   :  { %v436_v14 = vrot.slane %v435_v13, 1 }
 0x119   :  { %v437_v15 = vadd.f32 %v436_v14, %v435_v13 }
 0x11b   :  { %v438_v16 = vmul.f32 0.03125, %v437_v15 }
 0x11d   :  { %v439_v17 = vadd.f32 1e-05, %v438_v16 }
 0x11f   :  { %580 = vrsqrt.f32 %v439_v17 }
 0x129   :  { %v581_v18 = vpop.eup %580 }
 0x12a   :  { %v441_v20 = vmul.f32 %v581_v18, %v417_v59  ;;  %v442_v21 = vmul.f32 %v581_v18, %v418_v60  ;;  %v443_v22 = vmul.f32 %v581_v18, %v419_v61  ;;  %v444_v23 = vmul.f32 %v581_v18, %v420_v62 }
 0x12c   :  { %v452_v25 = vmul.f32 %v510_v19, %v441_v20  ;;  %v453_v26 = vmul.f32 %v510_v19, %v442_v21  ;;  %v454_v27 = vmul.f32 %v510_v19, %v443_v22  ;;  %v455_v28 = vmul.f32 %v510_v19, %v444_v23 }
 0x12e   :  { %v463_v29 = vadd.f32 %v511_v24, %v452_v25  ;;  %v464_v30 = vadd.f32 %v511_v24, %v453_v26  ;;  %v465_v31 = vadd.f32 %v511_v24, %v454_v27  ;;  %v466_v32 = vadd.f32 %v511_v24, %v455_v28 }
 0x130   :  { %467 = vst.msk [vmem:[%s718_s5] sm:$0xff] %vm401_vm1, %v463_v29  ;;  %468 = vst.msk [vmem:[%s718_s5 + $0x8] sm:$0xff] %vm401_vm1, %v464_v30 }
 0x131   :  { %469 = vst.msk [vmem:[%s718_s5 + $0x10] sm:$0xff] %vm401_vm1, %v465_v31  ;;  %470 = vst.msk [vmem:[%s718_s5 + $0x18] sm:$0xff] %vm401_vm1, %v466_v32 }

// kernel: _lambda_.9
= control target key start
LH: loop header
LB: loop body
LE: loop exit
PB: predicated region body
PF: predicated region fallthrough
CT: control target
= control target key end

     0   :  { %vm80_vm0 = vcmask 130048   ;;  %vm693_vm1 = vcmask 31744   ;;  %s1587_s1 = inlined_call_operand.vmem [shape: bf16[4,16,4], index: 1, kind: input, shape index: {}]   ;;  %s1588_s0 = inlined_call_operand.vmem [shape: f32[2,9,9,16], index: 0, kind: input, shape index: {}]   ;;  %s1589_s2 = inlined_call_operand.vmem [shape: f32[1,4], index: 2, kind: input, shape index: {}]   ;;  %s1590_s3 = inlined_call_operand.vmem [shape: f32[1,4], index: 3, kind: input, shape index: {}]   ;;  %s1591_s4 = inlined_call_operand.vmem [shape: f32[1,4], index: 4, kind: input, shape index: {}]   ;;  %s1592_s5 = inlined_call_operand.vmem [shape: f32[128,4], index: 5, kind: output, shape index: {}]  }
   0x1   :  { %v1120_v0 = vld [vmem:[%s1587_s1 + $0x8] sm:$0xff]   ;;  %v1121_v1 = vld [vmem:[%s1587_s1 + $0x10] sm:$0xff]   ;;  %v1179_v6 = vld [vmem:[%s1588_s0 + $0x20] sm:$0xff] }
   0x2   :  { %1000 = vmatprep.subr.bf16.mxu1 %v1120_v0  ;;  %v47_v2 = vld [vmem:[%s1588_s0 + $0x1] sm:$0xff]  ;;  %v1168_v3 = vld [vmem:[%s1588_s0 + $0x11] sm:$0xff]  ;;  %1036 = vmatprep.subr.bf16.mxu0 %v1121_v1 }
   0x3   :  { %v1173_v4 = vld [vmem:[%s1588_s0 + $0x10] sm:$0xff]  ;;  %1001 = vmatpush3.bf16.msra.mxu1 %v1120_v0  ;;  %v63_v5 = vpack.c.bf16 %v1168_v3, %v47_v2  ;;  %v1184_v7 = vld [vmem:[%s1588_s0 + $0x21] sm:$0xff]  ;;  %1037 = vmatpush3.bf16.msra.mxu0 %v1121_v1  ;;  %v1123_v15 = vld [vmem:[%s1587_s1 + $0x18] sm:$0xff]  }
   0x4   :  { %v1189_v8 = vld [vmem:[%s1588_s0 + $0x31] sm:$0xff]  ;;  %v346_v9 = vpack.c.bf16 %v1179_v6, %v1173_v4  ;;  %v1122_v11 = vld [vmem:[%s1587_s1] sm:$0xff]   ;;  %1054 = vmatprep.subr.bf16.mxu0 %v1123_v15  ;;  %v516_v54 = vpack.c.bf16 %v1184_v7, %v1168_v3 }
   0x5   :  { %v64_v10 = vpack.c.bf16 %v1189_v8, %v1184_v7  ;;  %1002 = vmatprep.mubr.msk.bf16.mxu1 %vm80_vm0, %v63_v5  ;;  %v1202_v12 = vld [vmem:[%s1588_s0 + $0x30] sm:$0xff]  ;;  %v1207_v13 = vld [vmem:[%s1588_s0 + $0x40] sm:$0xff]  ;;  %1018 = vmatprep.subr.bf16.mxu1 %v1122_v11 }
   0x6   :  { %1038 = vmatprep.mubr.msk.bf16.mxu0 %vm80_vm0, %v346_v9  ;;  %v347_v14 = vpack.c.bf16 %v1207_v13, %v1202_v12  ;;  %v1219_v16 = vld [vmem:[%s1588_s0 + $0x41] sm:$0xff]  ;;  %v1224_v17 = vld [vmem:[%s1588_s0 + $0x51] sm:$0xff]  ;;  %v38_v55 = vpack.c.bf16 %v1202_v12, %v1179_v6 }
   0x7   :  { %1003 = vmatmul.mubr.msk.bf16.vlgmr.msra.gmra.mrb[0].mxu1 %vm80_vm0, %v64_v10  ;;  %v911_v18 = vld [vmem:[%s1588_s0 + $0x50] sm:$0xff]  ;;  %v1232_v19 = vld [vmem:[%s1588_s0 + $0x60] sm:$0xff]  ;;  %v65_v20 = vpack.c.bf16 %v1224_v17, %v1219_v16  ;;  %v517_v57 = vpack.c.bf16 %v1219_v16, %v1189_v8 }
   0x8   :  { %1039 = vmatmul.mubr.msk.bf16.vlgmr.msra.gmra.mrb[0].mxu0 %vm80_vm0, %v347_v14  ;;  %v348_v21 = vpack.c.bf16 %v1232_v19, %v911_v18  ;;  %v53_v22 = vld [vmem:[%s1588_s0 + $0x61] sm:$0xff]  ;;  %v1244_v23 = vld [vmem:[%s1588_s0 + $0x71] sm:$0xff]  ;;  %1019 = vmatpush3.bf16.msra.mxu1 %v1122_v11  ;;  %v39_v56 = vpack.c.bf16 %v911_v18, %v1207_v13  ;;  %v1355_v13 = vld [vmem:[%s1589_s2] ss:$0 sm:$0xff] }
   0x9   :  { %v913_v24 = vld [vmem:[%s1588_s0 + $0x70] sm:$0xff]  ;;  %1055 = vmatpush3.bf16.msra.mxu0 %v1123_v15  ;;  %v914_v25 = vld [vmem:[%s1588_s0 + $0x80] sm:$0xff]  ;;  %1006 = vmatprep.mubr.msk.bf16.mxu1 %vm80_vm0, %v65_v20  ;;  %v66_v28 = vpack.c.bf16 %v1244_v23, %v53_v22  ;;  %v518_v58 = vpack.c.bf16 %v53_v22, %v1224_v17 }
   0xa   :  { %v55_v26 = vld [vmem:[%s1588_s0 + $0x91] sm:$0xff]  ;;  %v56_v27 = vld [vmem:[%s1588_s0 + $0xa1] sm:$0xff]  ;;  %1042 = vmatprep.mubr.msk.bf16.mxu0 %vm80_vm0, %v348_v21  ;;  %v349_v32 = vpack.c.bf16 %v914_v25, %v913_v24  ;;  %v40_v61 = vpack.c.bf16 %v913_v24, %v1232_v19 }
   0xb   :  { %v915_v29 = vld [vmem:[%s1588_s0 + $0xa0] sm:$0xff]  ;;  %v916_v30 = vld [vmem:[%s1588_s0 + $0xb0] sm:$0xff]  ;;  %v67_v31 = vpack.c.bf16 %v56_v27, %v55_v26 }
   0xc   :  { %v350_v33 = vpack.c.bf16 %v916_v30, %v915_v29  ;;  %v57_v34 = vld [vmem:[%s1588_s0 + $0xb1] sm:$0xff]  ;;  %v58_v35 = vld [vmem:[%s1588_s0 + $0xc1] sm:$0xff] }
   0xd   :  { %v59_v36 = vld [vmem:[%s1588_s0 + $0xd1] sm:$0xff]  ;;  %v60_v37 = vld [vmem:[%s1588_s0 + $0xe1] sm:$0xff]  ;;  %v68_v40 = vpack.c.bf16 %v58_v35, %v57_v34  ;;  %v520_v0 = vpack.c.bf16 %v57_v34, %v56_v27 }
   0xe   :  { %v917_v38 = vld [vmem:[%s1588_s0 + $0xc0] sm:$0xff]  ;;  %v918_v39 = vld [vmem:[%s1588_s0 + $0xd0] sm:$0xff]  ;;  %v69_v43 = vpack.c.bf16 %v60_v37, %v59_v36  ;;  %v521_v3 = vpack.c.bf16 %v59_v36, %v58_v35 }
   0xf   :  { %1007 = vmatmul.mubr.msk.bf16.gmra.mrb[4].mxu1 %vm80_vm0, %v66_v28  ;;  %v919_v41 = vld [vmem:[%s1588_s0 + $0xe0] sm:$0xff]  ;;  %v920_v42 = vld [vmem:[%s1588_s0 + $0xf0] sm:$0xff]  ;;  %v351_v44 = vpack.c.bf16 %v918_v39, %v917_v38  ;;  %v42_v1 = vpack.c.bf16 %v917_v38, %v916_v30 }
  0x10   :  { %1010 = vmatprep.mubr.msk.bf16.mxu1 %vm80_vm0, %v67_v31  ;;  %1043 = vmatmul.mubr.msk.bf16.gmra.mrb[4].mxu0 %vm80_vm0, %v349_v32  ;;  %v352_v45 = vpack.c.bf16 %v920_v42, %v919_v41  ;;  %v61_v46 = vld [vmem:[%s1588_s0 + $0xf1] sm:$0xff]  ;;  %v62_v47 = vld [vmem:[%s1588_s0 + $0x101] sm:$0xff]  ;;  %v43_v2 = vpack.c.bf16 %v919_v41, %v918_v39 }
  0x11   :  { %1046 = vmatprep.mubr.msk.bf16.mxu0 %vm80_vm0, %v350_v33  ;;  %v21_v48 = vld [vmem:[%s1588_s0] sm:$0xff]  ;;  %v922_v50 = vld [vmem:[%s1588_s0 + $0x110] sm:$0xff]  ;;  %v70_v51 = vpack.c.bf16 %v62_v47, %v61_v46 }
  0x12   :  { %v921_v49 = vld [vmem:[%s1588_s0 + $0x100] sm:$0xff]  ;;  %v37_v52 = vpack.c.bf16 %v1173_v4, %v21_v48  ;;  %v29_v59 = vld [vmem:[%s1588_s0 + $0x90] sm:$0xff]  ;;  %v522_v4 = vpack.c.bf16 %v61_v46, %v60_v37 }
  0x13   :  { %v353_v53 = vpack.c.bf16 %v922_v50, %v921_v49  ;;  %v941_v60 = vld [vmem:[%s1588_s0 + $0x81] sm:$0xff]  ;;  %v41_v62 = vpack.c.bf16 %v915_v29, %v29_v59  ;;  %v949_v5 = vld [vmem:[%s1588_s0 + $0x111] sm:$0xff]  ;;  %v44_v6 = vpack.c.bf16 %v921_v49, %v920_v42 }
  0x14   :  { %v519_v63 = vpack.c.bf16 %v941_v60, %v1244_v23  ;;  %v523_v7 = vpack.c.bf16 %v949_v5, %v62_v47 }
  0x17   :  { %1011 = vmatmul.mubr.msk.bf16.gmra.mrb[8].mxu1 %vm80_vm0, %v68_v40 }
  0x18   :  { %1014 = vmatprep.mubr.msk.bf16.mxu1 %vm80_vm0, %v69_v43  ;;  %1047 = vmatmul.mubr.msk.bf16.gmra.mrb[8].mxu0 %vm80_vm0, %v351_v44 }
  0x19   :  { %1050 = vmatprep.mubr.msk.bf16.mxu0 %vm80_vm0, %v352_v45 }
  0x1f   :  { %1015 = vmatmul.mubr.msk.bf16.gmra.mrb[12].mxu1 %vm80_vm0, %v70_v51 }
  0x20   :  { %1020 = vmatprep.mubr.msk.bf16.mxu1 %vm80_vm0, %v37_v52  ;;  %1051 = vmatmul.mubr.msk.bf16.gmra.mrb[12].mxu0 %vm80_vm0, %v353_v53 }
  0x21   :  { %1056 = vmatprep.mubr.msk.bf16.mxu0 %vm80_vm0, %v516_v54 }
  0x27   :  { %1021 = vmatmul.mubr.msk.bf16.vlgmr.msra.gmra.mrb[0].mxu1 %vm80_vm0, %v38_v55 }
  0x28   :  { %1024 = vmatprep.mubr.msk.bf16.mxu1 %vm80_vm0, %v39_v56  ;;  %1057 = vmatmul.mubr.msk.bf16.vlgmr.msra.gmra.mrb[0].mxu0 %vm80_vm0, %v517_v57 }
  0x29   :  { %1060 = vmatprep.mubr.msk.bf16.mxu0 %vm80_vm0, %v518_v58 }
  0x2f   :  { %1025 = vmatmul.mubr.msk.bf16.gmra.mrb[4].mxu1 %vm80_vm0, %v40_v61 }
  0x30   :  { %1028 = vmatprep.mubr.msk.bf16.mxu1 %vm80_vm0, %v41_v62  ;;  %1061 = vmatmul.mubr.msk.bf16.gmra.mrb[4].mxu0 %vm80_vm0, %v519_v63 }
  0x31   :  { %1064 = vmatprep.mubr.msk.bf16.mxu0 %vm80_vm0, %v520_v0 }
  0x37   :  { %1029 = vmatmul.mubr.msk.bf16.gmra.mrb[8].mxu1 %vm80_vm0, %v42_v1 }
  0x38   :  { %1032 = vmatprep.mubr.msk.bf16.mxu1 %vm80_vm0, %v43_v2  ;;  %1065 = vmatmul.mubr.msk.bf16.gmra.mrb[8].mxu0 %vm80_vm0, %v521_v3 }
  0x39   :  { %1068 = vmatprep.mubr.msk.bf16.mxu0 %vm80_vm0, %v522_v4 }
  0x3f   :  { %1033 = vmatmul.mubr.msk.bf16.gmra.mrb[12].mxu1 %vm80_vm0, %v44_v6 }
  0x40   :  { %1069 = vmatmul.mubr.msk.bf16.gmra.mrb[12].mxu0 %vm80_vm0, %v523_v7 }
  0xfa   :  { %v1022_v8 = vpop.f32.mrb[0].mxu1 }
  0xfb   :  { %v266_v9 = vpop.f32.mrb[1].mxu1  ;;  %v1058_v10 = vpop.f32.mrb[0].mxu0 }
  0xfc   :  { %v1023_v11 = vpop.f32.mrb[2].mxu1  ;;  %v1072_v12 = vadd.f32 %v1058_v10, %v1022_v8  ;;  %v591_v14 = vpop.f32.mrb[1].mxu0 }
  0xfd   :  { %v269_v15 = vpop.f32.mrb[3].mxu1  ;;  %v1073_v16 = vadd.f32 %v591_v14, %v266_v9  ;;  %v1059_v17 = vpop.f32.mrb[2].mxu0 }
  0xfe   :  { %v1074_v18 = vadd.f32 %v1059_v17, %v1023_v11  ;;  %v594_v19 = vpop.f32.mrb[3].mxu0  ;;  %v1361_v22 = vadd.f32 %v1072_v12, %v1355_v13 }
  0xff   :  { %v1358_v20 = vadd.f32 %v1073_v16, %v1355_v13  ;;  %v1075_v21 = vadd.f32 %v594_v19, %v269_v15 }
 0x100   :  { %v1369_v27 = vadd.f32 %v1074_v18, %v1355_v13  ;;  %v697_v35 = vsel %vm693_vm1, %v1361_v22, 0.0 }
 0x101   :  { %v1364_v23 = vadd.f32 %v1075_v21, %v1355_v13  ;;  %v694_v26 = vsel %vm693_vm1, %v1358_v20, 0.0 }
 0x102   :  { %v1026_v24 = vpop.f32.mrb[4].mxu1  ;;  %v699_v41 = vsel %vm693_vm1, %v1369_v27, 0.0 }
 0x103   :  { %v282_v25 = vpop.f32.mrb[5].mxu1  ;;  %v695_v28 = vsel %vm693_vm1, %v1364_v23, 0.0  ;;  %v1062_v29 = vpop.f32.mrb[4].mxu0 }
 0x104   :  { %v1027_v30 = vpop.f32.mrb[6].mxu1  ;;  %v696_v31 = vadd.f32 %v695_v28, %v694_v26  ;;  %v1076_v32 = vadd.f32 %v1062_v29, %v1026_v24  ;;  %v607_v33 = vpop.f32.mrb[5].mxu0 }
 0x105   :  { %v285_v34 = vpop.f32.mrb[7].mxu1  ;;  %v1077_v36 = vadd.f32 %v607_v33, %v282_v25  ;;  %v1063_v37 = vpop.f32.mrb[6].mxu0 }
 0x106   :  { %v698_v38 = vadd.f32 %v697_v35, %v696_v31  ;;  %v1078_v39 = vadd.f32 %v1063_v37, %v1027_v30  ;;  %v610_v40 = vpop.f32.mrb[7].mxu0  ;;  %v1381_v45 = vadd.f32 %v1076_v32, %v1355_v13 }
 0x107   :  { %v1378_v42 = vadd.f32 %v1077_v36, %v1355_v13  ;;  %v1079_v43 = vadd.f32 %v610_v40, %v285_v34 }
 0x108   :  { %v700_v44 = vadd.f32 %v699_v41, %v698_v38  ;;  %v1389_v51 = vadd.f32 %v1078_v39, %v1355_v13  ;;  %v705_v59 = vsel %vm693_vm1, %v1381_v45, 0.0 }
 0x109   :  { %v701_v46 = vsel %vm693_vm1, %v1378_v42, 0.0  ;;  %v1386_v47 = vadd.f32 %v1079_v43, %v1355_v13 }
 0x10a   :  { %v1030_v48 = vpop.f32.mrb[8].mxu1  ;;  %v702_v49 = vadd.f32 %v701_v46, %v700_v44  ;;  %v707_v1 = vsel %vm693_vm1, %v1389_v51, 0.0 }
 0x10b   :  { %v298_v50 = vpop.f32.mrb[9].mxu1  ;;  %v703_v52 = vsel %vm693_vm1, %v1386_v47, 0.0  ;;  %v1066_v53 = vpop.f32.mrb[8].mxu0 }
 0x10c   :  { %v1031_v54 = vpop.f32.mrb[10].mxu1  ;;  %v704_v55 = vadd.f32 %v703_v52, %v702_v49  ;;  %v1080_v56 = vadd.f32 %v1066_v53, %v1030_v48  ;;  %v623_v57 = vpop.f32.mrb[9].mxu0 }
 0x10d   :  { %v301_v58 = vpop.f32.mrb[11].mxu1  ;;  %v1081_v60 = vadd.f32 %v623_v57, %v298_v50  ;;  %v1067_v61 = vpop.f32.mrb[10].mxu0 }
 0x10e   :  { %v706_v62 = vadd.f32 %v705_v59, %v704_v55  ;;  %v1082_v63 = vadd.f32 %v1067_v61, %v1031_v54  ;;  %v626_v0 = vpop.f32.mrb[11].mxu0  ;;  %v687_v5 = vadd.f32 %v1080_v56, %v1355_v13 }
 0x10f   :  { %v685_v2 = vadd.f32 %v1081_v60, %v1355_v13  ;;  %v1083_v3 = vadd.f32 %v626_v0, %v301_v58 }
 0x110   :  { %v708_v4 = vadd.f32 %v707_v1, %v706_v62  ;;  %v688_v11 = vadd.f32 %v1082_v63, %v1355_v13  ;;  %v713_v21 = vsel %vm693_vm1, %v687_v5, 0.0 }
 0x111   :  { %v709_v6 = vsel %vm693_vm1, %v685_v2, 0.0  ;;  %v686_v7 = vadd.f32 %v1083_v3, %v1355_v13 }
 0x112   :  { %v1034_v8 = vpop.f32.mrb[12].mxu1  ;;  %v710_v9 = vadd.f32 %v709_v6, %v708_v4  ;;  %v715_v30 = vsel %vm693_vm1, %v688_v11, 0.0 }
 0x113   :  { %v314_v10 = vpop.f32.mrb[13].mxu1  ;;  %v711_v12 = vsel %vm693_vm1, %v686_v7, 0.0  ;;  %v1070_v14 = vpop.f32.mrb[12].mxu0 }
 0x114   :  { %v1035_v15 = vpop.f32.mrb[14].mxu1  ;;  %v712_v16 = vadd.f32 %v711_v12, %v710_v9  ;;  %v1084_v17 = vadd.f32 %v1070_v14, %v1034_v8  ;;  %v639_v18 = vpop.f32.mrb[13].mxu0 }
 0x115   :  { %v317_v19 = vpop.f32.mrb[15].mxu1  ;;  %v1085_v24 = vadd.f32 %v639_v18, %v314_v10  ;;  %v1071_v25 = vpop.f32.mrb[14].mxu0 }
 0x116   :  { %v714_v26 = vadd.f32 %v713_v21, %v712_v16  ;;  %v1086_v28 = vadd.f32 %v1071_v25, %v1035_v15  ;;  %v642_v29 = vpop.f32.mrb[15].mxu0  ;;  %v691_v34 = vadd.f32 %v1084_v17, %v1355_v13 }
 0x117   :  { %v689_v31 = vadd.f32 %v1085_v24, %v1355_v13  ;;  %v1087_v32 = vadd.f32 %v642_v29, %v317_v19 }
 0x118   :  { %v716_v33 = vadd.f32 %v715_v30, %v714_v26  ;;  %v692_v38 = vadd.f32 %v1086_v28, %v1355_v13  ;;  %v721_v41 = vsel %vm693_vm1, %v691_v34, 0.0 }
 0x119   :  { %v717_v35 = vsel %vm693_vm1, %v689_v31, 0.0  ;;  %v690_v36 = vadd.f32 %v1087_v32, %v1355_v13 }
 0x11a   :  { %v718_v37 = vadd.f32 %v717_v35, %v716_v33  ;;  %v723_v44 = vsel %vm693_vm1, %v692_v38, 0.0 }
 0x11b   :  { %v719_v39 = vsel %vm693_vm1, %v690_v36, 0.0 }
 0x11c   :  { %v720_v40 = vadd.f32 %v719_v39, %v718_v37 }
 0x11e   :  { %v722_v43 = vadd.f32 %v721_v41, %v720_v40 }
 0x120   :  { %v724_v46 = vadd.f32 %v723_v44, %v722_v43 }
 0x122   :  { %v725_v48 = vrot.slane %v724_v46, 4 }
 0x124   :  { %v726_v49 = vadd.f32 %v725_v48, %v724_v46 }
 0x126   :  { %v727_v50 = vrot.slane %v726_v49, 2 }
 0x128   :  { %v728_v52 = vadd.f32 %v727_v50, %v726_v49 }
 0x12a   :  { %v729_v53 = vrot.slane %v728_v52, 1 }
 0x12c   :  { %v730_v54 = vadd.f32 %v729_v53, %v728_v52 }
 0x12e   :  { %v732_v55 = vmul.f32 0.0078125, %v730_v54 }
 0x130   :  { %v1414_v56 = vsub.f32 %v1358_v20, %v732_v55  ;;  %v1417_v13 = vsub.f32 %v1364_v23, %v732_v55  ;;  %v1420_v57 = vsub.f32 %v1361_v22, %v732_v55  ;;  %v1423_v58 = vsub.f32 %v1369_v27, %v732_v55 }
 0x131   :  { %v1426_v59 = vsub.f32 %v1378_v42, %v732_v55  ;;  %v1429_v60 = vsub.f32 %v1386_v47, %v732_v55  ;;  %v1432_v61 = vsub.f32 %v1381_v45, %v732_v55  ;;  %v1435_v20 = vsub.f32 %v1389_v51, %v732_v55 }
 0x132   :  { %v1437_v23 = vsub.f32 %v685_v2, %v732_v55  ;;  %v1439_v62 = vsub.f32 %v686_v7, %v732_v55  ;;  %v1441_v22 = vsub.f32 %v687_v5, %v732_v55  ;;  %v1443_v27 = vsub.f32 %v688_v11, %v732_v55 }
 0x133   :  { %v1445_v63 = vsub.f32 %v689_v31, %v732_v55  ;;  %v1447_v42 = vsub.f32 %v690_v36, %v732_v55  ;;  %v1449_v47 = vsub.f32 %v691_v34, %v732_v55  ;;  %v1451_v0 = vsub.f32 %v692_v38, %v732_v55 }
 0x134   :  { %v749_v45 = vmul.f32 %v1414_v56, %v1414_v56  ;;  %v750_v51 = vmul.f32 %v1417_v13, %v1417_v13  ;;  %v751_v1 = vmul.f32 %v1420_v57, %v1420_v57  ;;  %v752_v2 = vmul.f32 %v1423_v58, %v1423_v58 }
 0x135   :  { %v753_v6 = vmul.f32 %v1426_v59, %v1426_v59  ;;  %v754_v9 = vmul.f32 %v1429_v60, %v1429_v60  ;;  %v755_v12 = vmul.f32 %v1432_v61, %v1432_v61  ;;  %v756_v16 = vmul.f32 %v1435_v20, %v1435_v20 }
 0x136   :  { %v765_v3 = vsel %vm693_vm1, %v749_v45, 0.0  ;;  %v766_v4 = vsel %vm693_vm1, %v750_v51, 0.0  ;;  %v768_v7 = vsel %vm693_vm1, %v751_v1, 0.0  ;;  %v770_v10 = vsel %vm693_vm1, %v752_v2, 0.0 }
 0x137   :  { %v767_v5 = vadd.f32 %v766_v4, %v765_v3  ;;  %v772_v14 = vsel %vm693_vm1, %v753_v6, 0.0  ;;  %v774_v17 = vsel %vm693_vm1, %v754_v9, 0.0  ;;  %v757_v19 = vmul.f32 %v1437_v23, %v1437_v23 }
 0x138   :  { %v776_v21 = vsel %vm693_vm1, %v755_v12, 0.0  ;;  %v758_v25 = vmul.f32 %v1439_v62, %v1439_v62  ;;  %v778_v26 = vsel %vm693_vm1, %v756_v16, 0.0  ;;  %v759_v29 = vmul.f32 %v1441_v22, %v1441_v22  ;;  %v962_v16 = vld [vmem:[%s1590_s3] ss:$0 sm:$0xff] }
 0x139   :  { %v769_v8 = vadd.f32 %v768_v7, %v767_v5  ;;  %v780_v30 = vsel %vm693_vm1, %v757_v19, 0.0  ;;  %v760_v32 = vmul.f32 %v1443_v27, %v1443_v27  ;;  %v761_v35 = vmul.f32 %v1445_v63, %v1445_v63 }
 0x13a   :  { %v782_v33 = vsel %vm693_vm1, %v758_v25, 0.0  ;;  %v784_v36 = vsel %vm693_vm1, %v759_v29, 0.0  ;;  %v762_v38 = vmul.f32 %v1447_v42, %v1447_v42  ;;  %v763_v41 = vmul.f32 %v1449_v47, %v1449_v47 }
 0x13b   :  { %v771_v11 = vadd.f32 %v770_v10, %v769_v8  ;;  %v786_v39 = vsel %vm693_vm1, %v760_v32, 0.0  ;;  %v788_v43 = vsel %vm693_vm1, %v761_v35, 0.0  ;;  %v764_v46 = vmul.f32 %v1451_v0, %v1451_v0 }
 0x13c   :  { %v790_v48 = vsel %vm693_vm1, %v762_v38, 0.0  ;;  %v792_v50 = vsel %vm693_vm1, %v763_v41, 0.0 }
 0x13d   :  { %v773_v15 = vadd.f32 %v772_v14, %v771_v11  ;;  %v794_v53 = vsel %vm693_vm1, %v764_v46, 0.0 }
 0x13f   :  { %v775_v18 = vadd.f32 %v774_v17, %v773_v15 }
 0x141   :  { %v777_v24 = vadd.f32 %v776_v21, %v775_v18 }
 0x143   :  { %v779_v28 = vadd.f32 %v778_v26, %v777_v24 }
 0x145   :  { %v781_v31 = vadd.f32 %v780_v30, %v779_v28 }
 0x147   :  { %v783_v34 = vadd.f32 %v782_v33, %v781_v31 }
 0x149   :  { %v785_v37 = vadd.f32 %v784_v36, %v783_v34 }
 0x14b   :  { %v787_v40 = vadd.f32 %v786_v39, %v785_v37 }
 0x14d   :  { %v789_v44 = vadd.f32 %v788_v43, %v787_v40 }
 0x14f   :  { %v791_v49 = vadd.f32 %v790_v48, %v789_v44 }
 0x151   :  { %v793_v52 = vadd.f32 %v792_v50, %v791_v49 }
 0x153   :  { %v795_v54 = vadd.f32 %v794_v53, %v793_v52 }
 0x155   :  { %v796_v55 = vrot.slane %v795_v54, 4 }
 0x157   :  { %v797_v45 = vadd.f32 %v796_v55, %v795_v54 }
 0x159   :  { %v798_v51 = vrot.slane %v797_v45, 2 }
 0x15b   :  { %v799_v1 = vadd.f32 %v798_v51, %v797_v45 }
 0x15d   :  { %v800_v2 = vrot.slane %v799_v1, 1 }
 0x15f   :  { %v801_v3 = vadd.f32 %v800_v2, %v799_v1 }
 0x161   :  { %v802_v4 = vmul.f32 0.0078125, %v801_v3 }
 0x163   :  { %v803_v5 = vadd.f32 1e-05, %v802_v4 }
 0x165   :  { %1124 = vrsqrt.f32 %v803_v5 }
 0x16f   :  { %v1125_v6 = vpop.eup %1124 }
 0x170   :  { %v805_v7 = vmul.f32 %v1125_v6, %v1414_v56  ;;  %v806_v8 = vmul.f32 %v1125_v6, %v1417_v13  ;;  %v807_v9 = vmul.f32 %v1125_v6, %v1420_v57  ;;  %v808_v10 = vmul.f32 %v1125_v6, %v1423_v58 }
 0x171   :  { %v809_v11 = vmul.f32 %v1125_v6, %v1426_v59  ;;  %v810_v12 = vmul.f32 %v1125_v6, %v1429_v60  ;;  %v811_v14 = vmul.f32 %v1125_v6, %v1432_v61  ;;  %v812_v15 = vmul.f32 %v1125_v6, %v1435_v20 }
 0x172   :  { %v813_v56 = vmul.f32 %v1125_v6, %v1437_v23  ;;  %v814_v13 = vmul.f32 %v1125_v6, %v1439_v62  ;;  %v815_v57 = vmul.f32 %v1125_v6, %v1441_v22  ;;  %v816_v58 = vmul.f32 %v1125_v6, %v1443_v27  ;;  %v963_v22 = vld [vmem:[%s1591_s4] ss:$0 sm:$0xff] }
 0x173   :  { %v817_v59 = vmul.f32 %v1125_v6, %v1445_v63  ;;  %v818_v60 = vmul.f32 %v1125_v6, %v1447_v42  ;;  %v819_v61 = vmul.f32 %v1125_v6, %v1449_v47  ;;  %v820_v20 = vmul.f32 %v1125_v6, %v1451_v0 }
 0x174   :  { %v828_v17 = vmul.f32 %v962_v16, %v805_v7  ;;  %v829_v18 = vmul.f32 %v962_v16, %v806_v8  ;;  %v830_v19 = vmul.f32 %v962_v16, %v807_v9  ;;  %v831_v21 = vmul.f32 %v962_v16, %v808_v10 }
 0x175   :  { %v832_v24 = vmul.f32 %v962_v16, %v809_v11  ;;  %v833_v23 = vmul.f32 %v962_v16, %v810_v12  ;;  %v834_v25 = vmul.f32 %v962_v16, %v811_v14  ;;  %v835_v62 = vmul.f32 %v962_v16, %v812_v15 }
 0x176   :  { %v836_v27 = vmul.f32 %v962_v16, %v813_v56  ;;  %v837_v63 = vmul.f32 %v962_v16, %v814_v13  ;;  %v838_v26 = vmul.f32 %v962_v16, %v815_v57  ;;  %v839_v42 = vmul.f32 %v962_v16, %v816_v58 }
 0x177   :  { %v840_v28 = vmul.f32 %v962_v16, %v817_v59  ;;  %v841_v47 = vmul.f32 %v962_v16, %v818_v60  ;;  %v842_v29 = vmul.f32 %v962_v16, %v819_v61  ;;  %v843_v0 = vmul.f32 %v962_v16, %v820_v20 }
 0x178   :  { %v851_v30 = vadd.f32 %v963_v22, %v828_v17  ;;  %v852_v31 = vadd.f32 %v963_v22, %v829_v18  ;;  %v853_v32 = vadd.f32 %v963_v22, %v830_v19  ;;  %v854_v33 = vadd.f32 %v963_v22, %v831_v21 }
 0x179   :  { %v855_v34 = vadd.f32 %v963_v22, %v832_v24  ;;  %v856_v35 = vadd.f32 %v963_v22, %v833_v23  ;;  %v857_v36 = vadd.f32 %v963_v22, %v834_v25  ;;  %v858_v37 = vadd.f32 %v963_v22, %v835_v62 }
 0x17a   :  { %v859_v38 = vadd.f32 %v963_v22, %v836_v27  ;;  %v860_v39 = vadd.f32 %v963_v22, %v837_v63  ;;  %v861_v40 = vadd.f32 %v963_v22, %v838_v26  ;;  %v862_v41 = vadd.f32 %v963_v22, %v839_v42  ;;  %867 = vst.msk [vmem:[%s1592_s5] sm:$0xff] %vm693_vm1, %v851_v30 }
 0x17b   :  { %868 = vst.msk [vmem:[%s1592_s5 + $0x8] sm:$0xff] %vm693_vm1, %v852_v31  ;;  %869 = vst.msk [vmem:[%s1592_s5 + $0x10] sm:$0xff] %vm693_vm1, %v853_v32  ;;  %v863_v43 = vadd.f32 %v963_v22, %v840_v28  ;;  %v864_v44 = vadd.f32 %v963_v22, %v841_v47  ;;  %v865_v46 = vadd.f32 %v963_v22, %v842_v29 }
 0x17c   :  { %870 = vst.msk [vmem:[%s1592_s5 + $0x18] sm:$0xff] %vm693_vm1, %v854_v33  ;;  %v866_v48 = vadd.f32 %v963_v22, %v843_v0  ;;  %871 = vst.msk [vmem:[%s1592_s5 + $0x20] sm:$0xff] %vm693_vm1, %v855_v34 }
 0x17d   :  { %872 = vst.msk [vmem:[%s1592_s5 + $0x28] sm:$0xff] %vm693_vm1, %v856_v35  ;;  %873 = vst.msk [vmem:[%s1592_s5 + $0x30] sm:$0xff] %vm693_vm1, %v857_v36 }
 0x17e   :  { %874 = vst.msk [vmem:[%s1592_s5 + $0x38] sm:$0xff] %vm693_vm1, %v858_v37  ;;  %875 = vst.msk [vmem:[%s1592_s5 + $0x40] sm:$0xff] %vm693_vm1, %v859_v38 }
 0x17f   :  { %876 = vst.msk [vmem:[%s1592_s5 + $0x48] sm:$0xff] %vm693_vm1, %v860_v39  ;;  %877 = vst.msk [vmem:[%s1592_s5 + $0x50] sm:$0xff] %vm693_vm1, %v861_v40 }
 0x180   :  { %878 = vst.msk [vmem:[%s1592_s5 + $0x58] sm:$0xff] %vm693_vm1, %v862_v41  ;;  %879 = vst.msk [vmem:[%s1592_s5 + $0x60] sm:$0xff] %vm693_vm1, %v863_v43 }
 0x181   :  { %880 = vst.msk [vmem:[%s1592_s5 + $0x68] sm:$0xff] %vm693_vm1, %v864_v44  ;;  %881 = vst.msk [vmem:[%s1592_s5 + $0x70] sm:$0xff] %vm693_vm1, %v865_v46 }
 0x182   :  { %882 = vst.msk [vmem:[%s1592_s5 + $0x78] sm:$0xff] %vm693_vm1, %v866_v48 }

// kernel: _lambda_.12
= control target key start
LH: loop header
LB: loop body
LE: loop exit
PB: predicated region body
PF: predicated region fallthrough
CT: control target
= control target key end

     0   :  { %vm126_vm0 = vcmask 1043456   ;;  %vm41_vm1 = vcmask 62464   ;;  %vm55_vm2 = vcmask 60416   ;;  %v2267_v3 = vmov 0.0   ;;  %s2582_s1 = inlined_call_operand.vmem [shape: bf16[9,8,8], index: 1, kind: input, shape index: {}]   ;;  %s2583_s0 = inlined_call_operand.vmem [shape: f32[2,4,4,8], index: 0, kind: input, shape index: {}]   ;;  %s2584_s5 = inlined_call_operand.vmem [shape: bf16[9,8,8], index: 5, kind: input, shape index: {}]   ;;  %s2585_s2 = inlined_call_operand.vmem [shape: f32[1,8], index: 2, kind: input, shape index: {}]   ;;  %s2586_s3 = inlined_call_operand.vmem [shape: f32[1,8], index: 3, kind: input, shape index: {}, may-alias: {3,7}]   ;;  %s2587_s4 = inlined_call_operand.vmem [shape: f32[1,8], index: 4, kind: input, shape index: {}, may-alias: {4,8}]   ;;  %s2588_s6 = inlined_call_operand.vmem [shape: f32[1,8], index: 6, kind: input, shape index: {}]   ;;  %s2589_s7 = inlined_call_operand.vmem [shape: f32[1,8], index: 7, kind: input, shape index: {}, may-alias: {3,7}]   ;;  %s2590_s8 = inlined_call_operand.vmem [shape: f32[1,8], index: 8, kind: input, shape index: {}, may-alias: {4,8}]   ;;  %s2591_s9 = inlined_call_operand.vmem [shape: f32[32,8], index: 9, kind: output, shape index: {}]  }
   0x1   :  { %v1888_v0 = vld [vmem:[%s2582_s1 + $0x4] sm:$0xf]  ;;  %v2324_v1 = vld [vmem:[%s2583_s0] sm:$0xf]  ;;  %42 = vst.msk [vmem:[#allocation2] sm:$0x3f] %vm41_vm1, %v2267_v3 }
   0x2   :  { %v2329_v2 = vld [vmem:[%s2583_s0 + $0x4] sm:$0xf]  ;;  %43 = vst.msk [vmem:[#allocation2 + $0x8] sm:$0x3f] %vm41_vm1, %v2267_v3  ;;  %44 = vst.msk [vmem:[#allocation2 + $0x10] sm:$0x3f] %vm41_vm1, %v2267_v3  ;;  %2172 = vmatprep.subr.msk.bf16.mxu0 %vm126_vm0, %v1888_v0 }
   0x3   :  { %45 = vst.msk [vmem:[#allocation2 + $0x18] sm:$0x3f] %vm41_vm1, %v2267_v3  ;;  %46 = vst.msk [vmem:[#allocation2 + $0x20] sm:$0x3f] %vm41_vm1, %v2267_v3  ;;  %v128_v4 = vsel %vm126_vm0, %v1888_v0, 0  ;;  %vm119_vm3 = vcmask 64512  }
   0x4   :  { %47 = vst.msk [vmem:[#allocation2 + $0x28] sm:$0x3f] %vm41_vm1, %v2267_v3  ;;  %48 = vst.msk [vmem:[#allocation2 + $0x30] sm:$0x3f] %vm41_vm1, %v2267_v3  ;;  %v2348_v5 = vld [vmem:[%s2583_s0 + $0x8] sm:$0xf]  ;;  %2001 = vmatpush3.bf16.msra.mxu0 %v128_v4 }
   0x5   :  { %49 = vst.msk [vmem:[#allocation2 + $0x38] sm:$0x3f] %vm41_vm1, %v2267_v3  ;;  %50 = vst.msk [vmem:[#allocation2 + $0x40] sm:$0x3f] %vm41_vm1, %v2267_v3  ;;  %v90_v6 = vld [vmem:[%s2582_s1] sm:$0xf] }
   0x6   :  { %51 = vst.msk [vmem:[#allocation2 + $0x48] sm:$0x3f] %vm41_vm1, %v2267_v3  ;;  %52 = vst.msk [vmem:[#allocation2 + $0x50] sm:$0x3f] %vm41_vm1, %v2267_v3  ;;  %v2362_v7 = vld [vmem:[%s2583_s0 + $0x10] sm:$0xf]  ;;  %2173 = vmatprep.subr.msk.bf16.mxu0 %vm126_vm0, %v90_v6 }
   0x7   :  { %53 = vst.msk [vmem:[#allocation2 + $0x58] sm:$0x3f] %vm41_vm1, %v2267_v3  ;;  %v2367_v8 = vld [vmem:[%s2583_s0 + $0x14] sm:$0xf]  ;;  %v2372_v9 = vld [vmem:[%s2583_s0 + $0x18] sm:$0xf] }
   0x8   :  { %56 = vst.msk [vmem:[#allocation2 + $0x9] sm:$0xf] %vm55_vm2, %v2324_v1  ;;  %57 = vst.msk [vmem:[#allocation2 + $0x11] sm:$0xf] %vm55_vm2, %v2329_v2  ;;  %v2384_v10 = vld [vmem:[%s2583_s0 + $0xc] sm:$0xf] }
   0x9   :  { %58 = vst.msk [vmem:[#allocation2 + $0x19] sm:$0xf] %vm55_vm2, %v2348_v5  ;;  %60 = vst.msk [vmem:[#allocation2 + $0x39] sm:$0xf] %vm55_vm2, %v2362_v7  ;;  %v2391_v11 = vld [vmem:[%s2583_s0 + $0x1c] sm:$0xf] }
   0xa   :  { %61 = vst.msk [vmem:[#allocation2 + $0x41] sm:$0xf] %vm55_vm2, %v2367_v8  ;;  %62 = vst.msk [vmem:[#allocation2 + $0x49] sm:$0xf] %vm55_vm2, %v2372_v9  ;;  %v186_v12 = vsel %vm126_vm0, %v90_v6, 0 }
   0xb   :  { %59 = vst.msk [vmem:[#allocation2 + $0x21] sm:$0xf] %vm55_vm2, %v2384_v10  ;;  %63 = vst.msk [vmem:[#allocation2 + $0x51] sm:$0xf] %vm55_vm2, %v2391_v11  ;;  %v1893_v22 = vld [vmem:[%s2582_s1 + $0x8] sm:$0xf] }
   0xc   :  { %v272_v28 = vsel %vm126_vm0, %v1893_v22, 0  ;;  %v1896_v30 = vld [vmem:[%s2582_s1 + $0xc] sm:$0xf]  ;;  %v1899_v38 = vld [vmem:[%s2582_s1 + $0x10] sm:$0xf] }
   0xd   :  { %v362_v37 = vsel %vm126_vm0, %v1896_v30, 0  ;;  %v452_v45 = vsel %vm126_vm0, %v1899_v38, 0  ;;  %v1902_v46 = vld [vmem:[%s2582_s1 + $0x14] sm:$0xf]  ;;  %v1905_v54 = vld [vmem:[%s2582_s1 + $0x18] sm:$0xf] }
   0xe   :  { %v542_v53 = vsel %vm126_vm0, %v1902_v46, 0  ;;  %v633_v61 = vsel %vm126_vm0, %v1905_v54, 0  ;;  %v1908_v62 = vld [vmem:[%s2582_s1 + $0x1c] sm:$0xf] }
   0xf   :  { %v2191_v13 = vld [vmem:[#allocation2 + $0x1] ss:$8 sps:$4 sm:$0xff]  }
  0x10   :  { %v2192_v14 = vld [vmem:[#allocation2 + $0x11] ss:$8 sps:$4 sm:$0xff]   ;;  %v2195_v18 = vld [vmem:[#allocation2] ss:$8 sps:$4 sm:$0xff]  }
  0x11   :  { %v115_v15 = vpack.c.bf16 %v2192_v14, %v2191_v13  ;;  %v2193_v16 = vld [vmem:[#allocation2 + $0x31] ss:$8 sps:$4 sm:$0xff]   ;;  %v2194_v17 = vld [vmem:[#allocation2 + $0x41] ss:$8 sps:$4 sm:$0xff]   ;;  %v723_v13 = vsel %vm126_vm0, %v1908_v62, 0 }
  0x12   :  { %v2196_v19 = vld [vmem:[#allocation2 + $0x10] ss:$8 sps:$4 sm:$0xff]   ;;  %v116_v20 = vpack.c.bf16 %v2194_v17, %v2193_v16  ;;  %v2198_v24 = vld [vmem:[#allocation2 + $0x40] ss:$8 sps:$4 sm:$0xff]  }
  0x13   :  { %2002 = vmatprep.mubr.msk.bf16.mxu0 %vm119_vm3, %v115_v15  ;;  %v88_v21 = vpack.c.bf16 %v2196_v19, %v2195_v18  ;;  %v2197_v23 = vld [vmem:[#allocation2 + $0x30] ss:$8 sps:$4 sm:$0xff]   ;;  %v2199_v25 = vld [vmem:[#allocation2 + $0x2] ss:$8 sps:$4 sm:$0xff]  }
  0x14   :  { %2003 = vmatmul.mubr.msk.bf16.vlgmr.msra.gmra.mrb[0].mxu0 %vm119_vm3, %v116_v20  ;;  %v2200_v26 = vld [vmem:[#allocation2 + $0x12] ss:$8 sps:$4 sm:$0xff]   ;;  %v89_v27 = vpack.c.bf16 %v2198_v24, %v2197_v23  ;;  %v2202_v32 = vld [vmem:[#allocation2 + $0x42] ss:$8 sps:$4 sm:$0xff]  }
  0x15   :  { %2007 = vmatpush3.bf16.msra.mxu0 %v186_v12  ;;  %2008 = vmatprep.mubr.msk.bf16.mxu0 %vm119_vm3, %v88_v21  ;;  %v261_v29 = vpack.c.bf16 %v2200_v26, %v2199_v25  ;;  %v2201_v31 = vld [vmem:[#allocation2 + $0x32] ss:$8 sps:$4 sm:$0xff]   ;;  %v2216_v58 = vld [vmem:[#allocation2 + $0x20] ss:$8 sps:$4 sm:$0xff]   ;;  %v1917_v25 = vld [vmem:[%s2584_s5 + $0x4] sm:$0xf] }
  0x16   :  { %2174 = vmatprep.subr.msk.bf16.mxu0 %vm126_vm0, %v1893_v22  ;;  %v2203_v33 = vld [vmem:[#allocation2 + $0x8] ss:$8 sps:$4 sm:$0xff]   ;;  %v2204_v34 = vld [vmem:[#allocation2 + $0x18] ss:$8 sps:$4 sm:$0xff]   ;;  %v262_v35 = vpack.c.bf16 %v2202_v32, %v2201_v31  ;;  %2181 = vmatprep.subr.msk.bf16.mxu1 %vm126_vm0, %v1917_v25  ;;  %v1030_v26 = vsel %vm126_vm0, %v1917_v25, 0 }
  0x17   :  { %v351_v36 = vpack.c.bf16 %v2204_v34, %v2203_v33  ;;  %v2205_v39 = vld [vmem:[#allocation2 + $0x38] ss:$8 sps:$4 sm:$0xff]   ;;  %v2206_v40 = vld [vmem:[#allocation2 + $0x48] ss:$8 sps:$4 sm:$0xff]   ;;  %2055 = vmatpush3.bf16.msra.mxu1 %v1030_v26 }
  0x18   :  { %v2207_v41 = vld [vmem:[#allocation2 + $0x9] ss:$8 sps:$4 sm:$0xff]   ;;  %v2208_v42 = vld [vmem:[#allocation2 + $0x19] ss:$8 sps:$4 sm:$0xff]   ;;  %v352_v43 = vpack.c.bf16 %v2206_v40, %v2205_v39 }
  0x19   :  { %v441_v44 = vpack.c.bf16 %v2208_v42, %v2207_v41  ;;  %v2209_v47 = vld [vmem:[#allocation2 + $0x39] ss:$8 sps:$4 sm:$0xff]   ;;  %v2210_v48 = vld [vmem:[#allocation2 + $0x49] ss:$8 sps:$4 sm:$0xff]  }
  0x1a   :  { %v2211_v49 = vld [vmem:[#allocation2 + $0xa] ss:$8 sps:$4 sm:$0xff]   ;;  %v2212_v50 = vld [vmem:[#allocation2 + $0x1a] ss:$8 sps:$4 sm:$0xff]   ;;  %v442_v51 = vpack.c.bf16 %v2210_v48, %v2209_v47 }
  0x1b   :  { %v531_v52 = vpack.c.bf16 %v2212_v50, %v2211_v49  ;;  %v2213_v55 = vld [vmem:[#allocation2 + $0x3a] ss:$8 sps:$4 sm:$0xff]   ;;  %v2214_v56 = vld [vmem:[#allocation2 + $0x4a] ss:$8 sps:$4 sm:$0xff]  }
  0x1c   :  { %v2215_v57 = vld [vmem:[#allocation2 + $0x10] ss:$8 sps:$4 sm:$0xff]   ;;  %v532_v59 = vpack.c.bf16 %v2214_v56, %v2213_v55  ;;  %v2217_v63 = vld [vmem:[#allocation2 + $0x40] ss:$8 sps:$4 sm:$0xff]  }
  0x1d   :  { %v622_v60 = vpack.c.bf16 %v2216_v58, %v2215_v57  ;;  %v2218_v0 = vld [vmem:[#allocation2 + $0x50] ss:$8 sps:$4 sm:$0xff]   ;;  %v2220_v4 = vld [vmem:[#allocation2 + $0x21] ss:$8 sps:$4 sm:$0xff]  }
  0x1e   :  { %v2219_v3 = vld [vmem:[#allocation2 + $0x11] ss:$8 sps:$4 sm:$0xff]   ;;  %v623_v6 = vpack.c.bf16 %v2218_v0, %v2217_v63  ;;  %v1911_v14 = vld [vmem:[%s2582_s1 + $0x20] sm:$0xf] }
  0x1f   :  { %v712_v12 = vpack.c.bf16 %v2220_v4, %v2219_v3  ;;  %v2221_v15 = vld [vmem:[#allocation2 + $0x41] ss:$8 sps:$4 sm:$0xff]   ;;  %v2222_v16 = vld [vmem:[#allocation2 + $0x51] ss:$8 sps:$4 sm:$0xff]   ;;  %v813_v21 = vsel %vm126_vm0, %v1911_v14, 0 }
  0x20   :  { %2009 = vmatmul.mubr.msk.bf16.vlgmr.msra.gmra.mrb[0].mxu0 %vm119_vm3, %v89_v27  ;;  %v2223_v17 = vld [vmem:[#allocation2 + $0x12] ss:$8 sps:$4 sm:$0xff]   ;;  %v2224_v18 = vld [vmem:[#allocation2 + $0x22] ss:$8 sps:$4 sm:$0xff]   ;;  %v713_v19 = vpack.c.bf16 %v2222_v16, %v2221_v15 }
  0x21   :  { %2013 = vmatpush3.bf16.msra.mxu0 %v272_v28  ;;  %2014 = vmatprep.mubr.msk.bf16.mxu0 %vm119_vm3, %v261_v29  ;;  %v802_v20 = vpack.c.bf16 %v2224_v18, %v2223_v17  ;;  %v2225_v22 = vld [vmem:[#allocation2 + $0x42] ss:$8 sps:$4 sm:$0xff]   ;;  %v2226_v23 = vld [vmem:[#allocation2 + $0x52] ss:$8 sps:$4 sm:$0xff]   ;;  %v1914_v28 = vld [vmem:[%s2585_s2] ss:$0 sm:$0xff] }
  0x22   :  { %2175 = vmatprep.subr.msk.bf16.mxu0 %vm126_vm0, %v1896_v30  ;;  %v803_v24 = vpack.c.bf16 %v2226_v23, %v2225_v22  ;;  %v2457_v27 = vld [vmem:[%s2584_s5] sm:$0xf] }
  0x23   :  { %2182 = vmatprep.subr.msk.bf16.mxu1 %vm126_vm0, %v2457_v27 }
  0x2c   :  { %2015 = vmatmul.mubr.msk.bf16.vlgmr.msra.gmra.mrb[0].mxu0 %vm119_vm3, %v262_v35 }
  0x2d   :  { %2019 = vmatpush3.bf16.msra.mxu0 %v362_v37  ;;  %2020 = vmatprep.mubr.msk.bf16.mxu0 %vm119_vm3, %v351_v36 }
  0x2e   :  { %2176 = vmatprep.subr.msk.bf16.mxu0 %vm126_vm0, %v1899_v38 }
  0x38   :  { %2021 = vmatmul.mubr.msk.bf16.vlgmr.msra.gmra.mrb[0].mxu0 %vm119_vm3, %v352_v43 }
  0x39   :  { %2025 = vmatpush3.bf16.msra.mxu0 %v452_v45  ;;  %2026 = vmatprep.mubr.msk.bf16.mxu0 %vm119_vm3, %v441_v44 }
  0x3a   :  { %2177 = vmatprep.subr.msk.bf16.mxu0 %vm126_vm0, %v1902_v46 }
  0x44   :  { %2027 = vmatmul.mubr.msk.bf16.vlgmr.msra.gmra.mrb[0].mxu0 %vm119_vm3, %v442_v51 }
  0x45   :  { %2031 = vmatpush3.bf16.msra.mxu0 %v542_v53  ;;  %2032 = vmatprep.mubr.msk.bf16.mxu0 %vm119_vm3, %v531_v52 }
  0x46   :  { %2178 = vmatprep.subr.msk.bf16.mxu0 %vm126_vm0, %v1905_v54 }
  0x50   :  { %2033 = vmatmul.mubr.msk.bf16.vlgmr.msra.gmra.mrb[0].mxu0 %vm119_vm3, %v532_v59 }
  0x51   :  { %2037 = vmatpush3.bf16.msra.mxu0 %v633_v61  ;;  %2038 = vmatprep.mubr.msk.bf16.mxu0 %vm119_vm3, %v622_v60 }
  0x52   :  { %2179 = vmatprep.subr.msk.bf16.mxu0 %vm126_vm0, %v1908_v62 }
  0x5c   :  { %2039 = vmatmul.mubr.msk.bf16.vlgmr.msra.gmra.mrb[0].mxu0 %vm119_vm3, %v623_v6 }
  0x5d   :  { %2043 = vmatpush3.bf16.msra.mxu0 %v723_v13  ;;  %2044 = vmatprep.mubr.msk.bf16.mxu0 %vm119_vm3, %v712_v12 }
  0x5e   :  { %2180 = vmatprep.subr.msk.bf16.mxu0 %vm126_vm0, %v1911_v14 }
  0x68   :  { %2045 = vmatmul.mubr.msk.bf16.vlgmr.msra.gmra.mrb[0].mxu0 %vm119_vm3, %v713_v19  ;;  %v1915_v19 = vld [vmem:[%s2586_s3] ss:$0 sm:$0xff] }
  0x69   :  { %2049 = vmatpush3.bf16.msra.mxu0 %v813_v21  ;;  %2050 = vmatprep.mubr.msk.bf16.mxu0 %vm119_vm3, %v802_v20 }
  0x74   :  { %2051 = vmatmul.mubr.msk.bf16.vlgmr.msra.gmra.mrb[0].mxu0 %vm119_vm3, %v803_v24  ;;  %v1916_v24 = vld [vmem:[%s2587_s4] ss:$0 sm:$0xff] }
 0x147   :  { %v2052_v29 = vpop.f32.mrb[0].mxu0 }
 0x148   :  { %v849_v30 = vpop.f32.mrb[1].mxu0  ;;  %v877_v34 = vadd.f32 %v2052_v29, %v1914_v28 }
 0x149   :  { %v875_v31 = vadd.f32 %v1914_v28, %v849_v30  ;;  %v2053_v32 = vpop.f32.mrb[2].mxu0 }
 0x14a   :  { %v852_v33 = vpop.f32.mrb[3].mxu0  ;;  %v878_v37 = vadd.f32 %v2053_v32, %v1914_v28  ;;  %v882_v40 = vsel %vm119_vm3, %v877_v34, 0.0 }
 0x14b   :  { %v876_v35 = vadd.f32 %v1914_v28, %v852_v33  ;;  %v879_v36 = vsel %vm119_vm3, %v875_v31, 0.0 }
 0x14c   :  { %v884_v42 = vsel %vm119_vm3, %v878_v37, 0.0 }
 0x14d   :  { %v880_v38 = vsel %vm119_vm3, %v876_v35, 0.0 }
 0x14e   :  { %v881_v39 = vadd.f32 %v880_v38, %v879_v36 }
 0x150   :  { %v883_v41 = vadd.f32 %v882_v40, %v881_v39 }
 0x152   :  { %v885_v43 = vadd.f32 %v884_v42, %v883_v41  ;;  %v1088_v42 = vsel %vm126_vm0, %v2457_v27, 0 }
 0x154   :  { %v886_v44 = vrot.slane %v885_v43, 4 }
 0x156   :  { %v887_v45 = vadd.f32 %v886_v44, %v885_v43 }
 0x158   :  { %v888_v46 = vrot.slane %v887_v45, 2 }
 0x15a   :  { %v889_v47 = vadd.f32 %v888_v46, %v887_v45 }
 0x15c   :  { %v890_v48 = vrot.slane %v889_v47, 1 }
 0x15e   :  { %v891_v49 = vadd.f32 %v890_v48, %v889_v47 }
 0x160   :  { %v893_v50 = vmul.f32 0.03125, %v891_v49 }
 0x162   :  { %v894_v51 = vsub.f32 %v875_v31, %v893_v50  ;;  %v895_v52 = vsub.f32 %v876_v35, %v893_v50  ;;  %v896_v53 = vsub.f32 %v877_v34, %v893_v50  ;;  %v897_v54 = vsub.f32 %v878_v37, %v893_v50 }
 0x164   :  { %v898_v55 = vmul.f32 %v894_v51, %v894_v51  ;;  %v899_v56 = vmul.f32 %v895_v52, %v895_v52  ;;  %v900_v57 = vmul.f32 %v896_v53, %v896_v53  ;;  %v901_v58 = vmul.f32 %v897_v54, %v897_v54 }
 0x166   :  { %v902_v59 = vsel %vm119_vm3, %v898_v55, 0.0  ;;  %v903_v60 = vsel %vm119_vm3, %v899_v56, 0.0  ;;  %v905_v62 = vsel %vm119_vm3, %v900_v57, 0.0  ;;  %v907_v0 = vsel %vm119_vm3, %v901_v58, 0.0  ;;  %v1925_v58 = vld [vmem:[%s2584_s5 + $0xc] sm:$0xf] }
 0x167   :  { %v904_v61 = vadd.f32 %v903_v60, %v902_v59 }
 0x169   :  { %v906_v63 = vadd.f32 %v905_v62, %v904_v61 }
 0x16b   :  { %v908_v3 = vadd.f32 %v907_v0, %v906_v63 }
 0x16d   :  { %v909_v4 = vrot.slane %v908_v3, 4 }
 0x16f   :  { %v910_v6 = vadd.f32 %v909_v4, %v908_v3  ;;  %v1264_v3 = vsel %vm126_vm0, %v1925_v58, 0 }
 0x171   :  { %v911_v12 = vrot.slane %v910_v6, 2 }
 0x173   :  { %v912_v13 = vadd.f32 %v911_v12, %v910_v6  ;;  %v1928_v6 = vld [vmem:[%s2584_s5 + $0x10] sm:$0xf] }
 0x175   :  { %v913_v14 = vrot.slane %v912_v13, 1 }
 0x177   :  { %v914_v15 = vadd.f32 %v913_v14, %v912_v13 }
 0x179   :  { %v915_v16 = vmul.f32 0.03125, %v914_v15 }
 0x17b   :  { %v916_v17 = vadd.f32 1e-05, %v915_v16 }
 0x17d   :  { %2263 = vrsqrt.f32 %v916_v17  ;;  %v1354_v17 = vsel %vm126_vm0, %v1928_v6, 0 }
 0x187   :  { %v2264_v18 = vpop.eup %2263 }
 0x188   :  { %v918_v20 = vmul.f32 %v2264_v18, %v894_v51  ;;  %v919_v21 = vmul.f32 %v2264_v18, %v895_v52  ;;  %v920_v22 = vmul.f32 %v2264_v18, %v896_v53  ;;  %v921_v23 = vmul.f32 %v2264_v18, %v897_v54  ;;  %v1922_v52 = vld [vmem:[%s2584_s5 + $0x8] sm:$0xf] }
 0x189   :  { %v1174_v57 = vsel %vm126_vm0, %v1922_v52, 0 }
 0x18a   :  { %v929_v25 = vmul.f32 %v1915_v19, %v918_v20  ;;  %v930_v26 = vmul.f32 %v1915_v19, %v919_v21  ;;  %v931_v28 = vmul.f32 %v1915_v19, %v920_v22  ;;  %v932_v29 = vmul.f32 %v1915_v19, %v921_v23  ;;  %v1931_v19 = vld [vmem:[%s2584_s5 + $0x14] sm:$0xf] }
 0x18c   :  { %v940_v30 = vadd.f32 %v1916_v24, %v929_v25  ;;  %v941_v31 = vadd.f32 %v1916_v24, %v930_v26  ;;  %v942_v32 = vadd.f32 %v1916_v24, %v931_v28  ;;  %v943_v33 = vadd.f32 %v1916_v24, %v932_v29  ;;  %v1934_v28 = vld [vmem:[%s2584_s5 + $0x18] sm:$0xf] }
 0x18d   :  { %v1444_v25 = vsel %vm126_vm0, %v1931_v19, 0 }
 0x18e   :  { %v944_v34 = vmax.f32 %v940_v30, 0.0  ;;  %v945_v35 = vmax.f32 %v941_v31, 0.0  ;;  %v946_v36 = vmax.f32 %v942_v32, 0.0  ;;  %v947_v37 = vmax.f32 %v943_v33, 0.0 }
 0x190   :  { %v952_v38 = vcombine.high %v944_v34, %v944_v34  ;;  %v953_v39 = vcombine.high %v945_v35, %v945_v35  ;;  %v954_v40 = vcombine.high %v946_v36, %v946_v36  ;;  %v955_v41 = vcombine.high %v947_v37, %v947_v37  ;;  %960 = vst.msk [vmem:[#allocation2 + $0x9] sm:$0xf] %vm55_vm2, %v944_v34 }
 0x191   :  { %962 = vst.msk [vmem:[#allocation2 + $0x19] sm:$0xf] %vm55_vm2, %v945_v35  ;;  %964 = vst.msk [vmem:[#allocation2 + $0x39] sm:$0xf] %vm55_vm2, %v946_v36  ;;  %v1534_v34 = vsel %vm126_vm0, %v1934_v28, 0 }
 0x192   :  { %966 = vst.msk [vmem:[#allocation2 + $0x49] sm:$0xf] %vm55_vm2, %v947_v37  ;;  %961 = vst.msk [vmem:[#allocation2 + $0x11] sm:$0xf] %vm55_vm2, %v952_v38  ;;  %v1937_v36 = vld [vmem:[%s2584_s5 + $0x1c] sm:$0xf] }
 0x193   :  { %963 = vst.msk [vmem:[#allocation2 + $0x21] sm:$0xf] %vm55_vm2, %v953_v39  ;;  %965 = vst.msk [vmem:[#allocation2 + $0x41] sm:$0xf] %vm55_vm2, %v954_v40 }
 0x194   :  { %967 = vst.msk [vmem:[#allocation2 + $0x51] sm:$0xf] %vm55_vm2, %v955_v41 }
 0x197   :  { %v2227_v43 = vld [vmem:[#allocation2 + $0x1] ss:$8 sps:$4 sm:$0xff]  }
 0x198   :  { %v2229_v44 = vld [vmem:[#allocation2 + $0x31] ss:$8 sps:$4 sm:$0xff]   ;;  %v2231_v48 = vld [vmem:[#allocation2] ss:$8 sps:$4 sm:$0xff]  }
 0x199   :  { %v2228_v45 = vld [vmem:[#allocation2 + $0x11] ss:$8 sps:$4 sm:$0xff]   ;;  %v2235_v55 = vld [vmem:[#allocation2 + $0x2] ss:$8 sps:$4 sm:$0xff]  }
 0x19a   :  { %v2230_v46 = vld [vmem:[#allocation2 + $0x41] ss:$8 sps:$4 sm:$0xff]   ;;  %v1019_v47 = vpack.c.bf16 %v2228_v45, %v2227_v43  ;;  %v2232_v49 = vld [vmem:[#allocation2 + $0x10] ss:$8 sps:$4 sm:$0xff]  }
 0x19b   :  { %v1020_v50 = vpack.c.bf16 %v2230_v46, %v2229_v44  ;;  %v992_v51 = vpack.c.bf16 %v2232_v49, %v2231_v48  ;;  %v2234_v27 = vld [vmem:[#allocation2 + $0x40] ss:$8 sps:$4 sm:$0xff]   ;;  %v2236_v53 = vld [vmem:[#allocation2 + $0x12] ss:$8 sps:$4 sm:$0xff]  }
 0x19c   :  { %2056 = vmatprep.mubr.msk.bf16.mxu1 %vm119_vm3, %v1019_v47  ;;  %v2233_v54 = vld [vmem:[#allocation2 + $0x30] ss:$8 sps:$4 sm:$0xff]   ;;  %v1163_v59 = vpack.c.bf16 %v2236_v53, %v2235_v55  ;;  %v2238_v61 = vld [vmem:[#allocation2 + $0x42] ss:$8 sps:$4 sm:$0xff]  }
 0x19d   :  { %2057 = vmatmul.mubr.msk.bf16.vlgmr.msra.gmra.mrb[0].mxu1 %vm119_vm3, %v1020_v50  ;;  %v993_v56 = vpack.c.bf16 %v2234_v27, %v2233_v54  ;;  %v2237_v60 = vld [vmem:[#allocation2 + $0x32] ss:$8 sps:$4 sm:$0xff]   ;;  %v2252_v32 = vld [vmem:[#allocation2 + $0x20] ss:$8 sps:$4 sm:$0xff]  }
 0x19e   :  { %2061 = vmatpush3.bf16.msra.mxu1 %v1088_v42  ;;  %2062 = vmatprep.mubr.msk.bf16.mxu1 %vm119_vm3, %v992_v51  ;;  %v2239_v62 = vld [vmem:[#allocation2 + $0x8] ss:$8 sps:$4 sm:$0xff]   ;;  %v2240_v63 = vld [vmem:[#allocation2 + $0x18] ss:$8 sps:$4 sm:$0xff]   ;;  %v1164_v0 = vpack.c.bf16 %v2238_v61, %v2237_v60  ;;  %v1624_v42 = vsel %vm126_vm0, %v1937_v36, 0 }
 0x19f   :  { %2183 = vmatprep.subr.msk.bf16.mxu1 %vm126_vm0, %v1922_v52  ;;  %v1253_v4 = vpack.c.bf16 %v2240_v63, %v2239_v62  ;;  %v2241_v12 = vld [vmem:[#allocation2 + $0x38] ss:$8 sps:$4 sm:$0xff]   ;;  %v2242_v13 = vld [vmem:[#allocation2 + $0x48] ss:$8 sps:$4 sm:$0xff]  }
 0x1a0   :  { %v2243_v14 = vld [vmem:[#allocation2 + $0x9] ss:$8 sps:$4 sm:$0xff]   ;;  %v2244_v15 = vld [vmem:[#allocation2 + $0x19] ss:$8 sps:$4 sm:$0xff]   ;;  %v1254_v16 = vpack.c.bf16 %v2242_v13, %v2241_v12  ;;  %v1943_v54 = vld [vmem:[%s2588_s6] ss:$0 sm:$0xff] }
 0x1a1   :  { %v1343_v18 = vpack.c.bf16 %v2244_v15, %v2243_v14  ;;  %v2245_v20 = vld [vmem:[#allocation2 + $0x39] ss:$8 sps:$4 sm:$0xff]   ;;  %v2246_v21 = vld [vmem:[#allocation2 + $0x49] ss:$8 sps:$4 sm:$0xff]  }
 0x1a2   :  { %v2247_v22 = vld [vmem:[#allocation2 + $0xa] ss:$8 sps:$4 sm:$0xff]   ;;  %v2248_v23 = vld [vmem:[#allocation2 + $0x1a] ss:$8 sps:$4 sm:$0xff]   ;;  %v1344_v24 = vpack.c.bf16 %v2246_v21, %v2245_v20 }
 0x1a3   :  { %v1433_v26 = vpack.c.bf16 %v2248_v23, %v2247_v22  ;;  %v2249_v29 = vld [vmem:[#allocation2 + $0x3a] ss:$8 sps:$4 sm:$0xff]   ;;  %v2250_v30 = vld [vmem:[#allocation2 + $0x4a] ss:$8 sps:$4 sm:$0xff]  }
 0x1a4   :  { %v2251_v31 = vld [vmem:[#allocation2 + $0x10] ss:$8 sps:$4 sm:$0xff]   ;;  %v1434_v33 = vpack.c.bf16 %v2250_v30, %v2249_v29  ;;  %v2253_v37 = vld [vmem:[#allocation2 + $0x40] ss:$8 sps:$4 sm:$0xff]  }
 0x1a5   :  { %v1523_v35 = vpack.c.bf16 %v2252_v32, %v2251_v31  ;;  %v2254_v38 = vld [vmem:[#allocation2 + $0x50] ss:$8 sps:$4 sm:$0xff]   ;;  %v2256_v40 = vld [vmem:[#allocation2 + $0x21] ss:$8 sps:$4 sm:$0xff]  }
 0x1a6   :  { %v2255_v39 = vld [vmem:[#allocation2 + $0x11] ss:$8 sps:$4 sm:$0xff]   ;;  %v1524_v41 = vpack.c.bf16 %v2254_v38, %v2253_v37  ;;  %v1940_v44 = vld [vmem:[%s2584_s5 + $0x20] sm:$0xf] }
 0x1a7   :  { %v1613_v43 = vpack.c.bf16 %v2256_v40, %v2255_v39  ;;  %v2257_v45 = vld [vmem:[#allocation2 + $0x41] ss:$8 sps:$4 sm:$0xff]   ;;  %v2258_v46 = vld [vmem:[#allocation2 + $0x51] ss:$8 sps:$4 sm:$0xff]   ;;  %v1714_v50 = vsel %vm126_vm0, %v1940_v44, 0 }
 0x1a8   :  { %v2259_v47 = vld [vmem:[#allocation2 + $0x12] ss:$8 sps:$4 sm:$0xff]   ;;  %v2260_v48 = vld [vmem:[#allocation2 + $0x22] ss:$8 sps:$4 sm:$0xff]   ;;  %v1614_v49 = vpack.c.bf16 %v2258_v46, %v2257_v45  ;;  %v1944_v46 = vld [vmem:[%s2589_s7] ss:$0 sm:$0xff] }
 0x1a9   :  { %2063 = vmatmul.mubr.msk.bf16.vlgmr.msra.gmra.mrb[0].mxu1 %vm119_vm3, %v993_v56  ;;  %v1703_v51 = vpack.c.bf16 %v2260_v48, %v2259_v47  ;;  %v2261_v52 = vld [vmem:[#allocation2 + $0x42] ss:$8 sps:$4 sm:$0xff]   ;;  %v2262_v27 = vld [vmem:[#allocation2 + $0x52] ss:$8 sps:$4 sm:$0xff]  }
 0x1aa   :  { %2067 = vmatpush3.bf16.msra.mxu1 %v1174_v57  ;;  %2068 = vmatprep.mubr.msk.bf16.mxu1 %vm119_vm3, %v1163_v59  ;;  %v1704_v53 = vpack.c.bf16 %v2262_v27, %v2261_v52 }
 0x1ab   :  { %2184 = vmatprep.subr.msk.bf16.mxu1 %vm126_vm0, %v1925_v58 }
 0x1b5   :  { %2069 = vmatmul.mubr.msk.bf16.vlgmr.msra.gmra.mrb[0].mxu1 %vm119_vm3, %v1164_v0 }
 0x1b6   :  { %2073 = vmatpush3.bf16.msra.mxu1 %v1264_v3  ;;  %2074 = vmatprep.mubr.msk.bf16.mxu1 %vm119_vm3, %v1253_v4 }
 0x1b7   :  { %2185 = vmatprep.subr.msk.bf16.mxu1 %vm126_vm0, %v1928_v6 }
 0x1c1   :  { %2075 = vmatmul.mubr.msk.bf16.vlgmr.msra.gmra.mrb[0].mxu1 %vm119_vm3, %v1254_v16 }
 0x1c2   :  { %2079 = vmatpush3.bf16.msra.mxu1 %v1354_v17  ;;  %2080 = vmatprep.mubr.msk.bf16.mxu1 %vm119_vm3, %v1343_v18 }
 0x1c3   :  { %2186 = vmatprep.subr.msk.bf16.mxu1 %vm126_vm0, %v1931_v19 }
 0x1cd   :  { %2081 = vmatmul.mubr.msk.bf16.vlgmr.msra.gmra.mrb[0].mxu1 %vm119_vm3, %v1344_v24 }
 0x1ce   :  { %2085 = vmatpush3.bf16.msra.mxu1 %v1444_v25  ;;  %2086 = vmatprep.mubr.msk.bf16.mxu1 %vm119_vm3, %v1433_v26 }
 0x1cf   :  { %2187 = vmatprep.subr.msk.bf16.mxu1 %vm126_vm0, %v1934_v28 }
 0x1d9   :  { %2087 = vmatmul.mubr.msk.bf16.vlgmr.msra.gmra.mrb[0].mxu1 %vm119_vm3, %v1434_v33 }
 0x1da   :  { %2091 = vmatpush3.bf16.msra.mxu1 %v1534_v34  ;;  %2092 = vmatprep.mubr.msk.bf16.mxu1 %vm119_vm3, %v1523_v35 }
 0x1db   :  { %2188 = vmatprep.subr.msk.bf16.mxu1 %vm126_vm0, %v1937_v36 }
 0x1e5   :  { %2093 = vmatmul.mubr.msk.bf16.vlgmr.msra.gmra.mrb[0].mxu1 %vm119_vm3, %v1524_v41 }
 0x1e6   :  { %2097 = vmatpush3.bf16.msra.mxu1 %v1624_v42  ;;  %2098 = vmatprep.mubr.msk.bf16.mxu1 %vm119_vm3, %v1613_v43 }
 0x1e7   :  { %2189 = vmatprep.subr.msk.bf16.mxu1 %vm126_vm0, %v1940_v44 }
 0x1f1   :  { %2099 = vmatmul.mubr.msk.bf16.vlgmr.msra.gmra.mrb[0].mxu1 %vm119_vm3, %v1614_v49 }
 0x1f2   :  { %2103 = vmatpush3.bf16.msra.mxu1 %v1714_v50  ;;  %2104 = vmatprep.mubr.msk.bf16.mxu1 %vm119_vm3, %v1703_v51  ;;  %v1945_v51 = vld [vmem:[%s2590_s8] ss:$0 sm:$0xff] }
 0x1fd   :  { %2105 = vmatmul.mubr.msk.bf16.vlgmr.msra.gmra.mrb[0].mxu1 %vm119_vm3, %v1704_v53 }
 0x2d0   :  { %v2106_v55 = vpop.f32.mrb[0].mxu1 }
 0x2d1   :  { %v1750_v56 = vpop.f32.mrb[1].mxu1  ;;  %v1778_v60 = vadd.f32 %v2106_v55, %v1943_v54 }
 0x2d2   :  { %v1776_v57 = vadd.f32 %v1943_v54, %v1750_v56  ;;  %v2107_v58 = vpop.f32.mrb[2].mxu1 }
 0x2d3   :  { %v1753_v59 = vpop.f32.mrb[3].mxu1  ;;  %v1779_v63 = vadd.f32 %v2107_v58, %v1943_v54  ;;  %v1783_v4 = vsel %vm119_vm3, %v1778_v60, 0.0 }
 0x2d4   :  { %v1777_v61 = vadd.f32 %v1943_v54, %v1753_v59  ;;  %v1780_v62 = vsel %vm119_vm3, %v1776_v57, 0.0 }
 0x2d5   :  { %v1785_v12 = vsel %vm119_vm3, %v1779_v63, 0.0 }
 0x2d6   :  { %v1781_v0 = vsel %vm119_vm3, %v1777_v61, 0.0 }
 0x2d7   :  { %v1782_v3 = vadd.f32 %v1781_v0, %v1780_v62 }
 0x2d9   :  { %v1784_v6 = vadd.f32 %v1783_v4, %v1782_v3 }
 0x2db   :  { %v1786_v13 = vadd.f32 %v1785_v12, %v1784_v6 }
 0x2dd   :  { %v1787_v14 = vrot.slane %v1786_v13, 4 }
 0x2df   :  { %v1788_v15 = vadd.f32 %v1787_v14, %v1786_v13 }
 0x2e1   :  { %v1789_v16 = vrot.slane %v1788_v15, 2 }
 0x2e3   :  { %v1790_v17 = vadd.f32 %v1789_v16, %v1788_v15 }
 0x2e5   :  { %v1791_v18 = vrot.slane %v1790_v17, 1 }
 0x2e7   :  { %v1792_v19 = vadd.f32 %v1791_v18, %v1790_v17 }
 0x2e9   :  { %v1793_v20 = vmul.f32 0.03125, %v1792_v19 }
 0x2eb   :  { %v1794_v21 = vsub.f32 %v1776_v57, %v1793_v20  ;;  %v1795_v22 = vsub.f32 %v1777_v61, %v1793_v20  ;;  %v1796_v23 = vsub.f32 %v1778_v60, %v1793_v20  ;;  %v1797_v24 = vsub.f32 %v1779_v63, %v1793_v20 }
 0x2ed   :  { %v1798_v25 = vmul.f32 %v1794_v21, %v1794_v21  ;;  %v1799_v26 = vmul.f32 %v1795_v22, %v1795_v22  ;;  %v1800_v28 = vmul.f32 %v1796_v23, %v1796_v23  ;;  %v1801_v29 = vmul.f32 %v1797_v24, %v1797_v24 }
 0x2ef   :  { %v1802_v30 = vsel %vm119_vm3, %v1798_v25, 0.0  ;;  %v1803_v31 = vsel %vm119_vm3, %v1799_v26, 0.0  ;;  %v1805_v33 = vsel %vm119_vm3, %v1800_v28, 0.0  ;;  %v1807_v35 = vsel %vm119_vm3, %v1801_v29, 0.0 }
 0x2f0   :  { %v1804_v32 = vadd.f32 %v1803_v31, %v1802_v30 }
 0x2f2   :  { %v1806_v34 = vadd.f32 %v1805_v33, %v1804_v32 }
 0x2f4   :  { %v1808_v36 = vadd.f32 %v1807_v35, %v1806_v34 }
 0x2f6   :  { %v1809_v37 = vrot.slane %v1808_v36, 4 }
 0x2f8   :  { %v1810_v38 = vadd.f32 %v1809_v37, %v1808_v36 }
 0x2fa   :  { %v1811_v39 = vrot.slane %v1810_v38, 2 }
 0x2fc   :  { %v1812_v40 = vadd.f32 %v1811_v39, %v1810_v38 }
 0x2fe   :  { %v1813_v41 = vrot.slane %v1812_v40, 1 }
 0x300   :  { %v1814_v42 = vadd.f32 %v1813_v41, %v1812_v40 }
 0x302   :  { %v1815_v43 = vmul.f32 0.03125, %v1814_v42 }
 0x304   :  { %v1816_v44 = vadd.f32 1e-05, %v1815_v43 }
 0x306   :  { %2265 = vrsqrt.f32 %v1816_v44 }
 0x310   :  { %v2266_v45 = vpop.eup %2265 }
 0x311   :  { %v1818_v47 = vmul.f32 %v2266_v45, %v1794_v21  ;;  %v1819_v48 = vmul.f32 %v2266_v45, %v1795_v22  ;;  %v1820_v49 = vmul.f32 %v2266_v45, %v1796_v23  ;;  %v1821_v50 = vmul.f32 %v2266_v45, %v1797_v24 }
 0x313   :  { %v1829_v52 = vmul.f32 %v1944_v46, %v1818_v47  ;;  %v1830_v27 = vmul.f32 %v1944_v46, %v1819_v48  ;;  %v1831_v53 = vmul.f32 %v1944_v46, %v1820_v49  ;;  %v1832_v54 = vmul.f32 %v1944_v46, %v1821_v50 }
 0x315   :  { %v1840_v55 = vadd.f32 %v1945_v51, %v1829_v52  ;;  %v1841_v56 = vadd.f32 %v1945_v51, %v1830_v27  ;;  %v1842_v57 = vadd.f32 %v1945_v51, %v1831_v53  ;;  %v1843_v58 = vadd.f32 %v1945_v51, %v1832_v54 }
 0x317   :  { %v1848_v59 = vcombine.high %v1840_v55, %v1840_v55  ;;  %v1849_v60 = vcombine.high %v1841_v56, %v1841_v56  ;;  %v1850_v61 = vcombine.high %v1842_v57, %v1842_v57  ;;  %v1851_v62 = vcombine.high %v1843_v58, %v1843_v58 }
 0x318   :  { %v1856_v63 = vadd.f32 %v1840_v55, %v2324_v1  ;;  %v1858_v0 = vadd.f32 %v1841_v56, %v2348_v5  ;;  %v1860_v3 = vadd.f32 %v1842_v57, %v2362_v7  ;;  %v1862_v4 = vadd.f32 %v1843_v58, %v2372_v9 }
 0x319   :  { %v1857_v6 = vadd.f32 %v1848_v59, %v2329_v2  ;;  %v1859_v12 = vadd.f32 %v1849_v60, %v2384_v10  ;;  %v1861_v13 = vadd.f32 %v1850_v61, %v2367_v8  ;;  %v1863_v14 = vadd.f32 %v1851_v62, %v2391_v11 }
 0x31b   :  { %v1872_v15 = vcombine.low %v1856_v63, %v1857_v6  ;;  %v1873_v16 = vcombine.low %v1858_v0, %v1859_v12  ;;  %v1874_v17 = vcombine.low %v1860_v3, %v1861_v13  ;;  %v1875_v18 = vcombine.low %v1862_v4, %v1863_v14 }
 0x31d   :  { %1880 = vst.msk [vmem:[%s2591_s9] sm:$0xff] %vm119_vm3, %v1872_v15  ;;  %1881 = vst.msk [vmem:[%s2591_s9 + $0x8] sm:$0xff] %vm119_vm3, %v1873_v16 }
 0x31e   :  { %1882 = vst.msk [vmem:[%s2591_s9 + $0x10] sm:$0xff] %vm119_vm3, %v1874_v17  ;;  %1883 = vst.msk [vmem:[%s2591_s9 + $0x18] sm:$0xff] %vm119_vm3, %v1875_v18 }

// kernel: _lambda_.13
= control target key start
LH: loop header
LB: loop body
LE: loop exit
PB: predicated region body
PF: predicated region fallthrough
CT: control target
= control target key end

     0   :  { %v532_v0 = vmov 0.0   ;;  %vm533_vm0 = vmmov 0   ;;  %vm96_vm1 = vcmask 261120   ;;  %vm380_vm2 = vcmask 130048   ;;  %s635_s1 = inlined_call_operand.vmem [shape: bf16[4,32,16], index: 1, kind: input, shape index: {}]   ;;  %s636_s0 = inlined_call_operand.vmem [shape: f32[2,3,3,32], index: 0, kind: input, shape index: {}]   ;;  %s637_s2 = inlined_call_operand.vmem [shape: f32[1,16], index: 2, kind: input, shape index: {}]   ;;  %s638_s3 = inlined_call_operand.vmem [shape: f32[1,16], index: 3, kind: input, shape index: {}]   ;;  %s639_s4 = inlined_call_operand.vmem [shape: f32[1,16], index: 4, kind: input, shape index: {}]   ;;  %s640_s5 = inlined_call_operand.vmem [shape: f32[8,16], index: 5, kind: output, shape index: {}]  }
   0x1   :  { %471 = vmatprep.subr.bf16.mxu0 %v532_v0  ;;  %v506_v1 = vld [vmem:[%s635_s1 + $0x10] sm:$0xff]   ;;  %479 = vmatprep.subr.bf16.mxu1 %v532_v0  ;;  %v507_v2 = vld [vmem:[%s635_s1] sm:$0xff]   ;;  %v508_v3 = vld [vmem:[%s635_s1 + $0x18] sm:$0xff]  }
   0x2   :  { %475 = vmatprep.mubr.msk.bf16.mxu0 %vm533_vm0, %v532_v0  ;;  %483 = vmatprep.mubr.msk.bf16.mxu1 %vm533_vm0, %v532_v0  ;;  %v509_v4 = vld [vmem:[%s635_s1 + $0x8] sm:$0xff]   ;;  %v524_v5 = vld.sshfl [vmem:[%s636_s0 + $0x1] sm:$0xf pattern:$0x76325410]  ;;  %v515_v13 = vld [vmem:[%s635_s1 + $0x30] sm:$0xff]  }
   0x3   :  { %472 = vmatpush3.bf16.msra.mxu0 %v506_v1  ;;  %480 = vmatpush3.bf16.msra.mxu1 %v507_v2  ;;  %v525_v6 = vld.sshfl [vmem:[%s636_s0 + $0xd] sm:$0xf pattern:$0x76325410]  ;;  %v514_v10 = vld [vmem:[%s635_s1 + $0x20] sm:$0xff]   ;;  %v517_v20 = vld [vmem:[%s635_s1 + $0x38] sm:$0xff]  }
   0x4   :  { %473 = vmatprep.subr.bf16.mxu0 %v532_v0  ;;  %481 = vmatprep.subr.bf16.mxu1 %v532_v0  ;;  %v526_v7 = vld.sshfl [vmem:[%s636_s0] sm:$0xf pattern:$0x76325410]  ;;  %v76_v9 = vcombine.low %v524_v5, %v525_v6  ;;  %v516_v14 = vld [vmem:[%s635_s1 + $0x28] sm:$0xff]  }
   0x5   :  { %v527_v8 = vld.sshfl [vmem:[%s636_s0 + $0xc] sm:$0xf pattern:$0x76325410]  ;;  %v456_v38 = vld [vmem:[%s637_s2] ss:$0 sm:$0xff] }
   0x6   :  { %v78_v11 = vpack.c.bf16 %v76_v9, %v76_v9  ;;  %v45_v12 = vcombine.low %v526_v7, %v527_v8  ;;  %v528_v16 = vld.sshfl [vmem:[%s636_s0 + $0x4] sm:$0xf pattern:$0x76325410]  ;;  %v457_v2 = vld [vmem:[%s638_s3] ss:$0 sm:$0xff] }
   0x7   :  { %474 = vmatpush3.bf16.msra.mxu0 %v508_v3  ;;  %482 = vmatpush3.bf16.msra.mxu1 %v509_v4  ;;  %v529_v17 = vld.sshfl [vmem:[%s636_s0 + $0x10] sm:$0xf pattern:$0x76325410]  ;;  %v458_v4 = vld [vmem:[%s639_s4] ss:$0 sm:$0xff] }
   0x8   :  { %487 = vmatprep.subr.bf16.mxu0 %v532_v0  ;;  %495 = vmatprep.subr.bf16.mxu1 %v532_v0  ;;  %v47_v15 = vpack.c.bf16 %v45_v12, %v45_v12  ;;  %v530_v18 = vld.sshfl [vmem:[%s636_s0 + $0x5] sm:$0xf pattern:$0x76325410]  ;;  %v220_v21 = vcombine.low %v528_v16, %v529_v17 }
   0x9   :  { %v531_v19 = vld.sshfl [vmem:[%s636_s0 + $0x11] sm:$0xf pattern:$0x76325410] }
   0xa   :  { %476 = vmatmul.mubr.msk.bf16.vlgmr.msra.gmra.mrb[0].mxu0 %vm96_vm1, %v78_v11  ;;  %484 = vmatmul.mubr.msk.bf16.vlgmr.msra.gmra.mrb[0].mxu1 %vm96_vm1, %v47_v15  ;;  %v222_v22 = vpack.c.bf16 %v220_v21, %v220_v21  ;;  %v308_v23 = vcombine.low %v530_v18, %v531_v19 }
   0xb   :  { %488 = vmatpush3.bf16.msra.mxu0 %v514_v10  ;;  %491 = vmatprep.mubr.msk.bf16.mxu0 %vm533_vm0, %v532_v0 }
   0xc   :  { %489 = vmatprep.subr.bf16.mxu0 %v532_v0  ;;  %496 = vmatpush3.bf16.msra.mxu1 %v515_v13  ;;  %v310_v24 = vpack.c.bf16 %v308_v23, %v308_v23 }
   0xd   :  { %499 = vmatprep.mubr.msk.bf16.mxu1 %vm533_vm0, %v532_v0  ;;  %497 = vmatprep.subr.bf16.mxu1 %v532_v0 }
   0xf   :  { %490 = vmatpush3.bf16.msra.mxu0 %v516_v14 }
  0x10   :  { %498 = vmatpush3.bf16.msra.mxu1 %v517_v20 }
  0x12   :  { %492 = vmatmul.mubr.msk.bf16.vlgmr.msra.gmra.mrb[4].mxu0 %vm96_vm1, %v222_v22 }
  0x13   :  { %500 = vmatmul.mubr.msk.bf16.vlgmr.msra.gmra.mrb[4].mxu1 %vm96_vm1, %v310_v24 }
  0xdd   :  { %v134_v25 = vpop.f32.mrb[0].mxu0  ;;  %v189_v27 = vpop.f32.mrb[0].mxu1 }
  0xde   :  { %v477_v26 = vpop.f32.mrb[1].mxu0  ;;  %v190_v29 = vadd.f32 %v189_v27, %v134_v25  ;;  %v485_v30 = vpop.f32.mrb[1].mxu1 }
  0xdf   :  { %v137_v28 = vpop.f32.mrb[2].mxu0  ;;  %v192_v32 = vpop.f32.mrb[2].mxu1 }
  0xe0   :  { %v478_v31 = vpop.f32.mrb[3].mxu0  ;;  %v486_v33 = vpop.f32.mrb[3].mxu1 }
  0xe5   :  { %v277_v34 = vpop.f32.mrb[4].mxu0 }
  0xe6   :  { %v283_v35 = vadd.f32 %v277_v34, %v190_v29  ;;  %v493_v36 = vpop.f32.mrb[5].mxu0  ;;  %v365_v37 = vpop.f32.mrb[4].mxu1 }
  0xe7   :  { %v280_v39 = vpop.f32.mrb[6].mxu0  ;;  %v501_v41 = vpop.f32.mrb[5].mxu1 }
  0xe8   :  { %v371_v40 = vadd.f32 %v365_v37, %v283_v35  ;;  %v494_v42 = vpop.f32.mrb[7].mxu0  ;;  %v368_v43 = vpop.f32.mrb[6].mxu1 }
  0xe9   :  { %v502_v45 = vpop.f32.mrb[7].mxu1 }
  0xea   :  { %v379_v44 = vadd.f32 %v456_v38, %v371_v40 }
  0xec   :  { %v381_v46 = vsel %vm380_vm2, %v379_v44, 0.0 }
  0xed   :  { %v382_v47 = vrot.slane %v381_v46, 4 }
  0xef   :  { %v383_v48 = vadd.f32 %v382_v47, %v381_v46 }
  0xf1   :  { %v384_v49 = vrot.slane %v383_v48, 2 }
  0xf3   :  { %v385_v50 = vadd.f32 %v384_v49, %v383_v48 }
  0xf5   :  { %v386_v51 = vrot.slane %v385_v50, 1 }
  0xf7   :  { %v387_v52 = vadd.f32 %v386_v51, %v385_v50 }
  0xf9   :  { %v389_v53 = vmul.f32 0.125, %v387_v52 }
  0xfb   :  { %v390_v54 = vsub.f32 %v379_v44, %v389_v53 }
  0xfd   :  { %v391_v55 = vmul.f32 %v390_v54, %v390_v54 }
  0xff   :  { %v392_v56 = vsel %vm380_vm2, %v391_v55, 0.0 }
 0x100   :  { %v393_v57 = vrot.slane %v392_v56, 4 }
 0x102   :  { %v394_v58 = vadd.f32 %v393_v57, %v392_v56 }
 0x104   :  { %v395_v59 = vrot.slane %v394_v58, 2 }
 0x106   :  { %v396_v60 = vadd.f32 %v395_v59, %v394_v58 }
 0x108   :  { %v397_v61 = vrot.slane %v396_v60, 1 }
 0x10a   :  { %v398_v62 = vadd.f32 %v397_v61, %v396_v60 }
 0x10c   :  { %v399_v63 = vmul.f32 0.125, %v398_v62 }
 0x10e   :  { %v400_v0 = vadd.f32 1e-05, %v399_v63 }
 0x110   :  { %522 = vrsqrt.f32 %v400_v0 }
 0x11a   :  { %v523_v1 = vpop.eup %522 }
 0x11b   :  { %v402_v3 = vmul.f32 %v523_v1, %v390_v54 }
 0x11d   :  { %v410_v5 = vmul.f32 %v457_v2, %v402_v3 }
 0x11f   :  { %v418_v6 = vadd.f32 %v458_v4, %v410_v5 }
 0x121   :  { %419 = vst.msk [vmem:[%s640_s5] sm:$0xff] %vm380_vm2, %v418_v6 }

// kernel: _lambda_.10
= control target key start
LH: loop header
LB: loop body
LE: loop exit
PB: predicated region body
PF: predicated region fallthrough
CT: control target
= control target key end

     0   :  { %vm183_vm0 = vcmask 1041408   ;;  %vm49_vm1 = vcmask 31744   ;;  %vm51_vm2 = vcmask 25600   ;;  %v4422_v2 = vmov 0.0   ;;  %s5707_s1 = inlined_call_operand.vmem [shape: bf16[9,4,4], index: 1, kind: input, shape index: {}]   ;;  %s5708_s0 = inlined_call_operand.vmem [shape: f32[2,8,8,4], index: 0, kind: input, shape index: {}]   ;;  %s5709_s2 = inlined_call_operand.vmem [shape: f32[1,4], index: 2, kind: input, shape index: {}]   ;;  %s5710_s5 = inlined_call_operand.vmem [shape: bf16[9,4,4], index: 5, kind: input, shape index: {}]   ;;  %s5711_s3 = inlined_call_operand.vmem [shape: f32[1,4], index: 3, kind: input, shape index: {}, may-alias: {3,7}]   ;;  %s5712_s4 = inlined_call_operand.vmem [shape: f32[1,4], index: 4, kind: input, shape index: {}, may-alias: {4,8}]   ;;  %s5713_s6 = inlined_call_operand.vmem [shape: f32[1,4], index: 6, kind: input, shape index: {}]   ;;  %s5714_s7 = inlined_call_operand.vmem [shape: f32[1,4], index: 7, kind: input, shape index: {}, may-alias: {3,7}]   ;;  %s5715_s8 = inlined_call_operand.vmem [shape: f32[1,4], index: 8, kind: input, shape index: {}, may-alias: {4,8}]   ;;  %s5716_s9 = inlined_call_operand.vmem [shape: f32[128,4], index: 9, kind: output, shape index: {}]  }
   0x1   :  { %v3491_v0 = vld [vmem:[%s5707_s1 + $0x2] sm:$0x3]  ;;  %50 = vst.msk [vmem:[#allocation2] sm:$0xff] %vm49_vm1, %v4422_v2  ;;  %53 = vst.msk [vmem:[#allocation2 + $0x10] sm:$0xff] %vm49_vm1, %v4422_v2  ;;  %v132_v3 = vld [vmem:[%s5707_s1] sm:$0x3] }
   0x2   :  { %v4479_v1 = vld [vmem:[%s5708_s0] sm:$0xff]  ;;  %52 = vst.msk [vmem:[#allocation2 + $0x8] sm:$0x3] %vm51_vm2, %v4422_v2  ;;  %54 = vst.msk [vmem:[#allocation2 + $0x18] sm:$0x3] %vm51_vm2, %v4422_v2  ;;  %4399 = vmatprep.subr.msk.bf16.mxu0 %vm183_vm0, %v3491_v0  ;;  %v185_v4 = vsel %vm183_vm0, %v3491_v0, 0 }
   0x3   :  { %5738 = vst [vmem:[#allocation3_spill] sm:$0xff] %v4479_v1  ;;  %55 = vst.msk [vmem:[#allocation2 + $0x20] sm:$0xff] %vm49_vm1, %v4422_v2  ;;  %v4531_v5 = vld [vmem:[%s5708_s0 + $0x8] sm:$0xff]  ;;  %v4536_v6 = vld [vmem:[%s5708_s0 + $0x10] sm:$0xff]  ;;  %3820 = vmatpush3.bf16.msra.mxu0 %v185_v4  ;;  %v309_v27 = vsel %vm183_vm0, %v132_v3, 0 }
   0x4   :  { %56 = vst.msk [vmem:[#allocation2 + $0x28] sm:$0x3] %vm51_vm2, %v4422_v2  ;;  %58 = vst.msk [vmem:[#allocation2 + $0x38] sm:$0x3] %vm51_vm2, %v4422_v2  ;;  %v4541_v7 = vld [vmem:[%s5708_s0 + $0x18] sm:$0xff]  ;;  %v4550_v8 = vld [vmem:[%s5708_s0 + $0x20] sm:$0xff]  ;;  %4400 = vmatprep.subr.msk.bf16.mxu0 %vm183_vm0, %v132_v3 }
   0x5   :  { %57 = vst.msk [vmem:[#allocation2 + $0x30] sm:$0xff] %vm49_vm1, %v4422_v2  ;;  %59 = vst.msk [vmem:[#allocation2 + $0x40] sm:$0xff] %vm49_vm1, %v4422_v2  ;;  %v4557_v9 = vld [vmem:[%s5708_s0 + $0x28] sm:$0xff]  ;;  %v4562_v10 = vld [vmem:[%s5708_s0 + $0x30] sm:$0xff] }
   0x6   :  { %60 = vst.msk [vmem:[#allocation2 + $0x48] sm:$0x3] %vm51_vm2, %v4422_v2  ;;  %62 = vst.msk [vmem:[#allocation2 + $0x58] sm:$0x3] %vm51_vm2, %v4422_v2  ;;  %v4574_v11 = vld [vmem:[%s5708_s0 + $0x40] sm:$0xff]  ;;  %v4579_v12 = vld [vmem:[%s5708_s0 + $0x48] sm:$0xff] }
   0x7   :  { %61 = vst.msk [vmem:[#allocation2 + $0x50] sm:$0xff] %vm49_vm1, %v4422_v2  ;;  %63 = vst.msk [vmem:[#allocation2 + $0x60] sm:$0xff] %vm49_vm1, %v4422_v2  ;;  %v4584_v13 = vld [vmem:[%s5708_s0 + $0x50] sm:$0xff]  ;;  %v4595_v14 = vld [vmem:[%s5708_s0 + $0x58] sm:$0xff] }
   0x8   :  { %64 = vst.msk [vmem:[#allocation2 + $0x68] sm:$0x3] %vm51_vm2, %v4422_v2  ;;  %66 = vst.msk [vmem:[#allocation2 + $0x78] sm:$0x3] %vm51_vm2, %v4422_v2  ;;  %v4600_v15 = vld [vmem:[%s5708_s0 + $0x60] sm:$0xff]  ;;  %v4605_v16 = vld [vmem:[%s5708_s0 + $0x68] sm:$0xff] }
   0x9   :  { %65 = vst.msk [vmem:[#allocation2 + $0x70] sm:$0xff] %vm49_vm1, %v4422_v2  ;;  %67 = vst.msk [vmem:[#allocation2 + $0x80] sm:$0xff] %vm49_vm1, %v4422_v2  ;;  %v4614_v17 = vld [vmem:[%s5708_s0 + $0x70] sm:$0xff]  ;;  %v4623_v18 = vld [vmem:[%s5708_s0 + $0x38] sm:$0xff] }
   0xa   :  { %68 = vst.msk [vmem:[#allocation2 + $0x88] sm:$0x3] %vm51_vm2, %v4422_v2  ;;  %70 = vst.msk [vmem:[#allocation2 + $0x98] sm:$0x3] %vm51_vm2, %v4422_v2  ;;  %v4628_v19 = vld [vmem:[%s5708_s0 + $0x78] sm:$0xff]  ;;  %v133_v20 = vld [vmem:[#allocation2 + $0x1] sm:$0xff] }
   0xb   :  { %69 = vst.msk [vmem:[#allocation2 + $0x90] sm:$0xff] %vm49_vm1, %v4422_v2  ;;  %71 = vst.msk [vmem:[#allocation2 + $0xa0] sm:$0xff] %vm49_vm1, %v4422_v2  ;;  %v3508_v30 = vld [vmem:[%s5707_s1 + $0x4] sm:$0x3]  ;;  %v3517_v56 = vld [vmem:[%s5707_s1 + $0x6] sm:$0x3] }
   0xc   :  { %72 = vst.msk [vmem:[#allocation2 + $0xa8] sm:$0x3] %vm51_vm2, %v4422_v2  ;;  %74 = vst.msk [vmem:[#allocation2 + $0xb8] sm:$0x3] %vm51_vm2, %v4422_v2  ;;  %v108_v45 = vld [vmem:[#allocation2] sm:$0xff]  ;;  %v459_v55 = vsel %vm183_vm0, %v3508_v30, 0 }
   0xd   :  { %73 = vst.msk [vmem:[#allocation2 + $0xb0] sm:$0xff] %vm49_vm1, %v4422_v2  ;;  %75 = vst.msk [vmem:[#allocation2 + $0xc0] sm:$0xff] %vm49_vm1, %v4422_v2 }
   0xe   :  { %76 = vst.msk [vmem:[#allocation2 + $0xc8] sm:$0x3] %vm51_vm2, %v4422_v2  ;;  %78 = vst.msk [vmem:[#allocation2 + $0xd8] sm:$0x3] %vm51_vm2, %v4422_v2 }
   0xf   :  { %77 = vst.msk [vmem:[#allocation2 + $0xd0] sm:$0xff] %vm49_vm1, %v4422_v2  ;;  %79 = vst.msk [vmem:[#allocation2 + $0xe0] sm:$0xff] %vm49_vm1, %v4422_v2 }
  0x10   :  { %80 = vst.msk [vmem:[#allocation2 + $0xe8] sm:$0x3] %vm51_vm2, %v4422_v2  ;;  %82 = vst.msk [vmem:[#allocation2 + $0xf8] sm:$0x3] %vm51_vm2, %v4422_v2 }
  0x11   :  { %81 = vst.msk [vmem:[#allocation2 + $0xf0] sm:$0xff] %vm49_vm1, %v4422_v2  ;;  %83 = vst.msk [vmem:[#allocation2 + $0x100] sm:$0xff] %vm49_vm1, %v4422_v2 }
  0x12   :  { %84 = vst.msk [vmem:[#allocation2 + $0x108] sm:$0x3] %vm51_vm2, %v4422_v2  ;;  %86 = vst.msk [vmem:[#allocation2 + $0x118] sm:$0x3] %vm51_vm2, %v4422_v2  ;;  %v116_v59 = vld [vmem:[#allocation2 + $0xa0] sm:$0xff] }
  0x13   :  { %85 = vst.msk [vmem:[#allocation2 + $0x110] sm:$0xff] %vm49_vm1, %v4422_v2  ;;  %87 = vst.msk [vmem:[#allocation2 + $0x120] sm:$0xff] %vm49_vm1, %v4422_v2  ;;  %v141_v33 = vld [vmem:[#allocation2 + $0xa1] sm:$0xff] }
  0x14   :  { %88 = vst.msk [vmem:[#allocation2 + $0x128] sm:$0x3] %vm51_vm2, %v4422_v2  ;;  %90 = vst.msk [vmem:[#allocation2 + $0x138] sm:$0x3] %vm51_vm2, %v4422_v2 }
  0x15   :  { %89 = vst.msk [vmem:[#allocation2 + $0x130] sm:$0xff] %vm49_vm1, %v4422_v2  ;;  %92 = vst.msk [vmem:[#allocation2 + $0x11] sm:$0xff] %vm49_vm1, %v4479_v1 }
  0x16   :  { %5739 = vst [vmem:[#allocation4_spill] sm:$0xff] %v4531_v5  ;;  %5740 = vst [vmem:[#allocation5_spill] sm:$0xff] %v4536_v6 }
  0x17   :  { %5741 = vst [vmem:[#allocation6_spill] sm:$0xff] %v4541_v7  ;;  %93 = vst.msk [vmem:[#allocation2 + $0x21] sm:$0xff] %vm49_vm1, %v4531_v5 }
  0x18   :  { %94 = vst.msk [vmem:[#allocation2 + $0x31] sm:$0xff] %vm49_vm1, %v4536_v6  ;;  %5742 = vst [vmem:[#allocation7_spill] sm:$0xff] %v4550_v8 }
  0x19   :  { %95 = vst.msk [vmem:[#allocation2 + $0x41] sm:$0xff] %vm49_vm1, %v4541_v7  ;;  %5743 = vst [vmem:[#allocation8_spill] sm:$0xff] %v4557_v9 }
  0x1a   :  { %5744 = vst [vmem:[#allocation9_spill] sm:$0xff] %v4562_v10  ;;  %96 = vst.msk [vmem:[#allocation2 + $0x51] sm:$0xff] %vm49_vm1, %v4550_v8 }
  0x1b   :  { %97 = vst.msk [vmem:[#allocation2 + $0x61] sm:$0xff] %vm49_vm1, %v4557_v9  ;;  %98 = vst.msk [vmem:[#allocation2 + $0x71] sm:$0xff] %vm49_vm1, %v4562_v10 }
  0x1c   :  { %5745 = vst [vmem:[#allocation10_spill] sm:$0xff] %v4574_v11  ;;  %5746 = vst [vmem:[#allocation11_spill] sm:$0xff] %v4579_v12  ;;  %v4634_v21 = vld [vmem:[#allocation2 + $0x11] sm:$0xff] }
  0x1d   :  { %5747 = vst [vmem:[#allocation12_spill] sm:$0xff] %v4584_v13  ;;  %100 = vst.msk [vmem:[#allocation2 + $0xb1] sm:$0xff] %vm49_vm1, %v4574_v11  ;;  %v149_v22 = vpack.c.bf16 %v4634_v21, %v133_v20  ;;  %v4701_v46 = vld [vmem:[#allocation2 + $0x10] sm:$0xff] }
  0x1e   :  { %101 = vst.msk [vmem:[#allocation2 + $0xc1] sm:$0xff] %vm49_vm1, %v4579_v12  ;;  %102 = vst.msk [vmem:[#allocation2 + $0xd1] sm:$0xff] %vm49_vm1, %v4584_v13  ;;  %v4637_v23 = vld [vmem:[#allocation2 + $0x21] sm:$0xff]  ;;  %v124_v48 = vpack.c.bf16 %v4701_v46, %v108_v45 }
  0x1f   :  { %5748 = vst [vmem:[#allocation13_spill] sm:$0xff] %v4595_v14  ;;  %5749 = vst [vmem:[#allocation14_spill] sm:$0xff] %v4600_v15  ;;  %v4639_v24 = vld [vmem:[#allocation2 + $0x31] sm:$0xff]  ;;  %3821 = vmatprep.mubr.msk.bf16.mxu0 %vm49_vm1, %v149_v22  ;;  %v4711_v49 = vld [vmem:[#allocation2 + $0x20] sm:$0xff] }
  0x20   :  { %5750 = vst [vmem:[#allocation15_spill] sm:$0xff] %v4605_v16  ;;  %103 = vst.msk [vmem:[#allocation2 + $0xe1] sm:$0xff] %vm49_vm1, %v4595_v14  ;;  %v4641_v25 = vld [vmem:[#allocation2 + $0x41] sm:$0xff]  ;;  %v4645_v26 = vpack.c.bf16 %v4639_v24, %v4637_v23  ;;  %v4713_v50 = vld [vmem:[#allocation2 + $0x30] sm:$0xff]  ;;  %v590_v6 = vpack.c.bf16 %v4711_v49, %v4701_v46 }
  0x21   :  { %104 = vst.msk [vmem:[#allocation2 + $0xf1] sm:$0xff] %vm49_vm1, %v4600_v15  ;;  %5751 = vst [vmem:[#allocation16_spill] sm:$0xff] %v4614_v17  ;;  %v4648_v28 = vld [vmem:[#allocation2 + $0x51] sm:$0xff]  ;;  %v4715_v51 = vld [vmem:[#allocation2 + $0x40] sm:$0xff]  ;;  %v4721_v53 = vpack.c.bf16 %v4713_v50, %v4711_v49 }
  0x22   :  { %105 = vst.msk [vmem:[#allocation2 + $0x101] sm:$0xff] %vm49_vm1, %v4605_v16  ;;  %106 = vst.msk [vmem:[#allocation2 + $0x111] sm:$0xff] %vm49_vm1, %v4614_v17  ;;  %v4653_v29 = vpack.c.bf16 %v4648_v28, %v4641_v25  ;;  %3822 = vmatmul.mubr.msk.bf16.vlgmr.msra.gmra.mrb[0].mxu0 %vm49_vm1, %v4645_v26  ;;  %v4662_v31 = vld [vmem:[#allocation2 + $0x61] sm:$0xff]  ;;  %v4664_v32 = vld [vmem:[#allocation2 + $0x71] sm:$0xff]  ;;  %v625_v17 = vsel %vm183_vm0, %v3517_v56, 0  ;;  %v591_v5 = vpack.c.bf16 %v4715_v51, %v4713_v50 }
  0x23   :  { %5752 = vst [vmem:[#allocation17_spill] sm:$0xff] %v4623_v18  ;;  %5753 = vst [vmem:[#allocation18_spill] sm:$0xff] %v4628_v19  ;;  %3838 = vmatpush3.bf16.msra.mxu0 %v309_v27  ;;  %v4671_v35 = vpack.c.bf16 %v4664_v32, %v4662_v31  ;;  %v4717_v52 = vld [vmem:[#allocation2 + $0x50] sm:$0xff]  ;;  %v4735_v57 = vld [vmem:[#allocation2 + $0x60] sm:$0xff] }
  0x24   :  { %99 = vst.msk [vmem:[#allocation2 + $0x81] sm:$0xff] %vm49_vm1, %v4623_v18  ;;  %107 = vst.msk [vmem:[#allocation2 + $0x121] sm:$0xff] %vm49_vm1, %v4628_v19  ;;  %3825 = vmatprep.mubr.msk.bf16.mxu0 %vm49_vm1, %v4653_v29  ;;  %v4666_v34 = vld [vmem:[#allocation2 + $0xb1] sm:$0xff]  ;;  %4401 = vmatprep.subr.msk.bf16.mxu0 %vm183_vm0, %v3508_v30  ;;  %v4725_v54 = vpack.c.bf16 %v4717_v52, %v4715_v51  ;;  %v408_v30 = vld [vmem:[#allocation2 + $0x2] sm:$0xff]  ;;  %v592_v1 = vpack.c.bf16 %v4735_v57, %v4717_v52 }
  0x25   :  { %v153_v36 = vpack.c.bf16 %v4666_v34, %v141_v33  ;;  %v4677_v37 = vld [vmem:[#allocation2 + $0xc1] sm:$0xff]  ;;  %v4679_v38 = vld [vmem:[#allocation2 + $0xd1] sm:$0xff]  ;;  %v756_v52 = vpack.c.bf16 %v4637_v23, %v4634_v21 }
  0x26   :  { %v4687_v41 = vpack.c.bf16 %v4679_v38, %v4677_v37  ;;  %v4737_v58 = vld [vmem:[#allocation2 + $0x70] sm:$0xff]  ;;  %v4750_v63 = vld [vmem:[#allocation2 + $0xc0] sm:$0xff] }
  0x27   :  { %v4681_v39 = vld [vmem:[#allocation2 + $0xe1] sm:$0xff]  ;;  %v4739_v60 = vld [vmem:[#allocation2 + $0xb0] sm:$0xff]  ;;  %v4744_v61 = vpack.c.bf16 %v4737_v58, %v4735_v57  ;;  %v757_v57 = vpack.c.bf16 %v4641_v25, %v4639_v24  ;;  %v760_v24 = vpack.c.bf16 %v4677_v37, %v4666_v34 }
  0x28   :  { %v4683_v40 = vld [vmem:[#allocation2 + $0xf1] sm:$0xff]  ;;  %v128_v62 = vpack.c.bf16 %v4739_v60, %v116_v59  ;;  %v4754_v2 = vld [vmem:[#allocation2 + $0xe0] sm:$0xff]  ;;  %v594_v49 = vpack.c.bf16 %v4750_v63, %v4739_v60 }
  0x29   :  { %v4691_v42 = vpack.c.bf16 %v4683_v40, %v4681_v39  ;;  %v4697_v43 = vld [vmem:[#allocation2 + $0x101] sm:$0xff]  ;;  %v4699_v44 = vld [vmem:[#allocation2 + $0x111] sm:$0xff] }
  0x2a   :  { %3826 = vmatmul.mubr.msk.bf16.gmra.mrb[4].mxu0 %vm49_vm1, %v4671_v35  ;;  %v4705_v47 = vpack.c.bf16 %v4699_v44, %v4697_v43  ;;  %v4752_v0 = vld [vmem:[#allocation2 + $0xd0] sm:$0xff]  ;;  %v122_v22 = vld [vmem:[#allocation2 + $0x100] sm:$0xff]  ;;  %v762_v25 = vpack.c.bf16 %v4697_v43, %v4683_v40 }
  0x2b   :  { %3829 = vmatprep.mubr.msk.bf16.mxu0 %vm49_vm1, %v153_v36  ;;  %v4756_v3 = vld [vmem:[#allocation2 + $0xf0] sm:$0xff]  ;;  %v4760_v4 = vpack.c.bf16 %v4752_v0, %v4750_v63  ;;  %v4782_v59 = vld [vmem:[#allocation2 + $0x42] sm:$0xff]  ;;  %v3544_v63 = vld [vmem:[%s5707_s1 + $0xc] sm:$0x3] }
  0x2c   :  { %v4764_v20 = vpack.c.bf16 %v4756_v3, %v4754_v2  ;;  %v123_v27 = vld [vmem:[#allocation2 + $0x110] sm:$0xff]  ;;  %v4802_v16 = vld [vmem:[#allocation2 + $0x62] sm:$0xff]  ;;  %v596_v50 = vpack.c.bf16 %v122_v22, %v4756_v3 }
  0x2d   :  { %v4770_v33 = vld [vmem:[#allocation2 + $0x12] sm:$0xff]  ;;  %v4772_v36 = vpack.c.bf16 %v123_v27, %v122_v22  ;;  %v416_v14 = vld [vmem:[#allocation2 + $0xa2] sm:$0xff] }
  0x2e   :  { %v424_v45 = vpack.c.bf16 %v4770_v33, %v408_v30  ;;  %v4804_v15 = vld [vmem:[#allocation2 + $0x72] sm:$0xff]  ;;  %v4821_v18 = vld [vmem:[#allocation2 + $0xe2] sm:$0xff] }
  0x2f   :  { %v4806_v13 = vld [vmem:[#allocation2 + $0xb2] sm:$0xff]  ;;  %v4860_v46 = vld [vmem:[#allocation2 + $0x80] sm:$0xff] }
  0x30   :  { %v428_v12 = vpack.c.bf16 %v4806_v13, %v416_v14  ;;  %v4819_v11 = vld [vmem:[#allocation2 + $0xd2] sm:$0xff]  ;;  %v747_v21 = vld [vmem:[#allocation2 + $0x81] sm:$0xff] }
  0x31   :  { %v4823_v10 = vld [vmem:[#allocation2 + $0xf2] sm:$0xff]  ;;  %v759_v23 = vpack.c.bf16 %v747_v21, %v4664_v32  ;;  %v913_v40 = vld [vmem:[#allocation2 + $0x82] sm:$0xff] }
  0x32   :  { %3830 = vmatmul.mubr.msk.bf16.gmra.mrb[8].mxu0 %vm49_vm1, %v4687_v41  ;;  %v4831_v14 = vpack.c.bf16 %v4823_v10, %v4821_v18  ;;  %v4839_v8 = vld [vmem:[#allocation2 + $0x112] sm:$0xff]  ;;  %v925_v43 = vpack.c.bf16 %v913_v40, %v4804_v15 }
  0x33   :  { %3833 = vmatprep.mubr.msk.bf16.mxu0 %vm49_vm1, %v4691_v42 }
  0x34   :  { %5755 = vst [vmem:[#allocation20_spill] sm:$0xff] %v4831_v14 }
  0x3a   :  { %3834 = vmatmul.mubr.msk.bf16.gmra.mrb[12].mxu0 %vm49_vm1, %v4705_v47 }
  0x3b   :  { %3839 = vmatprep.mubr.msk.bf16.mxu0 %vm49_vm1, %v124_v48  ;;  %v4778_v48 = vld [vmem:[#allocation2 + $0x22] sm:$0xff] }
  0x3c   :  { %v922_v32 = vpack.c.bf16 %v4778_v48, %v4770_v33 }
  0x42   :  { %3840 = vmatmul.mubr.msk.bf16.vlgmr.msra.gmra.mrb[0].mxu0 %vm49_vm1, %v4721_v53 }
  0x43   :  { %3856 = vmatpush3.bf16.msra.mxu0 %v459_v55  ;;  %3843 = vmatprep.mubr.msk.bf16.mxu0 %vm49_vm1, %v4725_v54  ;;  %v4780_v55 = vld [vmem:[#allocation2 + $0x32] sm:$0xff] }
  0x44   :  { %4402 = vmatprep.subr.msk.bf16.mxu0 %vm183_vm0, %v3517_v56  ;;  %v4788_v19 = vpack.c.bf16 %v4780_v55, %v4778_v48  ;;  %v4811_v56 = vpack.c.bf16 %v4804_v15, %v4802_v16  ;;  %v923_v34 = vpack.c.bf16 %v4782_v59, %v4780_v55 }
  0x4a   :  { %3844 = vmatmul.mubr.msk.bf16.gmra.mrb[4].mxu0 %vm49_vm1, %v4744_v61 }
  0x4b   :  { %3847 = vmatprep.mubr.msk.bf16.mxu0 %vm49_vm1, %v128_v62  ;;  %v4784_v62 = vld [vmem:[#allocation2 + $0x52] sm:$0xff] }
  0x4c   :  { %v4792_v30 = vpack.c.bf16 %v4784_v62, %v4782_v59  ;;  %v924_v37 = vpack.c.bf16 %v4802_v16, %v4784_v62  ;;  %v927_v16 = vpack.c.bf16 %v4821_v18, %v4819_v11  ;;  %v1088_v18 = vld [vmem:[#allocation2 + $0x130] sm:$0xff] }
  0x52   :  { %3848 = vmatmul.mubr.msk.bf16.gmra.mrb[8].mxu0 %vm49_vm1, %v4760_v4 }
  0x53   :  { %3851 = vmatprep.mubr.msk.bf16.mxu0 %vm49_vm1, %v4764_v20 }
  0x5a   :  { %3852 = vmatmul.mubr.msk.bf16.gmra.mrb[12].mxu0 %vm49_vm1, %v4772_v36 }
  0x5b   :  { %3857 = vmatprep.mubr.msk.bf16.mxu0 %vm49_vm1, %v424_v45  ;;  %v3526_v45 = vld [vmem:[%s5707_s1 + $0x8] sm:$0x3] }
  0x62   :  { %3858 = vmatmul.mubr.msk.bf16.vlgmr.msra.gmra.mrb[0].mxu0 %vm49_vm1, %v4788_v19 }
  0x63   :  { %3874 = vmatpush3.bf16.msra.mxu0 %v625_v17  ;;  %3861 = vmatprep.mubr.msk.bf16.mxu0 %vm49_vm1, %v4792_v30  ;;  %v4817_v17 = vld [vmem:[#allocation2 + $0xc2] sm:$0xff] }
  0x64   :  { %4403 = vmatprep.subr.msk.bf16.mxu0 %vm183_vm0, %v3526_v45  ;;  %v4827_v9 = vpack.c.bf16 %v4819_v11, %v4817_v17  ;;  %v3562_v11 = vld [vmem:[%s5707_s1 + $0x10] sm:$0x3] }
  0x66   :  { %5754 = vst [vmem:[#allocation19_spill] sm:$0xff] %v4827_v9 }
  0x6a   :  { %3862 = vmatmul.mubr.msk.bf16.gmra.mrb[4].mxu0 %vm49_vm1, %v4811_v56 }
  0x6b   :  { %3865 = vmatprep.mubr.msk.bf16.mxu0 %vm49_vm1, %v428_v12  ;;  %v4837_v12 = vld [vmem:[#allocation2 + $0x102] sm:$0xff] }
  0x6c   :  { %v4843_v7 = vpack.c.bf16 %v4839_v8, %v4837_v12 }
  0x72   :  { %3866 = vmatmul.mubr.msk.bf16.gmra.mrb[8].mxu0 %vm49_vm1, %v4827_v9  ;;  %v3535_v9 = vld [vmem:[%s5707_s1 + $0xa] sm:$0x3] }
  0x73   :  { %3869 = vmatprep.mubr.msk.bf16.mxu0 %vm49_vm1, %v4831_v14  ;;  %v791_v14 = vsel %vm183_vm0, %v3526_v45, 0  ;;  %v957_v60 = vsel %vm183_vm0, %v3535_v9, 0 }
  0x7a   :  { %3870 = vmatmul.mubr.msk.bf16.gmra.mrb[12].mxu0 %vm49_vm1, %v4843_v7 }
  0x7b   :  { %3875 = vmatprep.mubr.msk.bf16.mxu0 %vm49_vm1, %v590_v6  ;;  %v593_v6 = vpack.c.bf16 %v4860_v46, %v4737_v58  ;;  %v758_v58 = vpack.c.bf16 %v4662_v31, %v4648_v28  ;;  %v755_v28 = vld [vmem:[#allocation2 + $0x121] sm:$0xff] }
  0x7c   :  { %v763_v31 = vpack.c.bf16 %v755_v28, %v4699_v44  ;;  %v926_v44 = vpack.c.bf16 %v4817_v17, %v4806_v13 }
  0x82   :  { %3876 = vmatmul.mubr.msk.bf16.vlgmr.msra.gmra.mrb[0].mxu0 %vm49_vm1, %v591_v5  ;;  %v595_v5 = vpack.c.bf16 %v4754_v2, %v4752_v0  ;;  %v928_v0 = vpack.c.bf16 %v4837_v12, %v4823_v10  ;;  %v921_v2 = vld [vmem:[#allocation2 + $0x122] sm:$0xff]  ;;  %v1080_v10 = vld [vmem:[#allocation2 + $0x90] sm:$0xff] }
  0x83   :  { %3892 = vmatpush3.bf16.msra.mxu0 %v791_v14  ;;  %3879 = vmatprep.mubr.msk.bf16.mxu0 %vm49_vm1, %v592_v1  ;;  %v4874_v1 = vld [vmem:[#allocation2 + $0x120] sm:$0xff]  ;;  %v929_v15 = vpack.c.bf16 %v921_v2, %v4839_v8  ;;  %v1092_v8 = vpack.c.bf16 %v1080_v10, %v4860_v46 }
  0x84   :  { %4404 = vmatprep.subr.msk.bf16.mxu0 %vm183_vm0, %v3535_v9  ;;  %v597_v51 = vpack.c.bf16 %v4874_v1, %v123_v27  ;;  %v761_v9 = vpack.c.bf16 %v4681_v39, %v4679_v38  ;;  %v1124_v38 = vsel %vm183_vm0, %v3544_v63, 0  ;;  %v3553_v39 = vld [vmem:[%s5707_s1 + $0xe] sm:$0x3] }
  0x85   :  { %v1290_v13 = vsel %vm183_vm0, %v3553_v39, 0 }
  0x8a   :  { %3880 = vmatmul.mubr.msk.bf16.gmra.mrb[4].mxu0 %vm49_vm1, %v593_v6 }
  0x8b   :  { %3883 = vmatprep.mubr.msk.bf16.mxu0 %vm49_vm1, %v594_v49 }
  0x92   :  { %3884 = vmatmul.mubr.msk.bf16.gmra.mrb[8].mxu0 %vm49_vm1, %v595_v5 }
  0x93   :  { %3887 = vmatprep.mubr.msk.bf16.mxu0 %vm49_vm1, %v596_v50 }
  0x9a   :  { %3888 = vmatmul.mubr.msk.bf16.gmra.mrb[12].mxu0 %vm49_vm1, %v597_v51 }
  0x9b   :  { %3893 = vmatprep.mubr.msk.bf16.mxu0 %vm49_vm1, %v756_v52 }
  0xa2   :  { %3894 = vmatmul.mubr.msk.bf16.vlgmr.msra.gmra.mrb[0].mxu0 %vm49_vm1, %v757_v57 }
  0xa3   :  { %3910 = vmatpush3.bf16.msra.mxu0 %v957_v60  ;;  %3897 = vmatprep.mubr.msk.bf16.mxu0 %vm49_vm1, %v758_v58 }
  0xa4   :  { %4405 = vmatprep.subr.msk.bf16.mxu0 %vm183_vm0, %v3544_v63  ;;  %v5019_v63 = vld [vmem:[%s5710_s5] sm:$0x3] }
  0xaa   :  { %3898 = vmatmul.mubr.msk.bf16.gmra.mrb[4].mxu0 %vm49_vm1, %v759_v23 }
  0xab   :  { %3901 = vmatprep.mubr.msk.bf16.mxu0 %vm49_vm1, %v760_v24 }
  0xb2   :  { %3902 = vmatmul.mubr.msk.bf16.gmra.mrb[8].mxu0 %vm49_vm1, %v761_v9 }
  0xb3   :  { %3905 = vmatprep.mubr.msk.bf16.mxu0 %vm49_vm1, %v762_v25 }
  0xba   :  { %3906 = vmatmul.mubr.msk.bf16.gmra.mrb[12].mxu0 %vm49_vm1, %v763_v31 }
  0xbb   :  { %3911 = vmatprep.mubr.msk.bf16.mxu0 %vm49_vm1, %v922_v32 }
  0xc2   :  { %3912 = vmatmul.mubr.msk.bf16.vlgmr.msra.gmra.mrb[0].mxu0 %vm49_vm1, %v923_v34 }
  0xc3   :  { %3928 = vmatpush3.bf16.msra.mxu0 %v1124_v38  ;;  %3915 = vmatprep.mubr.msk.bf16.mxu0 %vm49_vm1, %v924_v37 }
  0xc4   :  { %4406 = vmatprep.subr.msk.bf16.mxu0 %vm183_vm0, %v3553_v39 }
  0xca   :  { %3916 = vmatmul.mubr.msk.bf16.gmra.mrb[4].mxu0 %vm49_vm1, %v925_v43 }
  0xcb   :  { %3919 = vmatprep.mubr.msk.bf16.mxu0 %vm49_vm1, %v926_v44 }
  0xd2   :  { %3920 = vmatmul.mubr.msk.bf16.gmra.mrb[8].mxu0 %vm49_vm1, %v927_v16 }
  0xd3   :  { %3923 = vmatprep.mubr.msk.bf16.mxu0 %vm49_vm1, %v928_v0 }
  0xda   :  { %3924 = vmatmul.mubr.msk.bf16.gmra.mrb[12].mxu0 %vm49_vm1, %v929_v15 }
  0xdb   :  { %3929 = vmatprep.mubr.msk.bf16.mxu0 %vm49_vm1, %v4721_v53  ;;  %v1096_v53 = vpack.c.bf16 %v1088_v18, %v4874_v1 }
  0xe2   :  { %3930 = vmatmul.mubr.msk.bf16.vlgmr.msra.gmra.mrb[0].mxu0 %vm49_vm1, %v4725_v54  ;;  %v1456_v54 = vsel %vm183_vm0, %v3562_v11, 0 }
  0xe3   :  { %3946 = vmatpush3.bf16.msra.mxu0 %v1290_v13  ;;  %3933 = vmatprep.mubr.msk.bf16.mxu0 %vm49_vm1, %v4744_v61  ;;  %v1246_v61 = vld [vmem:[#allocation2 + $0x91] sm:$0xff] }
  0xe4   :  { %4407 = vmatprep.subr.msk.bf16.mxu0 %vm183_vm0, %v3562_v11  ;;  %v1258_v3 = vpack.c.bf16 %v1246_v61, %v747_v21 }
  0xea   :  { %3934 = vmatmul.mubr.msk.bf16.gmra.mrb[4].mxu0 %vm49_vm1, %v1092_v8 }
  0xeb   :  { %3937 = vmatprep.mubr.msk.bf16.mxu0 %vm49_vm1, %v4760_v4 }
  0xf2   :  { %3938 = vmatmul.mubr.msk.bf16.gmra.mrb[8].mxu0 %vm49_vm1, %v4764_v20  ;;  %v4985_v20 = vld [vmem:[%s5709_s2] ss:$0 sm:$0xff] }
  0xf3   :  { %3941 = vmatprep.mubr.msk.bf16.mxu0 %vm49_vm1, %v4772_v36 }
  0xfa   :  { %3942 = vmatmul.mubr.msk.bf16.gmra.mrb[12].mxu0 %vm49_vm1, %v1096_v53 }
  0xfb   :  { %3947 = vmatprep.mubr.msk.bf16.mxu0 %vm49_vm1, %v4645_v26  ;;  %v1254_v26 = vld [vmem:[#allocation2 + $0x131] sm:$0xff] }
  0xfc   :  { %v1262_v4 = vpack.c.bf16 %v1254_v26, %v755_v28 }
 0x102   :  { %3948 = vmatmul.mubr.msk.bf16.vlgmr.msra.gmra.mrb[0].mxu0 %vm49_vm1, %v4653_v29  ;;  %v1412_v29 = vld [vmem:[#allocation2 + $0x92] sm:$0xff] }
 0x103   :  { %3964 = vmatpush3.bf16.msra.mxu0 %v1456_v54  ;;  %3951 = vmatprep.mubr.msk.bf16.mxu0 %vm49_vm1, %v4671_v35  ;;  %v1424_v35 = vpack.c.bf16 %v1412_v29, %v913_v40 }
 0x10a   :  { %3952 = vmatmul.mubr.msk.bf16.gmra.mrb[4].mxu0 %vm49_vm1, %v1258_v3 }
 0x10b   :  { %3955 = vmatprep.mubr.msk.bf16.mxu0 %vm49_vm1, %v4687_v41  ;;  %v5756_v41 = vld [vmem:[#allocation19_spill] sm:$0xff] }
 0x112   :  { %3956 = vmatmul.mubr.msk.bf16.gmra.mrb[8].mxu0 %vm49_vm1, %v4691_v42  ;;  %v5757_v42 = vld [vmem:[#allocation20_spill] sm:$0xff] }
 0x113   :  { %3959 = vmatprep.mubr.msk.bf16.mxu0 %vm49_vm1, %v4705_v47 }
 0x11a   :  { %3960 = vmatmul.mubr.msk.bf16.gmra.mrb[12].mxu0 %vm49_vm1, %v1262_v4 }
 0x11b   :  { %3965 = vmatprep.mubr.msk.bf16.mxu0 %vm49_vm1, %v4788_v19  ;;  %v1420_v19 = vld [vmem:[#allocation2 + $0x132] sm:$0xff] }
 0x11c   :  { %v1428_v47 = vpack.c.bf16 %v1420_v19, %v921_v2 }
 0x122   :  { %3966 = vmatmul.mubr.msk.bf16.vlgmr.msra.gmra.mrb[0].mxu0 %vm49_vm1, %v4792_v30 }
 0x123   :  { %3969 = vmatprep.mubr.msk.bf16.mxu0 %vm49_vm1, %v4811_v56  ;;  %v3574_v56 = vld [vmem:[%s5710_s5 + $0x2] sm:$0x3] }
 0x124   :  { %4408 = vmatprep.subr.msk.bf16.mxu1 %vm183_vm0, %v3574_v56  ;;  %v1875_v12 = vsel %vm183_vm0, %v3574_v56, 0 }
 0x125   :  { %3982 = vmatpush3.bf16.msra.mxu1 %v1875_v12 }
 0x126   :  { %4409 = vmatprep.subr.msk.bf16.mxu1 %vm183_vm0, %v5019_v63 }
 0x12a   :  { %3970 = vmatmul.mubr.msk.bf16.gmra.mrb[4].mxu0 %vm49_vm1, %v1424_v35 }
 0x12b   :  { %3973 = vmatprep.mubr.msk.bf16.mxu0 %vm49_vm1, %v5756_v41 }
 0x132   :  { %3974 = vmatmul.mubr.msk.bf16.gmra.mrb[8].mxu0 %vm49_vm1, %v5757_v42 }
 0x133   :  { %3977 = vmatprep.mubr.msk.bf16.mxu0 %vm49_vm1, %v4843_v7 }
 0x13a   :  { %3978 = vmatmul.mubr.msk.bf16.gmra.mrb[12].mxu0 %vm49_vm1, %v1428_v47 }
 0x1f5   :  { %v3967_v22 = vpop.f32.mrb[0].mxu0 }
 0x1f6   :  { %v1492_v27 = vpop.f32.mrb[1].mxu0  ;;  %v4991_v55 = vadd.f32 %v3967_v22, %v4985_v20 }
 0x1f7   :  { %v4988_v33 = vadd.f32 %v4985_v20, %v1492_v27  ;;  %v3968_v36 = vpop.f32.mrb[2].mxu0 }
 0x1f8   :  { %v1495_v48 = vpop.f32.mrb[3].mxu0  ;;  %v4999_v62 = vadd.f32 %v3968_v36, %v4985_v20  ;;  %v1597_v17 = vsel %vm49_vm1, %v4991_v55, 0.0 }
 0x1f9   :  { %v4994_v7 = vadd.f32 %v4985_v20, %v1495_v48  ;;  %v1594_v59 = vsel %vm49_vm1, %v4988_v33, 0.0 }
 0x1fa   :  { %v1599_v49 = vsel %vm49_vm1, %v4999_v62, 0.0 }
 0x1fb   :  { %v1595_v30 = vsel %vm49_vm1, %v4994_v7, 0.0 }
 0x1fc   :  { %v1596_v45 = vadd.f32 %v1595_v30, %v1594_v59 }
 0x1fd   :  { %v3971_v14 = vpop.f32.mrb[4].mxu0 }
 0x1fe   :  { %v1598_v46 = vadd.f32 %v1597_v17, %v1596_v45  ;;  %v1508_v6 = vpop.f32.mrb[5].mxu0  ;;  %v1584_v52 = vadd.f32 %v3971_v14, %v4985_v20 }
 0x1ff   :  { %v1582_v5 = vadd.f32 %v4985_v20, %v1508_v6  ;;  %v3972_v50 = vpop.f32.mrb[6].mxu0 }
 0x200   :  { %v1600_v1 = vadd.f32 %v1599_v49, %v1598_v46  ;;  %v1511_v51 = vpop.f32.mrb[7].mxu0  ;;  %v1585_v21 = vadd.f32 %v3972_v50, %v4985_v20  ;;  %v1605_v9 = vsel %vm49_vm1, %v1584_v52, 0.0 }
 0x201   :  { %v1601_v57 = vsel %vm49_vm1, %v1582_v5, 0.0  ;;  %v1583_v58 = vadd.f32 %v4985_v20, %v1511_v51 }
 0x202   :  { %v1602_v60 = vadd.f32 %v1601_v57, %v1600_v1  ;;  %v1607_v32 = vsel %vm49_vm1, %v1585_v21, 0.0 }
 0x203   :  { %v1603_v23 = vsel %vm49_vm1, %v1583_v58, 0.0 }
 0x204   :  { %v1604_v24 = vadd.f32 %v1603_v23, %v1602_v60 }
 0x205   :  { %v3975_v25 = vpop.f32.mrb[8].mxu0 }
 0x206   :  { %v1606_v28 = vadd.f32 %v1605_v9, %v1604_v24  ;;  %v1524_v31 = vpop.f32.mrb[9].mxu0  ;;  %v1588_v40 = vadd.f32 %v3975_v25, %v4985_v20 }
 0x207   :  { %v1586_v34 = vadd.f32 %v4985_v20, %v1524_v31  ;;  %v3976_v37 = vpop.f32.mrb[10].mxu0 }
 0x208   :  { %v1608_v38 = vadd.f32 %v1607_v32, %v1606_v28  ;;  %v1527_v39 = vpop.f32.mrb[11].mxu0  ;;  %v1589_v0 = vadd.f32 %v3976_v37, %v4985_v20  ;;  %v1613_v13 = vsel %vm49_vm1, %v1588_v40, 0.0 }
 0x209   :  { %v1609_v43 = vsel %vm49_vm1, %v1586_v34, 0.0  ;;  %v1587_v44 = vadd.f32 %v4985_v20, %v1527_v39 }
 0x20a   :  { %v1610_v16 = vadd.f32 %v1609_v43, %v1608_v38  ;;  %v1615_v18 = vsel %vm49_vm1, %v1589_v0, 0.0 }
 0x20b   :  { %v1611_v2 = vsel %vm49_vm1, %v1587_v44, 0.0 }
 0x20c   :  { %v1612_v15 = vadd.f32 %v1611_v2, %v1610_v16 }
 0x20d   :  { %v3979_v11 = vpop.f32.mrb[12].mxu0 }
 0x20e   :  { %v1614_v10 = vadd.f32 %v1613_v13, %v1612_v15  ;;  %v1540_v8 = vpop.f32.mrb[13].mxu0  ;;  %v1592_v26 = vadd.f32 %v3979_v11, %v4985_v20 }
 0x20f   :  { %v1590_v53 = vadd.f32 %v4985_v20, %v1540_v8  ;;  %v3980_v54 = vpop.f32.mrb[14].mxu0 }
 0x210   :  { %v1616_v61 = vadd.f32 %v1615_v18, %v1614_v10  ;;  %v1543_v3 = vpop.f32.mrb[15].mxu0  ;;  %v1593_v41 = vadd.f32 %v3980_v54, %v4985_v20  ;;  %v1621_v47 = vsel %vm49_vm1, %v1592_v26, 0.0 }
 0x211   :  { %v1617_v4 = vsel %vm49_vm1, %v1590_v53, 0.0  ;;  %v1591_v29 = vadd.f32 %v4985_v20, %v1543_v3 }
 0x212   :  { %v1618_v35 = vadd.f32 %v1617_v4, %v1616_v61  ;;  %v1623_v27 = vsel %vm49_vm1, %v1593_v41, 0.0 }
 0x213   :  { %v1619_v42 = vsel %vm49_vm1, %v1591_v29, 0.0 }
 0x214   :  { %v1620_v19 = vadd.f32 %v1619_v42, %v1618_v35 }
 0x216   :  { %v1622_v22 = vadd.f32 %v1621_v47, %v1620_v19 }
 0x218   :  { %v1624_v36 = vadd.f32 %v1623_v27, %v1622_v22 }
 0x21a   :  { %v1625_v48 = vrot.slane %v1624_v36, 4 }
 0x21c   :  { %v1626_v59 = vadd.f32 %v1625_v48, %v1624_v36 }
 0x21e   :  { %v1627_v30 = vrot.slane %v1626_v59, 2 }
 0x220   :  { %v1628_v45 = vadd.f32 %v1627_v30, %v1626_v59 }
 0x222   :  { %v1629_v56 = vrot.slane %v1628_v45, 1 }
 0x224   :  { %v1630_v17 = vadd.f32 %v1629_v56, %v1628_v45 }
 0x226   :  { %v1632_v14 = vmul.f32 0.0078125, %v1630_v17 }
 0x228   :  { %v5044_v12 = vsub.f32 %v4988_v33, %v1632_v14  ;;  %v5047_v20 = vsub.f32 %v4994_v7, %v1632_v14  ;;  %v5050_v46 = vsub.f32 %v4991_v55, %v1632_v14  ;;  %v5053_v6 = vsub.f32 %v4999_v62, %v1632_v14 }
 0x229   :  { %v5055_v49 = vsub.f32 %v1582_v5, %v1632_v14  ;;  %v5057_v50 = vsub.f32 %v1583_v58, %v1632_v14  ;;  %v5059_v1 = vsub.f32 %v1584_v52, %v1632_v14  ;;  %v5061_v51 = vsub.f32 %v1585_v21, %v1632_v14 }
 0x22a   :  { %v5063_v57 = vsub.f32 %v1586_v34, %v1632_v14  ;;  %v5065_v33 = vsub.f32 %v1587_v44, %v1632_v14  ;;  %v5067_v7 = vsub.f32 %v1588_v40, %v1632_v14  ;;  %v5069_v60 = vsub.f32 %v1589_v0, %v1632_v14 }
 0x22b   :  { %v5071_v55 = vsub.f32 %v1590_v53, %v1632_v14  ;;  %v5073_v62 = vsub.f32 %v1591_v29, %v1632_v14  ;;  %v5075_v5 = vsub.f32 %v1592_v26, %v1632_v14  ;;  %v5077_v58 = vsub.f32 %v1593_v41, %v1632_v14 }
 0x22c   :  { %v1649_v52 = vmul.f32 %v5044_v12, %v5044_v12  ;;  %v1650_v21 = vmul.f32 %v5047_v20, %v5047_v20  ;;  %v1651_v23 = vmul.f32 %v5050_v46, %v5050_v46  ;;  %v1652_v24 = vmul.f32 %v5053_v6, %v5053_v6 }
 0x22d   :  { %v1653_v31 = vmul.f32 %v5055_v49, %v5055_v49  ;;  %v1654_v37 = vmul.f32 %v5057_v50, %v5057_v50  ;;  %v1655_v40 = vmul.f32 %v5059_v1, %v5059_v1  ;;  %v1656_v16 = vmul.f32 %v5061_v51, %v5061_v51 }
 0x22e   :  { %v1665_v9 = vsel %vm49_vm1, %v1649_v52, 0.0  ;;  %v1666_v25 = vsel %vm49_vm1, %v1650_v21, 0.0  ;;  %v1668_v32 = vsel %vm49_vm1, %v1651_v23, 0.0  ;;  %v1670_v38 = vsel %vm49_vm1, %v1652_v24, 0.0 }
 0x22f   :  { %v1667_v28 = vadd.f32 %v1666_v25, %v1665_v9  ;;  %v1672_v43 = vsel %vm49_vm1, %v1653_v31, 0.0  ;;  %v1674_v0 = vsel %vm49_vm1, %v1654_v37, 0.0  ;;  %v1657_v15 = vmul.f32 %v5063_v57, %v5063_v57 }
 0x230   :  { %v1676_v13 = vsel %vm49_vm1, %v1655_v40, 0.0  ;;  %v1658_v10 = vmul.f32 %v5065_v33, %v5065_v33  ;;  %v1678_v8 = vsel %vm49_vm1, %v1656_v16, 0.0  ;;  %v1659_v53 = vmul.f32 %v5067_v7, %v5067_v7 }
 0x231   :  { %v1669_v34 = vadd.f32 %v1668_v32, %v1667_v28  ;;  %v1680_v54 = vsel %vm49_vm1, %v1657_v15, 0.0  ;;  %v1660_v3 = vmul.f32 %v5069_v60, %v5069_v60  ;;  %v1661_v29 = vmul.f32 %v5071_v55, %v5071_v55 }
 0x232   :  { %v1682_v26 = vsel %vm49_vm1, %v1658_v10, 0.0  ;;  %v1684_v35 = vsel %vm49_vm1, %v1659_v53, 0.0  ;;  %v1662_v42 = vmul.f32 %v5073_v62, %v5073_v62  ;;  %v1663_v22 = vmul.f32 %v5075_v5, %v5075_v5 }
 0x233   :  { %v1671_v39 = vadd.f32 %v1670_v38, %v1669_v34  ;;  %v1686_v19 = vsel %vm49_vm1, %v1660_v3, 0.0  ;;  %v1688_v27 = vsel %vm49_vm1, %v1661_v29, 0.0  ;;  %v1664_v48 = vmul.f32 %v5077_v58, %v5077_v58 }
 0x234   :  { %v1690_v59 = vsel %vm49_vm1, %v1662_v42, 0.0  ;;  %v1692_v45 = vsel %vm49_vm1, %v1663_v22, 0.0 }
 0x235   :  { %v1673_v44 = vadd.f32 %v1672_v43, %v1671_v39  ;;  %v1694_v17 = vsel %vm49_vm1, %v1664_v48, 0.0 }
 0x237   :  { %v1675_v2 = vadd.f32 %v1674_v0, %v1673_v44  ;;  %v3572_v0 = vld [vmem:[%s5711_s3] ss:$0 sm:$0xff] }
 0x239   :  { %v1677_v11 = vadd.f32 %v1676_v13, %v1675_v2 }
 0x23b   :  { %v1679_v18 = vadd.f32 %v1678_v8, %v1677_v11 }
 0x23d   :  { %v1681_v61 = vadd.f32 %v1680_v54, %v1679_v18 }
 0x23f   :  { %v1683_v4 = vadd.f32 %v1682_v26, %v1681_v61 }
 0x241   :  { %v1685_v41 = vadd.f32 %v1684_v35, %v1683_v4 }
 0x243   :  { %v1687_v47 = vadd.f32 %v1686_v19, %v1685_v41 }
 0x245   :  { %v1689_v36 = vadd.f32 %v1688_v27, %v1687_v47 }
 0x247   :  { %v1691_v30 = vadd.f32 %v1690_v59, %v1689_v36 }
 0x249   :  { %v1693_v56 = vadd.f32 %v1692_v45, %v1691_v30 }
 0x24b   :  { %v1695_v14 = vadd.f32 %v1694_v17, %v1693_v56 }
 0x24d   :  { %v1696_v52 = vrot.slane %v1695_v14, 4 }
 0x24f   :  { %v1697_v21 = vadd.f32 %v1696_v52, %v1695_v14 }
 0x251   :  { %v1698_v23 = vrot.slane %v1697_v21, 2 }
 0x253   :  { %v1699_v24 = vadd.f32 %v1698_v23, %v1697_v21 }
 0x255   :  { %v1700_v9 = vrot.slane %v1699_v24, 1 }
 0x257   :  { %v1701_v25 = vadd.f32 %v1700_v9, %v1699_v24 }
 0x259   :  { %v1702_v28 = vmul.f32 0.0078125, %v1701_v25 }
 0x25b   :  { %v1703_v31 = vadd.f32 1e-05, %v1702_v28 }
 0x25d   :  { %4418 = vrsqrt.f32 %v1703_v31 }
 0x267   :  { %v4419_v32 = vpop.eup %4418 }
 0x268   :  { %v1705_v34 = vmul.f32 %v4419_v32, %v5044_v12  ;;  %v1706_v37 = vmul.f32 %v4419_v32, %v5047_v20  ;;  %v1707_v38 = vmul.f32 %v4419_v32, %v5050_v46  ;;  %v1708_v39 = vmul.f32 %v4419_v32, %v5053_v6 }
 0x269   :  { %v1709_v40 = vmul.f32 %v4419_v32, %v5055_v49  ;;  %v1710_v43 = vmul.f32 %v4419_v32, %v5057_v50  ;;  %v1711_v44 = vmul.f32 %v4419_v32, %v5059_v1  ;;  %v1712_v16 = vmul.f32 %v4419_v32, %v5061_v51 }
 0x26a   :  { %v1713_v12 = vmul.f32 %v4419_v32, %v5063_v57  ;;  %v1714_v20 = vmul.f32 %v4419_v32, %v5065_v33  ;;  %v1715_v46 = vmul.f32 %v4419_v32, %v5067_v7  ;;  %v1716_v6 = vmul.f32 %v4419_v32, %v5069_v60  ;;  %v3573_v7 = vld [vmem:[%s5712_s4] ss:$0 sm:$0xff] }
 0x26b   :  { %v1717_v49 = vmul.f32 %v4419_v32, %v5071_v55  ;;  %v1718_v50 = vmul.f32 %v4419_v32, %v5073_v62  ;;  %v1719_v1 = vmul.f32 %v4419_v32, %v5075_v5  ;;  %v1720_v51 = vmul.f32 %v4419_v32, %v5077_v58 }
 0x26c   :  { %v1728_v2 = vmul.f32 %v3572_v0, %v1705_v34  ;;  %v1729_v15 = vmul.f32 %v3572_v0, %v1706_v37  ;;  %v1730_v13 = vmul.f32 %v3572_v0, %v1707_v38  ;;  %v1731_v11 = vmul.f32 %v3572_v0, %v1708_v39  ;;  %v1824_v39 = vld [vmem:[#allocation2 + $0x1] sm:$0xff] }
 0x26d   :  { %v1732_v10 = vmul.f32 %v3572_v0, %v1709_v40  ;;  %v1733_v57 = vmul.f32 %v3572_v0, %v1710_v43  ;;  %v1734_v8 = vmul.f32 %v3572_v0, %v1711_v44  ;;  %v1735_v33 = vmul.f32 %v3572_v0, %v1712_v16 }
 0x26e   :  { %v1736_v60 = vmul.f32 %v3572_v0, %v1713_v12  ;;  %v1737_v55 = vmul.f32 %v3572_v0, %v1714_v20  ;;  %v1738_v18 = vmul.f32 %v3572_v0, %v1715_v46  ;;  %v1739_v62 = vmul.f32 %v3572_v0, %v1716_v6 }
 0x26f   :  { %v1740_v53 = vmul.f32 %v3572_v0, %v1717_v49  ;;  %v1741_v5 = vmul.f32 %v3572_v0, %v1718_v50  ;;  %v1742_v54 = vmul.f32 %v3572_v0, %v1719_v1  ;;  %v1743_v58 = vmul.f32 %v3572_v0, %v1720_v51  ;;  %v3591_v51 = vld [vmem:[%s5710_s5 + $0x4] sm:$0x3] }
 0x270   :  { %v1751_v61 = vadd.f32 %v3573_v7, %v1728_v2  ;;  %v1752_v3 = vadd.f32 %v3573_v7, %v1729_v15  ;;  %v1753_v26 = vadd.f32 %v3573_v7, %v1730_v13  ;;  %v1754_v4 = vadd.f32 %v3573_v7, %v1731_v11 }
 0x271   :  { %v1755_v29 = vadd.f32 %v3573_v7, %v1732_v10  ;;  %v1756_v35 = vadd.f32 %v3573_v7, %v1733_v57  ;;  %v1757_v41 = vadd.f32 %v3573_v7, %v1734_v8  ;;  %v1758_v42 = vadd.f32 %v3573_v7, %v1735_v33 }
 0x272   :  { %v1759_v19 = vadd.f32 %v3573_v7, %v1736_v60  ;;  %v1760_v47 = vadd.f32 %v3573_v7, %v1737_v55  ;;  %v1761_v22 = vadd.f32 %v3573_v7, %v1738_v18  ;;  %v1762_v27 = vadd.f32 %v3573_v7, %v1739_v62  ;;  %v1832_v55 = vld [vmem:[#allocation2 + $0xa1] sm:$0xff] }
 0x273   :  { %v1763_v36 = vadd.f32 %v3573_v7, %v1740_v53  ;;  %v1764_v48 = vadd.f32 %v3573_v7, %v1741_v5  ;;  %v1765_v59 = vadd.f32 %v3573_v7, %v1742_v54  ;;  %v1766_v30 = vadd.f32 %v3573_v7, %v1743_v58  ;;  %v3609_v7 = vld [vmem:[%s5710_s5 + $0x8] sm:$0x3] }
 0x274   :  { %v1767_v45 = vmax.f32 %v1751_v61, 0.0  ;;  %v1768_v56 = vmax.f32 %v1752_v3, 0.0  ;;  %v1769_v17 = vmax.f32 %v1753_v26, 0.0  ;;  %v1770_v14 = vmax.f32 %v1754_v4, 0.0 }
 0x275   :  { %v1771_v52 = vmax.f32 %v1755_v29, 0.0  ;;  %v1772_v21 = vmax.f32 %v1756_v35, 0.0  ;;  %v1773_v23 = vmax.f32 %v1757_v41, 0.0  ;;  %v1774_v24 = vmax.f32 %v1758_v42, 0.0 }
 0x276   :  { %v1775_v9 = vmax.f32 %v1759_v19, 0.0  ;;  %v1776_v25 = vmax.f32 %v1760_v47, 0.0  ;;  %v1777_v28 = vmax.f32 %v1761_v22, 0.0  ;;  %v1778_v31 = vmax.f32 %v1762_v27, 0.0  ;;  %1783 = vst.msk [vmem:[#allocation2 + $0x11] sm:$0xff] %vm49_vm1, %v1767_v45  ;;  %1784 = vst.msk [vmem:[#allocation2 + $0x21] sm:$0xff] %vm49_vm1, %v1768_v56 }
 0x277   :  { %1785 = vst.msk [vmem:[#allocation2 + $0x31] sm:$0xff] %vm49_vm1, %v1769_v17  ;;  %1786 = vst.msk [vmem:[#allocation2 + $0x41] sm:$0xff] %vm49_vm1, %v1770_v14  ;;  %v1779_v32 = vmax.f32 %v1763_v36, 0.0  ;;  %v1780_v34 = vmax.f32 %v1764_v48, 0.0  ;;  %v1781_v37 = vmax.f32 %v1765_v59, 0.0  ;;  %v1782_v38 = vmax.f32 %v1766_v30, 0.0 }
 0x278   :  { %1787 = vst.msk [vmem:[#allocation2 + $0x51] sm:$0xff] %vm49_vm1, %v1771_v52  ;;  %1788 = vst.msk [vmem:[#allocation2 + $0x61] sm:$0xff] %vm49_vm1, %v1772_v21  ;;  %v1999_v49 = vsel %vm183_vm0, %v5019_v63, 0  ;;  %v1799_v56 = vld [vmem:[#allocation2] sm:$0xff]  ;;  %v2481_v6 = vsel %vm183_vm0, %v3609_v7, 0 }
 0x279   :  { %1789 = vst.msk [vmem:[#allocation2 + $0x71] sm:$0xff] %vm49_vm1, %v1773_v23  ;;  %1790 = vst.msk [vmem:[#allocation2 + $0x81] sm:$0xff] %vm49_vm1, %v1774_v24  ;;  %v2098_v36 = vld [vmem:[#allocation2 + $0x2] sm:$0xff] }
 0x27a   :  { %1791 = vst.msk [vmem:[#allocation2 + $0xb1] sm:$0xff] %vm49_vm1, %v1775_v9  ;;  %1792 = vst.msk [vmem:[#allocation2 + $0xc1] sm:$0xff] %vm49_vm1, %v1776_v25 }
 0x27b   :  { %1793 = vst.msk [vmem:[#allocation2 + $0xd1] sm:$0xff] %vm49_vm1, %v1777_v28  ;;  %1794 = vst.msk [vmem:[#allocation2 + $0xe1] sm:$0xff] %vm49_vm1, %v1778_v31  ;;  %v2149_v28 = vsel %vm183_vm0, %v3591_v51, 0 }
 0x27c   :  { %1795 = vst.msk [vmem:[#allocation2 + $0xf1] sm:$0xff] %vm49_vm1, %v1779_v32  ;;  %1796 = vst.msk [vmem:[#allocation2 + $0x101] sm:$0xff] %vm49_vm1, %v1780_v34  ;;  %v3600_v32 = vld [vmem:[%s5710_s5 + $0x6] sm:$0x3] }
 0x27d   :  { %1797 = vst.msk [vmem:[#allocation2 + $0x111] sm:$0xff] %vm49_vm1, %v1781_v37  ;;  %1798 = vst.msk [vmem:[#allocation2 + $0x121] sm:$0xff] %vm49_vm1, %v1782_v38  ;;  %v5165_v40 = vld [vmem:[#allocation2 + $0x11] sm:$0xff]  ;;  %v5167_v43 = vld [vmem:[#allocation2 + $0x21] sm:$0xff]  ;;  %v2315_v29 = vsel %vm183_vm0, %v3600_v32, 0 }
 0x27e   :  { %v5169_v44 = vld [vmem:[#allocation2 + $0x31] sm:$0xff]  ;;  %v1840_v16 = vpack.c.bf16 %v5165_v40, %v1824_v39  ;;  %v5176_v12 = vld [vmem:[#allocation2 + $0x41] sm:$0xff] }
 0x27f   :  { %v5174_v0 = vpack.c.bf16 %v5169_v44, %v5167_v43  ;;  %v5178_v20 = vld [vmem:[#allocation2 + $0x51] sm:$0xff]  ;;  %v5180_v46 = vld [vmem:[#allocation2 + $0x61] sm:$0xff] }
 0x280   :  { %3983 = vmatprep.mubr.msk.bf16.mxu1 %vm49_vm1, %v1840_v16  ;;  %v5200_v13 = vpack.c.bf16 %v5178_v20, %v5176_v12  ;;  %v5221_v60 = vld [vmem:[#allocation2 + $0x71] sm:$0xff]  ;;  %v5225_v62 = vld [vmem:[#allocation2 + $0x22] sm:$0xff] }
 0x281   :  { %v5186_v50 = vld [vmem:[#allocation2 + $0xb1] sm:$0xff]  ;;  %v5188_v1 = vld [vmem:[#allocation2 + $0xc1] sm:$0xff]  ;;  %3984 = vmatmul.mubr.msk.bf16.vlgmr.msra.gmra.mrb[0].mxu1 %vm49_vm1, %v5174_v0  ;;  %v5229_v53 = vpack.c.bf16 %v5221_v60, %v5180_v46 }
 0x282   :  { %v5202_v63 = vld [vmem:[#allocation2 + $0xd1] sm:$0xff]  ;;  %v5204_v11 = vld [vmem:[#allocation2 + $0xe1] sm:$0xff]  ;;  %4000 = vmatpush3.bf16.msra.mxu1 %v1999_v49  ;;  %3987 = vmatprep.mubr.msk.bf16.mxu1 %vm49_vm1, %v5200_v13  ;;  %v1844_v3 = vpack.c.bf16 %v5186_v50, %v1832_v55 }
 0x283   :  { %v5206_v10 = vld [vmem:[#allocation2 + $0xf1] sm:$0xff]  ;;  %v5212_v8 = vld [vmem:[#allocation2 + $0x101] sm:$0xff]  ;;  %4410 = vmatprep.subr.msk.bf16.mxu1 %vm183_vm0, %v3591_v51  ;;  %v5269_v59 = vpack.c.bf16 %v5202_v63, %v5188_v1 }
 0x284   :  { %v5223_v18 = vld [vmem:[#allocation2 + $0x12] sm:$0xff]  ;;  %v5233_v54 = vld [vmem:[#allocation2 + $0x42] sm:$0xff]  ;;  %v5273_v30 = vpack.c.bf16 %v5206_v10, %v5204_v11 }
 0x285   :  { %v5231_v5 = vld [vmem:[#allocation2 + $0x32] sm:$0xff]  ;;  %v5240_v26 = vld [vmem:[#allocation2 + $0x62] sm:$0xff] }
 0x286   :  { %v5235_v58 = vld [vmem:[#allocation2 + $0x52] sm:$0xff]  ;;  %v5248_v35 = vld [vmem:[#allocation2 + $0xc2] sm:$0xff]  ;;  %v5325_v19 = vpack.c.bf16 %v5231_v5, %v5225_v62 }
 0x287   :  { %v5242_v4 = vld [vmem:[#allocation2 + $0xb2] sm:$0xff]  ;;  %v5252_v42 = vld [vmem:[#allocation2 + $0xe2] sm:$0xff]  ;;  %v5330_v61 = vpack.c.bf16 %v5235_v58, %v5233_v54 }
 0x288   :  { %v5250_v41 = vld [vmem:[#allocation2 + $0xd2] sm:$0xff]  ;;  %v5259_v22 = vld [vmem:[#allocation2 + $0x102] sm:$0xff] }
 0x289   :  { %3988 = vmatmul.mubr.msk.bf16.gmra.mrb[4].mxu1 %vm49_vm1, %v5229_v53  ;;  %v5257_v47 = vld [vmem:[#allocation2 + $0xf2] sm:$0xff]  ;;  %v1801_v21 = vld [vmem:[#allocation2 + $0x20] sm:$0xff] }
 0x28a   :  { %3991 = vmatprep.mubr.msk.bf16.mxu1 %vm49_vm1, %v1844_v3  ;;  %v5279_v45 = vld [vmem:[#allocation2 + $0x111] sm:$0xff]  ;;  %v1803_v24 = vld [vmem:[#allocation2 + $0x40] sm:$0xff]  ;;  %v5353_v57 = vpack.c.bf16 %v5257_v47, %v5252_v42 }
 0x28b   :  { %v5281_v17 = vld [vmem:[#allocation2 + $0x10] sm:$0xff]  ;;  %v5285_v14 = vpack.c.bf16 %v5279_v45, %v5212_v8  ;;  %v1805_v34 = vld [vmem:[#allocation2 + $0x60] sm:$0xff] }
 0x28c   :  { %v1815_v52 = vpack.c.bf16 %v5281_v17, %v1799_v56  ;;  %v1802_v23 = vld [vmem:[#allocation2 + $0x30] sm:$0xff]  ;;  %v1807_v38 = vld [vmem:[#allocation2 + $0xa0] sm:$0xff] }
 0x28d   :  { %v1804_v9 = vld [vmem:[#allocation2 + $0x50] sm:$0xff]  ;;  %v5291_v25 = vpack.c.bf16 %v1802_v23, %v1801_v21  ;;  %v1809_v51 = vld [vmem:[#allocation2 + $0xc0] sm:$0xff]  ;;  %v2281_v2 = vpack.c.bf16 %v1803_v24, %v1802_v23 }
 0x28e   :  { %v5294_v31 = vpack.c.bf16 %v1804_v9, %v1803_v24  ;;  %v1806_v37 = vld [vmem:[#allocation2 + $0x70] sm:$0xff]  ;;  %v1811_v3 = vld [vmem:[#allocation2 + $0xe0] sm:$0xff] }
 0x28f   :  { %v1808_v39 = vld [vmem:[#allocation2 + $0xb0] sm:$0xff]  ;;  %v5304_v16 = vpack.c.bf16 %v1806_v37, %v1805_v34  ;;  %v2279_v24 = vld [vmem:[#allocation2 + $0x120] sm:$0xff] }
 0x290   :  { %v1819_v49 = vpack.c.bf16 %v1808_v39, %v1807_v38  ;;  %v1810_v55 = vld [vmem:[#allocation2 + $0xd0] sm:$0xff]  ;;  %v1813_v38 = vld [vmem:[#allocation2 + $0x100] sm:$0xff] }
 0x291   :  { %3992 = vmatmul.mubr.msk.bf16.gmra.mrb[8].mxu1 %vm49_vm1, %v5269_v59  ;;  %v1812_v56 = vld [vmem:[#allocation2 + $0xf0] sm:$0xff] }
 0x292   :  { %3995 = vmatprep.mubr.msk.bf16.mxu1 %vm49_vm1, %v5273_v30  ;;  %v1814_v48 = vld [vmem:[#allocation2 + $0x110] sm:$0xff]  ;;  %v2286_v23 = vpack.c.bf16 %v1813_v38, %v1812_v56 }
 0x293   :  { %v5317_v27 = vpack.c.bf16 %v1814_v48, %v1813_v38 }
 0x299   :  { %3996 = vmatmul.mubr.msk.bf16.gmra.mrb[12].mxu1 %vm49_vm1, %v5285_v14 }
 0x29a   :  { %4001 = vmatprep.mubr.msk.bf16.mxu1 %vm49_vm1, %v1815_v52  ;;  %v5309_v52 = vpack.c.bf16 %v1810_v55, %v1809_v51 }
 0x2a1   :  { %4002 = vmatmul.mubr.msk.bf16.vlgmr.msra.gmra.mrb[0].mxu1 %vm49_vm1, %v5291_v25 }
 0x2a2   :  { %4018 = vmatpush3.bf16.msra.mxu1 %v2149_v28  ;;  %4005 = vmatprep.mubr.msk.bf16.mxu1 %vm49_vm1, %v5294_v31  ;;  %v5311_v28 = vpack.c.bf16 %v1812_v56, %v1811_v3 }
 0x2a3   :  { %4411 = vmatprep.subr.msk.bf16.mxu1 %vm183_vm0, %v3600_v32 }
 0x2a9   :  { %4006 = vmatmul.mubr.msk.bf16.gmra.mrb[4].mxu1 %vm49_vm1, %v5304_v16 }
 0x2aa   :  { %4009 = vmatprep.mubr.msk.bf16.mxu1 %vm49_vm1, %v1819_v49  ;;  %v2114_v49 = vpack.c.bf16 %v5223_v18, %v2098_v36  ;;  %v2105_v36 = vld [vmem:[#allocation2 + $0x72] sm:$0xff] }
 0x2ab   :  { %v5341_v32 = vpack.c.bf16 %v2105_v36, %v5240_v26 }
 0x2ad   :  { %5758 = vst [vmem:[#allocation19_spill] sm:$0xff] %v5341_v32 }
 0x2b1   :  { %4010 = vmatmul.mubr.msk.bf16.gmra.mrb[8].mxu1 %vm49_vm1, %v5309_v52 }
 0x2b2   :  { %4013 = vmatprep.mubr.msk.bf16.mxu1 %vm49_vm1, %v5311_v28 }
 0x2b9   :  { %4014 = vmatmul.mubr.msk.bf16.gmra.mrb[12].mxu1 %vm49_vm1, %v5317_v27 }
 0x2ba   :  { %4019 = vmatprep.mubr.msk.bf16.mxu1 %vm49_vm1, %v2114_v49  ;;  %v2106_v49 = vld [vmem:[#allocation2 + $0xa2] sm:$0xff] }
 0x2bb   :  { %v2118_v33 = vpack.c.bf16 %v5242_v4, %v2106_v49  ;;  %v2113_v49 = vld [vmem:[#allocation2 + $0x112] sm:$0xff] }
 0x2bc   :  { %v5360_v15 = vpack.c.bf16 %v2113_v49, %v5259_v22 }
 0x2be   :  { %5760 = vst [vmem:[#allocation21_spill] sm:$0xff] %v5360_v15 }
 0x2c1   :  { %4020 = vmatmul.mubr.msk.bf16.vlgmr.msra.gmra.mrb[0].mxu1 %vm49_vm1, %v5325_v19 }
 0x2c2   :  { %4036 = vmatpush3.bf16.msra.mxu1 %v2315_v29  ;;  %4023 = vmatprep.mubr.msk.bf16.mxu1 %vm49_vm1, %v5330_v61  ;;  %v5349_v29 = vpack.c.bf16 %v5250_v41, %v5248_v35 }
 0x2c3   :  { %4412 = vmatprep.subr.msk.bf16.mxu1 %vm183_vm0, %v3609_v7  ;;  %v2285_v7 = vpack.c.bf16 %v1811_v3, %v1810_v55 }
 0x2c4   :  { %5759 = vst [vmem:[#allocation20_spill] sm:$0xff] %v5349_v29 }
 0x2c9   :  { %4024 = vmatmul.mubr.msk.bf16.gmra.mrb[4].mxu1 %vm49_vm1, %v5341_v32  ;;  %v2282_v32 = vpack.c.bf16 %v1805_v34, %v1804_v9  ;;  %v5762_v34 = vpack.c.bf16 %v5176_v12, %v5169_v44  ;;  %v5765_v44 = vpack.c.bf16 %v5204_v11, %v5202_v63  ;;  %v5766_v12 = vpack.c.bf16 %v5212_v8, %v5206_v10  ;;  %v3636_v63 = vld [vmem:[%s5710_s5 + $0xe] sm:$0x3]  ;;  %v2603_v8 = vld [vmem:[#allocation2 + $0x82] sm:$0xff] }
 0x2ca   :  { %4027 = vmatprep.mubr.msk.bf16.mxu1 %vm49_vm1, %v2118_v33  ;;  %v2280_v33 = vpack.c.bf16 %v1801_v21, %v5281_v17  ;;  %v2271_v17 = vld [vmem:[#allocation2 + $0x80] sm:$0xff]  ;;  %v5768_v11 = vpack.c.bf16 %v5233_v54, %v5231_v5  ;;  %v5769_v10 = vpack.c.bf16 %v5240_v26, %v5235_v58  ;;  %v5772_v5 = vpack.c.bf16 %v5259_v22, %v5257_v47 }
 0x2cb   :  { %v2283_v21 = vpack.c.bf16 %v2271_v17, %v1806_v37  ;;  %v5764_v37 = vpack.c.bf16 %v5188_v1, %v5186_v50  ;;  %v5767_v50 = vpack.c.bf16 %v5225_v62, %v5223_v18  ;;  %v5770_v18 = vpack.c.bf16 %v5248_v35, %v5242_v4  ;;  %v2611_v54 = vld [vmem:[#allocation2 + $0x122] sm:$0xff]  ;;  %v3645_v4 = vld [vmem:[%s5710_s5 + $0x10] sm:$0x3] }
 0x2cc   :  { %v5771_v62 = vpack.c.bf16 %v5252_v42, %v5250_v41  ;;  %v2619_v58 = vpack.c.bf16 %v2611_v54, %v2113_v49  ;;  %v2979_v26 = vsel %vm183_vm0, %v3636_v63, 0  ;;  %v2769_v35 = vld [vmem:[#allocation2 + $0x90] sm:$0xff]  ;;  %v3145_v22 = vsel %vm183_vm0, %v3645_v4, 0 }
 0x2cd   :  { %v2781_v41 = vpack.c.bf16 %v2769_v35, %v2271_v17  ;;  %v2777_v42 = vld [vmem:[#allocation2 + $0x130] sm:$0xff] }
 0x2ce   :  { %v2785_v47 = vpack.c.bf16 %v2777_v42, %v2279_v24 }
 0x2d1   :  { %4028 = vmatmul.mubr.msk.bf16.gmra.mrb[8].mxu1 %vm49_vm1, %v5349_v29  ;;  %v3618_v29 = vld [vmem:[%s5710_s5 + $0xa] sm:$0x3] }
 0x2d2   :  { %4031 = vmatprep.mubr.msk.bf16.mxu1 %vm49_vm1, %v5353_v57  ;;  %v2647_v9 = vsel %vm183_vm0, %v3618_v29, 0 }
 0x2d9   :  { %4032 = vmatmul.mubr.msk.bf16.gmra.mrb[12].mxu1 %vm49_vm1, %v5360_v15  ;;  %v2284_v15 = vpack.c.bf16 %v1809_v51, %v1808_v39 }
 0x2da   :  { %4037 = vmatprep.mubr.msk.bf16.mxu1 %vm49_vm1, %v2280_v33 }
 0x2e1   :  { %4038 = vmatmul.mubr.msk.bf16.vlgmr.msra.gmra.mrb[0].mxu1 %vm49_vm1, %v2281_v2  ;;  %v2287_v2 = vpack.c.bf16 %v2279_v24, %v1814_v48  ;;  %v5763_v48 = vpack.c.bf16 %v5180_v46, %v5178_v20  ;;  %v2445_v20 = vld [vmem:[#allocation2 + $0x121] sm:$0xff] }
 0x2e2   :  { %4054 = vmatpush3.bf16.msra.mxu1 %v2481_v6  ;;  %4041 = vmatprep.mubr.msk.bf16.mxu1 %vm49_vm1, %v2282_v32  ;;  %v5761_v6 = vpack.c.bf16 %v5167_v43, %v5165_v40  ;;  %v2437_v40 = vld [vmem:[#allocation2 + $0x81] sm:$0xff]  ;;  %v2453_v46 = vpack.c.bf16 %v2445_v20, %v5279_v45  ;;  %v2935_v45 = vld [vmem:[#allocation2 + $0x91] sm:$0xff] }
 0x2e3   :  { %4413 = vmatprep.subr.msk.bf16.mxu1 %vm183_vm0, %v3618_v29  ;;  %v2449_v43 = vpack.c.bf16 %v2437_v40, %v5221_v60  ;;  %v2615_v60 = vpack.c.bf16 %v2603_v8, %v2105_v36 }
 0x2e9   :  { %4042 = vmatmul.mubr.msk.bf16.gmra.mrb[4].mxu1 %vm49_vm1, %v2283_v21 }
 0x2ea   :  { %4045 = vmatprep.mubr.msk.bf16.mxu1 %vm49_vm1, %v2284_v15  ;;  %v3627_v15 = vld [vmem:[%s5710_s5 + $0xc] sm:$0x3] }
 0x2eb   :  { %v2813_v1 = vsel %vm183_vm0, %v3627_v15, 0 }
 0x2f1   :  { %4046 = vmatmul.mubr.msk.bf16.gmra.mrb[8].mxu1 %vm49_vm1, %v2285_v7 }
 0x2f2   :  { %4049 = vmatprep.mubr.msk.bf16.mxu1 %vm49_vm1, %v2286_v23 }
 0x2f9   :  { %4050 = vmatmul.mubr.msk.bf16.gmra.mrb[12].mxu1 %vm49_vm1, %v2287_v2 }
 0x2fa   :  { %4055 = vmatprep.mubr.msk.bf16.mxu1 %vm49_vm1, %v5761_v6 }
 0x301   :  { %4056 = vmatmul.mubr.msk.bf16.vlgmr.msra.gmra.mrb[0].mxu1 %vm49_vm1, %v5762_v34 }
 0x302   :  { %4072 = vmatpush3.bf16.msra.mxu1 %v2647_v9  ;;  %4059 = vmatprep.mubr.msk.bf16.mxu1 %vm49_vm1, %v5763_v48 }
 0x303   :  { %4414 = vmatprep.subr.msk.bf16.mxu1 %vm183_vm0, %v3627_v15 }
 0x309   :  { %4060 = vmatmul.mubr.msk.bf16.gmra.mrb[4].mxu1 %vm49_vm1, %v2449_v43 }
 0x30a   :  { %4063 = vmatprep.mubr.msk.bf16.mxu1 %vm49_vm1, %v5764_v37 }
 0x311   :  { %4064 = vmatmul.mubr.msk.bf16.gmra.mrb[8].mxu1 %vm49_vm1, %v5765_v44 }
 0x312   :  { %4067 = vmatprep.mubr.msk.bf16.mxu1 %vm49_vm1, %v5766_v12 }
 0x319   :  { %4068 = vmatmul.mubr.msk.bf16.gmra.mrb[12].mxu1 %vm49_vm1, %v2453_v46 }
 0x31a   :  { %4073 = vmatprep.mubr.msk.bf16.mxu1 %vm49_vm1, %v5767_v50 }
 0x321   :  { %4074 = vmatmul.mubr.msk.bf16.vlgmr.msra.gmra.mrb[0].mxu1 %vm49_vm1, %v5768_v11 }
 0x322   :  { %4090 = vmatpush3.bf16.msra.mxu1 %v2813_v1  ;;  %4077 = vmatprep.mubr.msk.bf16.mxu1 %vm49_vm1, %v5769_v10 }
 0x323   :  { %4415 = vmatprep.subr.msk.bf16.mxu1 %vm183_vm0, %v3636_v63 }
 0x329   :  { %4078 = vmatmul.mubr.msk.bf16.gmra.mrb[4].mxu1 %vm49_vm1, %v2615_v60 }
 0x32a   :  { %4081 = vmatprep.mubr.msk.bf16.mxu1 %vm49_vm1, %v5770_v18 }
 0x331   :  { %4082 = vmatmul.mubr.msk.bf16.gmra.mrb[8].mxu1 %vm49_vm1, %v5771_v62 }
 0x332   :  { %4085 = vmatprep.mubr.msk.bf16.mxu1 %vm49_vm1, %v5772_v5 }
 0x339   :  { %4086 = vmatmul.mubr.msk.bf16.gmra.mrb[12].mxu1 %vm49_vm1, %v2619_v58 }
 0x33a   :  { %4091 = vmatprep.mubr.msk.bf16.mxu1 %vm49_vm1, %v5291_v25  ;;  %v2947_v25 = vpack.c.bf16 %v2935_v45, %v2437_v40 }
 0x341   :  { %4092 = vmatmul.mubr.msk.bf16.vlgmr.msra.gmra.mrb[0].mxu1 %vm49_vm1, %v5294_v31 }
 0x342   :  { %4108 = vmatpush3.bf16.msra.mxu1 %v2979_v26  ;;  %4095 = vmatprep.mubr.msk.bf16.mxu1 %vm49_vm1, %v5304_v16 }
 0x343   :  { %4416 = vmatprep.subr.msk.bf16.mxu1 %vm183_vm0, %v3645_v4 }
 0x349   :  { %4096 = vmatmul.mubr.msk.bf16.gmra.mrb[4].mxu1 %vm49_vm1, %v2781_v41 }
 0x34a   :  { %4099 = vmatprep.mubr.msk.bf16.mxu1 %vm49_vm1, %v5309_v52 }
 0x351   :  { %4100 = vmatmul.mubr.msk.bf16.gmra.mrb[8].mxu1 %vm49_vm1, %v5311_v28 }
 0x352   :  { %4103 = vmatprep.mubr.msk.bf16.mxu1 %vm49_vm1, %v5317_v27 }
 0x359   :  { %4104 = vmatmul.mubr.msk.bf16.gmra.mrb[12].mxu1 %vm49_vm1, %v2785_v47 }
 0x35a   :  { %4109 = vmatprep.mubr.msk.bf16.mxu1 %vm49_vm1, %v5174_v0  ;;  %v2943_v0 = vld [vmem:[#allocation2 + $0x131] sm:$0xff] }
 0x35b   :  { %v2951_v27 = vpack.c.bf16 %v2943_v0, %v2445_v20 }
 0x361   :  { %4110 = vmatmul.mubr.msk.bf16.vlgmr.msra.gmra.mrb[0].mxu1 %vm49_vm1, %v5200_v13  ;;  %v5773_v13 = vld [vmem:[#allocation19_spill] sm:$0xff] }
 0x362   :  { %4126 = vmatpush3.bf16.msra.mxu1 %v3145_v22  ;;  %4113 = vmatprep.mubr.msk.bf16.mxu1 %vm49_vm1, %v5229_v53  ;;  %v3101_v53 = vld [vmem:[#allocation2 + $0x92] sm:$0xff] }
 0x369   :  { %4114 = vmatmul.mubr.msk.bf16.gmra.mrb[4].mxu1 %vm49_vm1, %v2947_v25 }
 0x36a   :  { %4117 = vmatprep.mubr.msk.bf16.mxu1 %vm49_vm1, %v5269_v59  ;;  %v3113_v59 = vpack.c.bf16 %v3101_v53, %v2603_v8 }
 0x371   :  { %4118 = vmatmul.mubr.msk.bf16.gmra.mrb[8].mxu1 %vm49_vm1, %v5273_v30  ;;  %v5774_v30 = vld [vmem:[#allocation20_spill] sm:$0xff] }
 0x372   :  { %4121 = vmatprep.mubr.msk.bf16.mxu1 %vm49_vm1, %v5285_v14  ;;  %v5775_v14 = vld [vmem:[#allocation21_spill] sm:$0xff] }
 0x379   :  { %4122 = vmatmul.mubr.msk.bf16.gmra.mrb[12].mxu1 %vm49_vm1, %v2951_v27 }
 0x37a   :  { %4127 = vmatprep.mubr.msk.bf16.mxu1 %vm49_vm1, %v5325_v19  ;;  %v3109_v19 = vld [vmem:[#allocation2 + $0x132] sm:$0xff] }
 0x37b   :  { %v3117_v31 = vpack.c.bf16 %v3109_v19, %v2611_v54 }
 0x381   :  { %4128 = vmatmul.mubr.msk.bf16.vlgmr.msra.gmra.mrb[0].mxu1 %vm49_vm1, %v5330_v61  ;;  %v3654_v61 = vld [vmem:[%s5713_s6] ss:$0 sm:$0xff] }
 0x382   :  { %4131 = vmatprep.mubr.msk.bf16.mxu1 %vm49_vm1, %v5773_v13 }
 0x389   :  { %4132 = vmatmul.mubr.msk.bf16.gmra.mrb[4].mxu1 %vm49_vm1, %v3113_v59 }
 0x38a   :  { %4135 = vmatprep.mubr.msk.bf16.mxu1 %vm49_vm1, %v5774_v30 }
 0x391   :  { %4136 = vmatmul.mubr.msk.bf16.gmra.mrb[8].mxu1 %vm49_vm1, %v5353_v57 }
 0x392   :  { %4139 = vmatprep.mubr.msk.bf16.mxu1 %vm49_vm1, %v5775_v14 }
 0x399   :  { %4140 = vmatmul.mubr.msk.bf16.gmra.mrb[12].mxu1 %vm49_vm1, %v3117_v31 }
 0x454   :  { %v4129_v39 = vpop.f32.mrb[0].mxu1 }
 0x455   :  { %v3181_v16 = vpop.f32.mrb[1].mxu1  ;;  %v5495_v56 = vadd.f32 %v4129_v39, %v3654_v61 }
 0x456   :  { %v5493_v51 = vadd.f32 %v3654_v61, %v3181_v16  ;;  %v4130_v55 = vpop.f32.mrb[2].mxu1 }
 0x457   :  { %v3184_v3 = vpop.f32.mrb[3].mxu1  ;;  %v5501_v28 = vadd.f32 %v4130_v55, %v3654_v61  ;;  %v3286_v32 = vsel %vm49_vm1, %v5495_v56, 0.0 }
 0x458   :  { %v5497_v57 = vadd.f32 %v3654_v61, %v3184_v3  ;;  %v3283_v52 = vsel %vm49_vm1, %v5493_v51, 0.0 }
 0x459   :  { %v3288_v17 = vsel %vm49_vm1, %v5501_v28, 0.0 }
 0x45a   :  { %v3284_v38 = vsel %vm49_vm1, %v5497_v57, 0.0 }
 0x45b   :  { %v3285_v36 = vadd.f32 %v3284_v38, %v3283_v52 }
 0x45c   :  { %v4133_v29 = vpop.f32.mrb[4].mxu1 }
 0x45d   :  { %v3287_v49 = vadd.f32 %v3286_v32, %v3285_v36  ;;  %v3197_v33 = vpop.f32.mrb[5].mxu1  ;;  %v3273_v2 = vadd.f32 %v4133_v29, %v3654_v61 }
 0x45e   :  { %v3271_v21 = vadd.f32 %v3654_v61, %v3197_v33  ;;  %v4134_v7 = vpop.f32.mrb[6].mxu1 }
 0x45f   :  { %v3289_v23 = vadd.f32 %v3288_v17, %v3287_v49  ;;  %v3200_v24 = vpop.f32.mrb[7].mxu1  ;;  %v3274_v34 = vadd.f32 %v4134_v7, %v3654_v61  ;;  %v3294_v43 = vsel %vm49_vm1, %v3273_v2, 0.0 }
 0x460   :  { %v3290_v6 = vsel %vm49_vm1, %v3271_v21, 0.0  ;;  %v3272_v9 = vadd.f32 %v3654_v61, %v3200_v24 }
 0x461   :  { %v3291_v15 = vadd.f32 %v3290_v6, %v3289_v23  ;;  %v3296_v20 = vsel %vm49_vm1, %v3274_v34, 0.0 }
 0x462   :  { %v3292_v48 = vsel %vm49_vm1, %v3272_v9, 0.0 }
 0x463   :  { %v3293_v40 = vadd.f32 %v3292_v48, %v3291_v15 }
 0x464   :  { %v4137_v37 = vpop.f32.mrb[8].mxu1 }
 0x465   :  { %v3295_v44 = vadd.f32 %v3294_v43, %v3293_v40  ;;  %v3213_v12 = vpop.f32.mrb[9].mxu1  ;;  %v3277_v11 = vadd.f32 %v4137_v37, %v3654_v61 }
 0x466   :  { %v3275_v46 = vadd.f32 %v3654_v61, %v3213_v12  ;;  %v4138_v50 = vpop.f32.mrb[10].mxu1 }
 0x467   :  { %v3297_v1 = vadd.f32 %v3296_v20, %v3295_v44  ;;  %v3216_v63 = vpop.f32.mrb[11].mxu1  ;;  %v3278_v18 = vadd.f32 %v4138_v50, %v3654_v61  ;;  %v3302_v54 = vsel %vm49_vm1, %v3277_v11, 0.0 }
 0x468   :  { %v3298_v10 = vsel %vm49_vm1, %v3275_v46, 0.0  ;;  %v3276_v8 = vadd.f32 %v3654_v61, %v3216_v63 }
 0x469   :  { %v3299_v60 = vadd.f32 %v3298_v10, %v3297_v1  ;;  %v3304_v35 = vsel %vm49_vm1, %v3278_v18, 0.0 }
 0x46a   :  { %v3300_v62 = vsel %vm49_vm1, %v3276_v8, 0.0 }
 0x46b   :  { %v3301_v5 = vadd.f32 %v3300_v62, %v3299_v60 }
 0x46c   :  { %v4141_v58 = vpop.f32.mrb[12].mxu1 }
 0x46d   :  { %v3303_v26 = vadd.f32 %v3302_v54, %v3301_v5  ;;  %v3229_v4 = vpop.f32.mrb[13].mxu1  ;;  %v3281_v45 = vadd.f32 %v4141_v58, %v3654_v61 }
 0x46e   :  { %v3279_v41 = vadd.f32 %v3654_v61, %v3229_v4  ;;  %v4142_v42 = vpop.f32.mrb[14].mxu1 }
 0x46f   :  { %v3305_v47 = vadd.f32 %v3304_v35, %v3303_v26  ;;  %v3232_v22 = vpop.f32.mrb[15].mxu1  ;;  %v3282_v13 = vadd.f32 %v4142_v42, %v3654_v61  ;;  %v3310_v30 = vsel %vm49_vm1, %v3281_v45, 0.0 }
 0x470   :  { %v3306_v25 = vsel %vm49_vm1, %v3279_v41, 0.0  ;;  %v3280_v0 = vadd.f32 %v3654_v61, %v3232_v22 }
 0x471   :  { %v3307_v27 = vadd.f32 %v3306_v25, %v3305_v47  ;;  %v3312_v19 = vsel %vm49_vm1, %v3282_v13, 0.0 }
 0x472   :  { %v3308_v53 = vsel %vm49_vm1, %v3280_v0, 0.0 }
 0x473   :  { %v3309_v59 = vadd.f32 %v3308_v53, %v3307_v27 }
 0x475   :  { %v3311_v14 = vadd.f32 %v3310_v30, %v3309_v59 }
 0x477   :  { %v3313_v31 = vadd.f32 %v3312_v19, %v3311_v14 }
 0x479   :  { %v3314_v39 = vrot.slane %v3313_v31, 4 }
 0x47b   :  { %v3315_v16 = vadd.f32 %v3314_v39, %v3313_v31 }
 0x47d   :  { %v3316_v55 = vrot.slane %v3315_v16, 2 }
 0x47f   :  { %v3317_v3 = vadd.f32 %v3316_v55, %v3315_v16 }
 0x481   :  { %v3318_v52 = vrot.slane %v3317_v3, 1 }
 0x483   :  { %v3319_v38 = vadd.f32 %v3318_v52, %v3317_v3 }
 0x485   :  { %v3320_v36 = vmul.f32 0.0078125, %v3319_v38 }
 0x487   :  { %v5522_v32 = vsub.f32 %v5493_v51, %v3320_v36  ;;  %v5525_v61 = vsub.f32 %v5497_v57, %v3320_v36  ;;  %v5528_v29 = vsub.f32 %v5495_v56, %v3320_v36  ;;  %v5531_v49 = vsub.f32 %v5501_v28, %v3320_v36 }
 0x488   :  { %v5533_v33 = vsub.f32 %v3271_v21, %v3320_v36  ;;  %v5535_v17 = vsub.f32 %v3272_v9, %v3320_v36  ;;  %v5537_v7 = vsub.f32 %v3273_v2, %v3320_v36  ;;  %v5539_v23 = vsub.f32 %v3274_v34, %v3320_v36 }
 0x489   :  { %v5541_v24 = vsub.f32 %v3275_v46, %v3320_v36  ;;  %v5543_v51 = vsub.f32 %v3276_v8, %v3320_v36  ;;  %v5545_v57 = vsub.f32 %v3277_v11, %v3320_v36  ;;  %v5547_v6 = vsub.f32 %v3278_v18, %v3320_v36 }
 0x48a   :  { %v5549_v56 = vsub.f32 %v3279_v41, %v3320_v36  ;;  %v5551_v28 = vsub.f32 %v3280_v0, %v3320_v36  ;;  %v5553_v21 = vsub.f32 %v3281_v45, %v3320_v36  ;;  %v5555_v9 = vsub.f32 %v3282_v13, %v3320_v36 }
 0x48b   :  { %v3337_v2 = vmul.f32 %v5522_v32, %v5522_v32  ;;  %v3338_v15 = vmul.f32 %v5525_v61, %v5525_v61  ;;  %v3339_v34 = vmul.f32 %v5528_v29, %v5528_v29  ;;  %v3340_v48 = vmul.f32 %v5531_v49, %v5531_v49 }
 0x48c   :  { %v3341_v44 = vmul.f32 %v5533_v33, %v5533_v33  ;;  %v3342_v46 = vmul.f32 %v5535_v17, %v5535_v17  ;;  %v3343_v63 = vmul.f32 %v5537_v7, %v5537_v7  ;;  %v3344_v8 = vmul.f32 %v5539_v23, %v5539_v23 }
 0x48d   :  { %v3353_v40 = vsel %vm49_vm1, %v3337_v2, 0.0  ;;  %v3354_v43 = vsel %vm49_vm1, %v3338_v15, 0.0  ;;  %v3356_v12 = vsel %vm49_vm1, %v3339_v34, 0.0  ;;  %v3358_v50 = vsel %vm49_vm1, %v3340_v48, 0.0 }
 0x48e   :  { %v3355_v37 = vadd.f32 %v3354_v43, %v3353_v40  ;;  %v3360_v11 = vsel %vm49_vm1, %v3341_v44, 0.0  ;;  %v3362_v60 = vsel %vm49_vm1, %v3342_v46, 0.0  ;;  %v3345_v62 = vmul.f32 %v5541_v24, %v5541_v24 }
 0x48f   :  { %v3364_v5 = vsel %vm49_vm1, %v3343_v63, 0.0  ;;  %v3346_v58 = vmul.f32 %v5543_v51, %v5543_v51  ;;  %v3366_v26 = vsel %vm49_vm1, %v3344_v8, 0.0  ;;  %v3347_v35 = vmul.f32 %v5545_v57, %v5545_v57  ;;  %v3655_v8 = vld [vmem:[%s5714_s7] ss:$0 sm:$0xff] }
 0x490   :  { %v3357_v20 = vadd.f32 %v3356_v12, %v3355_v37  ;;  %v3368_v41 = vsel %vm49_vm1, %v3345_v62, 0.0  ;;  %v3348_v47 = vmul.f32 %v5547_v6, %v5547_v6  ;;  %v3349_v25 = vmul.f32 %v5549_v56, %v5549_v56 }
 0x491   :  { %v3370_v22 = vsel %vm49_vm1, %v3346_v58, 0.0  ;;  %v3372_v0 = vsel %vm49_vm1, %v3347_v35, 0.0  ;;  %v3350_v13 = vmul.f32 %v5551_v28, %v5551_v28  ;;  %v3351_v30 = vmul.f32 %v5553_v21, %v5553_v21 }
 0x492   :  { %v3359_v1 = vadd.f32 %v3358_v50, %v3357_v20  ;;  %v3374_v53 = vsel %vm49_vm1, %v3348_v47, 0.0  ;;  %v3376_v14 = vsel %vm49_vm1, %v3349_v25, 0.0  ;;  %v3352_v31 = vmul.f32 %v5555_v9, %v5555_v9 }
 0x493   :  { %v3378_v39 = vsel %vm49_vm1, %v3350_v13, 0.0  ;;  %v3380_v55 = vsel %vm49_vm1, %v3351_v30, 0.0 }
 0x494   :  { %v3361_v10 = vadd.f32 %v3360_v11, %v3359_v1  ;;  %v3382_v52 = vsel %vm49_vm1, %v3352_v31, 0.0 }
 0x496   :  { %v3363_v18 = vadd.f32 %v3362_v60, %v3361_v10 }
 0x498   :  { %v3365_v54 = vadd.f32 %v3364_v5, %v3363_v18 }
 0x49a   :  { %v3367_v4 = vadd.f32 %v3366_v26, %v3365_v54 }
 0x49c   :  { %v3369_v42 = vadd.f32 %v3368_v41, %v3367_v4 }
 0x49e   :  { %v3371_v45 = vadd.f32 %v3370_v22, %v3369_v42 }
 0x4a0   :  { %v3373_v27 = vadd.f32 %v3372_v0, %v3371_v45 }
 0x4a2   :  { %v3375_v59 = vadd.f32 %v3374_v53, %v3373_v27 }
 0x4a4   :  { %v3377_v19 = vadd.f32 %v3376_v14, %v3375_v59 }
 0x4a6   :  { %v3379_v16 = vadd.f32 %v3378_v39, %v3377_v19 }
 0x4a8   :  { %v3381_v3 = vadd.f32 %v3380_v55, %v3379_v16  ;;  %v5776_v16 = vld [vmem:[#allocation3_spill] sm:$0xff] }
 0x4aa   :  { %v3383_v38 = vadd.f32 %v3382_v52, %v3381_v3  ;;  %v5777_v3 = vld [vmem:[#allocation4_spill] sm:$0xff] }
 0x4ac   :  { %v3384_v36 = vrot.slane %v3383_v38, 4 }
 0x4ae   :  { %v3385_v2 = vadd.f32 %v3384_v36, %v3383_v38  ;;  %v5778_v38 = vld [vmem:[#allocation5_spill] sm:$0xff] }
 0x4b0   :  { %v3386_v15 = vrot.slane %v3385_v2, 2 }
 0x4b2   :  { %v3387_v34 = vadd.f32 %v3386_v15, %v3385_v2  ;;  %v5779_v2 = vld [vmem:[#allocation6_spill] sm:$0xff] }
 0x4b4   :  { %v3388_v48 = vrot.slane %v3387_v34, 1 }
 0x4b6   :  { %v3389_v40 = vadd.f32 %v3388_v48, %v3387_v34  ;;  %v5780_v34 = vld [vmem:[#allocation7_spill] sm:$0xff] }
 0x4b8   :  { %v3390_v43 = vmul.f32 0.0078125, %v3389_v40  ;;  %v5781_v40 = vld [vmem:[#allocation8_spill] sm:$0xff] }
 0x4ba   :  { %v3391_v37 = vadd.f32 1e-05, %v3390_v43 }
 0x4bc   :  { %4420 = vrsqrt.f32 %v3391_v37  ;;  %v5782_v37 = vld [vmem:[#allocation9_spill] sm:$0xff] }
 0x4c6   :  { %v4421_v44 = vpop.eup %4420 }
 0x4c7   :  { %v3393_v12 = vmul.f32 %v4421_v44, %v5522_v32  ;;  %v3394_v20 = vmul.f32 %v4421_v44, %v5525_v61  ;;  %v3395_v46 = vmul.f32 %v4421_v44, %v5528_v29  ;;  %v3396_v50 = vmul.f32 %v4421_v44, %v5531_v49 }
 0x4c8   :  { %v3397_v1 = vmul.f32 %v4421_v44, %v5533_v33  ;;  %v3398_v63 = vmul.f32 %v4421_v44, %v5535_v17  ;;  %v3399_v11 = vmul.f32 %v4421_v44, %v5537_v7  ;;  %v3400_v10 = vmul.f32 %v4421_v44, %v5539_v23 }
 0x4c9   :  { %v3401_v32 = vmul.f32 %v4421_v44, %v5541_v24  ;;  %v3402_v61 = vmul.f32 %v4421_v44, %v5543_v51  ;;  %v3403_v29 = vmul.f32 %v4421_v44, %v5545_v57  ;;  %v3404_v49 = vmul.f32 %v4421_v44, %v5547_v6  ;;  %v3656_v57 = vld [vmem:[%s5715_s8] ss:$0 sm:$0xff] }
 0x4ca   :  { %v3405_v33 = vmul.f32 %v4421_v44, %v5549_v56  ;;  %v3406_v17 = vmul.f32 %v4421_v44, %v5551_v28  ;;  %v3407_v7 = vmul.f32 %v4421_v44, %v5553_v21  ;;  %v3408_v23 = vmul.f32 %v4421_v44, %v5555_v9 }
 0x4cb   :  { %v3416_v60 = vmul.f32 %v3655_v8, %v3393_v12  ;;  %v3417_v18 = vmul.f32 %v3655_v8, %v3394_v20  ;;  %v3418_v62 = vmul.f32 %v3655_v8, %v3395_v46  ;;  %v3419_v5 = vmul.f32 %v3655_v8, %v3396_v50  ;;  %v5783_v12 = vld [vmem:[#allocation17_spill] sm:$0xff]  ;;  %v5784_v46 = vld [vmem:[#allocation10_spill] sm:$0xff] }
 0x4cc   :  { %v3420_v54 = vmul.f32 %v3655_v8, %v3397_v1  ;;  %v3421_v24 = vmul.f32 %v3655_v8, %v3398_v63  ;;  %v3422_v58 = vmul.f32 %v3655_v8, %v3399_v11  ;;  %v3423_v51 = vmul.f32 %v3655_v8, %v3400_v10  ;;  %v5785_v1 = vld [vmem:[#allocation11_spill] sm:$0xff]  ;;  %v5786_v11 = vld [vmem:[#allocation12_spill] sm:$0xff] }
 0x4cd   :  { %v3424_v6 = vmul.f32 %v3655_v8, %v3401_v32  ;;  %v3425_v56 = vmul.f32 %v3655_v8, %v3402_v61  ;;  %v3426_v26 = vmul.f32 %v3655_v8, %v3403_v29  ;;  %v3427_v28 = vmul.f32 %v3655_v8, %v3404_v49  ;;  %v5788_v61 = vld [vmem:[#allocation14_spill] sm:$0xff]  ;;  %v5789_v49 = vld [vmem:[#allocation15_spill] sm:$0xff] }
 0x4ce   :  { %v3428_v4 = vmul.f32 %v3655_v8, %v3405_v33  ;;  %v3429_v21 = vmul.f32 %v3655_v8, %v3406_v17  ;;  %v3430_v35 = vmul.f32 %v3655_v8, %v3407_v7  ;;  %v3431_v9 = vmul.f32 %v3655_v8, %v3408_v23  ;;  %v5787_v8 = vld [vmem:[#allocation13_spill] sm:$0xff]  ;;  %v5790_v17 = vld [vmem:[#allocation16_spill] sm:$0xff]  ;;  %v5791_v23 = vld [vmem:[#allocation18_spill] sm:$0xff] }
 0x4cf   :  { %v3439_v41 = vadd.f32 %v3656_v57, %v3416_v60  ;;  %v3440_v42 = vadd.f32 %v3656_v57, %v3417_v18  ;;  %v3441_v47 = vadd.f32 %v3656_v57, %v3418_v62  ;;  %v3442_v22 = vadd.f32 %v3656_v57, %v3419_v5 }
 0x4d0   :  { %v3443_v45 = vadd.f32 %v3656_v57, %v3420_v54  ;;  %v3444_v25 = vadd.f32 %v3656_v57, %v3421_v24  ;;  %v3445_v0 = vadd.f32 %v3656_v57, %v3422_v58  ;;  %v3446_v27 = vadd.f32 %v3656_v57, %v3423_v51 }
 0x4d1   :  { %v3447_v13 = vadd.f32 %v3656_v57, %v3424_v6  ;;  %v3448_v53 = vadd.f32 %v3656_v57, %v3425_v56  ;;  %v3449_v59 = vadd.f32 %v3656_v57, %v3426_v26  ;;  %v3450_v30 = vadd.f32 %v3656_v57, %v3427_v28 }
 0x4d2   :  { %v3451_v14 = vadd.f32 %v3656_v57, %v3428_v4  ;;  %v3452_v19 = vadd.f32 %v3656_v57, %v3429_v21  ;;  %v3453_v31 = vadd.f32 %v3656_v57, %v3430_v35  ;;  %v3454_v39 = vadd.f32 %v3656_v57, %v3431_v9 }
 0x4d3   :  { %v3455_v55 = vadd.f32 %v3439_v41, %v5776_v16  ;;  %v3456_v52 = vadd.f32 %v3440_v42, %v5777_v3  ;;  %v3457_v36 = vadd.f32 %v3441_v47, %v5778_v38  ;;  %v3458_v15 = vadd.f32 %v3442_v22, %v5779_v2 }
 0x4d4   :  { %v3459_v48 = vadd.f32 %v3443_v45, %v5780_v34  ;;  %v3460_v43 = vadd.f32 %v3444_v25, %v5781_v40  ;;  %v3461_v44 = vadd.f32 %v3445_v0, %v5782_v37  ;;  %v3462_v20 = vadd.f32 %v3446_v27, %v5783_v12 }
 0x4d5   :  { %v3463_v50 = vadd.f32 %v3447_v13, %v5784_v46  ;;  %v3464_v63 = vadd.f32 %v3448_v53, %v5785_v1  ;;  %v3465_v10 = vadd.f32 %v3449_v59, %v5786_v11  ;;  %v3466_v32 = vadd.f32 %v3450_v30, %v5787_v8  ;;  %3471 = vst.msk [vmem:[%s5716_s9] sm:$0xff] %vm49_vm1, %v3455_v55 }
 0x4d6   :  { %3472 = vst.msk [vmem:[%s5716_s9 + $0x8] sm:$0xff] %vm49_vm1, %v3456_v52  ;;  %3473 = vst.msk [vmem:[%s5716_s9 + $0x10] sm:$0xff] %vm49_vm1, %v3457_v36  ;;  %v3467_v29 = vadd.f32 %v3451_v14, %v5788_v61  ;;  %v3468_v33 = vadd.f32 %v3452_v19, %v5789_v49  ;;  %v3469_v7 = vadd.f32 %v3453_v31, %v5790_v17 }
 0x4d7   :  { %3474 = vst.msk [vmem:[%s5716_s9 + $0x18] sm:$0xff] %vm49_vm1, %v3458_v15  ;;  %v3470_v60 = vadd.f32 %v3454_v39, %v5791_v23  ;;  %3475 = vst.msk [vmem:[%s5716_s9 + $0x20] sm:$0xff] %vm49_vm1, %v3459_v48 }
 0x4d8   :  { %3476 = vst.msk [vmem:[%s5716_s9 + $0x28] sm:$0xff] %vm49_vm1, %v3460_v43  ;;  %3477 = vst.msk [vmem:[%s5716_s9 + $0x30] sm:$0xff] %vm49_vm1, %v3461_v44 }
 0x4d9   :  { %3478 = vst.msk [vmem:[%s5716_s9 + $0x38] sm:$0xff] %vm49_vm1, %v3462_v20  ;;  %3479 = vst.msk [vmem:[%s5716_s9 + $0x40] sm:$0xff] %vm49_vm1, %v3463_v50 }
 0x4da   :  { %3480 = vst.msk [vmem:[%s5716_s9 + $0x48] sm:$0xff] %vm49_vm1, %v3464_v63  ;;  %3481 = vst.msk [vmem:[%s5716_s9 + $0x50] sm:$0xff] %vm49_vm1, %v3465_v10 }
 0x4db   :  { %3482 = vst.msk [vmem:[%s5716_s9 + $0x58] sm:$0xff] %vm49_vm1, %v3466_v32  ;;  %3483 = vst.msk [vmem:[%s5716_s9 + $0x60] sm:$0xff] %vm49_vm1, %v3467_v29 }
 0x4dc   :  { %3484 = vst.msk [vmem:[%s5716_s9 + $0x68] sm:$0xff] %vm49_vm1, %v3468_v33  ;;  %3485 = vst.msk [vmem:[%s5716_s9 + $0x70] sm:$0xff] %vm49_vm1, %v3469_v7 }
 0x4dd   :  { %3486 = vst.msk [vmem:[%s5716_s9 + $0x78] sm:$0xff] %vm49_vm1, %v3470_v60 }

// kernel: _lambda_.15
= control target key start
LH: loop header
LB: loop body
LE: loop exit
PB: predicated region body
PF: predicated region fallthrough
CT: control target
= control target key end

     0   :  { %v564_v0 = vmov 0.0   ;;  %vm565_vm0 = vmmov 0   ;;  %vm51_vm1 = vcmask 1041409   ;;  %vm78_vm2 = vcmask 523264   ;;  %s715_s1 = inlined_call_operand.vmem [shape: bf16[4,64,32], index: 1, kind: input, shape index: {}]   ;;  %s716_s0 = inlined_call_operand.vmem [shape: f32[2,2,2,64], index: 0, kind: input, shape index: {}]   ;;  %s717_s2 = inlined_call_operand.vmem [shape: f32[1,32], index: 2, kind: input, shape index: {}]   ;;  %s718_s3 = inlined_call_operand.vmem [shape: f32[1,32], index: 3, kind: input, shape index: {}]   ;;  %s719_s4 = inlined_call_operand.vmem [shape: f32[1,32], index: 4, kind: input, shape index: {}]   ;;  %s720_s5 = inlined_call_operand.vmem [shape: f32[2,32], index: 5, kind: output, shape index: {}]  }
   0x1   :  { %496 = vmatprep.subr.bf16.mxu0 %v564_v0  ;;  %508 = vmatprep.subr.bf16.mxu1 %v564_v0  ;;  %v546_v1 = vld [vmem:[%s715_s1 + $0x20] sm:$0xff]   ;;  %v548_v3 = vld [vmem:[%s715_s1 + $0x28] sm:$0xff]   ;;  %v550_v5 = vld [vmem:[%s715_s1 + $0x30] sm:$0xff]   ;;  %vm381_vm3 = vcmask 254976  }
   0x2   :  { %v547_v2 = vld [vmem:[%s715_s1] sm:$0xff]   ;;  %504 = vmatprep.mubr.msk.bf16.mxu0 %vm565_vm0, %v564_v0  ;;  %516 = vmatprep.mubr.msk.bf16.mxu1 %vm565_vm0, %v564_v0  ;;  %v549_v4 = vld [vmem:[%s715_s1 + $0x8] sm:$0xff]   ;;  %v551_v6 = vld [vmem:[%s715_s1 + $0x10] sm:$0xff]  }
   0x3   :  { %497 = vmatpush3.bf16.msra.mxu0 %v546_v1  ;;  %509 = vmatpush3.bf16.msra.mxu1 %v547_v2  ;;  %v33_v7 = vld [vmem:[%s716_s0 + $0x1] sm:$0x1]  ;;  %v34_v8 = vld [vmem:[%s716_s0 + $0x5] sm:$0x1]  ;;  %v21_v9 = vld [vmem:[%s716_s0] sm:$0x1] }
   0x4   :  { %498 = vmatprep.subr.bf16.mxu0 %v564_v0  ;;  %510 = vmatprep.subr.bf16.mxu1 %v564_v0  ;;  %v35_v10 = vpack.c.bf16 %v33_v7, %v33_v7  ;;  %v36_v11 = vpack.c.bf16 %v34_v8, %v34_v8  ;;  %v22_v12 = vld [vmem:[%s716_s0 + $0x4] sm:$0x1]  ;;  %v23_v13 = vpack.c.bf16 %v21_v9, %v21_v9  ;;  %v552_v14 = vld [vmem:[%s715_s1 + $0x38] sm:$0xff]   ;;  %v443_v29 = vld [vmem:[%s716_s0 + $0x2] sm:$0x1] }
   0x5   :  { %v24_v15 = vpack.c.bf16 %v22_v12, %v22_v12  ;;  %v553_v16 = vld [vmem:[%s715_s1 + $0x18] sm:$0xff]   ;;  %v554_v24 = vld [vmem:[%s715_s1 + $0x40] sm:$0xff]   ;;  %v556_v34 = vld [vmem:[%s715_s1 + $0x48] sm:$0xff]   ;;  %v199_v35 = vpack.c.bf16 %v443_v29, %v443_v29 }
   0x6   :  { %v48_v17 = vunpack.c.l.b16 %v35_v10  ;;  %v49_v18 = vunpack.c.l.b16 %v36_v11  ;;  %v124_v19 = vunpack.c.l.b16 %v23_v13  ;;  %v555_v27 = vld [vmem:[%s715_s1 + $0x60] sm:$0xff]   ;;  %v557_v37 = vld [vmem:[%s715_s1 + $0x68] sm:$0xff]   ;;  %v558_v41 = vld [vmem:[%s715_s1 + $0x50] sm:$0xff]  }
   0x7   :  { %499 = vmatpush3.bf16.msra.mxu0 %v548_v3  ;;  %511 = vmatpush3.bf16.msra.mxu1 %v549_v4  ;;  %v125_v20 = vunpack.c.l.b16 %v24_v15  ;;  %v444_v30 = vld [vmem:[%s716_s0 + $0x6] sm:$0x1]  ;;  %v458_v32 = vld [vmem:[%s716_s0 + $0x3] sm:$0x1]  ;;  %v459_v33 = vld [vmem:[%s716_s0 + $0x7] sm:$0x1]  ;;  %v212_v42 = vunpack.c.l.b16 %v199_v35 }
   0x8   :  { %500 = vmatprep.subr.bf16.mxu0 %v564_v0  ;;  %512 = vmatprep.subr.bf16.mxu1 %v564_v0  ;;  %v50_v21 = vrot.slane %v49_v18, 7  ;;  %v200_v31 = vpack.c.bf16 %v444_v30, %v444_v30  ;;  %v288_v36 = vpack.c.bf16 %v459_v33, %v459_v33  ;;  %v287_v39 = vpack.c.bf16 %v458_v32, %v458_v32  ;;  %v559_v44 = vld [vmem:[%s715_s1 + $0x70] sm:$0xff]   ;;  %v560_v47 = vld [vmem:[%s715_s1 + $0x58] sm:$0xff]   ;;  %v473_v2 = vld [vmem:[%s717_s2] ss:$0 sm:$0xff] }
   0x9   :  { %v126_v22 = vrot.slane %v125_v20, 7  ;;  %v561_v49 = vld [vmem:[%s715_s1 + $0x78] sm:$0xff]   ;;  %v474_v30 = vld [vmem:[%s718_s3] ss:$0 sm:$0xff] }
   0xa   :  { %v52_v23 = vsel %vm51_vm1, %v50_v21, %v48_v17  ;;  %v213_v38 = vunpack.c.l.b16 %v200_v31  ;;  %v301_v40 = vunpack.c.l.b16 %v288_v36  ;;  %v300_v45 = vunpack.c.l.b16 %v287_v39  ;;  %v475_v32 = vld [vmem:[%s719_s4] ss:$0 sm:$0xff] }
   0xb   :  { %501 = vmatpush3.bf16.msra.mxu0 %v550_v5  ;;  %513 = vmatpush3.bf16.msra.mxu1 %v551_v6  ;;  %v53_v25 = vpack.c.b16 %v52_v23, %v52_v23  ;;  %v127_v26 = vsel %vm51_vm1, %v126_v22, %v124_v19 }
   0xc   :  { %502 = vmatprep.subr.bf16.mxu0 %v564_v0  ;;  %514 = vmatprep.subr.bf16.mxu1 %v564_v0  ;;  %v128_v28 = vpack.c.b16 %v127_v26, %v127_v26  ;;  %v214_v43 = vrot.slane %v213_v38, 7  ;;  %v302_v46 = vrot.slane %v301_v40, 7 }
   0xe   :  { %v215_v48 = vsel %vm51_vm1, %v214_v43, %v212_v42  ;;  %v303_v50 = vsel %vm51_vm1, %v302_v46, %v300_v45 }
   0xf   :  { %503 = vmatpush3.bf16.msra.mxu0 %v552_v14  ;;  %515 = vmatpush3.bf16.msra.mxu1 %v553_v16  ;;  %v216_v51 = vpack.c.b16 %v215_v48, %v215_v48  ;;  %v304_v52 = vpack.c.b16 %v303_v50, %v303_v50 }
  0x10   :  { %520 = vmatprep.subr.bf16.mxu0 %v564_v0  ;;  %532 = vmatprep.subr.bf16.mxu1 %v564_v0 }
  0x12   :  { %505 = vmatmul.mubr.msk.bf16.vlgmr.msra.gmra.mrb[0].mxu0 %vm78_vm2, %v53_v25  ;;  %517 = vmatmul.mubr.msk.bf16.vlgmr.msra.gmra.mrb[0].mxu1 %vm78_vm2, %v128_v28 }
  0x13   :  { %521 = vmatpush3.bf16.msra.mxu0 %v554_v24  ;;  %533 = vmatpush3.bf16.msra.mxu1 %v555_v27 }
  0x14   :  { %522 = vmatprep.subr.bf16.mxu0 %v564_v0  ;;  %534 = vmatprep.subr.bf16.mxu1 %v564_v0 }
  0x15   :  { %528 = vmatprep.mubr.msk.bf16.mxu0 %vm565_vm0, %v564_v0  ;;  %540 = vmatprep.mubr.msk.bf16.mxu1 %vm565_vm0, %v564_v0 }
  0x17   :  { %523 = vmatpush3.bf16.msra.mxu0 %v556_v34  ;;  %535 = vmatpush3.bf16.msra.mxu1 %v557_v37 }
  0x18   :  { %524 = vmatprep.subr.bf16.mxu0 %v564_v0  ;;  %536 = vmatprep.subr.bf16.mxu1 %v564_v0 }
  0x1b   :  { %525 = vmatpush3.bf16.msra.mxu0 %v558_v41  ;;  %537 = vmatpush3.bf16.msra.mxu1 %v559_v44 }
  0x1c   :  { %526 = vmatprep.subr.bf16.mxu0 %v564_v0  ;;  %538 = vmatprep.subr.bf16.mxu1 %v564_v0 }
  0x1f   :  { %527 = vmatpush3.bf16.msra.mxu0 %v560_v47  ;;  %539 = vmatpush3.bf16.msra.mxu1 %v561_v49 }
  0x22   :  { %529 = vmatmul.mubr.msk.bf16.vlgmr.msra.gmra.mrb[4].mxu0 %vm78_vm2, %v216_v51  ;;  %541 = vmatmul.mubr.msk.bf16.vlgmr.msra.gmra.mrb[4].mxu1 %vm78_vm2, %v304_v52 }
  0xe5   :  { %v116_v53 = vpop.f32.mrb[0].mxu0  ;;  %v190_v54 = vpop.f32.mrb[0].mxu1 }
  0xe6   :  { %v506_v55 = vpop.f32.mrb[1].mxu0  ;;  %v191_v56 = vadd.f32 %v190_v54, %v116_v53  ;;  %v518_v57 = vpop.f32.mrb[1].mxu1 }
  0xe7   :  { %v119_v58 = vpop.f32.mrb[2].mxu0  ;;  %v193_v59 = vpop.f32.mrb[2].mxu1 }
  0xe8   :  { %v507_v60 = vpop.f32.mrb[3].mxu0  ;;  %v519_v61 = vpop.f32.mrb[3].mxu1 }
  0xf5   :  { %v278_v62 = vpop.f32.mrb[4].mxu0  ;;  %v366_v0 = vpop.f32.mrb[4].mxu1 }
  0xf6   :  { %v284_v63 = vadd.f32 %v278_v62, %v191_v56  ;;  %v530_v1 = vpop.f32.mrb[5].mxu0  ;;  %v542_v3 = vpop.f32.mrb[5].mxu1 }
  0xf7   :  { %v281_v4 = vpop.f32.mrb[6].mxu0  ;;  %v369_v6 = vpop.f32.mrb[6].mxu1 }
  0xf8   :  { %v372_v5 = vadd.f32 %v366_v0, %v284_v63  ;;  %v531_v7 = vpop.f32.mrb[7].mxu0  ;;  %v543_v8 = vpop.f32.mrb[7].mxu1 }
  0xfa   :  { %v380_v9 = vadd.f32 %v473_v2, %v372_v5 }
  0xfc   :  { %v382_v10 = vsel %vm381_vm3, %v380_v9, 0.0 }
  0xfd   :  { %v383_v11 = vrot.slane %v382_v10, 4 }
  0xff   :  { %v384_v12 = vadd.f32 %v383_v11, %v382_v10 }
 0x101   :  { %v385_v13 = vrot.slane %v384_v12, 2 }
 0x103   :  { %v386_v14 = vadd.f32 %v385_v13, %v384_v12 }
 0x105   :  { %v387_v15 = vrot.slane %v386_v14, 1 }
 0x107   :  { %v388_v16 = vadd.f32 %v387_v15, %v386_v14 }
 0x109   :  { %v390_v17 = vmul.f32 0.5, %v388_v16 }
 0x10b   :  { %v391_v18 = vsub.f32 %v380_v9, %v390_v17 }
 0x10d   :  { %v392_v19 = vmul.f32 %v391_v18, %v391_v18 }
 0x10f   :  { %v393_v20 = vsel %vm381_vm3, %v392_v19, 0.0 }
 0x110   :  { %v394_v21 = vrot.slane %v393_v20, 4 }
 0x112   :  { %v395_v22 = vadd.f32 %v394_v21, %v393_v20 }
 0x114   :  { %v396_v23 = vrot.slane %v395_v22, 2 }
 0x116   :  { %v397_v24 = vadd.f32 %v396_v23, %v395_v22 }
 0x118   :  { %v398_v25 = vrot.slane %v397_v24, 1 }
 0x11a   :  { %v399_v26 = vadd.f32 %v398_v25, %v397_v24 }
 0x11c   :  { %v400_v27 = vmul.f32 0.5, %v399_v26 }
 0x11e   :  { %v401_v28 = vadd.f32 1e-05, %v400_v27 }
 0x120   :  { %562 = vrsqrt.f32 %v401_v28 }
 0x12a   :  { %v563_v29 = vpop.eup %562 }
 0x12b   :  { %v403_v31 = vmul.f32 %v563_v29, %v391_v18 }
 0x12d   :  { %v411_v33 = vmul.f32 %v474_v30, %v403_v31 }
 0x12f   :  { %v419_v34 = vadd.f32 %v475_v32, %v411_v33 }
 0x131   :  { %420 = vst.msk [vmem:[%s720_s5] sm:$0x3] %vm381_vm3, %v419_v34 }

// kernel: _lambda_.14
= control target key start
LH: loop header
LB: loop body
LE: loop exit
PB: predicated region body
PF: predicated region fallthrough
CT: control target
= control target key end

     0   :  { %vm37_vm0 = vcmask 125952   ;;  %v1974_v0 = vmov 0.0   ;;  %vm47_vm1 = vcmask 123904   ;;  %v65_v2 = vlaneseq  ;;  %s2231_s1 = inlined_call_operand.vmem [shape: bf16[9,16,16], index: 1, kind: input, shape index: {}]   ;;  %s2232_s0 = inlined_call_operand.vmem [shape: f32[2,2,2,16], index: 0, kind: input, shape index: {}]   ;;  %s2233_s5 = inlined_call_operand.vmem [shape: bf16[9,16,16], index: 5, kind: input, shape index: {}]   ;;  %s2234_s2 = inlined_call_operand.vmem [shape: f32[1,16], index: 2, kind: input, shape index: {}]   ;;  %s2235_s3 = inlined_call_operand.vmem [shape: f32[1,16], index: 3, kind: input, shape index: {}, may-alias: {3,7}]   ;;  %s2236_s4 = inlined_call_operand.vmem [shape: f32[1,16], index: 4, kind: input, shape index: {}, may-alias: {4,8}]   ;;  %s2237_s6 = inlined_call_operand.vmem [shape: f32[1,16], index: 6, kind: input, shape index: {}]   ;;  %s2238_s7 = inlined_call_operand.vmem [shape: f32[1,16], index: 7, kind: input, shape index: {}, may-alias: {3,7}]   ;;  %s2239_s8 = inlined_call_operand.vmem [shape: f32[1,16], index: 8, kind: input, shape index: {}, may-alias: {4,8}]   ;;  %s2240_s9 = inlined_call_operand.vmem [shape: f32[8,16], index: 9, kind: output, shape index: {}]  }
   0x1   :  { %1769 = vmatprep.subr.bf16.mxu0 %v1974_v0  ;;  %v1880_v1 = vld [vmem:[%s2231_s1 + $0x8] sm:$0xff]   ;;  %1775 = vmatprep.subr.bf16.mxu1 %v1974_v0  ;;  %38 = vst.msk [vmem:[#allocation2] sm:$0xf] %vm37_vm0, %v1974_v0  ;;  %39 = vst.msk [vmem:[#allocation2 + $0x4] sm:$0xf] %vm37_vm0, %v1974_v0  ;;  %v1881_v3 = vld [vmem:[%s2231_s1] sm:$0xff]  }
   0x2   :  { %42 = vst.msk [vmem:[#allocation2 + $0x10] sm:$0xf] %vm37_vm0, %v1974_v0  ;;  %43 = vst.msk [vmem:[#allocation2 + $0x14] sm:$0xf] %vm37_vm0, %v1974_v0  ;;  %vm1975_vm2 = vmmov 0   ;;  %1770 = vmatpush3.bf16.msra.mxu0 %v1880_v1  ;;  %1776 = vmatpush3.bf16.msra.mxu1 %v1881_v3  ;;  %v66_v8 = vshrl.u32 %v65_v2, 7 }
   0x3   :  { %40 = vst.msk [vmem:[#allocation2 + $0x8] sm:$0xf] %vm37_vm0, %v1974_v0  ;;  %41 = vst.msk [vmem:[#allocation2 + $0xc] sm:$0xf] %vm37_vm0, %v1974_v0  ;;  %1771 = vmatprep.mubr.msk.bf16.mxu0 %vm1975_vm2, %v1974_v0  ;;  %1777 = vmatprep.mubr.msk.bf16.mxu1 %vm1975_vm2, %v1974_v0  ;;  %v2050_v4 = vld [vmem:[%s2232_s0] sm:$0x3] }
   0x4   :  { %44 = vst.msk [vmem:[#allocation2 + $0x18] sm:$0xf] %vm37_vm0, %v1974_v0  ;;  %45 = vst.msk [vmem:[#allocation2 + $0x1c] sm:$0xf] %vm37_vm0, %v1974_v0  ;;  %v2055_v5 = vld [vmem:[%s2232_s0 + $0x4] sm:$0x3]  ;;  %1781 = vmatprep.subr.bf16.mxu0 %v1974_v0  ;;  %1787 = vmatprep.subr.bf16.mxu1 %v1974_v0 }
   0x5   :  { %48 = vst.msk [vmem:[#allocation2 + $0x5] sm:$0x3] %vm47_vm1, %v2050_v4  ;;  %50 = vst.msk [vmem:[#allocation2 + $0x15] sm:$0x3] %vm47_vm1, %v2055_v5  ;;  %v1976_v6 = vmov 1983009808  }
   0x6   :  { %v63_v7 = vunpack.c.l.s4 %v1976_v6  ;;  %v2066_v10 = vld [vmem:[%s2232_s0 + $0x2] sm:$0x3]  ;;  %v2071_v11 = vld [vmem:[%s2232_s0 + $0x6] sm:$0x3]  ;;  %vm117_vm3 = vcmask 130048   ;;  %v1886_v19 = vld [vmem:[%s2231_s1 + $0x10] sm:$0xff]  }
   0x7   :  { %49 = vst.msk [vmem:[#allocation2 + $0x9] sm:$0x3] %vm47_vm1, %v2066_v10  ;;  %51 = vst.msk [vmem:[#allocation2 + $0x19] sm:$0x3] %vm47_vm1, %v2071_v11  ;;  %v1887_v25 = vld [vmem:[%s2231_s1 + $0x18] sm:$0xff]   ;;  %v1890_v34 = vld [vmem:[%s2231_s1 + $0x20] sm:$0xff]  }
   0x8   :  { %v64_v9 = vunpack.c.0.s8 %v63_v7  ;;  %v1893_v36 = vld [vmem:[%s2231_s1 + $0x28] sm:$0xff]   ;;  %v1896_v44 = vld [vmem:[%s2231_s1 + $0x30] sm:$0xff]   ;;  %v1899_v46 = vld [vmem:[%s2231_s1 + $0x38] sm:$0xff]  }
   0x9   :  { %v1902_v52 = vld [vmem:[%s2231_s1 + $0x40] sm:$0xff]   ;;  %v1907_v56 = vld [vmem:[%s2233_s5 + $0x8] sm:$0xff]  }
   0xa   :  { %v2077_v12 = vsub.s32 %v64_v9, %v66_v8  ;;  %v1908_v57 = vld [vmem:[%s2233_s5] sm:$0xff]  }
   0xc   :  { %v1938_v13 = vld.sshfl [vmem:[#allocation2 + $0x1] sm:$0xf pattern:$0x76325410] }
   0xd   :  { %v1939_v14 = vld.sshfl [vmem:[#allocation2 + $0x11] sm:$0xf pattern:$0x76325410] }
   0xe   :  { %v1940_v15 = vld.sshfl [vmem:[#allocation2] sm:$0xf pattern:$0x76325410]  ;;  %v105_v20 = vcombine.low %v1938_v13, %v1939_v14 }
   0xf   :  { %v1941_v16 = vld.sshfl [vmem:[#allocation2 + $0x10] sm:$0xf pattern:$0x76325410] }
  0x10   :  { %v1942_v17 = vld.sshfl [vmem:[#allocation2 + $0x2] sm:$0xf pattern:$0x76325410]  ;;  %v76_v23 = vcombine.low %v1940_v15, %v1941_v16  ;;  %v107_v24 = vpack.c.bf16 %v105_v20, %v105_v20 }
  0x11   :  { %v1943_v18 = vld.sshfl [vmem:[#allocation2 + $0x12] sm:$0xf pattern:$0x76325410] }
  0x12   :  { %v1944_v21 = vld.sshfl [vmem:[#allocation2 + $0x4] sm:$0xf pattern:$0x76325410]  ;;  %v78_v27 = vpack.c.bf16 %v76_v23, %v76_v23  ;;  %1772 = vmatmul.mubr.msk.bf16.vlgmr.msra.gmra.mrb[0].mxu0 %vm117_vm3, %v107_v24  ;;  %v234_v29 = vcombine.low %v1942_v17, %v1943_v18 }
  0x13   :  { %v1945_v22 = vld.sshfl [vmem:[#allocation2 + $0x14] sm:$0xf pattern:$0x76325410]  ;;  %1782 = vmatpush3.bf16.msra.mxu0 %v1886_v19  ;;  %1783 = vmatprep.mubr.msk.bf16.mxu0 %vm1975_vm2, %v1974_v0 }
  0x14   :  { %v1946_v26 = vld.sshfl [vmem:[#allocation2 + $0x5] sm:$0xf pattern:$0x76325410]  ;;  %1778 = vmatmul.mubr.msk.bf16.vlgmr.msra.gmra.mrb[0].mxu1 %vm117_vm3, %v78_v27  ;;  %v314_v30 = vcombine.low %v1944_v21, %v1945_v22  ;;  %1793 = vmatprep.subr.bf16.mxu0 %v1974_v0  ;;  %v236_v33 = vpack.c.bf16 %v234_v29, %v234_v29 }
  0x15   :  { %v1947_v28 = vld.sshfl [vmem:[#allocation2 + $0x15] sm:$0xf pattern:$0x76325410]  ;;  %1788 = vmatpush3.bf16.msra.mxu1 %v1887_v25  ;;  %1789 = vmatprep.mubr.msk.bf16.mxu1 %vm1975_vm2, %v1974_v0 }
  0x16   :  { %v1948_v31 = vld.sshfl [vmem:[#allocation2 + $0x6] sm:$0xf pattern:$0x76325410]  ;;  %1799 = vmatprep.subr.bf16.mxu1 %v1974_v0  ;;  %v316_v35 = vpack.c.bf16 %v314_v30, %v314_v30  ;;  %v394_v39 = vcombine.low %v1946_v26, %v1947_v28 }
  0x17   :  { %v1949_v32 = vld.sshfl [vmem:[#allocation2 + $0x16] sm:$0xf pattern:$0x76325410] }
  0x18   :  { %v1950_v37 = vld.sshfl [vmem:[#allocation2 + $0x8] sm:$0xf pattern:$0x76325410]  ;;  %v474_v40 = vcombine.low %v1948_v31, %v1949_v32  ;;  %v396_v43 = vpack.c.bf16 %v394_v39, %v394_v39 }
  0x19   :  { %v1951_v38 = vld.sshfl [vmem:[#allocation2 + $0x18] sm:$0xf pattern:$0x76325410] }
  0x1a   :  { %1784 = vmatmul.mubr.msk.bf16.vlgmr.msra.gmra.mrb[4].mxu0 %vm117_vm3, %v236_v33  ;;  %v1952_v41 = vld.sshfl [vmem:[#allocation2 + $0x9] sm:$0xf pattern:$0x76325410]  ;;  %v476_v45 = vpack.c.bf16 %v474_v40, %v474_v40  ;;  %v555_v47 = vcombine.low %v1950_v37, %v1951_v38  ;;  %v1693_v40 = vld [vmem:[%s2234_s2] ss:$0 sm:$0xff] }
  0x1b   :  { %1794 = vmatpush3.bf16.msra.mxu0 %v1890_v34  ;;  %v1953_v42 = vld.sshfl [vmem:[#allocation2 + $0x19] sm:$0xf pattern:$0x76325410]  ;;  %1795 = vmatprep.mubr.msk.bf16.mxu0 %vm1975_vm2, %v1974_v0 }
  0x1c   :  { %1790 = vmatmul.mubr.msk.bf16.vlgmr.msra.gmra.mrb[4].mxu1 %vm117_vm3, %v316_v35  ;;  %1805 = vmatprep.subr.bf16.mxu0 %v1974_v0  ;;  %v1954_v48 = vld.sshfl [vmem:[#allocation2 + $0xa] sm:$0xf pattern:$0x76325410]  ;;  %v635_v50 = vcombine.low %v1952_v41, %v1953_v42  ;;  %v557_v51 = vpack.c.bf16 %v555_v47, %v555_v47 }
  0x1d   :  { %1800 = vmatpush3.bf16.msra.mxu1 %v1893_v36  ;;  %1801 = vmatprep.mubr.msk.bf16.mxu1 %vm1975_vm2, %v1974_v0  ;;  %v1955_v49 = vld.sshfl [vmem:[#allocation2 + $0x1a] sm:$0xf pattern:$0x76325410] }
  0x1e   :  { %1811 = vmatprep.subr.bf16.mxu1 %v1974_v0  ;;  %v637_v53 = vpack.c.bf16 %v635_v50, %v635_v50  ;;  %v715_v54 = vcombine.low %v1954_v48, %v1955_v49 }
  0x20   :  { %v717_v55 = vpack.c.bf16 %v715_v54, %v715_v54 }
  0x22   :  { %1796 = vmatmul.mubr.msk.bf16.vlgmr.msra.gmra.mrb[8].mxu0 %vm117_vm3, %v396_v43 }
  0x23   :  { %1806 = vmatpush3.bf16.msra.mxu0 %v1896_v44  ;;  %1807 = vmatprep.mubr.msk.bf16.mxu0 %vm1975_vm2, %v1974_v0 }
  0x24   :  { %1802 = vmatmul.mubr.msk.bf16.vlgmr.msra.gmra.mrb[8].mxu1 %vm117_vm3, %v476_v45  ;;  %1817 = vmatprep.subr.bf16.mxu0 %v1974_v0 }
  0x25   :  { %1812 = vmatpush3.bf16.msra.mxu1 %v1899_v46  ;;  %1813 = vmatprep.mubr.msk.bf16.mxu1 %vm1975_vm2, %v1974_v0 }
  0x26   :  { %1823 = vmatprep.subr.bf16.mxu1 %v1974_v0 }
  0x2a   :  { %1808 = vmatmul.mubr.msk.bf16.vlgmr.msra.gmra.mrb[12].mxu0 %vm117_vm3, %v557_v51 }
  0x2b   :  { %1818 = vmatpush3.bf16.msra.mxu0 %v1902_v52  ;;  %1819 = vmatprep.mubr.msk.bf16.mxu0 %vm1975_vm2, %v1974_v0 }
  0x2c   :  { %1814 = vmatmul.mubr.msk.bf16.vlgmr.msra.gmra.mrb[12].mxu1 %vm117_vm3, %v637_v53  ;;  %1829 = vmatprep.subr.bf16.mxu0 %v1974_v0 }
  0x2d   :  { %1825 = vmatprep.mubr.msk.bf16.mxu1 %vm1975_vm2, %v1974_v0  ;;  %1824 = vmatpush3.bf16.msra.mxu1 %v1907_v56 }
  0x2e   :  { %1835 = vmatprep.subr.bf16.mxu1 %v1974_v0 }
  0x32   :  { %1820 = vmatmul.mubr.msk.bf16.vlgmr.msra.gmra.mrb[16].mxu0 %vm117_vm3, %v717_v55 }
  0x33   :  { %1831 = vmatprep.mubr.msk.bf16.mxu0 %vm1975_vm2, %v1974_v0  ;;  %1830 = vmatpush3.bf16.msra.mxu0 %v1908_v57 }
  0x34   :  { %1841 = vmatprep.subr.bf16.mxu0 %v1974_v0 }
  0xe5   :  { %v155_v58 = vpop.f32.mrb[0].mxu0 }
  0xe6   :  { %v1773_v60 = vpop.f32.mrb[1].mxu0 }
  0xe7   :  { %v204_v59 = vpop.f32.mrb[0].mxu1  ;;  %v158_v62 = vpop.f32.mrb[2].mxu0 }
  0xe8   :  { %v205_v61 = vadd.f32 %v204_v59, %v155_v58  ;;  %v1779_v63 = vpop.f32.mrb[1].mxu1  ;;  %v1774_v1 = vpop.f32.mrb[3].mxu0 }
  0xe9   :  { %v207_v2 = vpop.f32.mrb[2].mxu1 }
  0xea   :  { %v1780_v3 = vpop.f32.mrb[3].mxu1 }
  0xeb   :  { %v1694_v3 = vld [vmem:[%s2235_s3] ss:$0 sm:$0xff] }
  0xed   :  { %v283_v6 = vpop.f32.mrb[4].mxu0 }
  0xee   :  { %v289_v7 = vadd.f32 %v283_v6, %v205_v61  ;;  %v1785_v8 = vpop.f32.mrb[5].mxu0 }
  0xef   :  { %v363_v9 = vpop.f32.mrb[4].mxu1  ;;  %v286_v13 = vpop.f32.mrb[6].mxu0 }
  0xf0   :  { %v1791_v14 = vpop.f32.mrb[5].mxu1  ;;  %v369_v15 = vadd.f32 %v363_v9, %v289_v7  ;;  %v1786_v16 = vpop.f32.mrb[7].mxu0  ;;  %v1695_v7 = vld [vmem:[%s2236_s4] ss:$0 sm:$0xff] }
  0xf1   :  { %v366_v17 = vpop.f32.mrb[6].mxu1 }
  0xf2   :  { %v1792_v18 = vpop.f32.mrb[7].mxu1 }
  0xf5   :  { %v443_v19 = vpop.f32.mrb[8].mxu0 }
  0xf6   :  { %v449_v20 = vadd.f32 %v443_v19, %v369_v15  ;;  %v1797_v21 = vpop.f32.mrb[9].mxu0 }
  0xf7   :  { %v523_v22 = vpop.f32.mrb[8].mxu1  ;;  %v446_v23 = vpop.f32.mrb[10].mxu0 }
  0xf8   :  { %v1803_v24 = vpop.f32.mrb[9].mxu1  ;;  %v529_v25 = vadd.f32 %v523_v22, %v449_v20  ;;  %v1798_v26 = vpop.f32.mrb[11].mxu0 }
  0xf9   :  { %v526_v27 = vpop.f32.mrb[10].mxu1  ;;  %v1913_v24 = vld [vmem:[%s2233_s5 + $0x10] sm:$0xff]  }
  0xfa   :  { %v1804_v28 = vpop.f32.mrb[11].mxu1 }
  0xfd   :  { %v604_v29 = vpop.f32.mrb[12].mxu0 }
  0xfe   :  { %v610_v30 = vadd.f32 %v604_v29, %v529_v25  ;;  %v1809_v31 = vpop.f32.mrb[13].mxu0  ;;  %v1914_v29 = vld [vmem:[%s2233_s5 + $0x18] sm:$0xff]  }
  0xff   :  { %v684_v32 = vpop.f32.mrb[12].mxu1  ;;  %v607_v33 = vpop.f32.mrb[14].mxu0 }
 0x100   :  { %v1815_v34 = vpop.f32.mrb[13].mxu1  ;;  %v690_v35 = vadd.f32 %v684_v32, %v610_v30  ;;  %v1810_v36 = vpop.f32.mrb[15].mxu0 }
 0x101   :  { %v687_v37 = vpop.f32.mrb[14].mxu1 }
 0x102   :  { %v1816_v38 = vpop.f32.mrb[15].mxu1 }
 0x103   :  { %v1919_v38 = vld [vmem:[%s2233_s5 + $0x20] sm:$0xff]  }
 0x105   :  { %v764_v39 = vpop.f32.mrb[16].mxu0 }
 0x106   :  { %v770_v41 = vadd.f32 %v764_v39, %v690_v35  ;;  %v1821_v42 = vpop.f32.mrb[17].mxu0 }
 0x107   :  { %v767_v43 = vpop.f32.mrb[18].mxu0 }
 0x108   :  { %v778_v44 = vadd.f32 %v1693_v40, %v770_v41  ;;  %v1822_v45 = vpop.f32.mrb[19].mxu0  ;;  %v1920_v41 = vld [vmem:[%s2233_s5 + $0x28] sm:$0xff]  }
 0x10a   :  { %v779_v46 = vsel %vm117_vm3, %v778_v44, 0.0 }
 0x10b   :  { %v780_v47 = vrot.slane %v779_v46, 4 }
 0x10d   :  { %v781_v48 = vadd.f32 %v780_v47, %v779_v46 }
 0x10f   :  { %v782_v49 = vrot.slane %v781_v48, 2 }
 0x111   :  { %v783_v50 = vadd.f32 %v782_v49, %v781_v48  ;;  %v1925_v48 = vld [vmem:[%s2233_s5 + $0x30] sm:$0xff]  }
 0x113   :  { %v784_v51 = vrot.slane %v783_v50, 1 }
 0x115   :  { %v785_v52 = vadd.f32 %v784_v51, %v783_v50  ;;  %v1926_v51 = vld [vmem:[%s2233_s5 + $0x38] sm:$0xff]  }
 0x117   :  { %v787_v53 = vmul.f32 0.125, %v785_v52 }
 0x119   :  { %v788_v54 = vsub.f32 %v778_v44, %v787_v53 }
 0x11b   :  { %v789_v55 = vmul.f32 %v788_v54, %v788_v54 }
 0x11d   :  { %v790_v56 = vsel %vm117_vm3, %v789_v55, 0.0 }
 0x11e   :  { %v791_v57 = vrot.slane %v790_v56, 4 }
 0x120   :  { %v792_v58 = vadd.f32 %v791_v57, %v790_v56  ;;  %v1931_v57 = vld [vmem:[%s2233_s5 + $0x40] sm:$0xff]  }
 0x122   :  { %v793_v59 = vrot.slane %v792_v58, 2 }
 0x124   :  { %v794_v60 = vadd.f32 %v793_v59, %v792_v58 }
 0x126   :  { %v795_v61 = vrot.slane %v794_v60, 1 }
 0x128   :  { %v796_v62 = vadd.f32 %v795_v61, %v794_v60 }
 0x12a   :  { %v797_v63 = vmul.f32 0.125, %v796_v62 }
 0x12c   :  { %v798_v1 = vadd.f32 1e-05, %v797_v63 }
 0x12e   :  { %1934 = vrsqrt.f32 %v798_v1 }
 0x138   :  { %v1935_v2 = vpop.eup %1934 }
 0x139   :  { %v800_v6 = vmul.f32 %v1935_v2, %v788_v54 }
 0x13b   :  { %v808_v8 = vmul.f32 %v1694_v3, %v800_v6 }
 0x13d   :  { %v816_v9 = vadd.f32 %v1695_v7, %v808_v8 }
 0x13f   :  { %v817_v13 = vmax.f32 %v816_v9, 0.0 }
 0x141   :  { %v819_v14 = vcombine.high %v817_v13, %v817_v13  ;;  %v826_v15 = vrot.slane %v817_v13, %v2077_v12 }
 0x143   :  { %v833_v16 = vrot.slane %v819_v14, %v2077_v12  ;;  %v834_v17 = vcombine.high %v826_v15, %v826_v15  ;;  %840 = vst.msk [vmem:[#allocation2 + $0x5] sm:$0x3] %vm47_vm1, %v826_v15 }
 0x145   :  { %v835_v18 = vcombine.high %v833_v16, %v833_v16  ;;  %841 = vst.msk [vmem:[#allocation2 + $0x9] sm:$0x3] %vm47_vm1, %v834_v17  ;;  %842 = vst.msk [vmem:[#allocation2 + $0x15] sm:$0x3] %vm47_vm1, %v833_v16 }
 0x147   :  { %843 = vst.msk [vmem:[#allocation2 + $0x19] sm:$0x3] %vm47_vm1, %v835_v18 }
 0x14a   :  { %v1956_v19 = vld.sshfl [vmem:[#allocation2 + $0x1] sm:$0xf pattern:$0x76325410] }
 0x14b   :  { %v1958_v20 = vld.sshfl [vmem:[#allocation2] sm:$0xf pattern:$0x76325410] }
 0x14c   :  { %v1957_v21 = vld.sshfl [vmem:[#allocation2 + $0x11] sm:$0xf pattern:$0x76325410] }
 0x14d   :  { %v1959_v22 = vld.sshfl [vmem:[#allocation2 + $0x10] sm:$0xf pattern:$0x76325410]  ;;  %v897_v27 = vcombine.low %v1956_v19, %v1957_v21 }
 0x14e   :  { %v1960_v23 = vld.sshfl [vmem:[#allocation2 + $0x12] sm:$0xf pattern:$0x76325410]  ;;  %v868_v28 = vcombine.low %v1958_v20, %v1959_v22 }
 0x14f   :  { %v1962_v25 = vld.sshfl [vmem:[#allocation2 + $0x2] sm:$0xf pattern:$0x76325410]  ;;  %v899_v31 = vpack.c.bf16 %v897_v27, %v897_v27 }
 0x150   :  { %v1961_v26 = vld.sshfl [vmem:[#allocation2 + $0x14] sm:$0xf pattern:$0x76325410]  ;;  %v870_v32 = vpack.c.bf16 %v868_v28, %v868_v28  ;;  %v1025_v33 = vcombine.low %v1962_v25, %v1960_v23 }
 0x151   :  { %v1963_v30 = vld.sshfl [vmem:[#allocation2 + $0x4] sm:$0xf pattern:$0x76325410]  ;;  %1826 = vmatmul.mubr.msk.bf16.vlgmr.msra.gmra.mrb[16].mxu1 %vm117_vm3, %v899_v31 }
 0x152   :  { %1832 = vmatmul.mubr.msk.bf16.vlgmr.msra.gmra.mrb[20].mxu0 %vm117_vm3, %v870_v32  ;;  %1836 = vmatpush3.bf16.msra.mxu1 %v1913_v24  ;;  %v1964_v34 = vld.sshfl [vmem:[#allocation2 + $0x15] sm:$0xf pattern:$0x76325410]  ;;  %v1105_v35 = vcombine.low %v1963_v30, %v1961_v26  ;;  %v1027_v40 = vpack.c.bf16 %v1025_v33, %v1025_v33 }
 0x153   :  { %1842 = vmatpush3.bf16.msra.mxu0 %v1914_v29  ;;  %1837 = vmatprep.mubr.msk.bf16.mxu1 %vm1975_vm2, %v1974_v0  ;;  %v1965_v36 = vld.sshfl [vmem:[#allocation2 + $0x16] sm:$0xf pattern:$0x76325410] }
 0x154   :  { %1843 = vmatprep.mubr.msk.bf16.mxu0 %vm1975_vm2, %v1974_v0  ;;  %1847 = vmatprep.subr.bf16.mxu1 %v1974_v0  ;;  %v1966_v37 = vld.sshfl [vmem:[#allocation2 + $0x5] sm:$0xf pattern:$0x76325410]  ;;  %v1107_v42 = vpack.c.bf16 %v1105_v35, %v1105_v35 }
 0x155   :  { %1853 = vmatprep.subr.bf16.mxu0 %v1974_v0  ;;  %v1967_v39 = vld.sshfl [vmem:[#allocation2 + $0x6] sm:$0xf pattern:$0x76325410]  ;;  %v1185_v43 = vcombine.low %v1966_v37, %v1964_v34 }
 0x156   :  { %v1968_v44 = vld.sshfl [vmem:[#allocation2 + $0x18] sm:$0xf pattern:$0x76325410]  ;;  %v1265_v45 = vcombine.low %v1967_v39, %v1965_v36 }
 0x157   :  { %v1969_v46 = vld.sshfl [vmem:[#allocation2 + $0x19] sm:$0xf pattern:$0x76325410]  ;;  %v1187_v50 = vpack.c.bf16 %v1185_v43, %v1185_v43  ;;  %v1730_v43 = vld [vmem:[%s2237_s6] ss:$0 sm:$0xff] }
 0x158   :  { %v1970_v47 = vld.sshfl [vmem:[#allocation2 + $0x8] sm:$0xf pattern:$0x76325410]  ;;  %v1267_v52 = vpack.c.bf16 %v1265_v45, %v1265_v45 }
 0x159   :  { %1838 = vmatmul.mubr.msk.bf16.vlgmr.msra.gmra.mrb[20].mxu1 %vm117_vm3, %v1027_v40  ;;  %v1971_v49 = vld.sshfl [vmem:[#allocation2 + $0x9] sm:$0xf pattern:$0x76325410]  ;;  %v1345_v53 = vcombine.low %v1970_v47, %v1968_v44 }
 0x15a   :  { %1844 = vmatmul.mubr.msk.bf16.vlgmr.msra.gmra.mrb[24].mxu0 %vm117_vm3, %v1107_v42  ;;  %1848 = vmatpush3.bf16.msra.mxu1 %v1919_v38  ;;  %v1972_v54 = vld.sshfl [vmem:[#allocation2 + $0x1a] sm:$0xf pattern:$0x76325410]  ;;  %v1425_v55 = vcombine.low %v1971_v49, %v1969_v46 }
 0x15b   :  { %1854 = vmatpush3.bf16.msra.mxu0 %v1920_v41  ;;  %1849 = vmatprep.mubr.msk.bf16.mxu1 %vm1975_vm2, %v1974_v0  ;;  %v1973_v56 = vld.sshfl [vmem:[#allocation2 + $0xa] sm:$0xf pattern:$0x76325410]  ;;  %v1347_v58 = vpack.c.bf16 %v1345_v53, %v1345_v53 }
 0x15c   :  { %1855 = vmatprep.mubr.msk.bf16.mxu0 %vm1975_vm2, %v1974_v0  ;;  %1859 = vmatprep.subr.bf16.mxu1 %v1974_v0  ;;  %v1427_v59 = vpack.c.bf16 %v1425_v55, %v1425_v55  ;;  %v1505_v60 = vcombine.low %v1973_v56, %v1972_v54 }
 0x15d   :  { %1865 = vmatprep.subr.bf16.mxu0 %v1974_v0 }
 0x15e   :  { %v1507_v61 = vpack.c.bf16 %v1505_v60, %v1505_v60 }
 0x161   :  { %1850 = vmatmul.mubr.msk.bf16.vlgmr.msra.gmra.mrb[24].mxu1 %vm117_vm3, %v1187_v50 }
 0x162   :  { %1856 = vmatmul.mubr.msk.bf16.vlgmr.msra.gmra.mrb[28].mxu0 %vm117_vm3, %v1267_v52  ;;  %1860 = vmatpush3.bf16.msra.mxu1 %v1925_v48 }
 0x163   :  { %1866 = vmatpush3.bf16.msra.mxu0 %v1926_v51  ;;  %1861 = vmatprep.mubr.msk.bf16.mxu1 %vm1975_vm2, %v1974_v0 }
 0x164   :  { %1867 = vmatprep.mubr.msk.bf16.mxu0 %vm1975_vm2, %v1974_v0  ;;  %1871 = vmatprep.subr.bf16.mxu1 %v1974_v0 }
 0x169   :  { %1862 = vmatmul.mubr.msk.bf16.vlgmr.msra.gmra.mrb[28].mxu1 %vm117_vm3, %v1347_v58 }
 0x16a   :  { %1868 = vmatmul.mubr.msk.bf16.vlgmr.msra.gmra.mrb[32].mxu0 %vm117_vm3, %v1427_v59  ;;  %1872 = vmatpush3.bf16.msra.mxu1 %v1931_v57 }
 0x16b   :  { %1873 = vmatprep.mubr.msk.bf16.mxu1 %vm1975_vm2, %v1974_v0 }
 0x171   :  { %1874 = vmatmul.mubr.msk.bf16.vlgmr.msra.gmra.mrb[32].mxu1 %vm117_vm3, %v1507_v61 }
 0x224   :  { %v946_v62 = vpop.f32.mrb[16].mxu1 }
 0x225   :  { %v995_v63 = vpop.f32.mrb[20].mxu0  ;;  %v1827_v1 = vpop.f32.mrb[17].mxu1 }
 0x226   :  { %v996_v2 = vadd.f32 %v995_v63, %v946_v62  ;;  %v1833_v3 = vpop.f32.mrb[21].mxu0  ;;  %v949_v6 = vpop.f32.mrb[18].mxu1 }
 0x227   :  { %v998_v7 = vpop.f32.mrb[22].mxu0  ;;  %v1828_v8 = vpop.f32.mrb[19].mxu1 }
 0x228   :  { %v1834_v9 = vpop.f32.mrb[23].mxu0  ;;  %v1731_v8 = vld [vmem:[%s2238_s7] ss:$0 sm:$0xff] }
 0x22c   :  { %v1074_v13 = vpop.f32.mrb[20].mxu1 }
 0x22d   :  { %v1080_v14 = vadd.f32 %v1074_v13, %v996_v2  ;;  %v1154_v15 = vpop.f32.mrb[24].mxu0  ;;  %v1839_v16 = vpop.f32.mrb[21].mxu1  ;;  %v1732_v13 = vld [vmem:[%s2239_s8] ss:$0 sm:$0xff] }
 0x22e   :  { %v1845_v17 = vpop.f32.mrb[25].mxu0  ;;  %v1077_v18 = vpop.f32.mrb[22].mxu1 }
 0x22f   :  { %v1160_v0 = vadd.f32 %v1154_v15, %v1080_v14  ;;  %v1157_v19 = vpop.f32.mrb[26].mxu0  ;;  %v1840_v20 = vpop.f32.mrb[23].mxu1 }
 0x230   :  { %v1846_v21 = vpop.f32.mrb[27].mxu0 }
 0x234   :  { %v1234_v22 = vpop.f32.mrb[24].mxu1 }
 0x235   :  { %v1240_v23 = vadd.f32 %v1234_v22, %v1160_v0  ;;  %v1314_v24 = vpop.f32.mrb[28].mxu0  ;;  %v1851_v25 = vpop.f32.mrb[25].mxu1 }
 0x236   :  { %v1857_v26 = vpop.f32.mrb[29].mxu0  ;;  %v1237_v27 = vpop.f32.mrb[26].mxu1 }
 0x237   :  { %v1320_v28 = vadd.f32 %v1314_v24, %v1240_v23  ;;  %v1317_v29 = vpop.f32.mrb[30].mxu0  ;;  %v1852_v30 = vpop.f32.mrb[27].mxu1 }
 0x238   :  { %v1858_v31 = vpop.f32.mrb[31].mxu0 }
 0x23c   :  { %v1394_v32 = vpop.f32.mrb[28].mxu1 }
 0x23d   :  { %v1400_v33 = vadd.f32 %v1394_v32, %v1320_v28  ;;  %v1474_v34 = vpop.f32.mrb[32].mxu0  ;;  %v1863_v35 = vpop.f32.mrb[29].mxu1 }
 0x23e   :  { %v1869_v36 = vpop.f32.mrb[33].mxu0  ;;  %v1397_v37 = vpop.f32.mrb[30].mxu1 }
 0x23f   :  { %v1480_v38 = vadd.f32 %v1474_v34, %v1400_v33  ;;  %v1477_v39 = vpop.f32.mrb[34].mxu0  ;;  %v1864_v40 = vpop.f32.mrb[31].mxu1 }
 0x240   :  { %v1870_v41 = vpop.f32.mrb[35].mxu0 }
 0x244   :  { %v1554_v42 = vpop.f32.mrb[32].mxu1 }
 0x245   :  { %v1560_v44 = vadd.f32 %v1554_v42, %v1480_v38  ;;  %v1875_v45 = vpop.f32.mrb[33].mxu1 }
 0x246   :  { %v1557_v46 = vpop.f32.mrb[34].mxu1 }
 0x247   :  { %v1568_v47 = vadd.f32 %v1730_v43, %v1560_v44  ;;  %v1876_v48 = vpop.f32.mrb[35].mxu1 }
 0x249   :  { %v1569_v49 = vsel %vm117_vm3, %v1568_v47, 0.0 }
 0x24a   :  { %v1570_v50 = vrot.slane %v1569_v49, 4 }
 0x24c   :  { %v1571_v51 = vadd.f32 %v1570_v50, %v1569_v49 }
 0x24e   :  { %v1572_v52 = vrot.slane %v1571_v51, 2 }
 0x250   :  { %v1573_v53 = vadd.f32 %v1572_v52, %v1571_v51 }
 0x252   :  { %v1574_v54 = vrot.slane %v1573_v53, 1 }
 0x254   :  { %v1575_v55 = vadd.f32 %v1574_v54, %v1573_v53 }
 0x256   :  { %v1576_v56 = vmul.f32 0.125, %v1575_v55 }
 0x258   :  { %v1577_v57 = vsub.f32 %v1568_v47, %v1576_v56 }
 0x25a   :  { %v1578_v58 = vmul.f32 %v1577_v57, %v1577_v57 }
 0x25c   :  { %v1579_v59 = vsel %vm117_vm3, %v1578_v58, 0.0 }
 0x25d   :  { %v1580_v60 = vrot.slane %v1579_v59, 4 }
 0x25f   :  { %v1581_v61 = vadd.f32 %v1580_v60, %v1579_v59 }
 0x261   :  { %v1582_v62 = vrot.slane %v1581_v61, 2 }
 0x263   :  { %v1583_v63 = vadd.f32 %v1582_v62, %v1581_v61 }
 0x265   :  { %v1584_v1 = vrot.slane %v1583_v63, 1 }
 0x267   :  { %v1585_v2 = vadd.f32 %v1584_v1, %v1583_v63 }
 0x269   :  { %v1586_v3 = vmul.f32 0.125, %v1585_v2 }
 0x26b   :  { %v1587_v6 = vadd.f32 1e-05, %v1586_v3 }
 0x26d   :  { %1936 = vrsqrt.f32 %v1587_v6 }
 0x277   :  { %v1937_v7 = vpop.eup %1936 }
 0x278   :  { %v1589_v9 = vmul.f32 %v1937_v7, %v1577_v57 }
 0x27a   :  { %v1597_v14 = vmul.f32 %v1731_v8, %v1589_v9 }
 0x27c   :  { %v1605_v15 = vadd.f32 %v1732_v13, %v1597_v14 }
 0x27e   :  { %v1607_v16 = vcombine.high %v1605_v15, %v1605_v15  ;;  %v1614_v17 = vrot.slane %v1605_v15, %v2077_v12 }
 0x280   :  { %v1621_v18 = vrot.slane %v1607_v16, %v2077_v12  ;;  %v1622_v0 = vcombine.high %v1614_v17, %v1614_v17  ;;  %v1628_v20 = vadd.f32 %v1614_v17, %v2050_v4 }
 0x282   :  { %v1623_v19 = vcombine.high %v1621_v18, %v1621_v18  ;;  %v1629_v21 = vadd.f32 %v1622_v0, %v2066_v10  ;;  %v1630_v22 = vadd.f32 %v1621_v18, %v2055_v5 }
 0x284   :  { %v1631_v23 = vadd.f32 %v1623_v19, %v2071_v11  ;;  %v1636_v24 = vcombine.low %v1628_v20, %v1629_v21 }
 0x286   :  { %v1637_v25 = vcombine.low %v1630_v22, %v1631_v23  ;;  %v1644_v26 = vrot.slane %v1636_v24, %v2077_v12 }
 0x288   :  { %v1651_v27 = vrot.slane %v1637_v25, %v2077_v12 }
 0x28a   :  { %v1652_v28 = vcombine.low %v1644_v26, %v1651_v27 }
 0x28c   :  { %1654 = vst.msk [vmem:[%s2240_s9] sm:$0xff] %vm117_vm3, %v1652_v28 }

// kernel: _lambda_.17
= control target key start
LH: loop header
LB: loop body
LE: loop exit
PB: predicated region body
PF: predicated region fallthrough
CT: control target
= control target key end

     0   :  { %v145_v1 = vmov 0.0   ;;  %vm146_vm0 = vmmov 0   ;;  %s192_s0 = inlined_call_operand.vmem [shape: f32[2,32], index: 0, kind: input, shape index: {}]   ;;  %s193_s1 = inlined_call_operand.vmem [shape: bf16[32,32], index: 1, kind: input, shape index: {}]   ;;  %s194_s2 = inlined_call_operand.vmem [shape: f32[1,32], index: 2, kind: input, shape index: {}]   ;;  %s195_s3 = inlined_call_operand.hbm [shape: f32[2,32], index: 3, kind: output, shape index: {}]  }
   0x1   :  { %v119_v0 = vld [vmem:[%s193_s1] sm:$0xff]   ;;  %108 = vmatprep.subr.bf16.mxu0 %v145_v1  ;;  %v120_v2 = vld [vmem:[%s193_s1 + $0x8] sm:$0xff]   ;;  %112 = vmatprep.mubr.msk.bf16.mxu0 %vm146_vm0, %v145_v1 }
   0x2   :  { %109 = vmatpush3.bf16.msra.mxu0 %v119_v0  ;;  %v16_v3 = vld [vmem:[%s192_s0] sm:$0x3] }
   0x3   :  { %110 = vmatprep.subr.bf16.mxu0 %v145_v1 }
   0x4   :  { %8 = vsyncpa [#allocation3], 0  ;;  %v17_v4 = vpack.c.bf16 %v16_v3, %v16_v3  ;;  %vm41_vm1 = vcmask 261120   ;;  %v101_v5 = vld [vmem:[%s194_s2] ss:$0 sm:$0xff]  ;;  %s147_s20 = smov [#allocation2]  }
   0x5   :  { %s93_s21 = sshll.u32 %s147_s20, 4  ;;  %vm85_vm2 = vcmask 254976   ;;  %s94_s21 = int_to_ptr.vmem [resolvable:$true] %s93_s21 }
   0x6   :  { %111 = vmatpush3.bf16.msra.mxu0 %v120_v2  ;;  %s121_s0 = scalar_lea.vmem %s94_s21, 32  ;;  %p126_p1 = scmp.lt.s32.totalorder %s94_s21, %s94_s21 }
   0x7   :  { %p122_p0 = scmp.ne.s32.totalorder %s94_s21, %s121_s0  ;;  %p127_p2 = scmp.lt.s32.totalorder %s121_s0, %s121_s0 }
   0x9   :  { %113 = vmatmul.mubr.msk.bf16.vlgmr.msra.gmra.mrb[0].mxu0 %vm41_vm1, %v17_v4  ;;  %p128_p3 = por %p127_p2, %p126_p1 }
   0xb   :  { %p129_p4 = pnand %p128_p3, %p122_p0 }
  0xdc   :  { %v79_v6 = vpop.f32.mrb[0].mxu0 }
  0xdd   :  { %v80_v7 = vadd.f32 %v101_v5, %v79_v6  ;;  %v114_v8 = vpop.f32.mrb[1].mxu0 }
  0xde   :  { %v82_v9 = vpop.f32.mrb[2].mxu0 }
  0xdf   :  { %v115_v10 = vpop.f32.mrb[3].mxu0  ;;  %86 = vst.msk [vmem:[#allocation2] sm:$0x3] %vm85_vm2, %v80_v7 }
  0xe0   :  { %132 = shalt.err (!%p129_p4)
}
  0xe1   :  { %s133_s2 = scalar_lea.hbm %s195_s3, 32 }
  0xe2   :  { %p134_p5 = scmp.ne.s32.totalorder %s195_s3, %s133_s2  ;;  %p137_p6 = scmp.lt.u32.totalorder %s133_s2, %s195_s3 }
  0xe4   :  { %p139_p7 = pnand %p137_p6, %p134_p5 }
  0xe6   :  { %142 = shalt.err (!%p139_p7)
}
  0xe7   :  { %96 = dma.vmem_to_hbm [thread:$0]  %s94_s21, 32, %s195_s3, [#allocation3]  }
  0xe8   :  { %143 = dma.done.wait [#allocation3], 32  }
  0xe9   :  { %144 = vsyncadd [#allocation3], 4294967264 }
  0xea   :  { %100 = vsyncpa [#allocation3], 1 }

// kernel: _lambda_.16
= control target key start
LH: loop header
LB: loop body
LE: loop exit
PB: predicated region body
PF: predicated region fallthrough
CT: control target
= control target key end

     0   :  { %vm35_vm0 = vcmask 256000   ;;  %v1874_v0 = vmov 0.0   ;;  %vm1875_vm1 = vmmov 0   ;;  %vm68_vm2 = vcmask 1041409   ;;  %s2203_s1 = inlined_call_operand.vmem [shape: bf16[9,32,32], index: 1, kind: input, shape index: {}]   ;;  %s2204_s0 = inlined_call_operand.vmem [shape: f32[2,1,1,32], index: 0, kind: input, shape index: {}]   ;;  %s2205_s5 = inlined_call_operand.vmem [shape: bf16[9,32,32], index: 5, kind: input, shape index: {}]   ;;  %s2206_s2 = inlined_call_operand.vmem [shape: f32[1,32], index: 2, kind: input, shape index: {}]   ;;  %s2207_s3 = inlined_call_operand.vmem [shape: f32[1,32], index: 3, kind: input, shape index: {}, may-alias: {3,7}]   ;;  %s2208_s4 = inlined_call_operand.vmem [shape: f32[1,32], index: 4, kind: input, shape index: {}, may-alias: {4,8}]   ;;  %s2209_s6 = inlined_call_operand.vmem [shape: f32[1,32], index: 6, kind: input, shape index: {}]   ;;  %s2210_s7 = inlined_call_operand.vmem [shape: f32[1,32], index: 7, kind: input, shape index: {}, may-alias: {3,7}]   ;;  %s2211_s8 = inlined_call_operand.vmem [shape: f32[1,32], index: 8, kind: input, shape index: {}, may-alias: {4,8}]   ;;  %s2212_s9 = inlined_call_operand.vmem [shape: f32[2,32], index: 9, kind: output, shape index: {}]  }
   0x1   :  { %1687 = vmatprep.subr.bf16.mxu0 %v1874_v0  ;;  %v1834_v1 = vld [vmem:[%s2203_s1 + $0x10] sm:$0xff]   ;;  %1695 = vmatprep.subr.bf16.mxu1 %v1874_v0  ;;  %36 = vst.msk [vmem:[#allocation2] sm:$0x7] %vm35_vm0, %v1874_v0  ;;  %39 = vst.msk [vmem:[#allocation2 + $0xc] sm:$0x7] %vm35_vm0, %v1874_v0  ;;  %v1835_v2 = vld [vmem:[%s2203_s1] sm:$0xff]  }
   0x2   :  { %37 = vst.msk [vmem:[#allocation2 + $0x4] sm:$0x7] %vm35_vm0, %v1874_v0  ;;  %38 = vst.msk [vmem:[#allocation2 + $0x8] sm:$0x7] %vm35_vm0, %v1874_v0  ;;  %1691 = vmatprep.mubr.msk.bf16.mxu0 %vm1875_vm1, %v1874_v0  ;;  %1699 = vmatprep.mubr.msk.bf16.mxu1 %vm1875_vm1, %v1874_v0  ;;  %v1836_v3 = vld [vmem:[%s2203_s1 + $0x18] sm:$0xff]   ;;  %v1837_v4 = vld [vmem:[%s2203_s1 + $0x8] sm:$0xff]  }
   0x3   :  { %40 = vst.msk [vmem:[#allocation2 + $0x10] sm:$0x7] %vm35_vm0, %v1874_v0  ;;  %41 = vst.msk [vmem:[#allocation2 + $0x14] sm:$0x7] %vm35_vm0, %v1874_v0  ;;  %1688 = vmatpush3.bf16.msra.mxu0 %v1834_v1  ;;  %1696 = vmatpush3.bf16.msra.mxu1 %v1835_v2  ;;  %vm43_vm3 = vcmask 253952   ;;  %vm83_vm4 = vcmask 261120  }
   0x4   :  { %1689 = vmatprep.subr.bf16.mxu0 %v1874_v0  ;;  %1697 = vmatprep.subr.bf16.mxu1 %v1874_v0  ;;  %v1838_v29 = vld [vmem:[%s2203_s1 + $0x20] sm:$0xff]   ;;  %v1839_v35 = vld [vmem:[%s2203_s1 + $0x30] sm:$0xff]   ;;  %v1840_v43 = vld [vmem:[%s2203_s1 + $0x28] sm:$0xff]   ;;  %vm702_vm5 = vcmask 254976  }
   0x5   :  { %v1962_v32 = vld [vmem:[%s2204_s0] sm:$0x1]  ;;  %v1971_v38 = vld [vmem:[%s2204_s0 + $0x1] sm:$0x1]  ;;  %v1841_v46 = vld [vmem:[%s2203_s1 + $0x38] sm:$0xff]  }
   0x6   :  { %44 = vst.msk [vmem:[#allocation2 + $0x5] sm:$0x1] %vm43_vm3, %v1962_v32  ;;  %45 = vst.msk [vmem:[#allocation2 + $0x11] sm:$0x1] %vm43_vm3, %v1971_v38  ;;  %v1842_v52 = vld [vmem:[%s2203_s1 + $0x40] sm:$0xff]   ;;  %v1843_v55 = vld [vmem:[%s2203_s1 + $0x50] sm:$0xff]  }
   0x7   :  { %1690 = vmatpush3.bf16.msra.mxu0 %v1836_v3  ;;  %1698 = vmatpush3.bf16.msra.mxu1 %v1837_v4  ;;  %v1844_v4 = vld [vmem:[%s2203_s1 + $0x48] sm:$0xff]  }
   0x8   :  { %1703 = vmatprep.subr.bf16.mxu0 %v1874_v0  ;;  %v54_v5 = vld [vmem:[#allocation2 + $0x1] sm:$0x1]  ;;  %v55_v6 = vld [vmem:[#allocation2 + $0xd] sm:$0x1]  ;;  %v46_v7 = vld [vmem:[#allocation2] sm:$0x1]  ;;  %1711 = vmatprep.subr.bf16.mxu1 %v1874_v0 }
   0x9   :  { %v56_v8 = vpack.c.bf16 %v54_v5, %v54_v5  ;;  %v57_v9 = vpack.c.bf16 %v55_v6, %v55_v6  ;;  %v47_v10 = vld [vmem:[#allocation2 + $0xc] sm:$0x1]  ;;  %v48_v11 = vpack.c.bf16 %v46_v7, %v46_v7  ;;  %v189_v13 = vld [vmem:[#allocation2 + $0x2] sm:$0x1]  ;;  %v190_v14 = vld [vmem:[#allocation2 + $0xe] sm:$0x1] }
   0xa   :  { %v49_v12 = vpack.c.bf16 %v47_v10, %v47_v10  ;;  %v191_v17 = vpack.c.bf16 %v189_v13, %v189_v13  ;;  %v192_v20 = vpack.c.bf16 %v190_v14, %v190_v14  ;;  %v261_v21 = vld [vmem:[#allocation2 + $0x4] sm:$0x1]  ;;  %v262_v22 = vld [vmem:[#allocation2 + $0x10] sm:$0x1]  ;;  %v405_v41 = vld [vmem:[#allocation2 + $0x6] sm:$0x1] }
   0xb   :  { %v65_v15 = vunpack.c.l.b16 %v56_v8  ;;  %v66_v16 = vunpack.c.l.b16 %v57_v9  ;;  %v129_v18 = vunpack.c.l.b16 %v48_v11  ;;  %v263_v24 = vpack.c.bf16 %v261_v21, %v261_v21  ;;  %v406_v42 = vld [vmem:[#allocation2 + $0x12] sm:$0x1]  ;;  %v479_v50 = vld [vmem:[#allocation2 + $0x14] sm:$0x1]  ;;  %v478_v53 = vld [vmem:[#allocation2 + $0x8] sm:$0x1] }
   0xc   :  { %v130_v19 = vunpack.c.l.b16 %v49_v12  ;;  %v264_v25 = vpack.c.bf16 %v262_v22, %v262_v22  ;;  %v201_v27 = vunpack.c.l.b16 %v192_v20  ;;  %v200_v30 = vunpack.c.l.b16 %v191_v17  ;;  %v551_v59 = vld [vmem:[#allocation2 + $0x15] sm:$0x1]  ;;  %v550_v2 = vld [vmem:[#allocation2 + $0x9] sm:$0x1]  ;;  %v1845_v8 = vld [vmem:[%s2203_s1 + $0x58] sm:$0xff]  }
   0xd   :  { %v67_v23 = vrot.slane %v66_v16, 7  ;;  %v272_v37 = vunpack.c.l.b16 %v263_v24  ;;  %v408_v45 = vpack.c.bf16 %v406_v42, %v406_v42  ;;  %v407_v48 = vpack.c.bf16 %v405_v41, %v405_v41  ;;  %v333_v56 = vld [vmem:[#allocation2 + $0x5] sm:$0x1]  ;;  %v334_v60 = vld [vmem:[#allocation2 + $0x11] sm:$0x1] }
   0xe   :  { %v131_v26 = vrot.slane %v130_v19, 7  ;;  %v273_v31 = vunpack.c.l.b16 %v264_v25  ;;  %v202_v36 = vrot.slane %v201_v27, 7  ;;  %v481_v58 = vpack.c.bf16 %v479_v50, %v479_v50  ;;  %v623_v12 = vld [vmem:[#allocation2 + $0x16] sm:$0x1]  ;;  %v1846_v16 = vld [vmem:[%s2203_s1 + $0x60] sm:$0xff]   ;;  %v1848_v25 = vld [vmem:[%s2203_s1 + $0x68] sm:$0xff]  }
   0xf   :  { %v69_v28 = vsel %vm68_vm2, %v67_v23, %v65_v15  ;;  %v417_v49 = vunpack.c.l.b16 %v408_v45  ;;  %v335_v61 = vpack.c.bf16 %v333_v56, %v333_v56  ;;  %v416_v62 = vunpack.c.l.b16 %v407_v48  ;;  %v1847_v21 = vld [vmem:[%s2203_s1 + $0x70] sm:$0xff]   ;;  %v622_v24 = vld [vmem:[#allocation2 + $0xa] sm:$0x1]  ;;  %v778_v41 = vld [vmem:[#allocation2 + $0xd] sm:$0x1] }
  0x10   :  { %v70_v33 = vpack.c.b16 %v69_v28, %v69_v28  ;;  %v132_v34 = vsel %vm68_vm2, %v131_v26, %v129_v18  ;;  %v274_v40 = vrot.slane %v273_v31, 7  ;;  %v203_v44 = vsel %vm68_vm2, %v202_v36, %v200_v30  ;;  %v1852_v42 = vld [vmem:[%s2205_s5 + $0x10] sm:$0xff]   ;;  %v769_v50 = vld [vmem:[#allocation2] sm:$0x1] }
  0x11   :  { %v133_v39 = vpack.c.b16 %v132_v34, %v132_v34  ;;  %v204_v51 = vpack.c.b16 %v203_v44, %v203_v44  ;;  %v418_v57 = vrot.slane %v417_v49, 7  ;;  %v553_v63 = vpack.c.bf16 %v551_v59, %v551_v59  ;;  %v1853_v44 = vld [vmem:[%s2205_s5] sm:$0xff]  }
  0x12   :  { %1692 = vmatmul.mubr.msk.bf16.vlgmr.msra.gmra.mrb[0].mxu0 %vm83_vm4, %v70_v33  ;;  %v275_v47 = vsel %vm68_vm2, %v274_v40, %v272_v37  ;;  %v336_v1 = vpack.c.bf16 %v334_v60, %v334_v60  ;;  %v480_v3 = vpack.c.bf16 %v478_v53, %v478_v53  ;;  %v344_v5 = vunpack.c.l.b16 %v335_v61  ;;  %v1850_v33 = vld [vmem:[%s2203_s1 + $0x80] sm:$0xff]   ;;  %v1851_v37 = vld [vmem:[%s2203_s1 + $0x88] sm:$0xff]  }
  0x13   :  { %1700 = vmatmul.mubr.msk.bf16.vlgmr.msra.gmra.mrb[0].mxu1 %vm83_vm4, %v133_v39  ;;  %1704 = vmatpush3.bf16.msra.mxu0 %v1838_v29  ;;  %v276_v54 = vpack.c.b16 %v275_v47, %v275_v47  ;;  %v490_v7 = vunpack.c.l.b16 %v481_v58  ;;  %v419_v9 = vsel %vm68_vm2, %v418_v57, %v416_v62  ;;  %v552_v10 = vpack.c.bf16 %v550_v2, %v550_v2  ;;  %v1849_v29 = vld [vmem:[%s2203_s1 + $0x78] sm:$0xff]   ;;  %v777_v47 = vld [vmem:[#allocation2 + $0x1] sm:$0x1]  ;;  %v910_v60 = vld [vmem:[#allocation2 + $0x2] sm:$0x1] }
  0x14   :  { %1705 = vmatprep.subr.bf16.mxu0 %v1874_v0  ;;  %1712 = vmatpush3.bf16.msra.mxu1 %v1839_v35  ;;  %v345_v6 = vunpack.c.l.b16 %v336_v1  ;;  %v562_v11 = vunpack.c.l.b16 %v553_v63  ;;  %v489_v14 = vunpack.c.l.b16 %v480_v3  ;;  %v420_v17 = vpack.c.b16 %v419_v9, %v419_v9  ;;  %v1856_v56 = vld [vmem:[%s2205_s5 + $0x20] sm:$0xff]   ;;  %v911_v61 = vld [vmem:[#allocation2 + $0xe] sm:$0x1]  ;;  %v983_v62 = vld [vmem:[#allocation2 + $0x10] sm:$0x1] }
  0x15   :  { %1713 = vmatprep.subr.bf16.mxu1 %v1874_v0  ;;  %1707 = vmatprep.mubr.msk.bf16.mxu0 %vm1875_vm1, %v1874_v0  ;;  %v491_v18 = vrot.slane %v490_v7, 7  ;;  %v625_v19 = vpack.c.bf16 %v623_v12, %v623_v12  ;;  %v561_v22 = vunpack.c.l.b16 %v552_v10  ;;  %v624_v27 = vpack.c.bf16 %v622_v24, %v622_v24  ;;  %v1858_v12 = vld [vmem:[%s2205_s5 + $0x28] sm:$0xff]  }
  0x16   :  { %1715 = vmatprep.mubr.msk.bf16.mxu1 %vm1875_vm1, %v1874_v0  ;;  %v346_v13 = vrot.slane %v345_v6, 7  ;;  %v563_v23 = vrot.slane %v562_v11, 7  ;;  %v779_v49 = vpack.c.bf16 %v777_v47, %v777_v47  ;;  %v771_v53 = vpack.c.bf16 %v769_v50, %v769_v50  ;;  %v1857_v11 = vld [vmem:[%s2205_s5 + $0x30] sm:$0xff]   ;;  %v1862_v24 = vld [vmem:[%s2205_s5 + $0x48] sm:$0xff]  }
  0x17   :  { %1706 = vmatpush3.bf16.msra.mxu0 %v1840_v43  ;;  %v492_v26 = vsel %vm68_vm2, %v491_v18, %v489_v14  ;;  %v634_v28 = vunpack.c.l.b16 %v625_v19  ;;  %v633_v35 = vunpack.c.l.b16 %v624_v27  ;;  %v780_v43 = vpack.c.bf16 %v778_v41, %v778_v41  ;;  %v1860_v18 = vld [vmem:[%s2205_s5 + $0x40] sm:$0xff]   ;;  %v1863_v27 = vld [vmem:[%s2205_s5 + $0x58] sm:$0xff]  }
  0x18   :  { %1714 = vmatpush3.bf16.msra.mxu1 %v1841_v46  ;;  %1719 = vmatprep.subr.bf16.mxu0 %v1874_v0  ;;  %v347_v15 = vsel %vm68_vm2, %v346_v13, %v344_v5  ;;  %v564_v30 = vsel %vm68_vm2, %v563_v23, %v561_v22  ;;  %v493_v31 = vpack.c.b16 %v492_v26, %v492_v26  ;;  %v1854_v46 = vld [vmem:[%s2205_s5 + $0x18] sm:$0xff]   ;;  %v850_v58 = vunpack.c.l.b16 %v771_v53  ;;  %v982_v5 = vld [vmem:[#allocation2 + $0x4] sm:$0x1]  ;;  %v1861_v23 = vld [vmem:[%s2205_s5 + $0x50] sm:$0xff]  }
  0x19   :  { %1727 = vmatprep.subr.bf16.mxu1 %v1874_v0  ;;  %v348_v20 = vpack.c.b16 %v347_v15, %v347_v15  ;;  %v565_v34 = vpack.c.b16 %v564_v30, %v564_v30  ;;  %v635_v36 = vrot.slane %v634_v28, 7  ;;  %v789_v45 = vunpack.c.l.b16 %v780_v43  ;;  %v1126_v28 = vld [vmem:[#allocation2 + $0x6] sm:$0x1]  ;;  %v1867_v43 = vld [vmem:[%s2205_s5 + $0x78] sm:$0xff]  }
  0x1a   :  { %1708 = vmatmul.mubr.msk.bf16.vlgmr.msra.gmra.mrb[4].mxu0 %vm83_vm4, %v204_v51  ;;  %v1855_v51 = vld [vmem:[%s2205_s5 + $0x8] sm:$0xff]   ;;  %v912_v1 = vpack.c.bf16 %v910_v60, %v910_v60  ;;  %v913_v2 = vpack.c.bf16 %v911_v61, %v911_v61  ;;  %v985_v3 = vpack.c.bf16 %v983_v62, %v983_v62 }
  0x1b   :  { %1720 = vmatpush3.bf16.msra.mxu0 %v1842_v52  ;;  %1716 = vmatmul.mubr.msk.bf16.vlgmr.msra.gmra.mrb[4].mxu1 %vm83_vm4, %v276_v54  ;;  %v636_v39 = vsel %vm68_vm2, %v635_v36, %v633_v35  ;;  %v790_v48 = vrot.slane %v789_v45, 7  ;;  %v770_v52 = vld [vmem:[#allocation2 + $0xc] sm:$0x1]  ;;  %v788_v54 = vunpack.c.l.b16 %v779_v49  ;;  %v1271_v36 = vld [vmem:[#allocation2 + $0x15] sm:$0x1] }
  0x1c   :  { %1721 = vmatprep.subr.bf16.mxu0 %v1874_v0  ;;  %1728 = vmatpush3.bf16.msra.mxu1 %v1843_v55  ;;  %v637_v40 = vpack.c.b16 %v636_v39, %v636_v39  ;;  %v772_v55 = vpack.c.bf16 %v770_v52, %v770_v52  ;;  %v921_v6 = vunpack.c.l.b16 %v912_v1  ;;  %v922_v7 = vunpack.c.l.b16 %v913_v2 }
  0x1d   :  { %1729 = vmatprep.subr.bf16.mxu1 %v1874_v0  ;;  %1723 = vmatprep.mubr.msk.bf16.mxu0 %vm1875_vm1, %v1874_v0  ;;  %v791_v57 = vsel %vm68_vm2, %v790_v48, %v788_v54  ;;  %v994_v9 = vunpack.c.l.b16 %v985_v3  ;;  %v1273_v39 = vpack.c.bf16 %v1271_v36, %v1271_v36 }
  0x1e   :  { %1731 = vmatprep.mubr.msk.bf16.mxu1 %vm1875_vm1, %v1874_v0  ;;  %v851_v59 = vunpack.c.l.b16 %v772_v55  ;;  %v792_v63 = vpack.c.b16 %v791_v57, %v791_v57  ;;  %v923_v14 = vrot.slane %v922_v7, 7 }
  0x1f   :  { %1722 = vmatpush3.bf16.msra.mxu0 %v1844_v4 }
  0x20   :  { %1730 = vmatpush3.bf16.msra.mxu1 %v1845_v8  ;;  %1735 = vmatprep.subr.bf16.mxu0 %v1874_v0  ;;  %v852_v4 = vrot.slane %v851_v59, 7  ;;  %v984_v8 = vpack.c.bf16 %v982_v5, %v982_v5  ;;  %v924_v19 = vsel %vm68_vm2, %v923_v14, %v921_v6 }
  0x21   :  { %1743 = vmatprep.subr.bf16.mxu1 %v1874_v0 }
  0x22   :  { %1724 = vmatmul.mubr.msk.bf16.vlgmr.msra.gmra.mrb[8].mxu0 %vm83_vm4, %v348_v20  ;;  %v853_v10 = vsel %vm68_vm2, %v852_v4, %v850_v58  ;;  %v993_v15 = vunpack.c.l.b16 %v984_v8  ;;  %v925_v20 = vpack.c.b16 %v924_v19, %v924_v19 }
  0x23   :  { %1736 = vmatpush3.bf16.msra.mxu0 %v1846_v16  ;;  %1732 = vmatmul.mubr.msk.bf16.vlgmr.msra.gmra.mrb[8].mxu1 %vm83_vm4, %v420_v17  ;;  %v854_v13 = vpack.c.b16 %v853_v10, %v853_v10  ;;  %v995_v16 = vrot.slane %v994_v9, 7  ;;  %v1859_v17 = vld [vmem:[%s2205_s5 + $0x38] sm:$0xff]  }
  0x24   :  { %1737 = vmatprep.subr.bf16.mxu0 %v1874_v0  ;;  %1744 = vmatpush3.bf16.msra.mxu1 %v1847_v21 }
  0x25   :  { %1745 = vmatprep.subr.bf16.mxu1 %v1874_v0  ;;  %1739 = vmatprep.mubr.msk.bf16.mxu0 %vm1875_vm1, %v1874_v0  ;;  %v996_v21 = vsel %vm68_vm2, %v995_v16, %v993_v15 }
  0x26   :  { %1747 = vmatprep.mubr.msk.bf16.mxu1 %vm1875_vm1, %v1874_v0  ;;  %v997_v22 = vpack.c.b16 %v996_v21, %v996_v21 }
  0x27   :  { %1738 = vmatpush3.bf16.msra.mxu0 %v1848_v25  ;;  %v1127_v25 = vld [vmem:[#allocation2 + $0x12] sm:$0x1] }
  0x28   :  { %1746 = vmatpush3.bf16.msra.mxu1 %v1849_v29  ;;  %1751 = vmatprep.subr.bf16.mxu0 %v1874_v0  ;;  %v1129_v26 = vpack.c.bf16 %v1127_v25, %v1127_v25  ;;  %v1128_v29 = vpack.c.bf16 %v1126_v28, %v1126_v28  ;;  %v1568_v25 = vld [vmem:[%s2206_s2] ss:$0 sm:$0xff] }
  0x29   :  { %1759 = vmatprep.subr.bf16.mxu1 %v1874_v0 }
  0x2a   :  { %1740 = vmatmul.mubr.msk.bf16.vlgmr.msra.gmra.mrb[12].mxu0 %vm83_vm4, %v493_v31  ;;  %v1138_v30 = vunpack.c.l.b16 %v1129_v26  ;;  %v1137_v31 = vunpack.c.l.b16 %v1128_v29 }
  0x2b   :  { %1752 = vmatpush3.bf16.msra.mxu0 %v1850_v33  ;;  %1748 = vmatmul.mubr.msk.bf16.vlgmr.msra.gmra.mrb[12].mxu1 %vm83_vm4, %v565_v34 }
  0x2c   :  { %1753 = vmatprep.subr.bf16.mxu0 %v1874_v0  ;;  %1755 = vmatprep.mubr.msk.bf16.mxu0 %vm1875_vm1, %v1874_v0  ;;  %v1139_v33 = vrot.slane %v1138_v30, 7 }
  0x2d   :  { %1763 = vmatprep.mubr.msk.bf16.mxu1 %vm1875_vm1, %v1874_v0  ;;  %1760 = vmatpush3.bf16.msra.mxu1 %v1852_v42  ;;  %v1282_v42 = vunpack.c.l.b16 %v1273_v39 }
  0x2e   :  { %1761 = vmatprep.subr.bf16.mxu1 %v1874_v0  ;;  %v1140_v34 = vsel %vm68_vm2, %v1139_v33, %v1137_v31 }
  0x2f   :  { %1754 = vmatpush3.bf16.msra.mxu0 %v1851_v37  ;;  %v1141_v35 = vpack.c.b16 %v1140_v34, %v1140_v34  ;;  %v1865_v37 = vld [vmem:[%s2205_s5 + $0x70] sm:$0xff]   ;;  %v1283_v45 = vrot.slane %v1282_v42, 7 }
  0x30   :  { %1767 = vmatprep.subr.bf16.mxu0 %v1874_v0 }
  0x31   :  { %1762 = vmatpush3.bf16.msra.mxu1 %v1854_v46 }
  0x32   :  { %1756 = vmatmul.mubr.msk.bf16.vlgmr.msra.gmra.mrb[16].mxu0 %vm83_vm4, %v637_v40  ;;  %1775 = vmatprep.subr.bf16.mxu1 %v1874_v0  ;;  %v1270_v40 = vld [vmem:[#allocation2 + $0x9] sm:$0x1] }
  0x33   :  { %1771 = vmatprep.mubr.msk.bf16.mxu0 %vm1875_vm1, %v1874_v0  ;;  %1768 = vmatpush3.bf16.msra.mxu0 %v1853_v44  ;;  %v1272_v41 = vpack.c.bf16 %v1270_v40, %v1270_v40 }
  0x34   :  { %1769 = vmatprep.subr.bf16.mxu0 %v1874_v0  ;;  %1764 = vmatmul.mubr.msk.bf16.vlgmr.msra.gmra.mrb[16].mxu1 %vm83_vm4, %v792_v63 }
  0x35   :  { %1776 = vmatpush3.bf16.msra.mxu1 %v1856_v56  ;;  %1779 = vmatprep.mubr.msk.bf16.mxu1 %vm1875_vm1, %v1874_v0  ;;  %v1281_v44 = vunpack.c.l.b16 %v1272_v41 }
  0x36   :  { %1777 = vmatprep.subr.bf16.mxu1 %v1874_v0 }
  0x37   :  { %1770 = vmatpush3.bf16.msra.mxu0 %v1855_v51  ;;  %v1284_v46 = vsel %vm68_vm2, %v1283_v45, %v1281_v44 }
  0x38   :  { %1783 = vmatprep.subr.bf16.mxu0 %v1874_v0  ;;  %v1285_v47 = vpack.c.b16 %v1284_v46, %v1284_v46 }
  0x39   :  { %1778 = vmatpush3.bf16.msra.mxu1 %v1858_v12 }
  0x3a   :  { %1772 = vmatmul.mubr.msk.bf16.vlgmr.msra.gmra.mrb[20].mxu0 %vm83_vm4, %v854_v13  ;;  %1791 = vmatprep.subr.bf16.mxu1 %v1874_v0 }
  0x3b   :  { %1784 = vmatpush3.bf16.msra.mxu0 %v1857_v11  ;;  %1787 = vmatprep.mubr.msk.bf16.mxu0 %vm1875_vm1, %v1874_v0 }
  0x3c   :  { %1785 = vmatprep.subr.bf16.mxu0 %v1874_v0  ;;  %1780 = vmatmul.mubr.msk.bf16.vlgmr.msra.gmra.mrb[20].mxu1 %vm83_vm4, %v925_v20 }
  0x3d   :  { %1792 = vmatpush3.bf16.msra.mxu1 %v1860_v18  ;;  %1795 = vmatprep.mubr.msk.bf16.mxu1 %vm1875_vm1, %v1874_v0 }
  0x3e   :  { %1793 = vmatprep.subr.bf16.mxu1 %v1874_v0 }
  0x3f   :  { %1786 = vmatpush3.bf16.msra.mxu0 %v1859_v17 }
  0x40   :  { %1799 = vmatprep.subr.bf16.mxu0 %v1874_v0 }
  0x41   :  { %1794 = vmatpush3.bf16.msra.mxu1 %v1862_v24 }
  0x42   :  { %1788 = vmatmul.mubr.msk.bf16.vlgmr.msra.gmra.mrb[24].mxu0 %vm83_vm4, %v997_v22  ;;  %1807 = vmatprep.subr.bf16.mxu1 %v1874_v0 }
  0x43   :  { %1800 = vmatpush3.bf16.msra.mxu0 %v1861_v23  ;;  %1803 = vmatprep.mubr.msk.bf16.mxu0 %vm1875_vm1, %v1874_v0 }
  0x44   :  { %1801 = vmatprep.subr.bf16.mxu0 %v1874_v0 }
  0x47   :  { %1802 = vmatpush3.bf16.msra.mxu0 %v1863_v27 }
  0x48   :  { %1815 = vmatprep.subr.bf16.mxu0 %v1874_v0 }
  0x4a   :  { %1804 = vmatmul.mubr.msk.bf16.vlgmr.msra.gmra.mrb[28].mxu0 %vm83_vm4, %v1141_v35 }
  0x4b   :  { %1816 = vmatpush3.bf16.msra.mxu0 %v1865_v37  ;;  %1819 = vmatprep.mubr.msk.bf16.mxu0 %vm1875_vm1, %v1874_v0 }
  0x4c   :  { %1817 = vmatprep.subr.bf16.mxu0 %v1874_v0 }
  0x4f   :  { %1818 = vmatpush3.bf16.msra.mxu0 %v1867_v43 }
  0x52   :  { %1820 = vmatmul.mubr.msk.bf16.vlgmr.msra.gmra.mrb[32].mxu0 %vm83_vm4, %v1285_v47 }
  0xe5   :  { %v121_v48 = vpop.f32.mrb[0].mxu0 }
  0xe6   :  { %v183_v49 = vpop.f32.mrb[0].mxu1  ;;  %v1693_v50 = vpop.f32.mrb[1].mxu0 }
  0xe7   :  { %v184_v51 = vadd.f32 %v183_v49, %v121_v48  ;;  %v124_v52 = vpop.f32.mrb[2].mxu0  ;;  %v1701_v53 = vpop.f32.mrb[1].mxu1 }
  0xe8   :  { %v1694_v54 = vpop.f32.mrb[3].mxu0  ;;  %v186_v55 = vpop.f32.mrb[2].mxu1  ;;  %v1876_v52 = vmov 1966171168  }
  0xe9   :  { %v1702_v56 = vpop.f32.mrb[3].mxu1  ;;  %v744_v53 = vunpack.c.l.s4 %v1876_v52  ;;  %v746_v54 = vlaneseq }
  0xea   :  { %v1569_v56 = vld [vmem:[%s2207_s3] ss:$0 sm:$0xff] }
  0xed   :  { %v254_v57 = vpop.f32.mrb[4].mxu0 }
  0xee   :  { %v260_v58 = vadd.f32 %v254_v57, %v184_v51  ;;  %v1709_v59 = vpop.f32.mrb[5].mxu0  ;;  %v326_v60 = vpop.f32.mrb[4].mxu1 }
  0xef   :  { %v257_v61 = vpop.f32.mrb[6].mxu0  ;;  %v1717_v62 = vpop.f32.mrb[5].mxu1  ;;  %v747_v59 = vshrl.u32 %v746_v54, 7 }
  0xf0   :  { %v332_v63 = vadd.f32 %v326_v60, %v260_v58  ;;  %v1710_v1 = vpop.f32.mrb[7].mxu0  ;;  %v329_v2 = vpop.f32.mrb[6].mxu1  ;;  %v745_v58 = vunpack.c.0.s8 %v744_v53  ;;  %v1570_v60 = vld [vmem:[%s2208_s4] ss:$0 sm:$0xff] }
  0xf1   :  { %v1718_v3 = vpop.f32.mrb[7].mxu1 }
  0xf5   :  { %v398_v4 = vpop.f32.mrb[8].mxu0 }
  0xf6   :  { %v404_v5 = vadd.f32 %v398_v4, %v332_v63  ;;  %v1725_v6 = vpop.f32.mrb[9].mxu0  ;;  %v470_v7 = vpop.f32.mrb[8].mxu1  ;;  %v2149_v63 = vsub.s32 %v745_v58, %v747_v59 }
  0xf7   :  { %v401_v8 = vpop.f32.mrb[10].mxu0  ;;  %v1733_v9 = vpop.f32.mrb[9].mxu1  ;;  %v1199_v6 = vld [vmem:[#allocation2 + $0x14] sm:$0x1] }
  0xf8   :  { %v476_v10 = vadd.f32 %v470_v7, %v404_v5  ;;  %v1726_v11 = vpop.f32.mrb[11].mxu0  ;;  %v473_v12 = vpop.f32.mrb[10].mxu1  ;;  %v1201_v8 = vpack.c.bf16 %v1199_v6, %v1199_v6 }
  0xf9   :  { %v1734_v13 = vpop.f32.mrb[11].mxu1 }
  0xfd   :  { %v543_v14 = vpop.f32.mrb[12].mxu0 }
  0xfe   :  { %v549_v15 = vadd.f32 %v543_v14, %v476_v10  ;;  %v1741_v16 = vpop.f32.mrb[13].mxu0  ;;  %v615_v17 = vpop.f32.mrb[12].mxu1  ;;  %v1198_v10 = vld [vmem:[#allocation2 + $0x8] sm:$0x1] }
  0xff   :  { %v546_v18 = vpop.f32.mrb[14].mxu0  ;;  %v1749_v19 = vpop.f32.mrb[13].mxu1  ;;  %v1200_v14 = vpack.c.bf16 %v1198_v10, %v1198_v10  ;;  %v1343_v16 = vld [vmem:[#allocation2 + $0x16] sm:$0x1] }
 0x100   :  { %v621_v20 = vadd.f32 %v615_v17, %v549_v15  ;;  %v1742_v21 = vpop.f32.mrb[15].mxu0  ;;  %v618_v22 = vpop.f32.mrb[14].mxu1  ;;  %v1210_v15 = vunpack.c.l.b16 %v1201_v8 }
 0x101   :  { %v1750_v23 = vpop.f32.mrb[15].mxu1  ;;  %v1209_v21 = vunpack.c.l.b16 %v1200_v14 }
 0x102   :  { %v1211_v22 = vrot.slane %v1210_v15, 7  ;;  %v1345_v23 = vpack.c.bf16 %v1343_v16, %v1343_v16  ;;  %v1630_v16 = vld [vmem:[%s2209_s6] ss:$0 sm:$0xff] }
 0x105   :  { %v687_v24 = vpop.f32.mrb[16].mxu0 }
 0x106   :  { %v693_v26 = vadd.f32 %v687_v24, %v621_v20  ;;  %v1757_v27 = vpop.f32.mrb[17].mxu0  ;;  %v1864_v20 = vld [vmem:[%s2205_s5 + $0x60] sm:$0xff]  }
 0x107   :  { %v690_v28 = vpop.f32.mrb[18].mxu0  ;;  %v1212_v27 = vsel %vm68_vm2, %v1211_v22, %v1209_v21 }
 0x108   :  { %v701_v29 = vadd.f32 %v1568_v25, %v693_v26  ;;  %v1758_v30 = vpop.f32.mrb[19].mxu0  ;;  %v1342_v25 = vld [vmem:[#allocation2 + $0xa] sm:$0x1] }
 0x109   :  { %v1866_v26 = vld [vmem:[%s2205_s5 + $0x68] sm:$0xff]   ;;  %v1344_v28 = vpack.c.bf16 %v1342_v25, %v1342_v25  ;;  %v1213_v30 = vpack.c.b16 %v1212_v27, %v1212_v27 }
 0x10a   :  { %v703_v31 = vsel %vm702_vm5, %v701_v29, 0.0 }
 0x10b   :  { %v704_v33 = vrot.slane %v703_v31, 4 }
 0x10d   :  { %v705_v34 = vadd.f32 %v704_v33, %v703_v31  ;;  %v1868_v31 = vld [vmem:[%s2205_s5 + $0x80] sm:$0xff]   ;;  %v1353_v33 = vunpack.c.l.b16 %v1344_v28 }
 0x10f   :  { %v706_v35 = vrot.slane %v705_v34, 2 }
 0x111   :  { %v707_v36 = vadd.f32 %v706_v35, %v705_v34  ;;  %v1869_v35 = vld [vmem:[%s2205_s5 + $0x88] sm:$0xff]  }
 0x113   :  { %v708_v37 = vrot.slane %v707_v36, 1 }
 0x115   :  { %v709_v39 = vadd.f32 %v708_v37, %v707_v36 }
 0x117   :  { %v711_v40 = vmul.f32 0.5, %v709_v39  ;;  %v842_v39 = vpop.f32.mrb[16].mxu1 }
 0x119   :  { %v712_v41 = vsub.f32 %v701_v29, %v711_v40  ;;  %v1354_v29 = vunpack.c.l.b16 %v1345_v23  ;;  %v1765_v40 = vpop.f32.mrb[17].mxu1 }
 0x11b   :  { %v713_v42 = vmul.f32 %v712_v41, %v712_v41  ;;  %v1355_v34 = vrot.slane %v1354_v29, 7 }
 0x11d   :  { %v714_v43 = vsel %vm702_vm5, %v713_v42, 0.0  ;;  %v1356_v36 = vsel %vm68_vm2, %v1355_v34, %v1353_v33 }
 0x11e   :  { %v715_v44 = vrot.slane %v714_v43, 4  ;;  %v1357_v37 = vpack.c.b16 %v1356_v36, %v1356_v36 }
 0x120   :  { %v716_v45 = vadd.f32 %v715_v44, %v714_v43  ;;  %v904_v43 = vpop.f32.mrb[20].mxu0 }
 0x121   :  { %v905_v44 = vadd.f32 %v904_v43, %v842_v39 }
 0x122   :  { %v717_v46 = vrot.slane %v716_v45, 2 }
 0x124   :  { %v718_v47 = vadd.f32 %v717_v46, %v716_v45  ;;  %v1773_v45 = vpop.f32.mrb[21].mxu0 }
 0x125   :  { %v907_v46 = vpop.f32.mrb[22].mxu0 }
 0x126   :  { %v719_v48 = vrot.slane %v718_v47, 1  ;;  %v1632_v46 = vld [vmem:[%s2211_s8] ss:$0 sm:$0xff] }
 0x128   :  { %v720_v49 = vadd.f32 %v719_v48, %v718_v47  ;;  %v1774_v47 = vpop.f32.mrb[23].mxu0 }
 0x129   :  { %v1047_v53 = vpop.f32.mrb[24].mxu0 }
 0x12a   :  { %v721_v50 = vmul.f32 0.5, %v720_v49  ;;  %v1789_v54 = vpop.f32.mrb[25].mxu0 }
 0x12c   :  { %v722_v51 = vadd.f32 1e-05, %v721_v50 }
 0x12e   :  { %1870 = vrsqrt.f32 %v722_v51 }
 0x138   :  { %v1871_v55 = vpop.eup %1870 }
 0x139   :  { %v724_v57 = vmul.f32 %v1871_v55, %v712_v41  ;;  %v845_v41 = vpop.f32.mrb[18].mxu1  ;;  %v1050_v55 = vpop.f32.mrb[26].mxu0 }
 0x13a   :  { %v1766_v42 = vpop.f32.mrb[19].mxu1 }
 0x13b   :  { %v732_v61 = vmul.f32 %v1569_v56, %v724_v57  ;;  %v975_v48 = vpop.f32.mrb[20].mxu1  ;;  %v1790_v56 = vpop.f32.mrb[27].mxu0 }
 0x13c   :  { %v981_v49 = vadd.f32 %v975_v48, %v905_v44  ;;  %v1781_v50 = vpop.f32.mrb[21].mxu1  ;;  %v1191_v57 = vpop.f32.mrb[28].mxu0  ;;  %v1631_v44 = vld [vmem:[%s2210_s7] ss:$0 sm:$0xff] }
 0x13d   :  { %v740_v62 = vadd.f32 %v1570_v60, %v732_v61  ;;  %v978_v51 = vpop.f32.mrb[22].mxu1  ;;  %v1805_v58 = vpop.f32.mrb[29].mxu0 }
 0x13e   :  { %v1782_v52 = vpop.f32.mrb[23].mxu1  ;;  %v1194_v59 = vpop.f32.mrb[30].mxu0 }
 0x13f   :  { %v741_v1 = vmax.f32 %v740_v62, 0.0  ;;  %v1806_v60 = vpop.f32.mrb[31].mxu0 }
 0x140   :  { %v1335_v61 = vpop.f32.mrb[32].mxu0 }
 0x141   :  { %v749_v2 = vrot.slane %v741_v1, %v2149_v63  ;;  %v1821_v62 = vpop.f32.mrb[33].mxu0 }
 0x142   :  { %v1338_v1 = vpop.f32.mrb[34].mxu0 }
 0x143   :  { %v750_v3 = vcombine.high %v749_v2, %v749_v2  ;;  %v757_v4 = vrot.slane %v749_v2, %v2149_v63  ;;  %v1822_v2 = vpop.f32.mrb[35].mxu0 }
 0x145   :  { %v764_v5 = vrot.slane %v750_v3, %v2149_v63  ;;  %767 = vst.msk [vmem:[#allocation2 + $0x5] sm:$0x1] %vm43_vm3, %v757_v4 }
 0x147   :  { %768 = vst.msk [vmem:[#allocation2 + $0x11] sm:$0x1] %vm43_vm3, %v764_v5 }
 0x14c   :  { %v1054_v7 = vld [vmem:[#allocation2 + $0x5] sm:$0x1] }
 0x14d   :  { %v1056_v11 = vpack.c.bf16 %v1054_v7, %v1054_v7 }
 0x14e   :  { %v1055_v9 = vld [vmem:[#allocation2 + $0x11] sm:$0x1] }
 0x14f   :  { %v1057_v12 = vpack.c.bf16 %v1055_v9, %v1055_v9  ;;  %v1065_v17 = vunpack.c.l.b16 %v1056_v11 }
 0x151   :  { %v1066_v13 = vunpack.c.l.b16 %v1057_v12 }
 0x153   :  { %v1067_v18 = vrot.slane %v1066_v13, 7 }
 0x155   :  { %v1068_v19 = vsel %vm68_vm2, %v1067_v18, %v1065_v17 }
 0x156   :  { %v1069_v24 = vpack.c.b16 %v1068_v19, %v1068_v19 }
 0x158   :  { %1796 = vmatmul.mubr.msk.bf16.vlgmr.msra.gmra.mrb[24].mxu1 %vm83_vm4, %v1069_v24 }
 0x159   :  { %1808 = vmatpush3.bf16.msra.mxu1 %v1864_v20  ;;  %1811 = vmatprep.mubr.msk.bf16.mxu1 %vm1875_vm1, %v1874_v0 }
 0x15a   :  { %1809 = vmatprep.subr.bf16.mxu1 %v1874_v0 }
 0x15d   :  { %1810 = vmatpush3.bf16.msra.mxu1 %v1866_v26 }
 0x15e   :  { %1823 = vmatprep.subr.bf16.mxu1 %v1874_v0 }
 0x160   :  { %1812 = vmatmul.mubr.msk.bf16.vlgmr.msra.gmra.mrb[28].mxu1 %vm83_vm4, %v1213_v30 }
 0x161   :  { %1824 = vmatpush3.bf16.msra.mxu1 %v1868_v31  ;;  %1827 = vmatprep.mubr.msk.bf16.mxu1 %vm1875_vm1, %v1874_v0 }
 0x162   :  { %1825 = vmatprep.subr.bf16.mxu1 %v1874_v0  ;;  %v1053_v0 = vadd.f32 %v1047_v53, %v981_v49 }
 0x165   :  { %1826 = vmatpush3.bf16.msra.mxu1 %v1869_v35 }
 0x168   :  { %1828 = vmatmul.mubr.msk.bf16.vlgmr.msra.gmra.mrb[32].mxu1 %vm83_vm4, %v1357_v37 }
 0x22b   :  { %v1119_v3 = vpop.f32.mrb[24].mxu1 }
 0x22c   :  { %v1125_v4 = vadd.f32 %v1119_v3, %v1053_v0  ;;  %v1797_v5 = vpop.f32.mrb[25].mxu1 }
 0x22d   :  { %v1122_v6 = vpop.f32.mrb[26].mxu1 }
 0x22e   :  { %v1197_v7 = vadd.f32 %v1191_v57, %v1125_v4  ;;  %v1798_v8 = vpop.f32.mrb[27].mxu1 }
 0x233   :  { %v1263_v9 = vpop.f32.mrb[28].mxu1 }
 0x234   :  { %v1269_v10 = vadd.f32 %v1263_v9, %v1197_v7  ;;  %v1813_v11 = vpop.f32.mrb[29].mxu1 }
 0x235   :  { %v1266_v12 = vpop.f32.mrb[30].mxu1 }
 0x236   :  { %v1341_v13 = vadd.f32 %v1335_v61, %v1269_v10  ;;  %v1814_v14 = vpop.f32.mrb[31].mxu1 }
 0x23b   :  { %v1407_v15 = vpop.f32.mrb[32].mxu1 }
 0x23c   :  { %v1413_v17 = vadd.f32 %v1407_v15, %v1341_v13  ;;  %v1829_v18 = vpop.f32.mrb[33].mxu1 }
 0x23d   :  { %v1410_v19 = vpop.f32.mrb[34].mxu1 }
 0x23e   :  { %v1421_v20 = vadd.f32 %v1630_v16, %v1413_v17  ;;  %v1830_v21 = vpop.f32.mrb[35].mxu1 }
 0x240   :  { %v1422_v22 = vsel %vm702_vm5, %v1421_v20, 0.0 }
 0x241   :  { %v1423_v23 = vrot.slane %v1422_v22, 4 }
 0x243   :  { %v1424_v24 = vadd.f32 %v1423_v23, %v1422_v22 }
 0x245   :  { %v1425_v25 = vrot.slane %v1424_v24, 2 }
 0x247   :  { %v1426_v26 = vadd.f32 %v1425_v25, %v1424_v24 }
 0x249   :  { %v1427_v27 = vrot.slane %v1426_v26, 1 }
 0x24b   :  { %v1428_v28 = vadd.f32 %v1427_v27, %v1426_v26 }
 0x24d   :  { %v1429_v29 = vmul.f32 0.5, %v1428_v28 }
 0x24f   :  { %v1430_v30 = vsub.f32 %v1421_v20, %v1429_v29 }
 0x251   :  { %v1431_v31 = vmul.f32 %v1430_v30, %v1430_v30 }
 0x253   :  { %v1432_v33 = vsel %vm702_vm5, %v1431_v31, 0.0 }
 0x254   :  { %v1433_v34 = vrot.slane %v1432_v33, 4 }
 0x256   :  { %v1434_v35 = vadd.f32 %v1433_v34, %v1432_v33 }
 0x258   :  { %v1435_v36 = vrot.slane %v1434_v35, 2 }
 0x25a   :  { %v1436_v37 = vadd.f32 %v1435_v36, %v1434_v35 }
 0x25c   :  { %v1437_v39 = vrot.slane %v1436_v37, 1 }
 0x25e   :  { %v1438_v40 = vadd.f32 %v1437_v39, %v1436_v37 }
 0x260   :  { %v1439_v41 = vmul.f32 0.5, %v1438_v40 }
 0x262   :  { %v1440_v42 = vadd.f32 1e-05, %v1439_v41 }
 0x264   :  { %1872 = vrsqrt.f32 %v1440_v42 }
 0x26e   :  { %v1873_v43 = vpop.eup %1872 }
 0x26f   :  { %v1442_v45 = vmul.f32 %v1873_v43, %v1430_v30 }
 0x271   :  { %v1450_v47 = vmul.f32 %v1631_v44, %v1442_v45 }
 0x273   :  { %v1458_v48 = vadd.f32 %v1632_v46, %v1450_v47 }
 0x275   :  { %v1466_v49 = vrot.slane %v1458_v48, %v2149_v63 }
 0x277   :  { %v1467_v50 = vcombine.high %v1466_v49, %v1466_v49  ;;  %v1474_v51 = vrot.slane %v1466_v49, %v2149_v63 }
 0x279   :  { %v1481_v52 = vrot.slane %v1467_v50, %v2149_v63  ;;  %v1484_v53 = vadd.f32 %v1474_v51, %v1962_v32 }
 0x27b   :  { %v1485_v0 = vadd.f32 %v1481_v52, %v1971_v38 }
 0x27d   :  { %v1488_v54 = vcombine.low %v1484_v53, %v1485_v0 }
 0x27f   :  { %v1495_v55 = vrot.slane %v1488_v54, %v2149_v63 }
 0x281   :  { %v1502_v56 = vrot.slane %v1495_v55, %v2149_v63 }
 0x283   :  { %1504 = vst.msk [vmem:[%s2212_s9] sm:$0x3] %vm702_vm5, %v1502_v56 }

</bundles_post_ra>
